<compile_context>
chip_gen: v7x
topology: tpu7x:2x2x1
jax: 0.10.0
libtpu: 0.0.40
codegen_flags: <defaults>
</compile_context>

<pallas_src>
import functools

import jax
import jax.numpy as jnp
from jax.experimental import pallas as pl
from jax.experimental.pallas import tpu as pltpu


# ----------------- fused Conv2d + MaxPool2d + ReLU + BN kernel -------------- #

def _conv_pool_bn_kernel(xe_ref, xo_ref, w_ref, b_ref, sc_ref, sh_ref, o_ref, *, k):
    """One image per grid step.

    xe_ref / xo_ref: (Hp, Cpad, Wh)  even / odd padded-input columns (bf16).
    w_ref:           (Cout, k*k*Cpad) flattened conv weight, index order (dy, dx, ci).
    b/sc/sh:         (Cout, 1) conv bias / folded BN scale / folded BN shift (f32).
    o_ref:           (Po, Cout, Qo)  pooled block output (bf16).
    """
    po, cout, q = o_ref.shape
    cpad = xe_ref.shape[1]
    kc = k * cpad

    # Hoisted once: resident weights / per-channel constants.
    w_all = w_ref[...]
    w_taps = [w_all[:, dy * kc:(dy + 1) * kc] for dy in range(k)]   # (Cout, k*Cpad)
    bias = b_ref[...]
    scale = sc_ref[...]
    shift = sh_ref[...]

    def body(pr, carry):
        y0 = 2 * pr
        # k+1 padded-input rows cover both conv rows of this 2x2 pool window.
        rows_e = [xe_ref[y0 + d] for d in range(k + 1)]   # (Cpad, Wh) bf16
        rows_o = [xo_ref[y0 + d] for d in range(k + 1)]
        accs = []
        for s in range(2):            # conv-row parity inside the pool window
            for cp in range(2):       # conv-col parity inside the pool window
                acc = None
                for dy in range(k):
                    pieces = []
                    for dx in range(k):
                        sidx = cp + dx
                        src = rows_e if sidx % 2 == 0 else rows_o
                        t = sidx // 2
                        pieces.append(src[s + dy][:, t:t + q])
                    rhs = jnp.concatenate(pieces, axis=0)             # (k*Cpad, Qo)
                    part = jnp.dot(w_taps[dy], rhs,
                                   preferred_element_type=jnp.float32)  # (Cout, Qo)
                    acc = part if acc is None else acc + part
                accs.append(acc)
        m = jnp.maximum(jnp.maximum(accs[0], accs[1]),
                        jnp.maximum(accs[2], accs[3]))    # MaxPool2d(2, 2)
        m = jnp.maximum(m + bias, 0.0)                    # conv bias + ReLU
        m = m * scale + shift                             # BatchNorm2d (eval)
        # TODO(synk): Dropout(p=0.2) is identity in eval mode.
        o_ref[pr] = m.astype(o_ref.dtype)
        return carry

    jax.lax.fori_loop(0, po, body, 0)


def conv_block(x, w_mat, b, bn_scale, bn_shift, *, k, pad, cpad):
    """x: (N, H, C, W) activation.  Returns pooled output (N, Po, Cout, Qo) bf16."""
    N, H, C, W = x.shape
    if C < cpad:                                   # zero-pad channels (math no-op)
        x = jnp.pad(x, ((0, 0), (0, 0), (0, cpad - C), (0, 0)))
    xp = jnp.pad(x, ((0, 0), (pad, pad), (0, 0), (pad, pad)))   # conv zero padding
    Hp, Wp = H + 2 * pad, W + 2 * pad
    assert Wp % 2 == 0
    xe = xp[..., 0::2].astype(jnp.bfloat16)        # even input columns
    xo = xp[..., 1::2].astype(jnp.bfloat16)        # odd  input columns
    Wh = Wp // 2
    Ho, Wo = Hp - k + 1, Wp - k + 1
    Po, Qo = Ho // 2, Wo // 2                      # MaxPool2d floor semantics
    Cout = w_mat.shape[0]

    return pl.pallas_call(
        functools.partial(_conv_pool_bn_kernel, k=k),
        out_shape=jax.ShapeDtypeStruct((N, Po, Cout, Qo), jnp.bfloat16),
        grid=(N,),
        in_specs=[
            pl.BlockSpec((None, Hp, cpad, Wh), lambda n: (n, 0, 0, 0)),
            pl.BlockSpec((None, Hp, cpad, Wh), lambda n: (n, 0, 0, 0)),
            pl.BlockSpec((Cout, k * k * cpad), lambda n: (0, 0)),
            pl.BlockSpec((Cout, 1), lambda n: (0, 0)),
            pl.BlockSpec((Cout, 1), lambda n: (0, 0)),
            pl.BlockSpec((Cout, 1), lambda n: (0, 0)),
        ],
        out_specs=pl.BlockSpec((None, Po, Cout, Qo), lambda n: (n, 0, 0, 0)),
        compiler_params=pltpu.CompilerParams(dimension_semantics=("parallel",)),
    )(xe, xo, w_mat, b.reshape(Cout, 1),
      bn_scale.reshape(Cout, 1), bn_shift.reshape(Cout, 1))


# --------------------------- fused fc1 + ReLU + fc2 ------------------------- #

def _fc_kernel(x_ref, w1_ref, b1_ref, w2_ref, b2_ref, o_ref):
    h = jnp.dot(x_ref[...], w1_ref[...], preferred_element_type=jnp.float32)
    h = jnp.maximum(h + b1_ref[...], 0.0)                      # fc1 + ReLU
    # TODO(synk): Dropout(p=0.5) is identity in eval mode.
    y = jnp.dot(h.astype(jnp.bfloat16), w2_ref[...],
                preferred_element_type=jnp.float32)
    o_ref[...] = y + b2_ref[...]                               # fc2


def fc_head(flat, fc1_w, fc1_b, fc2_w, fc2_b):
    N, K = flat.shape
    Mp = max(8, ((N + 7) // 8) * 8)
    x = jnp.pad(flat, ((0, Mp - N), (0, 0)))
    hid = fc1_w.shape[1]
    out_dim = fc2_w.shape[1]
    out = pl.pallas_call(
        _fc_kernel,
        out_shape=jax.ShapeDtypeStruct((Mp, out_dim), jnp.float32),
        grid=(1,),
        in_specs=[
            pl.BlockSpec((Mp, K), lambda i: (0, 0)),
            pl.BlockSpec((K, hid), lambda i: (0, 0)),
            pl.BlockSpec((1, hid), lambda i: (0, 0)),
            pl.BlockSpec((hid, out_dim), lambda i: (0, 0)),
            pl.BlockSpec((1, out_dim), lambda i: (0, 0)),
        ],
        out_specs=pl.BlockSpec((Mp, out_dim), lambda i: (0, 0)),
    )(x, fc1_w, fc1_b.reshape(1, hid), fc2_w, fc2_b.reshape(1, out_dim))
    return out[:N]


# --------------------------------- params ----------------------------------- #

def init_params(key):
    ks = jax.random.split(key, 16)

    def bn_fold(k1, k2, k3, k4, c):
        gamma = 1.0 + 0.1 * jax.random.normal(k1, (c,))
        beta = 0.1 * jax.random.normal(k2, (c,))
        mean = 0.1 * jax.random.normal(k3, (c,))
        var = jax.random.uniform(k4, (c,), minval=0.5, maxval=1.5)
        scale = gamma / jnp.sqrt(var + 1e-5)
        shift = beta - mean * scale
        return scale.astype(jnp.float32), shift.astype(jnp.float32)

    def conv_w(kk, shape, scl, cpad):
        w = scl * jax.random.normal(kk, shape)            # (kh, kw, cin, cout)
        kh, kw, cin, cout = shape
        if cin < cpad:
            w = jnp.pad(w, ((0, 0), (0, 0), (0, cpad - cin), (0, 0)))
        # Flatten with contraction index order (dy, dx, ci) -> (cout, kh*kw*cpad).
        return jnp.transpose(w, (3, 0, 1, 2)).reshape(cout, kh * kw * cpad).astype(jnp.bfloat16)

    p = {}
    # block: Conv2d(3, 32, k=3, p=1)   (Cin zero-padded 3 -> 16 for layout)
    p["w1"] = conv_w(ks[0], (3, 3, 3, 32), 0.1, 16)
    p["b1"] = (0.1 * jax.random.normal(ks[1], (32,))).astype(jnp.float32)
    p["bn1_scale"], p["bn1_shift"] = bn_fold(ks[2], ks[3], ks[4], ks[5], 32)
    # block2: Conv2d(32, 32, k=5, p=1) (shared across the 4 applications)
    p["w2"] = conv_w(ks[6], (5, 5, 32, 32), 0.05, 32)
    p["b2"] = (0.1 * jax.random.normal(ks[7], (32,))).astype(jnp.float32)
    p["bn2_scale"], p["bn2_shift"] = bn_fold(ks[8], ks[9], ks[10], ks[11], 32)
    # fc1: Linear(800, 512); fc2: Linear(512, 2) — stored transposed (in, out).
    p["fc1_w"] = (0.03 * jax.random.normal(ks[12], (800, 512))).astype(jnp.bfloat16)
    p["fc1_b"] = (0.1 * jax.random.normal(ks[13], (512,))).astype(jnp.float32)
    p["fc2_w"] = (0.03 * jax.random.normal(ks[14], (512, 2))).astype(jnp.bfloat16)
    p["fc2_b"] = (0.1 * jax.random.normal(ks[15], (2,))).astype(jnp.float32)
    return p


# --------------------------------- forward ---------------------------------- #

@jax.jit
def net_forward(x_nchw, params):
    # NCHW (PyTorch) -> (N, H, C, W): H-major rows, channels mid, W on lanes.
    x = jnp.transpose(x_nchw, (0, 2, 1, 3)).astype(jnp.float32)
    out = conv_block(x, params["w1"], params["b1"],
                     params["bn1_scale"], params["bn1_shift"],
                     k=3, pad=1, cpad=16)
    for _ in range(4):   # forward() applies self.block2 four times (shared weights)
        out = conv_block(out, params["w2"], params["b2"],
                         params["bn2_scale"], params["bn2_shift"],
                         k=5, pad=1, cpad=32)
    N = out.shape[0]
    # Match PyTorch's NCHW .view(N, -1) flatten order (C, H, W).
    flat = jnp.transpose(out, (0, 2, 1, 3)).reshape(N, -1).astype(jnp.bfloat16)
    return fc_head(flat, params["fc1_w"], params["fc1_b"],
                   params["fc2_w"], params["fc2_b"])


if __name__ == "__main__":
    key = jax.random.PRNGKey(0)
    pkey, xkey = jax.random.split(key)
    params = init_params(pkey)
    # 220x220 is the smallest spatial size consistent with fc1 = Linear(32*5*5, 512):
    # 220 -> 110 (block) -> 54 -> 26 -> 12 -> 5 (four applications of block2).
    x = jax.random.normal(xkey, (2, 3, 220, 220), dtype=jnp.float32)
    logits = net_forward(x, params)
    jax.block_until_ready(logits)
    assert logits.shape == (2, 2), logits.shape
    assert bool(jnp.all(jnp.isfinite(logits)))
    print("KERNEL_OK")
</pallas_src>

<mosaic_0001>
module attributes {stable_mosaic.version = 11 : i64} {
  func.func @_conv_pool_bn_kernel(%arg0: i32, %arg1: memref<1x222x16x111xbf16, #tpu.memory_space<vmem>>, %arg2: memref<1x222x16x111xbf16, #tpu.memory_space<vmem>>, %arg3: memref<32x144xbf16, #tpu.memory_space<vmem>>, %arg4: memref<32x1xf32, #tpu.memory_space<vmem>>, %arg5: memref<32x1xf32, #tpu.memory_space<vmem>>, %arg6: memref<32x1xf32, #tpu.memory_space<vmem>>, %arg7: memref<1x110x32x110xbf16, #tpu.memory_space<vmem>>) attributes {dimension_semantics = [#tpu.dimension_semantics<parallel>], iteration_bounds = array<i64: 2>, scalar_prefetch = 0 : i64, scratch_operands = 0 : i64, tpu.core_type = #tpu.core_type<tc>, window_params = [{transform_indices = @transform_0, window_bounds = array<i64: 1, 222, 16, 111>}, {transform_indices = @transform_1, window_bounds = array<i64: 1, 222, 16, 111>}, {pipeline_mode = #tpu.pipeline_mode<synchronous>, transform_indices = @transform_2, window_bounds = array<i64: 32, 144>}, {pipeline_mode = #tpu.pipeline_mode<synchronous>, transform_indices = @transform_3, window_bounds = array<i64: 32, 1>}, {pipeline_mode = #tpu.pipeline_mode<synchronous>, transform_indices = @transform_4, window_bounds = array<i64: 32, 1>}, {pipeline_mode = #tpu.pipeline_mode<synchronous>, transform_indices = @transform_5, window_bounds = array<i64: 32, 1>}, {transform_indices = @transform_6, window_bounds = array<i64: 1, 110, 32, 110>}]} {
    %c0 = arith.constant 0 : index
    %c0_0 = arith.constant 0 : index
    %0 = vector.load %arg3[%c0, %c0_0] : memref<32x144xbf16, #tpu.memory_space<vmem>>, vector<32x144xbf16>
    %1 = vector.extract_strided_slice %0 {offsets = [0, 0], sizes = [32, 48], strides = [1, 1]} : vector<32x144xbf16> to vector<32x48xbf16>
    %2 = vector.extract_strided_slice %0 {offsets = [0, 48], sizes = [32, 48], strides = [1, 1]} : vector<32x144xbf16> to vector<32x48xbf16>
    %3 = vector.extract_strided_slice %0 {offsets = [0, 96], sizes = [32, 48], strides = [1, 1]} : vector<32x144xbf16> to vector<32x48xbf16>
    %c0_1 = arith.constant 0 : index
    %c0_2 = arith.constant 0 : index
    %4 = vector.load %arg4[%c0_1, %c0_2] : memref<32x1xf32, #tpu.memory_space<vmem>>, vector<32x1xf32>
    %c0_3 = arith.constant 0 : index
    %c0_4 = arith.constant 0 : index
    %5 = vector.load %arg5[%c0_3, %c0_4] : memref<32x1xf32, #tpu.memory_space<vmem>>, vector<32x1xf32>
    %c0_5 = arith.constant 0 : index
    %c0_6 = arith.constant 0 : index
    %6 = vector.load %arg6[%c0_5, %c0_6] : memref<32x1xf32, #tpu.memory_space<vmem>>, vector<32x1xf32>
    %c0_i32 = arith.constant 0 : i32
    %c110_i32 = arith.constant 110 : i32
    %7 = arith.addi %c0_i32, %c110_i32 : i32
    %c1_i32 = arith.constant 1 : i32
    scf.for %arg8 = %c0_i32 to %7 step %c1_i32  : i32 {
      %c2_i32 = arith.constant 2 : i32
      %8 = arith.muli %c2_i32, %arg8 : i32
      %c0_i32_8 = arith.constant 0 : i32
      %9 = arith.addi %8, %c0_i32_8 : i32
      %c0_9 = arith.constant 0 : index
      %10 = arith.index_cast %9 : i32 to index
      %c0_10 = arith.constant 0 : index
      %c0_11 = arith.constant 0 : index
      %11 = vector.load %arg1[%c0_9, %10, %c0_10, %c0_11] : memref<1x222x16x111xbf16, #tpu.memory_space<vmem>>, vector<1x1x16x111xbf16>
      %12 = vector.shape_cast %11 : vector<1x1x16x111xbf16> to vector<16x111xbf16>
      %c1_i32_12 = arith.constant 1 : i32
      %13 = arith.addi %8, %c1_i32_12 : i32
      %c0_13 = arith.constant 0 : index
      %14 = arith.index_cast %13 : i32 to index
      %c0_14 = arith.constant 0 : index
      %c0_15 = arith.constant 0 : index
      %15 = vector.load %arg1[%c0_13, %14, %c0_14, %c0_15] : memref<1x222x16x111xbf16, #tpu.memory_space<vmem>>, vector<1x1x16x111xbf16>
      %16 = vector.shape_cast %15 : vector<1x1x16x111xbf16> to vector<16x111xbf16>
      %c2_i32_16 = arith.constant 2 : i32
      %17 = arith.addi %8, %c2_i32_16 : i32
      %c0_17 = arith.constant 0 : index
      %18 = arith.index_cast %17 : i32 to index
      %c0_18 = arith.constant 0 : index
      %c0_19 = arith.constant 0 : index
      %19 = vector.load %arg1[%c0_17, %18, %c0_18, %c0_19] : memref<1x222x16x111xbf16, #tpu.memory_space<vmem>>, vector<1x1x16x111xbf16>
      %20 = vector.shape_cast %19 : vector<1x1x16x111xbf16> to vector<16x111xbf16>
      %c3_i32 = arith.constant 3 : i32
      %21 = arith.addi %8, %c3_i32 : i32
      %c0_20 = arith.constant 0 : index
      %22 = arith.index_cast %21 : i32 to index
      %c0_21 = arith.constant 0 : index
      %c0_22 = arith.constant 0 : index
      %23 = vector.load %arg1[%c0_20, %22, %c0_21, %c0_22] : memref<1x222x16x111xbf16, #tpu.memory_space<vmem>>, vector<1x1x16x111xbf16>
      %24 = vector.shape_cast %23 : vector<1x1x16x111xbf16> to vector<16x111xbf16>
      %c0_i32_23 = arith.constant 0 : i32
      %25 = arith.addi %8, %c0_i32_23 : i32
      %c0_24 = arith.constant 0 : index
      %26 = arith.index_cast %25 : i32 to index
      %c0_25 = arith.constant 0 : index
      %c0_26 = arith.constant 0 : index
      %27 = vector.load %arg2[%c0_24, %26, %c0_25, %c0_26] : memref<1x222x16x111xbf16, #tpu.memory_space<vmem>>, vector<1x1x16x111xbf16>
      %28 = vector.shape_cast %27 : vector<1x1x16x111xbf16> to vector<16x111xbf16>
      %c1_i32_27 = arith.constant 1 : i32
      %29 = arith.addi %8, %c1_i32_27 : i32
      %c0_28 = arith.constant 0 : index
      %30 = arith.index_cast %29 : i32 to index
      %c0_29 = arith.constant 0 : index
      %c0_30 = arith.constant 0 : index
      %31 = vector.load %arg2[%c0_28, %30, %c0_29, %c0_30] : memref<1x222x16x111xbf16, #tpu.memory_space<vmem>>, vector<1x1x16x111xbf16>
      %32 = vector.shape_cast %31 : vector<1x1x16x111xbf16> to vector<16x111xbf16>
      %c2_i32_31 = arith.constant 2 : i32
      %33 = arith.addi %8, %c2_i32_31 : i32
      %c0_32 = arith.constant 0 : index
      %34 = arith.index_cast %33 : i32 to index
      %c0_33 = arith.constant 0 : index
      %c0_34 = arith.constant 0 : index
      %35 = vector.load %arg2[%c0_32, %34, %c0_33, %c0_34] : memref<1x222x16x111xbf16, #tpu.memory_space<vmem>>, vector<1x1x16x111xbf16>
      %36 = vector.shape_cast %35 : vector<1x1x16x111xbf16> to vector<16x111xbf16>
      %c3_i32_35 = arith.constant 3 : i32
      %37 = arith.addi %8, %c3_i32_35 : i32
      %c0_36 = arith.constant 0 : index
      %38 = arith.index_cast %37 : i32 to index
      %c0_37 = arith.constant 0 : index
      %c0_38 = arith.constant 0 : index
      %39 = vector.load %arg2[%c0_36, %38, %c0_37, %c0_38] : memref<1x222x16x111xbf16, #tpu.memory_space<vmem>>, vector<1x1x16x111xbf16>
      %40 = vector.shape_cast %39 : vector<1x1x16x111xbf16> to vector<16x111xbf16>
      %41 = vector.extract_strided_slice %12 {offsets = [0, 0], sizes = [16, 110], strides = [1, 1]} : vector<16x111xbf16> to vector<16x110xbf16>
      %42 = vector.extract_strided_slice %28 {offsets = [0, 0], sizes = [16, 110], strides = [1, 1]} : vector<16x111xbf16> to vector<16x110xbf16>
      %43 = vector.extract_strided_slice %12 {offsets = [0, 1], sizes = [16, 110], strides = [1, 1]} : vector<16x111xbf16> to vector<16x110xbf16>
      %44 = tpu.concatenate %41, %42, %43 in 0 : vector<16x110xbf16>, vector<16x110xbf16>, vector<16x110xbf16> -> vector<48x110xbf16>
      %cst = arith.constant dense<0.000000e+00> : vector<32x110xf32>
      %45 = tpu.matmul %1, %44, %cst {dimension_numbers = #tpu.dot_dimension_numbers<[1], [0], [0], [1], [0, 0, 1, 1], [], []>} : vector<32x48xbf16>, vector<48x110xbf16>, vector<32x110xf32> -> vector<32x110xf32>
      %46 = vector.extract_strided_slice %16 {offsets = [0, 0], sizes = [16, 110], strides = [1, 1]} : vector<16x111xbf16> to vector<16x110xbf16>
      %47 = vector.extract_strided_slice %32 {offsets = [0, 0], sizes = [16, 110], strides = [1, 1]} : vector<16x111xbf16> to vector<16x110xbf16>
      %48 = vector.extract_strided_slice %16 {offsets = [0, 1], sizes = [16, 110], strides = [1, 1]} : vector<16x111xbf16> to vector<16x110xbf16>
      %49 = tpu.concatenate %46, %47, %48 in 0 : vector<16x110xbf16>, vector<16x110xbf16>, vector<16x110xbf16> -> vector<48x110xbf16>
      %cst_39 = arith.constant dense<0.000000e+00> : vector<32x110xf32>
      %50 = tpu.matmul %2, %49, %cst_39 {dimension_numbers = #tpu.dot_dimension_numbers<[1], [0], [0], [1], [0, 0, 1, 1], [], []>} : vector<32x48xbf16>, vector<48x110xbf16>, vector<32x110xf32> -> vector<32x110xf32>
      %51 = arith.addf %45, %50 : vector<32x110xf32>
      %52 = vector.extract_strided_slice %20 {offsets = [0, 0], sizes = [16, 110], strides = [1, 1]} : vector<16x111xbf16> to vector<16x110xbf16>
      %53 = vector.extract_strided_slice %36 {offsets = [0, 0], sizes = [16, 110], strides = [1, 1]} : vector<16x111xbf16> to vector<16x110xbf16>
      %54 = vector.extract_strided_slice %20 {offsets = [0, 1], sizes = [16, 110], strides = [1, 1]} : vector<16x111xbf16> to vector<16x110xbf16>
      %55 = tpu.concatenate %52, %53, %54 in 0 : vector<16x110xbf16>, vector<16x110xbf16>, vector<16x110xbf16> -> vector<48x110xbf16>
      %cst_40 = arith.constant dense<0.000000e+00> : vector<32x110xf32>
      %56 = tpu.matmul %3, %55, %cst_40 {dimension_numbers = #tpu.dot_dimension_numbers<[1], [0], [0], [1], [0, 0, 1, 1], [], []>} : vector<32x48xbf16>, vector<48x110xbf16>, vector<32x110xf32> -> vector<32x110xf32>
      %57 = arith.addf %51, %56 : vector<32x110xf32>
      %58 = vector.extract_strided_slice %28 {offsets = [0, 0], sizes = [16, 110], strides = [1, 1]} : vector<16x111xbf16> to vector<16x110xbf16>
      %59 = vector.extract_strided_slice %12 {offsets = [0, 1], sizes = [16, 110], strides = [1, 1]} : vector<16x111xbf16> to vector<16x110xbf16>
      %60 = vector.extract_strided_slice %28 {offsets = [0, 1], sizes = [16, 110], strides = [1, 1]} : vector<16x111xbf16> to vector<16x110xbf16>
      %61 = tpu.concatenate %58, %59, %60 in 0 : vector<16x110xbf16>, vector<16x110xbf16>, vector<16x110xbf16> -> vector<48x110xbf16>
      %cst_41 = arith.constant dense<0.000000e+00> : vector<32x110xf32>
      %62 = tpu.matmul %1, %61, %cst_41 {dimension_numbers = #tpu.dot_dimension_numbers<[1], [0], [0], [1], [0, 0, 1, 1], [], []>} : vector<32x48xbf16>, vector<48x110xbf16>, vector<32x110xf32> -> vector<32x110xf32>
      %63 = vector.extract_strided_slice %32 {offsets = [0, 0], sizes = [16, 110], strides = [1, 1]} : vector<16x111xbf16> to vector<16x110xbf16>
      %64 = vector.extract_strided_slice %16 {offsets = [0, 1], sizes = [16, 110], strides = [1, 1]} : vector<16x111xbf16> to vector<16x110xbf16>
      %65 = vector.extract_strided_slice %32 {offsets = [0, 1], sizes = [16, 110], strides = [1, 1]} : vector<16x111xbf16> to vector<16x110xbf16>
      %66 = tpu.concatenate %63, %64, %65 in 0 : vector<16x110xbf16>, vector<16x110xbf16>, vector<16x110xbf16> -> vector<48x110xbf16>
      %cst_42 = arith.constant dense<0.000000e+00> : vector<32x110xf32>
      %67 = tpu.matmul %2, %66, %cst_42 {dimension_numbers = #tpu.dot_dimension_numbers<[1], [0], [0], [1], [0, 0, 1, 1], [], []>} : vector<32x48xbf16>, vector<48x110xbf16>, vector<32x110xf32> -> vector<32x110xf32>
      %68 = arith.addf %62, %67 : vector<32x110xf32>
      %69 = vector.extract_strided_slice %36 {offsets = [0, 0], sizes = [16, 110], strides = [1, 1]} : vector<16x111xbf16> to vector<16x110xbf16>
      %70 = vector.extract_strided_slice %20 {offsets = [0, 1], sizes = [16, 110], strides = [1, 1]} : vector<16x111xbf16> to vector<16x110xbf16>
      %71 = vector.extract_strided_slice %36 {offsets = [0, 1], sizes = [16, 110], strides = [1, 1]} : vector<16x111xbf16> to vector<16x110xbf16>
      %72 = tpu.concatenate %69, %70, %71 in 0 : vector<16x110xbf16>, vector<16x110xbf16>, vector<16x110xbf16> -> vector<48x110xbf16>
      %cst_43 = arith.constant dense<0.000000e+00> : vector<32x110xf32>
      %73 = tpu.matmul %3, %72, %cst_43 {dimension_numbers = #tpu.dot_dimension_numbers<[1], [0], [0], [1], [0, 0, 1, 1], [], []>} : vector<32x48xbf16>, vector<48x110xbf16>, vector<32x110xf32> -> vector<32x110xf32>
      %74 = arith.addf %68, %73 : vector<32x110xf32>
      %75 = vector.extract_strided_slice %16 {offsets = [0, 0], sizes = [16, 110], strides = [1, 1]} : vector<16x111xbf16> to vector<16x110xbf16>
      %76 = vector.extract_strided_slice %32 {offsets = [0, 0], sizes = [16, 110], strides = [1, 1]} : vector<16x111xbf16> to vector<16x110xbf16>
      %77 = vector.extract_strided_slice %16 {offsets = [0, 1], sizes = [16, 110], strides = [1, 1]} : vector<16x111xbf16> to vector<16x110xbf16>
      %78 = tpu.concatenate %75, %76, %77 in 0 : vector<16x110xbf16>, vector<16x110xbf16>, vector<16x110xbf16> -> vector<48x110xbf16>
      %cst_44 = arith.constant dense<0.000000e+00> : vector<32x110xf32>
      %79 = tpu.matmul %1, %78, %cst_44 {dimension_numbers = #tpu.dot_dimension_numbers<[1], [0], [0], [1], [0, 0, 1, 1], [], []>} : vector<32x48xbf16>, vector<48x110xbf16>, vector<32x110xf32> -> vector<32x110xf32>
      %80 = vector.extract_strided_slice %20 {offsets = [0, 0], sizes = [16, 110], strides = [1, 1]} : vector<16x111xbf16> to vector<16x110xbf16>
      %81 = vector.extract_strided_slice %36 {offsets = [0, 0], sizes = [16, 110], strides = [1, 1]} : vector<16x111xbf16> to vector<16x110xbf16>
      %82 = vector.extract_strided_slice %20 {offsets = [0, 1], sizes = [16, 110], strides = [1, 1]} : vector<16x111xbf16> to vector<16x110xbf16>
      %83 = tpu.concatenate %80, %81, %82 in 0 : vector<16x110xbf16>, vector<16x110xbf16>, vector<16x110xbf16> -> vector<48x110xbf16>
      %cst_45 = arith.constant dense<0.000000e+00> : vector<32x110xf32>
      %84 = tpu.matmul %2, %83, %cst_45 {dimension_numbers = #tpu.dot_dimension_numbers<[1], [0], [0], [1], [0, 0, 1, 1], [], []>} : vector<32x48xbf16>, vector<48x110xbf16>, vector<32x110xf32> -> vector<32x110xf32>
      %85 = arith.addf %79, %84 : vector<32x110xf32>
      %86 = vector.extract_strided_slice %24 {offsets = [0, 0], sizes = [16, 110], strides = [1, 1]} : vector<16x111xbf16> to vector<16x110xbf16>
      %87 = vector.extract_strided_slice %40 {offsets = [0, 0], sizes = [16, 110], strides = [1, 1]} : vector<16x111xbf16> to vector<16x110xbf16>
      %88 = vector.extract_strided_slice %24 {offsets = [0, 1], sizes = [16, 110], strides = [1, 1]} : vector<16x111xbf16> to vector<16x110xbf16>
      %89 = tpu.concatenate %86, %87, %88 in 0 : vector<16x110xbf16>, vector<16x110xbf16>, vector<16x110xbf16> -> vector<48x110xbf16>
      %cst_46 = arith.constant dense<0.000000e+00> : vector<32x110xf32>
      %90 = tpu.matmul %3, %89, %cst_46 {dimension_numbers = #tpu.dot_dimension_numbers<[1], [0], [0], [1], [0, 0, 1, 1], [], []>} : vector<32x48xbf16>, vector<48x110xbf16>, vector<32x110xf32> -> vector<32x110xf32>
      %91 = arith.addf %85, %90 : vector<32x110xf32>
      %92 = vector.extract_strided_slice %32 {offsets = [0, 0], sizes = [16, 110], strides = [1, 1]} : vector<16x111xbf16> to vector<16x110xbf16>
      %93 = vector.extract_strided_slice %16 {offsets = [0, 1], sizes = [16, 110], strides = [1, 1]} : vector<16x111xbf16> to vector<16x110xbf16>
      %94 = vector.extract_strided_slice %32 {offsets = [0, 1], sizes = [16, 110], strides = [1, 1]} : vector<16x111xbf16> to vector<16x110xbf16>
      %95 = tpu.concatenate %92, %93, %94 in 0 : vector<16x110xbf16>, vector<16x110xbf16>, vector<16x110xbf16> -> vector<48x110xbf16>
      %cst_47 = arith.constant dense<0.000000e+00> : vector<32x110xf32>
      %96 = tpu.matmul %1, %95, %cst_47 {dimension_numbers = #tpu.dot_dimension_numbers<[1], [0], [0], [1], [0, 0, 1, 1], [], []>} : vector<32x48xbf16>, vector<48x110xbf16>, vector<32x110xf32> -> vector<32x110xf32>
      %97 = vector.extract_strided_slice %36 {offsets = [0, 0], sizes = [16, 110], strides = [1, 1]} : vector<16x111xbf16> to vector<16x110xbf16>
      %98 = vector.extract_strided_slice %20 {offsets = [0, 1], sizes = [16, 110], strides = [1, 1]} : vector<16x111xbf16> to vector<16x110xbf16>
      %99 = vector.extract_strided_slice %36 {offsets = [0, 1], sizes = [16, 110], strides = [1, 1]} : vector<16x111xbf16> to vector<16x110xbf16>
      %100 = tpu.concatenate %97, %98, %99 in 0 : vector<16x110xbf16>, vector<16x110xbf16>, vector<16x110xbf16> -> vector<48x110xbf16>
      %cst_48 = arith.constant dense<0.000000e+00> : vector<32x110xf32>
      %101 = tpu.matmul %2, %100, %cst_48 {dimension_numbers = #tpu.dot_dimension_numbers<[1], [0], [0], [1], [0, 0, 1, 1], [], []>} : vector<32x48xbf16>, vector<48x110xbf16>, vector<32x110xf32> -> vector<32x110xf32>
      %102 = arith.addf %96, %101 : vector<32x110xf32>
      %103 = vector.extract_strided_slice %40 {offsets = [0, 0], sizes = [16, 110], strides = [1, 1]} : vector<16x111xbf16> to vector<16x110xbf16>
      %104 = vector.extract_strided_slice %24 {offsets = [0, 1], sizes = [16, 110], strides = [1, 1]} : vector<16x111xbf16> to vector<16x110xbf16>
      %105 = vector.extract_strided_slice %40 {offsets = [0, 1], sizes = [16, 110], strides = [1, 1]} : vector<16x111xbf16> to vector<16x110xbf16>
      %106 = tpu.concatenate %103, %104, %105 in 0 : vector<16x110xbf16>, vector<16x110xbf16>, vector<16x110xbf16> -> vector<48x110xbf16>
      %cst_49 = arith.constant dense<0.000000e+00> : vector<32x110xf32>
      %107 = tpu.matmul %3, %106, %cst_49 {dimension_numbers = #tpu.dot_dimension_numbers<[1], [0], [0], [1], [0, 0, 1, 1], [], []>} : vector<32x48xbf16>, vector<48x110xbf16>, vector<32x110xf32> -> vector<32x110xf32>
      %108 = arith.addf %102, %107 : vector<32x110xf32>
      %109 = arith.maximumf %57, %74 : vector<32x110xf32>
      %110 = arith.maximumf %91, %108 : vector<32x110xf32>
      %111 = arith.maximumf %109, %110 : vector<32x110xf32>
      %112 = vector.broadcast %4 : vector<32x1xf32> to vector<32x110xf32>
      %113 = arith.addf %111, %112 : vector<32x110xf32>
      %cst_50 = arith.constant 0.000000e+00 : f32
      %114 = vector.broadcast %cst_50 : f32 to vector<32x110xf32>
      %115 = arith.maximumf %113, %114 : vector<32x110xf32>
      %116 = vector.broadcast %5 : vector<32x1xf32> to vector<32x110xf32>
      %117 = arith.mulf %115, %116 : vector<32x110xf32>
      %118 = vector.broadcast %6 : vector<32x1xf32> to vector<32x110xf32>
      %119 = arith.addf %117, %118 : vector<32x110xf32>
      %120 = arith.truncf %119 : vector<32x110xf32> to vector<32x110xbf16>
      %c0_51 = arith.constant 0 : index
      %121 = arith.index_cast %arg8 : i32 to index
      %c0_52 = arith.constant 0 : index
      %c0_53 = arith.constant 0 : index
      %122 = vector.load %arg7[%c0_51, %121, %c0_52, %c0_53] : memref<1x110x32x110xbf16, #tpu.memory_space<vmem>>, vector<1x1x32x110xbf16>
      %123 = vector.shape_cast %122 : vector<1x1x32x110xbf16> to vector<32x110xbf16>
      %124 = vector.shape_cast %120 : vector<32x110xbf16> to vector<1x1x32x110xbf16>
      tpu.vector_store %arg7[%c0_51, %121, %c0_52, %c0_53], %124 {strides = array<i32>} : memref<1x110x32x110xbf16, #tpu.memory_space<vmem>>, vector<1x1x32x110xbf16>,
    }
    %c110_i32_7 = arith.constant 110 : i32
    return
  }
  func.func @transform_0(%arg0: i32) -> (i32, i32, i32, i32) {
    %c0_i32 = arith.constant 0 : i32
    %c0_i32_0 = arith.constant 0 : i32
    %c0_i32_1 = arith.constant 0 : i32
    %c0_i32_2 = arith.constant 0 : i32
    return %arg0, %c0_i32, %c0_i32_0, %c0_i32_1 : i32, i32, i32, i32
  }
  func.func @transform_1(%arg0: i32) -> (i32, i32, i32, i32) {
    %c0_i32 = arith.constant 0 : i32
    %c0_i32_0 = arith.constant 0 : i32
    %c0_i32_1 = arith.constant 0 : i32
    %c0_i32_2 = arith.constant 0 : i32
    return %arg0, %c0_i32, %c0_i32_0, %c0_i32_1 : i32, i32, i32, i32
  }
  func.func @transform_2(%arg0: i32) -> (i32, i32) {
    %c0_i32 = arith.constant 0 : i32
    %c0_i32_0 = arith.constant 0 : i32
    %c0_i32_1 = arith.constant 0 : i32
    return %c0_i32, %c0_i32_0 : i32, i32
  }
  func.func @transform_3(%arg0: i32) -> (i32, i32) {
    %c0_i32 = arith.constant 0 : i32
    %c0_i32_0 = arith.constant 0 : i32
    %c0_i32_1 = arith.constant 0 : i32
    return %c0_i32, %c0_i32_0 : i32, i32
  }
  func.func @transform_4(%arg0: i32) -> (i32, i32) {
    %c0_i32 = arith.constant 0 : i32
    %c0_i32_0 = arith.constant 0 : i32
    %c0_i32_1 = arith.constant 0 : i32
    return %c0_i32, %c0_i32_0 : i32, i32
  }
  func.func @transform_5(%arg0: i32) -> (i32, i32) {
    %c0_i32 = arith.constant 0 : i32
    %c0_i32_0 = arith.constant 0 : i32
    %c0_i32_1 = arith.constant 0 : i32
    return %c0_i32, %c0_i32_0 : i32, i32
  }
  func.func @transform_6(%arg0: i32) -> (i32, i32, i32, i32) {
    %c0_i32 = arith.constant 0 : i32
    %c0_i32_0 = arith.constant 0 : i32
    %c0_i32_1 = arith.constant 0 : i32
    %c0_i32_2 = arith.constant 0 : i32
    return %arg0, %c0_i32, %c0_i32_0, %c0_i32_1 : i32, i32, i32, i32
  }
}

module attributes {stable_mosaic.version = 11 : i64} {
  func.func @_conv_pool_bn_kernel(%arg0: i32, %arg1: memref<1x112x32x56xbf16, #tpu.memory_space<vmem>>, %arg2: memref<1x112x32x56xbf16, #tpu.memory_space<vmem>>, %arg3: memref<32x800xbf16, #tpu.memory_space<vmem>>, %arg4: memref<32x1xf32, #tpu.memory_space<vmem>>, %arg5: memref<32x1xf32, #tpu.memory_space<vmem>>, %arg6: memref<32x1xf32, #tpu.memory_space<vmem>>, %arg7: memref<1x54x32x54xbf16, #tpu.memory_space<vmem>>) attributes {dimension_semantics = [#tpu.dimension_semantics<parallel>], iteration_bounds = array<i64: 2>, scalar_prefetch = 0 : i64, scratch_operands = 0 : i64, tpu.core_type = #tpu.core_type<tc>, window_params = [{transform_indices = @transform_0, window_bounds = array<i64: 1, 112, 32, 56>}, {transform_indices = @transform_1, window_bounds = array<i64: 1, 112, 32, 56>}, {pipeline_mode = #tpu.pipeline_mode<synchronous>, transform_indices = @transform_2, window_bounds = array<i64: 32, 800>}, {pipeline_mode = #tpu.pipeline_mode<synchronous>, transform_indices = @transform_3, window_bounds = array<i64: 32, 1>}, {pipeline_mode = #tpu.pipeline_mode<synchronous>, transform_indices = @transform_4, window_bounds = array<i64: 32, 1>}, {pipeline_mode = #tpu.pipeline_mode<synchronous>, transform_indices = @transform_5, window_bounds = array<i64: 32, 1>}, {transform_indices = @transform_6, window_bounds = array<i64: 1, 54, 32, 54>}]} {
    %c0 = arith.constant 0 : index
    %c0_0 = arith.constant 0 : index
    %0 = vector.load %arg3[%c0, %c0_0] : memref<32x800xbf16, #tpu.memory_space<vmem>>, vector<32x800xbf16>
    %1 = vector.extract_strided_slice %0 {offsets = [0, 0], sizes = [32, 160], strides = [1, 1]} : vector<32x800xbf16> to vector<32x160xbf16>
    %2 = vector.extract_strided_slice %0 {offsets = [0, 160], sizes = [32, 160], strides = [1, 1]} : vector<32x800xbf16> to vector<32x160xbf16>
    %3 = vector.extract_strided_slice %0 {offsets = [0, 320], sizes = [32, 160], strides = [1, 1]} : vector<32x800xbf16> to vector<32x160xbf16>
    %4 = vector.extract_strided_slice %0 {offsets = [0, 480], sizes = [32, 160], strides = [1, 1]} : vector<32x800xbf16> to vector<32x160xbf16>
    %5 = vector.extract_strided_slice %0 {offsets = [0, 640], sizes = [32, 160], strides = [1, 1]} : vector<32x800xbf16> to vector<32x160xbf16>
    %c0_1 = arith.constant 0 : index
    %c0_2 = arith.constant 0 : index
    %6 = vector.load %arg4[%c0_1, %c0_2] : memref<32x1xf32, #tpu.memory_space<vmem>>, vector<32x1xf32>
    %c0_3 = arith.constant 0 : index
    %c0_4 = arith.constant 0 : index
    %7 = vector.load %arg5[%c0_3, %c0_4] : memref<32x1xf32, #tpu.memory_space<vmem>>, vector<32x1xf32>
    %c0_5 = arith.constant 0 : index
    %c0_6 = arith.constant 0 : index
    %8 = vector.load %arg6[%c0_5, %c0_6] : memref<32x1xf32, #tpu.memory_space<vmem>>, vector<32x1xf32>
    %c0_i32 = arith.constant 0 : i32
    %c54_i32 = arith.constant 54 : i32
    %9 = arith.addi %c0_i32, %c54_i32 : i32
    %c1_i32 = arith.constant 1 : i32
    scf.for %arg8 = %c0_i32 to %9 step %c1_i32  : i32 {
      %c2_i32 = arith.constant 2 : i32
      %10 = arith.muli %c2_i32, %arg8 : i32
      %c0_i32_8 = arith.constant 0 : i32
      %11 = arith.addi %10, %c0_i32_8 : i32
      %c0_9 = arith.constant 0 : index
      %12 = arith.index_cast %11 : i32 to index
      %c0_10 = arith.constant 0 : index
      %c0_11 = arith.constant 0 : index
      %13 = vector.load %arg1[%c0_9, %12, %c0_10, %c0_11] : memref<1x112x32x56xbf16, #tpu.memory_space<vmem>>, vector<1x1x32x56xbf16>
      %14 = vector.shape_cast %13 : vector<1x1x32x56xbf16> to vector<32x56xbf16>
      %c1_i32_12 = arith.constant 1 : i32
      %15 = arith.addi %10, %c1_i32_12 : i32
      %c0_13 = arith.constant 0 : index
      %16 = arith.index_cast %15 : i32 to index
      %c0_14 = arith.constant 0 : index
      %c0_15 = arith.constant 0 : index
      %17 = vector.load %arg1[%c0_13, %16, %c0_14, %c0_15] : memref<1x112x32x56xbf16, #tpu.memory_space<vmem>>, vector<1x1x32x56xbf16>
      %18 = vector.shape_cast %17 : vector<1x1x32x56xbf16> to vector<32x56xbf16>
      %c2_i32_16 = arith.constant 2 : i32
      %19 = arith.addi %10, %c2_i32_16 : i32
      %c0_17 = arith.constant 0 : index
      %20 = arith.index_cast %19 : i32 to index
      %c0_18 = arith.constant 0 : index
      %c0_19 = arith.constant 0 : index
      %21 = vector.load %arg1[%c0_17, %20, %c0_18, %c0_19] : memref<1x112x32x56xbf16, #tpu.memory_space<vmem>>, vector<1x1x32x56xbf16>
      %22 = vector.shape_cast %21 : vector<1x1x32x56xbf16> to vector<32x56xbf16>
      %c3_i32 = arith.constant 3 : i32
      %23 = arith.addi %10, %c3_i32 : i32
      %c0_20 = arith.constant 0 : index
      %24 = arith.index_cast %23 : i32 to index
      %c0_21 = arith.constant 0 : index
      %c0_22 = arith.constant 0 : index
      %25 = vector.load %arg1[%c0_20, %24, %c0_21, %c0_22] : memref<1x112x32x56xbf16, #tpu.memory_space<vmem>>, vector<1x1x32x56xbf16>
      %26 = vector.shape_cast %25 : vector<1x1x32x56xbf16> to vector<32x56xbf16>
      %c4_i32 = arith.constant 4 : i32
      %27 = arith.addi %10, %c4_i32 : i32
      %c0_23 = arith.constant 0 : index
      %28 = arith.index_cast %27 : i32 to index
      %c0_24 = arith.constant 0 : index
      %c0_25 = arith.constant 0 : index
      %29 = vector.load %arg1[%c0_23, %28, %c0_24, %c0_25] : memref<1x112x32x56xbf16, #tpu.memory_space<vmem>>, vector<1x1x32x56xbf16>
      %30 = vector.shape_cast %29 : vector<1x1x32x56xbf16> to vector<32x56xbf16>
      %c5_i32 = arith.constant 5 : i32
      %31 = arith.addi %10, %c5_i32 : i32
      %c0_26 = arith.constant 0 : index
      %32 = arith.index_cast %31 : i32 to index
      %c0_27 = arith.constant 0 : index
      %c0_28 = arith.constant 0 : index
      %33 = vector.load %arg1[%c0_26, %32, %c0_27, %c0_28] : memref<1x112x32x56xbf16, #tpu.memory_space<vmem>>, vector<1x1x32x56xbf16>
      %34 = vector.shape_cast %33 : vector<1x1x32x56xbf16> to vector<32x56xbf16>
      %c0_i32_29 = arith.constant 0 : i32
      %35 = arith.addi %10, %c0_i32_29 : i32
      %c0_30 = arith.constant 0 : index
      %36 = arith.index_cast %35 : i32 to index
      %c0_31 = arith.constant 0 : index
      %c0_32 = arith.constant 0 : index
      %37 = vector.load %arg2[%c0_30, %36, %c0_31, %c0_32] : memref<1x112x32x56xbf16, #tpu.memory_space<vmem>>, vector<1x1x32x56xbf16>
      %38 = vector.shape_cast %37 : vector<1x1x32x56xbf16> to vector<32x56xbf16>
      %c1_i32_33 = arith.constant 1 : i32
      %39 = arith.addi %10, %c1_i32_33 : i32
      %c0_34 = arith.constant 0 : index
      %40 = arith.index_cast %39 : i32 to index
      %c0_35 = arith.constant 0 : index
      %c0_36 = arith.constant 0 : index
      %41 = vector.load %arg2[%c0_34, %40, %c0_35, %c0_36] : memref<1x112x32x56xbf16, #tpu.memory_space<vmem>>, vector<1x1x32x56xbf16>
      %42 = vector.shape_cast %41 : vector<1x1x32x56xbf16> to vector<32x56xbf16>
      %c2_i32_37 = arith.constant 2 : i32
      %43 = arith.addi %10, %c2_i32_37 : i32
      %c0_38 = arith.constant 0 : index
      %44 = arith.index_cast %43 : i32 to index
      %c0_39 = arith.constant 0 : index
      %c0_40 = arith.constant 0 : index
      %45 = vector.load %arg2[%c0_38, %44, %c0_39, %c0_40] : memref<1x112x32x56xbf16, #tpu.memory_space<vmem>>, vector<1x1x32x56xbf16>
      %46 = vector.shape_cast %45 : vector<1x1x32x56xbf16> to vector<32x56xbf16>
      %c3_i32_41 = arith.constant 3 : i32
      %47 = arith.addi %10, %c3_i32_41 : i32
      %c0_42 = arith.constant 0 : index
      %48 = arith.index_cast %47 : i32 to index
      %c0_43 = arith.constant 0 : index
      %c0_44 = arith.constant 0 : index
      %49 = vector.load %arg2[%c0_42, %48, %c0_43, %c0_44] : memref<1x112x32x56xbf16, #tpu.memory_space<vmem>>, vector<1x1x32x56xbf16>
      %50 = vector.shape_cast %49 : vector<1x1x32x56xbf16> to vector<32x56xbf16>
      %c4_i32_45 = arith.constant 4 : i32
      %51 = arith.addi %10, %c4_i32_45 : i32
      %c0_46 = arith.constant 0 : index
      %52 = arith.index_cast %51 : i32 to index
      %c0_47 = arith.constant 0 : index
      %c0_48 = arith.constant 0 : index
      %53 = vector.load %arg2[%c0_46, %52, %c0_47, %c0_48] : memref<1x112x32x56xbf16, #tpu.memory_space<vmem>>, vector<1x1x32x56xbf16>
      %54 = vector.shape_cast %53 : vector<1x1x32x56xbf16> to vector<32x56xbf16>
      %c5_i32_49 = arith.constant 5 : i32
      %55 = arith.addi %10, %c5_i32_49 : i32
      %c0_50 = arith.constant 0 : index
      %56 = arith.index_cast %55 : i32 to index
      %c0_51 = arith.constant 0 : index
      %c0_52 = arith.constant 0 : index
      %57 = vector.load %arg2[%c0_50, %56, %c0_51, %c0_52] : memref<1x112x32x56xbf16, #tpu.memory_space<vmem>>, vector<1x1x32x56xbf16>
      %58 = vector.shape_cast %57 : vector<1x1x32x56xbf16> to vector<32x56xbf16>
      %59 = vector.extract_strided_slice %14 {offsets = [0, 0], sizes = [32, 54], strides = [1, 1]} : vector<32x56xbf16> to vector<32x54xbf16>
      %60 = vector.extract_strided_slice %38 {offsets = [0, 0], sizes = [32, 54], strides = [1, 1]} : vector<32x56xbf16> to vector<32x54xbf16>
      %61 = vector.extract_strided_slice %14 {offsets = [0, 1], sizes = [32, 54], strides = [1, 1]} : vector<32x56xbf16> to vector<32x54xbf16>
      %62 = vector.extract_strided_slice %38 {offsets = [0, 1], sizes = [32, 54], strides = [1, 1]} : vector<32x56xbf16> to vector<32x54xbf16>
      %63 = vector.extract_strided_slice %14 {offsets = [0, 2], sizes = [32, 54], strides = [1, 1]} : vector<32x56xbf16> to vector<32x54xbf16>
      %64 = tpu.concatenate %59, %60, %61, %62, %63 in 0 : vector<32x54xbf16>, vector<32x54xbf16>, vector<32x54xbf16>, vector<32x54xbf16>, vector<32x54xbf16> -> vector<160x54xbf16>
      %cst = arith.constant dense<0.000000e+00> : vector<32x54xf32>
      %65 = tpu.matmul %1, %64, %cst {dimension_numbers = #tpu.dot_dimension_numbers<[1], [0], [0], [1], [0, 0, 1, 1], [], []>} : vector<32x160xbf16>, vector<160x54xbf16>, vector<32x54xf32> -> vector<32x54xf32>
      %66 = vector.extract_strided_slice %18 {offsets = [0, 0], sizes = [32, 54], strides = [1, 1]} : vector<32x56xbf16> to vector<32x54xbf16>
      %67 = vector.extract_strided_slice %42 {offsets = [0, 0], sizes = [32, 54], strides = [1, 1]} : vector<32x56xbf16> to vector<32x54xbf16>
      %68 = vector.extract_strided_slice %18 {offsets = [0, 1], sizes = [32, 54], strides = [1, 1]} : vector<32x56xbf16> to vector<32x54xbf16>
      %69 = vector.extract_strided_slice %42 {offsets = [0, 1], sizes = [32, 54], strides = [1, 1]} : vector<32x56xbf16> to vector<32x54xbf16>
      %70 = vector.extract_strided_slice %18 {offsets = [0, 2], sizes = [32, 54], strides = [1, 1]} : vector<32x56xbf16> to vector<32x54xbf16>
      %71 = tpu.concatenate %66, %67, %68, %69, %70 in 0 : vector<32x54xbf16>, vector<32x54xbf16>, vector<32x54xbf16>, vector<32x54xbf16>, vector<32x54xbf16> -> vector<160x54xbf16>
      %cst_53 = arith.constant dense<0.000000e+00> : vector<32x54xf32>
      %72 = tpu.matmul %2, %71, %cst_53 {dimension_numbers = #tpu.dot_dimension_numbers<[1], [0], [0], [1], [0, 0, 1, 1], [], []>} : vector<32x160xbf16>, vector<160x54xbf16>, vector<32x54xf32> -> vector<32x54xf32>
      %73 = arith.addf %65, %72 : vector<32x54xf32>
      %74 = vector.extract_strided_slice %22 {offsets = [0, 0], sizes = [32, 54], strides = [1, 1]} : vector<32x56xbf16> to vector<32x54xbf16>
      %75 = vector.extract_strided_slice %46 {offsets = [0, 0], sizes = [32, 54], strides = [1, 1]} : vector<32x56xbf16> to vector<32x54xbf16>
      %76 = vector.extract_strided_slice %22 {offsets = [0, 1], sizes = [32, 54], strides = [1, 1]} : vector<32x56xbf16> to vector<32x54xbf16>
      %77 = vector.extract_strided_slice %46 {offsets = [0, 1], sizes = [32, 54], strides = [1, 1]} : vector<32x56xbf16> to vector<32x54xbf16>
      %78 = vector.extract_strided_slice %22 {offsets = [0, 2], sizes = [32, 54], strides = [1, 1]} : vector<32x56xbf16> to vector<32x54xbf16>
      %79 = tpu.concatenate %74, %75, %76, %77, %78 in 0 : vector<32x54xbf16>, vector<32x54xbf16>, vector<32x54xbf16>, vector<32x54xbf16>, vector<32x54xbf16> -> vector<160x54xbf16>
      %cst_54 = arith.constant dense<0.000000e+00> : vector<32x54xf32>
      %80 = tpu.matmul %3, %79, %cst_54 {dimension_numbers = #tpu.dot_dimension_numbers<[1], [0], [0], [1], [0, 0, 1, 1], [], []>} : vector<32x160xbf16>, vector<160x54xbf16>, vector<32x54xf32> -> vector<32x54xf32>
      %81 = arith.addf %73, %80 : vector<32x54xf32>
      %82 = vector.extract_strided_slice %26 {offsets = [0, 0], sizes = [32, 54], strides = [1, 1]} : vector<32x56xbf16> to vector<32x54xbf16>
      %83 = vector.extract_strided_slice %50 {offsets = [0, 0], sizes = [32, 54], strides = [1, 1]} : vector<32x56xbf16> to vector<32x54xbf16>
      %84 = vector.extract_strided_slice %26 {offsets = [0, 1], sizes = [32, 54], strides = [1, 1]} : vector<32x56xbf16> to vector<32x54xbf16>
      %85 = vector.extract_strided_slice %50 {offsets = [0, 1], sizes = [32, 54], strides = [1, 1]} : vector<32x56xbf16> to vector<32x54xbf16>
      %86 = vector.extract_strided_slice %26 {offsets = [0, 2], sizes = [32, 54], strides = [1, 1]} : vector<32x56xbf16> to vector<32x54xbf16>
      %87 = tpu.concatenate %82, %83, %84, %85, %86 in 0 : vector<32x54xbf16>, vector<32x54xbf16>, vector<32x54xbf16>, vector<32x54xbf16>, vector<32x54xbf16> -> vector<160x54xbf16>
      %cst_55 = arith.constant dense<0.000000e+00> : vector<32x54xf32>
      %88 = tpu.matmul %4, %87, %cst_55 {dimension_numbers = #tpu.dot_dimension_numbers<[1], [0], [0], [1], [0, 0, 1, 1], [], []>} : vector<32x160xbf16>, vector<160x54xbf16>, vector<32x54xf32> -> vector<32x54xf32>
      %89 = arith.addf %81, %88 : vector<32x54xf32>
      %90 = vector.extract_strided_slice %30 {offsets = [0, 0], sizes = [32, 54], strides = [1, 1]} : vector<32x56xbf16> to vector<32x54xbf16>
      %91 = vector.extract_strided_slice %54 {offsets = [0, 0], sizes = [32, 54], strides = [1, 1]} : vector<32x56xbf16> to vector<32x54xbf16>
      %92 = vector.extract_strided_slice %30 {offsets = [0, 1], sizes = [32, 54], strides = [1, 1]} : vector<32x56xbf16> to vector<32x54xbf16>
      %93 = vector.extract_strided_slice %54 {offsets = [0, 1], sizes = [32, 54], strides = [1, 1]} : vector<32x56xbf16> to vector<32x54xbf16>
      %94 = vector.extract_strided_slice %30 {offsets = [0, 2], sizes = [32, 54], strides = [1, 1]} : vector<32x56xbf16> to vector<32x54xbf16>
      %95 = tpu.concatenate %90, %91, %92, %93, %94 in 0 : vector<32x54xbf16>, vector<32x54xbf16>, vector<32x54xbf16>, vector<32x54xbf16>, vector<32x54xbf16> -> vector<160x54xbf16>
      %cst_56 = arith.constant dense<0.000000e+00> : vector<32x54xf32>
      %96 = tpu.matmul %5, %95, %cst_56 {dimension_numbers = #tpu.dot_dimension_numbers<[1], [0], [0], [1], [0, 0, 1, 1], [], []>} : vector<32x160xbf16>, vector<160x54xbf16>, vector<32x54xf32> -> vector<32x54xf32>
      %97 = arith.addf %89, %96 : vector<32x54xf32>
      %98 = vector.extract_strided_slice %38 {offsets = [0, 0], sizes = [32, 54], strides = [1, 1]} : vector<32x56xbf16> to vector<32x54xbf16>
      %99 = vector.extract_strided_slice %14 {offsets = [0, 1], sizes = [32, 54], strides = [1, 1]} : vector<32x56xbf16> to vector<32x54xbf16>
      %100 = vector.extract_strided_slice %38 {offsets = [0, 1], sizes = [32, 54], strides = [1, 1]} : vector<32x56xbf16> to vector<32x54xbf16>
      %101 = vector.extract_strided_slice %14 {offsets = [0, 2], sizes = [32, 54], strides = [1, 1]} : vector<32x56xbf16> to vector<32x54xbf16>
      %102 = vector.extract_strided_slice %38 {offsets = [0, 2], sizes = [32, 54], strides = [1, 1]} : vector<32x56xbf16> to vector<32x54xbf16>
      %103 = tpu.concatenate %98, %99, %100, %101, %102 in 0 : vector<32x54xbf16>, vector<32x54xbf16>, vector<32x54xbf16>, vector<32x54xbf16>, vector<32x54xbf16> -> vector<160x54xbf16>
      %cst_57 = arith.constant dense<0.000000e+00> : vector<32x54xf32>
      %104 = tpu.matmul %1, %103, %cst_57 {dimension_numbers = #tpu.dot_dimension_numbers<[1], [0], [0], [1], [0, 0, 1, 1], [], []>} : vector<32x160xbf16>, vector<160x54xbf16>, vector<32x54xf32> -> vector<32x54xf32>
      %105 = vector.extract_strided_slice %42 {offsets = [0, 0], sizes = [32, 54], strides = [1, 1]} : vector<32x56xbf16> to vector<32x54xbf16>
      %106 = vector.extract_strided_slice %18 {offsets = [0, 1], sizes = [32, 54], strides = [1, 1]} : vector<32x56xbf16> to vector<32x54xbf16>
      %107 = vector.extract_strided_slice %42 {offsets = [0, 1], sizes = [32, 54], strides = [1, 1]} : vector<32x56xbf16> to vector<32x54xbf16>
      %108 = vector.extract_strided_slice %18 {offsets = [0, 2], sizes = [32, 54], strides = [1, 1]} : vector<32x56xbf16> to vector<32x54xbf16>
      %109 = vector.extract_strided_slice %42 {offsets = [0, 2], sizes = [32, 54], strides = [1, 1]} : vector<32x56xbf16> to vector<32x54xbf16>
      %110 = tpu.concatenate %105, %106, %107, %108, %109 in 0 : vector<32x54xbf16>, vector<32x54xbf16>, vector<32x54xbf16>, vector<32x54xbf16>, vector<32x54xbf16> -> vector<160x54xbf16>
      %cst_58 = arith.constant dense<0.000000e+00> : vector<32x54xf32>
      %111 = tpu.matmul %2, %110, %cst_58 {dimension_numbers = #tpu.dot_dimension_numbers<[1], [0], [0], [1], [0, 0, 1, 1], [], []>} : vector<32x160xbf16>, vector<160x54xbf16>, vector<32x54xf32> -> vector<32x54xf32>
      %112 = arith.addf %104, %111 : vector<32x54xf32>
      %113 = vector.extract_strided_slice %46 {offsets = [0, 0], sizes = [32, 54], strides = [1, 1]} : vector<32x56xbf16> to vector<32x54xbf16>
      %114 = vector.extract_strided_slice %22 {offsets = [0, 1], sizes = [32, 54], strides = [1, 1]} : vector<32x56xbf16> to vector<32x54xbf16>
      %115 = vector.extract_strided_slice %46 {offsets = [0, 1], sizes = [32, 54], strides = [1, 1]} : vector<32x56xbf16> to vector<32x54xbf16>
      %116 = vector.extract_strided_slice %22 {offsets = [0, 2], sizes = [32, 54], strides = [1, 1]} : vector<32x56xbf16> to vector<32x54xbf16>
      %117 = vector.extract_strided_slice %46 {offsets = [0, 2], sizes = [32, 54], strides = [1, 1]} : vector<32x56xbf16> to vector<32x54xbf16>
      %118 = tpu.concatenate %113, %114, %115, %116, %117 in 0 : vector<32x54xbf16>, vector<32x54xbf16>, vector<32x54xbf16>, vector<32x54xbf16>, vector<32x54xbf16> -> vector<160x54xbf16>
      %cst_59 = arith.constant dense<0.000000e+00> : vector<32x54xf32>
      %119 = tpu.matmul %3, %118, %cst_59 {dimension_numbers = #tpu.dot_dimension_numbers<[1], [0], [0], [1], [0, 0, 1, 1], [], []>} : vector<32x160xbf16>, vector<160x54xbf16>, vector<32x54xf32> -> vector<32x54xf32>
      %120 = arith.addf %112, %119 : vector<32x54xf32>
      %121 = vector.extract_strided_slice %50 {offsets = [0, 0], sizes = [32, 54], strides = [1, 1]} : vector<32x56xbf16> to vector<32x54xbf16>
      %122 = vector.extract_strided_slice %26 {offsets = [0, 1], sizes = [32, 54], strides = [1, 1]} : vector<32x56xbf16> to vector<32x54xbf16>
      %123 = vector.extract_strided_slice %50 {offsets = [0, 1], sizes = [32, 54], strides = [1, 1]} : vector<32x56xbf16> to vector<32x54xbf16>
      %124 = vector.extract_strided_slice %26 {offsets = [0, 2], sizes = [32, 54], strides = [1, 1]} : vector<32x56xbf16> to vector<32x54xbf16>
      %125 = vector.extract_strided_slice %50 {offsets = [0, 2], sizes = [32, 54], strides = [1, 1]} : vector<32x56xbf16> to vector<32x54xbf16>
      %126 = tpu.concatenate %121, %122, %123, %124, %125 in 0 : vector<32x54xbf16>, vector<32x54xbf16>, vector<32x54xbf16>, vector<32x54xbf16>, vector<32x54xbf16> -> vector<160x54xbf16>
      %cst_60 = arith.constant dense<0.000000e+00> : vector<32x54xf32>
      %127 = tpu.matmul %4, %126, %cst_60 {dimension_numbers = #tpu.dot_dimension_numbers<[1], [0], [0], [1], [0, 0, 1, 1], [], []>} : vector<32x160xbf16>, vector<160x54xbf16>, vector<32x54xf32> -> vector<32x54xf32>
      %128 = arith.addf %120, %127 : vector<32x54xf32>
      %129 = vector.extract_strided_slice %54 {offsets = [0, 0], sizes = [32, 54], strides = [1, 1]} : vector<32x56xbf16> to vector<32x54xbf16>
      %130 = vector.extract_strided_slice %30 {offsets = [0, 1], sizes = [32, 54], strides = [1, 1]} : vector<32x56xbf16> to vector<32x54xbf16>
      %131 = vector.extract_strided_slice %54 {offsets = [0, 1], sizes = [32, 54], strides = [1, 1]} : vector<32x56xbf16> to vector<32x54xbf16>
      %132 = vector.extract_strided_slice %30 {offsets = [0, 2], sizes = [32, 54], strides = [1, 1]} : vector<32x56xbf16> to vector<32x54xbf16>
      %133 = vector.extract_strided_slice %54 {offsets = [0, 2], sizes = [32, 54], strides = [1, 1]} : vector<32x56xbf16> to vector<32x54xbf16>
      %134 = tpu.concatenate %129, %130, %131, %132, %133 in 0 : vector<32x54xbf16>, vector<32x54xbf16>, vector<32x54xbf16>, vector<32x54xbf16>, vector<32x54xbf16> -> vector<160x54xbf16>
      %cst_61 = arith.constant dense<0.000000e+00> : vector<32x54xf32>
      %135 = tpu.matmul %5, %134, %cst_61 {dimension_numbers = #tpu.dot_dimension_numbers<[1], [0], [0], [1], [0, 0, 1, 1], [], []>} : vector<32x160xbf16>, vector<160x54xbf16>, vector<32x54xf32> -> vector<32x54xf32>
      %136 = arith.addf %128, %135 : vector<32x54xf32>
      %137 = vector.extract_strided_slice %18 {offsets = [0, 0], sizes = [32, 54], strides = [1, 1]} : vector<32x56xbf16> to vector<32x54xbf16>
      %138 = vector.extract_strided_slice %42 {offsets = [0, 0], sizes = [32, 54], strides = [1, 1]} : vector<32x56xbf16> to vector<32x54xbf16>
      %139 = vector.extract_strided_slice %18 {offsets = [0, 1], sizes = [32, 54], strides = [1, 1]} : vector<32x56xbf16> to vector<32x54xbf16>
      %140 = vector.extract_strided_slice %42 {offsets = [0, 1], sizes = [32, 54], strides = [1, 1]} : vector<32x56xbf16> to vector<32x54xbf16>
      %141 = vector.extract_strided_slice %18 {offsets = [0, 2], sizes = [32, 54], strides = [1, 1]} : vector<32x56xbf16> to vector<32x54xbf16>
      %142 = tpu.concatenate %137, %138, %139, %140, %141 in 0 : vector<32x54xbf16>, vector<32x54xbf16>, vector<32x54xbf16>, vector<32x54xbf16>, vector<32x54xbf16> -> vector<160x54xbf16>
      %cst_62 = arith.constant dense<0.000000e+00> : vector<32x54xf32>
      %143 = tpu.matmul %1, %142, %cst_62 {dimension_numbers = #tpu.dot_dimension_numbers<[1], [0], [0], [1], [0, 0, 1, 1], [], []>} : vector<32x160xbf16>, vector<160x54xbf16>, vector<32x54xf32> -> vector<32x54xf32>
      %144 = vector.extract_strided_slice %22 {offsets = [0, 0], sizes = [32, 54], strides = [1, 1]} : vector<32x56xbf16> to vector<32x54xbf16>
      %145 = vector.extract_strided_slice %46 {offsets = [0, 0], sizes = [32, 54], strides = [1, 1]} : vector<32x56xbf16> to vector<32x54xbf16>
      %146 = vector.extract_strided_slice %22 {offsets = [0, 1], sizes = [32, 54], strides = [1, 1]} : vector<32x56xbf16> to vector<32x54xbf16>
      %147 = vector.extract_strided_slice %46 {offsets = [0, 1], sizes = [32, 54], strides = [1, 1]} : vector<32x56xbf16> to vector<32x54xbf16>
      %148 = vector.extract_strided_slice %22 {offsets = [0, 2], sizes = [32, 54], strides = [1, 1]} : vector<32x56xbf16> to vector<32x54xbf16>
      %149 = tpu.concatenate %144, %145, %146, %147, %148 in 0 : vector<32x54xbf16>, vector<32x54xbf16>, vector<32x54xbf16>, vector<32x54xbf16>, vector<32x54xbf16> -> vector<160x54xbf16>
      %cst_63 = arith.constant dense<0.000000e+00> : vector<32x54xf32>
      %150 = tpu.matmul %2, %149, %cst_63 {dimension_numbers = #tpu.dot_dimension_numbers<[1], [0], [0], [1], [0, 0, 1, 1], [], []>} : vector<32x160xbf16>, vector<160x54xbf16>, vector<32x54xf32> -> vector<32x54xf32>
      %151 = arith.addf %143, %150 : vector<32x54xf32>
      %152 = vector.extract_strided_slice %26 {offsets = [0, 0], sizes = [32, 54], strides = [1, 1]} : vector<32x56xbf16> to vector<32x54xbf16>
      %153 = vector.extract_strided_slice %50 {offsets = [0, 0], sizes = [32, 54], strides = [1, 1]} : vector<32x56xbf16> to vector<32x54xbf16>
      %154 = vector.extract_strided_slice %26 {offsets = [0, 1], sizes = [32, 54], strides = [1, 1]} : vector<32x56xbf16> to vector<32x54xbf16>
      %155 = vector.extract_strided_slice %50 {offsets = [0, 1], sizes = [32, 54], strides = [1, 1]} : vector<32x56xbf16> to vector<32x54xbf16>
      %156 = vector.extract_strided_slice %26 {offsets = [0, 2], sizes = [32, 54], strides = [1, 1]} : vector<32x56xbf16> to vector<32x54xbf16>
      %157 = tpu.concatenate %152, %153, %154, %155, %156 in 0 : vector<32x54xbf16>, vector<32x54xbf16>, vector<32x54xbf16>, vector<32x54xbf16>, vector<32x54xbf16> -> vector<160x54xbf16>
      %cst_64 = arith.constant dense<0.000000e+00> : vector<32x54xf32>
      %158 = tpu.matmul %3, %157, %cst_64 {dimension_numbers = #tpu.dot_dimension_numbers<[1], [0], [0], [1], [0, 0, 1, 1], [], []>} : vector<32x160xbf16>, vector<160x54xbf16>, vector<32x54xf32> -> vector<32x54xf32>
      %159 = arith.addf %151, %158 : vector<32x54xf32>
      %160 = vector.extract_strided_slice %30 {offsets = [0, 0], sizes = [32, 54], strides = [1, 1]} : vector<32x56xbf16> to vector<32x54xbf16>
      %161 = vector.extract_strided_slice %54 {offsets = [0, 0], sizes = [32, 54], strides = [1, 1]} : vector<32x56xbf16> to vector<32x54xbf16>
      %162 = vector.extract_strided_slice %30 {offsets = [0, 1], sizes = [32, 54], strides = [1, 1]} : vector<32x56xbf16> to vector<32x54xbf16>
      %163 = vector.extract_strided_slice %54 {offsets = [0, 1], sizes = [32, 54], strides = [1, 1]} : vector<32x56xbf16> to vector<32x54xbf16>
      %164 = vector.extract_strided_slice %30 {offsets = [0, 2], sizes = [32, 54], strides = [1, 1]} : vector<32x56xbf16> to vector<32x54xbf16>
      %165 = tpu.concatenate %160, %161, %162, %163, %164 in 0 : vector<32x54xbf16>, vector<32x54xbf16>, vector<32x54xbf16>, vector<32x54xbf16>, vector<32x54xbf16> -> vector<160x54xbf16>
      %cst_65 = arith.constant dense<0.000000e+00> : vector<32x54xf32>
      %166 = tpu.matmul %4, %165, %cst_65 {dimension_numbers = #tpu.dot_dimension_numbers<[1], [0], [0], [1], [0, 0, 1, 1], [], []>} : vector<32x160xbf16>, vector<160x54xbf16>, vector<32x54xf32> -> vector<32x54xf32>
      %167 = arith.addf %159, %166 : vector<32x54xf32>
      %168 = vector.extract_strided_slice %34 {offsets = [0, 0], sizes = [32, 54], strides = [1, 1]} : vector<32x56xbf16> to vector<32x54xbf16>
      %169 = vector.extract_strided_slice %58 {offsets = [0, 0], sizes = [32, 54], strides = [1, 1]} : vector<32x56xbf16> to vector<32x54xbf16>
      %170 = vector.extract_strided_slice %34 {offsets = [0, 1], sizes = [32, 54], strides = [1, 1]} : vector<32x56xbf16> to vector<32x54xbf16>
      %171 = vector.extract_strided_slice %58 {offsets = [0, 1], sizes = [32, 54], strides = [1, 1]} : vector<32x56xbf16> to vector<32x54xbf16>
      %172 = vector.extract_strided_slice %34 {offsets = [0, 2], sizes = [32, 54], strides = [1, 1]} : vector<32x56xbf16> to vector<32x54xbf16>
      %173 = tpu.concatenate %168, %169, %170, %171, %172 in 0 : vector<32x54xbf16>, vector<32x54xbf16>, vector<32x54xbf16>, vector<32x54xbf16>, vector<32x54xbf16> -> vector<160x54xbf16>
      %cst_66 = arith.constant dense<0.000000e+00> : vector<32x54xf32>
      %174 = tpu.matmul %5, %173, %cst_66 {dimension_numbers = #tpu.dot_dimension_numbers<[1], [0], [0], [1], [0, 0, 1, 1], [], []>} : vector<32x160xbf16>, vector<160x54xbf16>, vector<32x54xf32> -> vector<32x54xf32>
      %175 = arith.addf %167, %174 : vector<32x54xf32>
      %176 = vector.extract_strided_slice %42 {offsets = [0, 0], sizes = [32, 54], strides = [1, 1]} : vector<32x56xbf16> to vector<32x54xbf16>
      %177 = vector.extract_strided_slice %18 {offsets = [0, 1], sizes = [32, 54], strides = [1, 1]} : vector<32x56xbf16> to vector<32x54xbf16>
      %178 = vector.extract_strided_slice %42 {offsets = [0, 1], sizes = [32, 54], strides = [1, 1]} : vector<32x56xbf16> to vector<32x54xbf16>
      %179 = vector.extract_strided_slice %18 {offsets = [0, 2], sizes = [32, 54], strides = [1, 1]} : vector<32x56xbf16> to vector<32x54xbf16>
      %180 = vector.extract_strided_slice %42 {offsets = [0, 2], sizes = [32, 54], strides = [1, 1]} : vector<32x56xbf16> to vector<32x54xbf16>
      %181 = tpu.concatenate %176, %177, %178, %179, %180 in 0 : vector<32x54xbf16>, vector<32x54xbf16>, vector<32x54xbf16>, vector<32x54xbf16>, vector<32x54xbf16> -> vector<160x54xbf16>
      %cst_67 = arith.constant dense<0.000000e+00> : vector<32x54xf32>
      %182 = tpu.matmul %1, %181, %cst_67 {dimension_numbers = #tpu.dot_dimension_numbers<[1], [0], [0], [1], [0, 0, 1, 1], [], []>} : vector<32x160xbf16>, vector<160x54xbf16>, vector<32x54xf32> -> vector<32x54xf32>
      %183 = vector.extract_strided_slice %46 {offsets = [0, 0], sizes = [32, 54], strides = [1, 1]} : vector<32x56xbf16> to vector<32x54xbf16>
      %184 = vector.extract_strided_slice %22 {offsets = [0, 1], sizes = [32, 54], strides = [1, 1]} : vector<32x56xbf16> to vector<32x54xbf16>
      %185 = vector.extract_strided_slice %46 {offsets = [0, 1], sizes = [32, 54], strides = [1, 1]} : vector<32x56xbf16> to vector<32x54xbf16>
      %186 = vector.extract_strided_slice %22 {offsets = [0, 2], sizes = [32, 54], strides = [1, 1]} : vector<32x56xbf16> to vector<32x54xbf16>
      %187 = vector.extract_strided_slice %46 {offsets = [0, 2], sizes = [32, 54], strides = [1, 1]} : vector<32x56xbf16> to vector<32x54xbf16>
      %188 = tpu.concatenate %183, %184, %185, %186, %187 in 0 : vector<32x54xbf16>, vector<32x54xbf16>, vector<32x54xbf16>, vector<32x54xbf16>, vector<32x54xbf16> -> vector<160x54xbf16>
      %cst_68 = arith.constant dense<0.000000e+00> : vector<32x54xf32>
      %189 = tpu.matmul %2, %188, %cst_68 {dimension_numbers = #tpu.dot_dimension_numbers<[1], [0], [0], [1], [0, 0, 1, 1], [], []>} : vector<32x160xbf16>, vector<160x54xbf16>, vector<32x54xf32> -> vector<32x54xf32>
      %190 = arith.addf %182, %189 : vector<32x54xf32>
      %191 = vector.extract_strided_slice %50 {offsets = [0, 0], sizes = [32, 54], strides = [1, 1]} : vector<32x56xbf16> to vector<32x54xbf16>
      %192 = vector.extract_strided_slice %26 {offsets = [0, 1], sizes = [32, 54], strides = [1, 1]} : vector<32x56xbf16> to vector<32x54xbf16>
      %193 = vector.extract_strided_slice %50 {offsets = [0, 1], sizes = [32, 54], strides = [1, 1]} : vector<32x56xbf16> to vector<32x54xbf16>
      %194 = vector.extract_strided_slice %26 {offsets = [0, 2], sizes = [32, 54], strides = [1, 1]} : vector<32x56xbf16> to vector<32x54xbf16>
      %195 = vector.extract_strided_slice %50 {offsets = [0, 2], sizes = [32, 54], strides = [1, 1]} : vector<32x56xbf16> to vector<32x54xbf16>
      %196 = tpu.concatenate %191, %192, %193, %194, %195 in 0 : vector<32x54xbf16>, vector<32x54xbf16>, vector<32x54xbf16>, vector<32x54xbf16>, vector<32x54xbf16> -> vector<160x54xbf16>
      %cst_69 = arith.constant dense<0.000000e+00> : vector<32x54xf32>
      %197 = tpu.matmul %3, %196, %cst_69 {dimension_numbers = #tpu.dot_dimension_numbers<[1], [0], [0], [1], [0, 0, 1, 1], [], []>} : vector<32x160xbf16>, vector<160x54xbf16>, vector<32x54xf32> -> vector<32x54xf32>
      %198 = arith.addf %190, %197 : vector<32x54xf32>
      %199 = vector.extract_strided_slice %54 {offsets = [0, 0], sizes = [32, 54], strides = [1, 1]} : vector<32x56xbf16> to vector<32x54xbf16>
      %200 = vector.extract_strided_slice %30 {offsets = [0, 1], sizes = [32, 54], strides = [1, 1]} : vector<32x56xbf16> to vector<32x54xbf16>
      %201 = vector.extract_strided_slice %54 {offsets = [0, 1], sizes = [32, 54], strides = [1, 1]} : vector<32x56xbf16> to vector<32x54xbf16>
      %202 = vector.extract_strided_slice %30 {offsets = [0, 2], sizes = [32, 54], strides = [1, 1]} : vector<32x56xbf16> to vector<32x54xbf16>
      %203 = vector.extract_strided_slice %54 {offsets = [0, 2], sizes = [32, 54], strides = [1, 1]} : vector<32x56xbf16> to vector<32x54xbf16>
      %204 = tpu.concatenate %199, %200, %201, %202, %203 in 0 : vector<32x54xbf16>, vector<32x54xbf16>, vector<32x54xbf16>, vector<32x54xbf16>, vector<32x54xbf16> -> vector<160x54xbf16>
      %cst_70 = arith.constant dense<0.000000e+00> : vector<32x54xf32>
      %205 = tpu.matmul %4, %204, %cst_70 {dimension_numbers = #tpu.dot_dimension_numbers<[1], [0], [0], [1], [0, 0, 1, 1], [], []>} : vector<32x160xbf16>, vector<160x54xbf16>, vector<32x54xf32> -> vector<32x54xf32>
      %206 = arith.addf %198, %205 : vector<32x54xf32>
      %207 = vector.extract_strided_slice %58 {offsets = [0, 0], sizes = [32, 54], strides = [1, 1]} : vector<32x56xbf16> to vector<32x54xbf16>
      %208 = vector.extract_strided_slice %34 {offsets = [0, 1], sizes = [32, 54], strides = [1, 1]} : vector<32x56xbf16> to vector<32x54xbf16>
      %209 = vector.extract_strided_slice %58 {offsets = [0, 1], sizes = [32, 54], strides = [1, 1]} : vector<32x56xbf16> to vector<32x54xbf16>
      %210 = vector.extract_strided_slice %34 {offsets = [0, 2], sizes = [32, 54], strides = [1, 1]} : vector<32x56xbf16> to vector<32x54xbf16>
      %211 = vector.extract_strided_slice %58 {offsets = [0, 2], sizes = [32, 54], strides = [1, 1]} : vector<32x56xbf16> to vector<32x54xbf16>
      %212 = tpu.concatenate %207, %208, %209, %210, %211 in 0 : vector<32x54xbf16>, vector<32x54xbf16>, vector<32x54xbf16>, vector<32x54xbf16>, vector<32x54xbf16> -> vector<160x54xbf16>
      %cst_71 = arith.constant dense<0.000000e+00> : vector<32x54xf32>
      %213 = tpu.matmul %5, %212, %cst_71 {dimension_numbers = #tpu.dot_dimension_numbers<[1], [0], [0], [1], [0, 0, 1, 1], [], []>} : vector<32x160xbf16>, vector<160x54xbf16>, vector<32x54xf32> -> vector<32x54xf32>
      %214 = arith.addf %206, %213 : vector<32x54xf32>
      %215 = arith.maximumf %97, %136 : vector<32x54xf32>
      %216 = arith.maximumf %175, %214 : vector<32x54xf32>
      %217 = arith.maximumf %215, %216 : vector<32x54xf32>
      %218 = vector.broadcast %6 : vector<32x1xf32> to vector<32x54xf32>
      %219 = arith.addf %217, %218 : vector<32x54xf32>
      %cst_72 = arith.constant 0.000000e+00 : f32
      %220 = vector.broadcast %cst_72 : f32 to vector<32x54xf32>
      %221 = arith.maximumf %219, %220 : vector<32x54xf32>
      %222 = vector.broadcast %7 : vector<32x1xf32> to vector<32x54xf32>
      %223 = arith.mulf %221, %222 : vector<32x54xf32>
      %224 = vector.broadcast %8 : vector<32x1xf32> to vector<32x54xf32>
      %225 = arith.addf %223, %224 : vector<32x54xf32>
      %226 = arith.truncf %225 : vector<32x54xf32> to vector<32x54xbf16>
      %c0_73 = arith.constant 0 : index
      %227 = arith.index_cast %arg8 : i32 to index
      %c0_74 = arith.constant 0 : index
      %c0_75 = arith.constant 0 : index
      %228 = vector.load %arg7[%c0_73, %227, %c0_74, %c0_75] : memref<1x54x32x54xbf16, #tpu.memory_space<vmem>>, vector<1x1x32x54xbf16>
      %229 = vector.shape_cast %228 : vector<1x1x32x54xbf16> to vector<32x54xbf16>
      %230 = vector.shape_cast %226 : vector<32x54xbf16> to vector<1x1x32x54xbf16>
      tpu.vector_store %arg7[%c0_73, %227, %c0_74, %c0_75], %230 {strides = array<i32>} : memref<1x54x32x54xbf16, #tpu.memory_space<vmem>>, vector<1x1x32x54xbf16>,
    }
    %c54_i32_7 = arith.constant 54 : i32
    return
  }
  func.func @transform_0(%arg0: i32) -> (i32, i32, i32, i32) {
    %c0_i32 = arith.constant 0 : i32
    %c0_i32_0 = arith.constant 0 : i32
    %c0_i32_1 = arith.constant 0 : i32
    %c0_i32_2 = arith.constant 0 : i32
    return %arg0, %c0_i32, %c0_i32_0, %c0_i32_1 : i32, i32, i32, i32
  }
  func.func @transform_1(%arg0: i32) -> (i32, i32, i32, i32) {
    %c0_i32 = arith.constant 0 : i32
    %c0_i32_0 = arith.constant 0 : i32
    %c0_i32_1 = arith.constant 0 : i32
    %c0_i32_2 = arith.constant 0 : i32
    return %arg0, %c0_i32, %c0_i32_0, %c0_i32_1 : i32, i32, i32, i32
  }
  func.func @transform_2(%arg0: i32) -> (i32, i32) {
    %c0_i32 = arith.constant 0 : i32
    %c0_i32_0 = arith.constant 0 : i32
    %c0_i32_1 = arith.constant 0 : i32
    return %c0_i32, %c0_i32_0 : i32, i32
  }
  func.func @transform_3(%arg0: i32) -> (i32, i32) {
    %c0_i32 = arith.constant 0 : i32
    %c0_i32_0 = arith.constant 0 : i32
    %c0_i32_1 = arith.constant 0 : i32
    return %c0_i32, %c0_i32_0 : i32, i32
  }
  func.func @transform_4(%arg0: i32) -> (i32, i32) {
    %c0_i32 = arith.constant 0 : i32
    %c0_i32_0 = arith.constant 0 : i32
    %c0_i32_1 = arith.constant 0 : i32
    return %c0_i32, %c0_i32_0 : i32, i32
  }
  func.func @transform_5(%arg0: i32) -> (i32, i32) {
    %c0_i32 = arith.constant 0 : i32
    %c0_i32_0 = arith.constant 0 : i32
    %c0_i32_1 = arith.constant 0 : i32
    return %c0_i32, %c0_i32_0 : i32, i32
  }
  func.func @transform_6(%arg0: i32) -> (i32, i32, i32, i32) {
    %c0_i32 = arith.constant 0 : i32
    %c0_i32_0 = arith.constant 0 : i32
    %c0_i32_1 = arith.constant 0 : i32
    %c0_i32_2 = arith.constant 0 : i32
    return %arg0, %c0_i32, %c0_i32_0, %c0_i32_1 : i32, i32, i32, i32
  }
}

module attributes {stable_mosaic.version = 11 : i64} {
  func.func @_conv_pool_bn_kernel(%arg0: i32, %arg1: memref<1x56x32x28xbf16, #tpu.memory_space<vmem>>, %arg2: memref<1x56x32x28xbf16, #tpu.memory_space<vmem>>, %arg3: memref<32x800xbf16, #tpu.memory_space<vmem>>, %arg4: memref<32x1xf32, #tpu.memory_space<vmem>>, %arg5: memref<32x1xf32, #tpu.memory_space<vmem>>, %arg6: memref<32x1xf32, #tpu.memory_space<vmem>>, %arg7: memref<1x26x32x26xbf16, #tpu.memory_space<vmem>>) attributes {dimension_semantics = [#tpu.dimension_semantics<parallel>], iteration_bounds = array<i64: 2>, scalar_prefetch = 0 : i64, scratch_operands = 0 : i64, tpu.core_type = #tpu.core_type<tc>, window_params = [{transform_indices = @transform_0, window_bounds = array<i64: 1, 56, 32, 28>}, {transform_indices = @transform_1, window_bounds = array<i64: 1, 56, 32, 28>}, {pipeline_mode = #tpu.pipeline_mode<synchronous>, transform_indices = @transform_2, window_bounds = array<i64: 32, 800>}, {pipeline_mode = #tpu.pipeline_mode<synchronous>, transform_indices = @transform_3, window_bounds = array<i64: 32, 1>}, {pipeline_mode = #tpu.pipeline_mode<synchronous>, transform_indices = @transform_4, window_bounds = array<i64: 32, 1>}, {pipeline_mode = #tpu.pipeline_mode<synchronous>, transform_indices = @transform_5, window_bounds = array<i64: 32, 1>}, {transform_indices = @transform_6, window_bounds = array<i64: 1, 26, 32, 26>}]} {
    %c0 = arith.constant 0 : index
    %c0_0 = arith.constant 0 : index
    %0 = vector.load %arg3[%c0, %c0_0] : memref<32x800xbf16, #tpu.memory_space<vmem>>, vector<32x800xbf16>
    %1 = vector.extract_strided_slice %0 {offsets = [0, 0], sizes = [32, 160], strides = [1, 1]} : vector<32x800xbf16> to vector<32x160xbf16>
    %2 = vector.extract_strided_slice %0 {offsets = [0, 160], sizes = [32, 160], strides = [1, 1]} : vector<32x800xbf16> to vector<32x160xbf16>
    %3 = vector.extract_strided_slice %0 {offsets = [0, 320], sizes = [32, 160], strides = [1, 1]} : vector<32x800xbf16> to vector<32x160xbf16>
    %4 = vector.extract_strided_slice %0 {offsets = [0, 480], sizes = [32, 160], strides = [1, 1]} : vector<32x800xbf16> to vector<32x160xbf16>
    %5 = vector.extract_strided_slice %0 {offsets = [0, 640], sizes = [32, 160], strides = [1, 1]} : vector<32x800xbf16> to vector<32x160xbf16>
    %c0_1 = arith.constant 0 : index
    %c0_2 = arith.constant 0 : index
    %6 = vector.load %arg4[%c0_1, %c0_2] : memref<32x1xf32, #tpu.memory_space<vmem>>, vector<32x1xf32>
    %c0_3 = arith.constant 0 : index
    %c0_4 = arith.constant 0 : index
    %7 = vector.load %arg5[%c0_3, %c0_4] : memref<32x1xf32, #tpu.memory_space<vmem>>, vector<32x1xf32>
    %c0_5 = arith.constant 0 : index
    %c0_6 = arith.constant 0 : index
    %8 = vector.load %arg6[%c0_5, %c0_6] : memref<32x1xf32, #tpu.memory_space<vmem>>, vector<32x1xf32>
    %c0_i32 = arith.constant 0 : i32
    %c26_i32 = arith.constant 26 : i32
    %9 = arith.addi %c0_i32, %c26_i32 : i32
    %c1_i32 = arith.constant 1 : i32
    scf.for %arg8 = %c0_i32 to %9 step %c1_i32  : i32 {
      %c2_i32 = arith.constant 2 : i32
      %10 = arith.muli %c2_i32, %arg8 : i32
      %c0_i32_8 = arith.constant 0 : i32
      %11 = arith.addi %10, %c0_i32_8 : i32
      %c0_9 = arith.constant 0 : index
      %12 = arith.index_cast %11 : i32 to index
      %c0_10 = arith.constant 0 : index
      %c0_11 = arith.constant 0 : index
      %13 = vector.load %arg1[%c0_9, %12, %c0_10, %c0_11] : memref<1x56x32x28xbf16, #tpu.memory_space<vmem>>, vector<1x1x32x28xbf16>
      %14 = vector.shape_cast %13 : vector<1x1x32x28xbf16> to vector<32x28xbf16>
      %c1_i32_12 = arith.constant 1 : i32
      %15 = arith.addi %10, %c1_i32_12 : i32
      %c0_13 = arith.constant 0 : index
      %16 = arith.index_cast %15 : i32 to index
      %c0_14 = arith.constant 0 : index
      %c0_15 = arith.constant 0 : index
      %17 = vector.load %arg1[%c0_13, %16, %c0_14, %c0_15] : memref<1x56x32x28xbf16, #tpu.memory_space<vmem>>, vector<1x1x32x28xbf16>
      %18 = vector.shape_cast %17 : vector<1x1x32x28xbf16> to vector<32x28xbf16>
      %c2_i32_16 = arith.constant 2 : i32
      %19 = arith.addi %10, %c2_i32_16 : i32
      %c0_17 = arith.constant 0 : index
      %20 = arith.index_cast %19 : i32 to index
      %c0_18 = arith.constant 0 : index
      %c0_19 = arith.constant 0 : index
      %21 = vector.load %arg1[%c0_17, %20, %c0_18, %c0_19] : memref<1x56x32x28xbf16, #tpu.memory_space<vmem>>, vector<1x1x32x28xbf16>
      %22 = vector.shape_cast %21 : vector<1x1x32x28xbf16> to vector<32x28xbf16>
      %c3_i32 = arith.constant 3 : i32
      %23 = arith.addi %10, %c3_i32 : i32
      %c0_20 = arith.constant 0 : index
      %24 = arith.index_cast %23 : i32 to index
      %c0_21 = arith.constant 0 : index
      %c0_22 = arith.constant 0 : index
      %25 = vector.load %arg1[%c0_20, %24, %c0_21, %c0_22] : memref<1x56x32x28xbf16, #tpu.memory_space<vmem>>, vector<1x1x32x28xbf16>
      %26 = vector.shape_cast %25 : vector<1x1x32x28xbf16> to vector<32x28xbf16>
      %c4_i32 = arith.constant 4 : i32
      %27 = arith.addi %10, %c4_i32 : i32
      %c0_23 = arith.constant 0 : index
      %28 = arith.index_cast %27 : i32 to index
      %c0_24 = arith.constant 0 : index
      %c0_25 = arith.constant 0 : index
      %29 = vector.load %arg1[%c0_23, %28, %c0_24, %c0_25] : memref<1x56x32x28xbf16, #tpu.memory_space<vmem>>, vector<1x1x32x28xbf16>
      %30 = vector.shape_cast %29 : vector<1x1x32x28xbf16> to vector<32x28xbf16>
      %c5_i32 = arith.constant 5 : i32
      %31 = arith.addi %10, %c5_i32 : i32
      %c0_26 = arith.constant 0 : index
      %32 = arith.index_cast %31 : i32 to index
      %c0_27 = arith.constant 0 : index
      %c0_28 = arith.constant 0 : index
      %33 = vector.load %arg1[%c0_26, %32, %c0_27, %c0_28] : memref<1x56x32x28xbf16, #tpu.memory_space<vmem>>, vector<1x1x32x28xbf16>
      %34 = vector.shape_cast %33 : vector<1x1x32x28xbf16> to vector<32x28xbf16>
      %c0_i32_29 = arith.constant 0 : i32
      %35 = arith.addi %10, %c0_i32_29 : i32
      %c0_30 = arith.constant 0 : index
      %36 = arith.index_cast %35 : i32 to index
      %c0_31 = arith.constant 0 : index
      %c0_32 = arith.constant 0 : index
      %37 = vector.load %arg2[%c0_30, %36, %c0_31, %c0_32] : memref<1x56x32x28xbf16, #tpu.memory_space<vmem>>, vector<1x1x32x28xbf16>
      %38 = vector.shape_cast %37 : vector<1x1x32x28xbf16> to vector<32x28xbf16>
      %c1_i32_33 = arith.constant 1 : i32
      %39 = arith.addi %10, %c1_i32_33 : i32
      %c0_34 = arith.constant 0 : index
      %40 = arith.index_cast %39 : i32 to index
      %c0_35 = arith.constant 0 : index
      %c0_36 = arith.constant 0 : index
      %41 = vector.load %arg2[%c0_34, %40, %c0_35, %c0_36] : memref<1x56x32x28xbf16, #tpu.memory_space<vmem>>, vector<1x1x32x28xbf16>
      %42 = vector.shape_cast %41 : vector<1x1x32x28xbf16> to vector<32x28xbf16>
      %c2_i32_37 = arith.constant 2 : i32
      %43 = arith.addi %10, %c2_i32_37 : i32
      %c0_38 = arith.constant 0 : index
      %44 = arith.index_cast %43 : i32 to index
      %c0_39 = arith.constant 0 : index
      %c0_40 = arith.constant 0 : index
      %45 = vector.load %arg2[%c0_38, %44, %c0_39, %c0_40] : memref<1x56x32x28xbf16, #tpu.memory_space<vmem>>, vector<1x1x32x28xbf16>
      %46 = vector.shape_cast %45 : vector<1x1x32x28xbf16> to vector<32x28xbf16>
      %c3_i32_41 = arith.constant 3 : i32
      %47 = arith.addi %10, %c3_i32_41 : i32
      %c0_42 = arith.constant 0 : index
      %48 = arith.index_cast %47 : i32 to index
      %c0_43 = arith.constant 0 : index
      %c0_44 = arith.constant 0 : index
      %49 = vector.load %arg2[%c0_42, %48, %c0_43, %c0_44] : memref<1x56x32x28xbf16, #tpu.memory_space<vmem>>, vector<1x1x32x28xbf16>
      %50 = vector.shape_cast %49 : vector<1x1x32x28xbf16> to vector<32x28xbf16>
      %c4_i32_45 = arith.constant 4 : i32
      %51 = arith.addi %10, %c4_i32_45 : i32
      %c0_46 = arith.constant 0 : index
      %52 = arith.index_cast %51 : i32 to index
      %c0_47 = arith.constant 0 : index
      %c0_48 = arith.constant 0 : index
      %53 = vector.load %arg2[%c0_46, %52, %c0_47, %c0_48] : memref<1x56x32x28xbf16, #tpu.memory_space<vmem>>, vector<1x1x32x28xbf16>
      %54 = vector.shape_cast %53 : vector<1x1x32x28xbf16> to vector<32x28xbf16>
      %c5_i32_49 = arith.constant 5 : i32
      %55 = arith.addi %10, %c5_i32_49 : i32
      %c0_50 = arith.constant 0 : index
      %56 = arith.index_cast %55 : i32 to index
      %c0_51 = arith.constant 0 : index
      %c0_52 = arith.constant 0 : index
      %57 = vector.load %arg2[%c0_50, %56, %c0_51, %c0_52] : memref<1x56x32x28xbf16, #tpu.memory_space<vmem>>, vector<1x1x32x28xbf16>
      %58 = vector.shape_cast %57 : vector<1x1x32x28xbf16> to vector<32x28xbf16>
      %59 = vector.extract_strided_slice %14 {offsets = [0, 0], sizes = [32, 26], strides = [1, 1]} : vector<32x28xbf16> to vector<32x26xbf16>
      %60 = vector.extract_strided_slice %38 {offsets = [0, 0], sizes = [32, 26], strides = [1, 1]} : vector<32x28xbf16> to vector<32x26xbf16>
      %61 = vector.extract_strided_slice %14 {offsets = [0, 1], sizes = [32, 26], strides = [1, 1]} : vector<32x28xbf16> to vector<32x26xbf16>
      %62 = vector.extract_strided_slice %38 {offsets = [0, 1], sizes = [32, 26], strides = [1, 1]} : vector<32x28xbf16> to vector<32x26xbf16>
      %63 = vector.extract_strided_slice %14 {offsets = [0, 2], sizes = [32, 26], strides = [1, 1]} : vector<32x28xbf16> to vector<32x26xbf16>
      %64 = tpu.concatenate %59, %60, %61, %62, %63 in 0 : vector<32x26xbf16>, vector<32x26xbf16>, vector<32x26xbf16>, vector<32x26xbf16>, vector<32x26xbf16> -> vector<160x26xbf16>
      %cst = arith.constant dense<0.000000e+00> : vector<32x26xf32>
      %65 = tpu.matmul %1, %64, %cst {dimension_numbers = #tpu.dot_dimension_numbers<[1], [0], [0], [1], [0, 0, 1, 1], [], []>} : vector<32x160xbf16>, vector<160x26xbf16>, vector<32x26xf32> -> vector<32x26xf32>
      %66 = vector.extract_strided_slice %18 {offsets = [0, 0], sizes = [32, 26], strides = [1, 1]} : vector<32x28xbf16> to vector<32x26xbf16>
      %67 = vector.extract_strided_slice %42 {offsets = [0, 0], sizes = [32, 26], strides = [1, 1]} : vector<32x28xbf16> to vector<32x26xbf16>
      %68 = vector.extract_strided_slice %18 {offsets = [0, 1], sizes = [32, 26], strides = [1, 1]} : vector<32x28xbf16> to vector<32x26xbf16>
      %69 = vector.extract_strided_slice %42 {offsets = [0, 1], sizes = [32, 26], strides = [1, 1]} : vector<32x28xbf16> to vector<32x26xbf16>
      %70 = vector.extract_strided_slice %18 {offsets = [0, 2], sizes = [32, 26], strides = [1, 1]} : vector<32x28xbf16> to vector<32x26xbf16>
      %71 = tpu.concatenate %66, %67, %68, %69, %70 in 0 : vector<32x26xbf16>, vector<32x26xbf16>, vector<32x26xbf16>, vector<32x26xbf16>, vector<32x26xbf16> -> vector<160x26xbf16>
      %cst_53 = arith.constant dense<0.000000e+00> : vector<32x26xf32>
      %72 = tpu.matmul %2, %71, %cst_53 {dimension_numbers = #tpu.dot_dimension_numbers<[1], [0], [0], [1], [0, 0, 1, 1], [], []>} : vector<32x160xbf16>, vector<160x26xbf16>, vector<32x26xf32> -> vector<32x26xf32>
      %73 = arith.addf %65, %72 : vector<32x26xf32>
      %74 = vector.extract_strided_slice %22 {offsets = [0, 0], sizes = [32, 26], strides = [1, 1]} : vector<32x28xbf16> to vector<32x26xbf16>
      %75 = vector.extract_strided_slice %46 {offsets = [0, 0], sizes = [32, 26], strides = [1, 1]} : vector<32x28xbf16> to vector<32x26xbf16>
      %76 = vector.extract_strided_slice %22 {offsets = [0, 1], sizes = [32, 26], strides = [1, 1]} : vector<32x28xbf16> to vector<32x26xbf16>
      %77 = vector.extract_strided_slice %46 {offsets = [0, 1], sizes = [32, 26], strides = [1, 1]} : vector<32x28xbf16> to vector<32x26xbf16>
      %78 = vector.extract_strided_slice %22 {offsets = [0, 2], sizes = [32, 26], strides = [1, 1]} : vector<32x28xbf16> to vector<32x26xbf16>
      %79 = tpu.concatenate %74, %75, %76, %77, %78 in 0 : vector<32x26xbf16>, vector<32x26xbf16>, vector<32x26xbf16>, vector<32x26xbf16>, vector<32x26xbf16> -> vector<160x26xbf16>
      %cst_54 = arith.constant dense<0.000000e+00> : vector<32x26xf32>
      %80 = tpu.matmul %3, %79, %cst_54 {dimension_numbers = #tpu.dot_dimension_numbers<[1], [0], [0], [1], [0, 0, 1, 1], [], []>} : vector<32x160xbf16>, vector<160x26xbf16>, vector<32x26xf32> -> vector<32x26xf32>
      %81 = arith.addf %73, %80 : vector<32x26xf32>
      %82 = vector.extract_strided_slice %26 {offsets = [0, 0], sizes = [32, 26], strides = [1, 1]} : vector<32x28xbf16> to vector<32x26xbf16>
      %83 = vector.extract_strided_slice %50 {offsets = [0, 0], sizes = [32, 26], strides = [1, 1]} : vector<32x28xbf16> to vector<32x26xbf16>
      %84 = vector.extract_strided_slice %26 {offsets = [0, 1], sizes = [32, 26], strides = [1, 1]} : vector<32x28xbf16> to vector<32x26xbf16>
      %85 = vector.extract_strided_slice %50 {offsets = [0, 1], sizes = [32, 26], strides = [1, 1]} : vector<32x28xbf16> to vector<32x26xbf16>
      %86 = vector.extract_strided_slice %26 {offsets = [0, 2], sizes = [32, 26], strides = [1, 1]} : vector<32x28xbf16> to vector<32x26xbf16>
      %87 = tpu.concatenate %82, %83, %84, %85, %86 in 0 : vector<32x26xbf16>, vector<32x26xbf16>, vector<32x26xbf16>, vector<32x26xbf16>, vector<32x26xbf16> -> vector<160x26xbf16>
      %cst_55 = arith.constant dense<0.000000e+00> : vector<32x26xf32>
      %88 = tpu.matmul %4, %87, %cst_55 {dimension_numbers = #tpu.dot_dimension_numbers<[1], [0], [0], [1], [0, 0, 1, 1], [], []>} : vector<32x160xbf16>, vector<160x26xbf16>, vector<32x26xf32> -> vector<32x26xf32>
      %89 = arith.addf %81, %88 : vector<32x26xf32>
      %90 = vector.extract_strided_slice %30 {offsets = [0, 0], sizes = [32, 26], strides = [1, 1]} : vector<32x28xbf16> to vector<32x26xbf16>
      %91 = vector.extract_strided_slice %54 {offsets = [0, 0], sizes = [32, 26], strides = [1, 1]} : vector<32x28xbf16> to vector<32x26xbf16>
      %92 = vector.extract_strided_slice %30 {offsets = [0, 1], sizes = [32, 26], strides = [1, 1]} : vector<32x28xbf16> to vector<32x26xbf16>
      %93 = vector.extract_strided_slice %54 {offsets = [0, 1], sizes = [32, 26], strides = [1, 1]} : vector<32x28xbf16> to vector<32x26xbf16>
      %94 = vector.extract_strided_slice %30 {offsets = [0, 2], sizes = [32, 26], strides = [1, 1]} : vector<32x28xbf16> to vector<32x26xbf16>
      %95 = tpu.concatenate %90, %91, %92, %93, %94 in 0 : vector<32x26xbf16>, vector<32x26xbf16>, vector<32x26xbf16>, vector<32x26xbf16>, vector<32x26xbf16> -> vector<160x26xbf16>
      %cst_56 = arith.constant dense<0.000000e+00> : vector<32x26xf32>
      %96 = tpu.matmul %5, %95, %cst_56 {dimension_numbers = #tpu.dot_dimension_numbers<[1], [0], [0], [1], [0, 0, 1, 1], [], []>} : vector<32x160xbf16>, vector<160x26xbf16>, vector<32x26xf32> -> vector<32x26xf32>
      %97 = arith.addf %89, %96 : vector<32x26xf32>
      %98 = vector.extract_strided_slice %38 {offsets = [0, 0], sizes = [32, 26], strides = [1, 1]} : vector<32x28xbf16> to vector<32x26xbf16>
      %99 = vector.extract_strided_slice %14 {offsets = [0, 1], sizes = [32, 26], strides = [1, 1]} : vector<32x28xbf16> to vector<32x26xbf16>
      %100 = vector.extract_strided_slice %38 {offsets = [0, 1], sizes = [32, 26], strides = [1, 1]} : vector<32x28xbf16> to vector<32x26xbf16>
      %101 = vector.extract_strided_slice %14 {offsets = [0, 2], sizes = [32, 26], strides = [1, 1]} : vector<32x28xbf16> to vector<32x26xbf16>
      %102 = vector.extract_strided_slice %38 {offsets = [0, 2], sizes = [32, 26], strides = [1, 1]} : vector<32x28xbf16> to vector<32x26xbf16>
      %103 = tpu.concatenate %98, %99, %100, %101, %102 in 0 : vector<32x26xbf16>, vector<32x26xbf16>, vector<32x26xbf16>, vector<32x26xbf16>, vector<32x26xbf16> -> vector<160x26xbf16>
      %cst_57 = arith.constant dense<0.000000e+00> : vector<32x26xf32>
      %104 = tpu.matmul %1, %103, %cst_57 {dimension_numbers = #tpu.dot_dimension_numbers<[1], [0], [0], [1], [0, 0, 1, 1], [], []>} : vector<32x160xbf16>, vector<160x26xbf16>, vector<32x26xf32> -> vector<32x26xf32>
      %105 = vector.extract_strided_slice %42 {offsets = [0, 0], sizes = [32, 26], strides = [1, 1]} : vector<32x28xbf16> to vector<32x26xbf16>
      %106 = vector.extract_strided_slice %18 {offsets = [0, 1], sizes = [32, 26], strides = [1, 1]} : vector<32x28xbf16> to vector<32x26xbf16>
      %107 = vector.extract_strided_slice %42 {offsets = [0, 1], sizes = [32, 26], strides = [1, 1]} : vector<32x28xbf16> to vector<32x26xbf16>
      %108 = vector.extract_strided_slice %18 {offsets = [0, 2], sizes = [32, 26], strides = [1, 1]} : vector<32x28xbf16> to vector<32x26xbf16>
      %109 = vector.extract_strided_slice %42 {offsets = [0, 2], sizes = [32, 26], strides = [1, 1]} : vector<32x28xbf16> to vector<32x26xbf16>
      %110 = tpu.concatenate %105, %106, %107, %108, %109 in 0 : vector<32x26xbf16>, vector<32x26xbf16>, vector<32x26xbf16>, vector<32x26xbf16>, vector<32x26xbf16> -> vector<160x26xbf16>
      %cst_58 = arith.constant dense<0.000000e+00> : vector<32x26xf32>
      %111 = tpu.matmul %2, %110, %cst_58 {dimension_numbers = #tpu.dot_dimension_numbers<[1], [0], [0], [1], [0, 0, 1, 1], [], []>} : vector<32x160xbf16>, vector<160x26xbf16>, vector<32x26xf32> -> vector<32x26xf32>
      %112 = arith.addf %104, %111 : vector<32x26xf32>
      %113 = vector.extract_strided_slice %46 {offsets = [0, 0], sizes = [32, 26], strides = [1, 1]} : vector<32x28xbf16> to vector<32x26xbf16>
      %114 = vector.extract_strided_slice %22 {offsets = [0, 1], sizes = [32, 26], strides = [1, 1]} : vector<32x28xbf16> to vector<32x26xbf16>
      %115 = vector.extract_strided_slice %46 {offsets = [0, 1], sizes = [32, 26], strides = [1, 1]} : vector<32x28xbf16> to vector<32x26xbf16>
      %116 = vector.extract_strided_slice %22 {offsets = [0, 2], sizes = [32, 26], strides = [1, 1]} : vector<32x28xbf16> to vector<32x26xbf16>
      %117 = vector.extract_strided_slice %46 {offsets = [0, 2], sizes = [32, 26], strides = [1, 1]} : vector<32x28xbf16> to vector<32x26xbf16>
      %118 = tpu.concatenate %113, %114, %115, %116, %117 in 0 : vector<32x26xbf16>, vector<32x26xbf16>, vector<32x26xbf16>, vector<32x26xbf16>, vector<32x26xbf16> -> vector<160x26xbf16>
      %cst_59 = arith.constant dense<0.000000e+00> : vector<32x26xf32>
      %119 = tpu.matmul %3, %118, %cst_59 {dimension_numbers = #tpu.dot_dimension_numbers<[1], [0], [0], [1], [0, 0, 1, 1], [], []>} : vector<32x160xbf16>, vector<160x26xbf16>, vector<32x26xf32> -> vector<32x26xf32>
      %120 = arith.addf %112, %119 : vector<32x26xf32>
      %121 = vector.extract_strided_slice %50 {offsets = [0, 0], sizes = [32, 26], strides = [1, 1]} : vector<32x28xbf16> to vector<32x26xbf16>
      %122 = vector.extract_strided_slice %26 {offsets = [0, 1], sizes = [32, 26], strides = [1, 1]} : vector<32x28xbf16> to vector<32x26xbf16>
      %123 = vector.extract_strided_slice %50 {offsets = [0, 1], sizes = [32, 26], strides = [1, 1]} : vector<32x28xbf16> to vector<32x26xbf16>
      %124 = vector.extract_strided_slice %26 {offsets = [0, 2], sizes = [32, 26], strides = [1, 1]} : vector<32x28xbf16> to vector<32x26xbf16>
      %125 = vector.extract_strided_slice %50 {offsets = [0, 2], sizes = [32, 26], strides = [1, 1]} : vector<32x28xbf16> to vector<32x26xbf16>
      %126 = tpu.concatenate %121, %122, %123, %124, %125 in 0 : vector<32x26xbf16>, vector<32x26xbf16>, vector<32x26xbf16>, vector<32x26xbf16>, vector<32x26xbf16> -> vector<160x26xbf16>
      %cst_60 = arith.constant dense<0.000000e+00> : vector<32x26xf32>
      %127 = tpu.matmul %4, %126, %cst_60 {dimension_numbers = #tpu.dot_dimension_numbers<[1], [0], [0], [1], [0, 0, 1, 1], [], []>} : vector<32x160xbf16>, vector<160x26xbf16>, vector<32x26xf32> -> vector<32x26xf32>
      %128 = arith.addf %120, %127 : vector<32x26xf32>
      %129 = vector.extract_strided_slice %54 {offsets = [0, 0], sizes = [32, 26], strides = [1, 1]} : vector<32x28xbf16> to vector<32x26xbf16>
      %130 = vector.extract_strided_slice %30 {offsets = [0, 1], sizes = [32, 26], strides = [1, 1]} : vector<32x28xbf16> to vector<32x26xbf16>
      %131 = vector.extract_strided_slice %54 {offsets = [0, 1], sizes = [32, 26], strides = [1, 1]} : vector<32x28xbf16> to vector<32x26xbf16>
      %132 = vector.extract_strided_slice %30 {offsets = [0, 2], sizes = [32, 26], strides = [1, 1]} : vector<32x28xbf16> to vector<32x26xbf16>
      %133 = vector.extract_strided_slice %54 {offsets = [0, 2], sizes = [32, 26], strides = [1, 1]} : vector<32x28xbf16> to vector<32x26xbf16>
      %134 = tpu.concatenate %129, %130, %131, %132, %133 in 0 : vector<32x26xbf16>, vector<32x26xbf16>, vector<32x26xbf16>, vector<32x26xbf16>, vector<32x26xbf16> -> vector<160x26xbf16>
      %cst_61 = arith.constant dense<0.000000e+00> : vector<32x26xf32>
      %135 = tpu.matmul %5, %134, %cst_61 {dimension_numbers = #tpu.dot_dimension_numbers<[1], [0], [0], [1], [0, 0, 1, 1], [], []>} : vector<32x160xbf16>, vector<160x26xbf16>, vector<32x26xf32> -> vector<32x26xf32>
      %136 = arith.addf %128, %135 : vector<32x26xf32>
      %137 = vector.extract_strided_slice %18 {offsets = [0, 0], sizes = [32, 26], strides = [1, 1]} : vector<32x28xbf16> to vector<32x26xbf16>
      %138 = vector.extract_strided_slice %42 {offsets = [0, 0], sizes = [32, 26], strides = [1, 1]} : vector<32x28xbf16> to vector<32x26xbf16>
      %139 = vector.extract_strided_slice %18 {offsets = [0, 1], sizes = [32, 26], strides = [1, 1]} : vector<32x28xbf16> to vector<32x26xbf16>
      %140 = vector.extract_strided_slice %42 {offsets = [0, 1], sizes = [32, 26], strides = [1, 1]} : vector<32x28xbf16> to vector<32x26xbf16>
      %141 = vector.extract_strided_slice %18 {offsets = [0, 2], sizes = [32, 26], strides = [1, 1]} : vector<32x28xbf16> to vector<32x26xbf16>
      %142 = tpu.concatenate %137, %138, %139, %140, %141 in 0 : vector<32x26xbf16>, vector<32x26xbf16>, vector<32x26xbf16>, vector<32x26xbf16>, vector<32x26xbf16> -> vector<160x26xbf16>
      %cst_62 = arith.constant dense<0.000000e+00> : vector<32x26xf32>
      %143 = tpu.matmul %1, %142, %cst_62 {dimension_numbers = #tpu.dot_dimension_numbers<[1], [0], [0], [1], [0, 0, 1, 1], [], []>} : vector<32x160xbf16>, vector<160x26xbf16>, vector<32x26xf32> -> vector<32x26xf32>
      %144 = vector.extract_strided_slice %22 {offsets = [0, 0], sizes = [32, 26], strides = [1, 1]} : vector<32x28xbf16> to vector<32x26xbf16>
      %145 = vector.extract_strided_slice %46 {offsets = [0, 0], sizes = [32, 26], strides = [1, 1]} : vector<32x28xbf16> to vector<32x26xbf16>
      %146 = vector.extract_strided_slice %22 {offsets = [0, 1], sizes = [32, 26], strides = [1, 1]} : vector<32x28xbf16> to vector<32x26xbf16>
      %147 = vector.extract_strided_slice %46 {offsets = [0, 1], sizes = [32, 26], strides = [1, 1]} : vector<32x28xbf16> to vector<32x26xbf16>
      %148 = vector.extract_strided_slice %22 {offsets = [0, 2], sizes = [32, 26], strides = [1, 1]} : vector<32x28xbf16> to vector<32x26xbf16>
      %149 = tpu.concatenate %144, %145, %146, %147, %148 in 0 : vector<32x26xbf16>, vector<32x26xbf16>, vector<32x26xbf16>, vector<32x26xbf16>, vector<32x26xbf16> -> vector<160x26xbf16>
      %cst_63 = arith.constant dense<0.000000e+00> : vector<32x26xf32>
      %150 = tpu.matmul %2, %149, %cst_63 {dimension_numbers = #tpu.dot_dimension_numbers<[1], [0], [0], [1], [0, 0, 1, 1], [], []>} : vector<32x160xbf16>, vector<160x26xbf16>, vector<32x26xf32> -> vector<32x26xf32>
      %151 = arith.addf %143, %150 : vector<32x26xf32>
      %152 = vector.extract_strided_slice %26 {offsets = [0, 0], sizes = [32, 26], strides = [1, 1]} : vector<32x28xbf16> to vector<32x26xbf16>
      %153 = vector.extract_strided_slice %50 {offsets = [0, 0], sizes = [32, 26], strides = [1, 1]} : vector<32x28xbf16> to vector<32x26xbf16>
      %154 = vector.extract_strided_slice %26 {offsets = [0, 1], sizes = [32, 26], strides = [1, 1]} : vector<32x28xbf16> to vector<32x26xbf16>
      %155 = vector.extract_strided_slice %50 {offsets = [0, 1], sizes = [32, 26], strides = [1, 1]} : vector<32x28xbf16> to vector<32x26xbf16>
      %156 = vector.extract_strided_slice %26 {offsets = [0, 2], sizes = [32, 26], strides = [1, 1]} : vector<32x28xbf16> to vector<32x26xbf16>
      %157 = tpu.concatenate %152, %153, %154, %155, %156 in 0 : vector<32x26xbf16>, vector<32x26xbf16>, vector<32x26xbf16>, vector<32x26xbf16>, vector<32x26xbf16> -> vector<160x26xbf16>
      %cst_64 = arith.constant dense<0.000000e+00> : vector<32x26xf32>
      %158 = tpu.matmul %3, %157, %cst_64 {dimension_numbers = #tpu.dot_dimension_numbers<[1], [0], [0], [1], [0, 0, 1, 1], [], []>} : vector<32x160xbf16>, vector<160x26xbf16>, vector<32x26xf32> -> vector<32x26xf32>
      %159 = arith.addf %151, %158 : vector<32x26xf32>
      %160 = vector.extract_strided_slice %30 {offsets = [0, 0], sizes = [32, 26], strides = [1, 1]} : vector<32x28xbf16> to vector<32x26xbf16>
      %161 = vector.extract_strided_slice %54 {offsets = [0, 0], sizes = [32, 26], strides = [1, 1]} : vector<32x28xbf16> to vector<32x26xbf16>
      %162 = vector.extract_strided_slice %30 {offsets = [0, 1], sizes = [32, 26], strides = [1, 1]} : vector<32x28xbf16> to vector<32x26xbf16>
      %163 = vector.extract_strided_slice %54 {offsets = [0, 1], sizes = [32, 26], strides = [1, 1]} : vector<32x28xbf16> to vector<32x26xbf16>
      %164 = vector.extract_strided_slice %30 {offsets = [0, 2], sizes = [32, 26], strides = [1, 1]} : vector<32x28xbf16> to vector<32x26xbf16>
      %165 = tpu.concatenate %160, %161, %162, %163, %164 in 0 : vector<32x26xbf16>, vector<32x26xbf16>, vector<32x26xbf16>, vector<32x26xbf16>, vector<32x26xbf16> -> vector<160x26xbf16>
      %cst_65 = arith.constant dense<0.000000e+00> : vector<32x26xf32>
      %166 = tpu.matmul %4, %165, %cst_65 {dimension_numbers = #tpu.dot_dimension_numbers<[1], [0], [0], [1], [0, 0, 1, 1], [], []>} : vector<32x160xbf16>, vector<160x26xbf16>, vector<32x26xf32> -> vector<32x26xf32>
      %167 = arith.addf %159, %166 : vector<32x26xf32>
      %168 = vector.extract_strided_slice %34 {offsets = [0, 0], sizes = [32, 26], strides = [1, 1]} : vector<32x28xbf16> to vector<32x26xbf16>
      %169 = vector.extract_strided_slice %58 {offsets = [0, 0], sizes = [32, 26], strides = [1, 1]} : vector<32x28xbf16> to vector<32x26xbf16>
      %170 = vector.extract_strided_slice %34 {offsets = [0, 1], sizes = [32, 26], strides = [1, 1]} : vector<32x28xbf16> to vector<32x26xbf16>
      %171 = vector.extract_strided_slice %58 {offsets = [0, 1], sizes = [32, 26], strides = [1, 1]} : vector<32x28xbf16> to vector<32x26xbf16>
      %172 = vector.extract_strided_slice %34 {offsets = [0, 2], sizes = [32, 26], strides = [1, 1]} : vector<32x28xbf16> to vector<32x26xbf16>
      %173 = tpu.concatenate %168, %169, %170, %171, %172 in 0 : vector<32x26xbf16>, vector<32x26xbf16>, vector<32x26xbf16>, vector<32x26xbf16>, vector<32x26xbf16> -> vector<160x26xbf16>
      %cst_66 = arith.constant dense<0.000000e+00> : vector<32x26xf32>
      %174 = tpu.matmul %5, %173, %cst_66 {dimension_numbers = #tpu.dot_dimension_numbers<[1], [0], [0], [1], [0, 0, 1, 1], [], []>} : vector<32x160xbf16>, vector<160x26xbf16>, vector<32x26xf32> -> vector<32x26xf32>
      %175 = arith.addf %167, %174 : vector<32x26xf32>
      %176 = vector.extract_strided_slice %42 {offsets = [0, 0], sizes = [32, 26], strides = [1, 1]} : vector<32x28xbf16> to vector<32x26xbf16>
      %177 = vector.extract_strided_slice %18 {offsets = [0, 1], sizes = [32, 26], strides = [1, 1]} : vector<32x28xbf16> to vector<32x26xbf16>
      %178 = vector.extract_strided_slice %42 {offsets = [0, 1], sizes = [32, 26], strides = [1, 1]} : vector<32x28xbf16> to vector<32x26xbf16>
      %179 = vector.extract_strided_slice %18 {offsets = [0, 2], sizes = [32, 26], strides = [1, 1]} : vector<32x28xbf16> to vector<32x26xbf16>
      %180 = vector.extract_strided_slice %42 {offsets = [0, 2], sizes = [32, 26], strides = [1, 1]} : vector<32x28xbf16> to vector<32x26xbf16>
      %181 = tpu.concatenate %176, %177, %178, %179, %180 in 0 : vector<32x26xbf16>, vector<32x26xbf16>, vector<32x26xbf16>, vector<32x26xbf16>, vector<32x26xbf16> -> vector<160x26xbf16>
      %cst_67 = arith.constant dense<0.000000e+00> : vector<32x26xf32>
      %182 = tpu.matmul %1, %181, %cst_67 {dimension_numbers = #tpu.dot_dimension_numbers<[1], [0], [0], [1], [0, 0, 1, 1], [], []>} : vector<32x160xbf16>, vector<160x26xbf16>, vector<32x26xf32> -> vector<32x26xf32>
      %183 = vector.extract_strided_slice %46 {offsets = [0, 0], sizes = [32, 26], strides = [1, 1]} : vector<32x28xbf16> to vector<32x26xbf16>
      %184 = vector.extract_strided_slice %22 {offsets = [0, 1], sizes = [32, 26], strides = [1, 1]} : vector<32x28xbf16> to vector<32x26xbf16>
      %185 = vector.extract_strided_slice %46 {offsets = [0, 1], sizes = [32, 26], strides = [1, 1]} : vector<32x28xbf16> to vector<32x26xbf16>
      %186 = vector.extract_strided_slice %22 {offsets = [0, 2], sizes = [32, 26], strides = [1, 1]} : vector<32x28xbf16> to vector<32x26xbf16>
      %187 = vector.extract_strided_slice %46 {offsets = [0, 2], sizes = [32, 26], strides = [1, 1]} : vector<32x28xbf16> to vector<32x26xbf16>
      %188 = tpu.concatenate %183, %184, %185, %186, %187 in 0 : vector<32x26xbf16>, vector<32x26xbf16>, vector<32x26xbf16>, vector<32x26xbf16>, vector<32x26xbf16> -> vector<160x26xbf16>
      %cst_68 = arith.constant dense<0.000000e+00> : vector<32x26xf32>
      %189 = tpu.matmul %2, %188, %cst_68 {dimension_numbers = #tpu.dot_dimension_numbers<[1], [0], [0], [1], [0, 0, 1, 1], [], []>} : vector<32x160xbf16>, vector<160x26xbf16>, vector<32x26xf32> -> vector<32x26xf32>
      %190 = arith.addf %182, %189 : vector<32x26xf32>
      %191 = vector.extract_strided_slice %50 {offsets = [0, 0], sizes = [32, 26], strides = [1, 1]} : vector<32x28xbf16> to vector<32x26xbf16>
      %192 = vector.extract_strided_slice %26 {offsets = [0, 1], sizes = [32, 26], strides = [1, 1]} : vector<32x28xbf16> to vector<32x26xbf16>
      %193 = vector.extract_strided_slice %50 {offsets = [0, 1], sizes = [32, 26], strides = [1, 1]} : vector<32x28xbf16> to vector<32x26xbf16>
      %194 = vector.extract_strided_slice %26 {offsets = [0, 2], sizes = [32, 26], strides = [1, 1]} : vector<32x28xbf16> to vector<32x26xbf16>
      %195 = vector.extract_strided_slice %50 {offsets = [0, 2], sizes = [32, 26], strides = [1, 1]} : vector<32x28xbf16> to vector<32x26xbf16>
      %196 = tpu.concatenate %191, %192, %193, %194, %195 in 0 : vector<32x26xbf16>, vector<32x26xbf16>, vector<32x26xbf16>, vector<32x26xbf16>, vector<32x26xbf16> -> vector<160x26xbf16>
      %cst_69 = arith.constant dense<0.000000e+00> : vector<32x26xf32>
      %197 = tpu.matmul %3, %196, %cst_69 {dimension_numbers = #tpu.dot_dimension_numbers<[1], [0], [0], [1], [0, 0, 1, 1], [], []>} : vector<32x160xbf16>, vector<160x26xbf16>, vector<32x26xf32> -> vector<32x26xf32>
      %198 = arith.addf %190, %197 : vector<32x26xf32>
      %199 = vector.extract_strided_slice %54 {offsets = [0, 0], sizes = [32, 26], strides = [1, 1]} : vector<32x28xbf16> to vector<32x26xbf16>
      %200 = vector.extract_strided_slice %30 {offsets = [0, 1], sizes = [32, 26], strides = [1, 1]} : vector<32x28xbf16> to vector<32x26xbf16>
      %201 = vector.extract_strided_slice %54 {offsets = [0, 1], sizes = [32, 26], strides = [1, 1]} : vector<32x28xbf16> to vector<32x26xbf16>
      %202 = vector.extract_strided_slice %30 {offsets = [0, 2], sizes = [32, 26], strides = [1, 1]} : vector<32x28xbf16> to vector<32x26xbf16>
      %203 = vector.extract_strided_slice %54 {offsets = [0, 2], sizes = [32, 26], strides = [1, 1]} : vector<32x28xbf16> to vector<32x26xbf16>
      %204 = tpu.concatenate %199, %200, %201, %202, %203 in 0 : vector<32x26xbf16>, vector<32x26xbf16>, vector<32x26xbf16>, vector<32x26xbf16>, vector<32x26xbf16> -> vector<160x26xbf16>
      %cst_70 = arith.constant dense<0.000000e+00> : vector<32x26xf32>
      %205 = tpu.matmul %4, %204, %cst_70 {dimension_numbers = #tpu.dot_dimension_numbers<[1], [0], [0], [1], [0, 0, 1, 1], [], []>} : vector<32x160xbf16>, vector<160x26xbf16>, vector<32x26xf32> -> vector<32x26xf32>
      %206 = arith.addf %198, %205 : vector<32x26xf32>
      %207 = vector.extract_strided_slice %58 {offsets = [0, 0], sizes = [32, 26], strides = [1, 1]} : vector<32x28xbf16> to vector<32x26xbf16>
      %208 = vector.extract_strided_slice %34 {offsets = [0, 1], sizes = [32, 26], strides = [1, 1]} : vector<32x28xbf16> to vector<32x26xbf16>
      %209 = vector.extract_strided_slice %58 {offsets = [0, 1], sizes = [32, 26], strides = [1, 1]} : vector<32x28xbf16> to vector<32x26xbf16>
      %210 = vector.extract_strided_slice %34 {offsets = [0, 2], sizes = [32, 26], strides = [1, 1]} : vector<32x28xbf16> to vector<32x26xbf16>
      %211 = vector.extract_strided_slice %58 {offsets = [0, 2], sizes = [32, 26], strides = [1, 1]} : vector<32x28xbf16> to vector<32x26xbf16>
      %212 = tpu.concatenate %207, %208, %209, %210, %211 in 0 : vector<32x26xbf16>, vector<32x26xbf16>, vector<32x26xbf16>, vector<32x26xbf16>, vector<32x26xbf16> -> vector<160x26xbf16>
      %cst_71 = arith.constant dense<0.000000e+00> : vector<32x26xf32>
      %213 = tpu.matmul %5, %212, %cst_71 {dimension_numbers = #tpu.dot_dimension_numbers<[1], [0], [0], [1], [0, 0, 1, 1], [], []>} : vector<32x160xbf16>, vector<160x26xbf16>, vector<32x26xf32> -> vector<32x26xf32>
      %214 = arith.addf %206, %213 : vector<32x26xf32>
      %215 = arith.maximumf %97, %136 : vector<32x26xf32>
      %216 = arith.maximumf %175, %214 : vector<32x26xf32>
      %217 = arith.maximumf %215, %216 : vector<32x26xf32>
      %218 = vector.broadcast %6 : vector<32x1xf32> to vector<32x26xf32>
      %219 = arith.addf %217, %218 : vector<32x26xf32>
      %cst_72 = arith.constant 0.000000e+00 : f32
      %220 = vector.broadcast %cst_72 : f32 to vector<32x26xf32>
      %221 = arith.maximumf %219, %220 : vector<32x26xf32>
      %222 = vector.broadcast %7 : vector<32x1xf32> to vector<32x26xf32>
      %223 = arith.mulf %221, %222 : vector<32x26xf32>
      %224 = vector.broadcast %8 : vector<32x1xf32> to vector<32x26xf32>
      %225 = arith.addf %223, %224 : vector<32x26xf32>
      %226 = arith.truncf %225 : vector<32x26xf32> to vector<32x26xbf16>
      %c0_73 = arith.constant 0 : index
      %227 = arith.index_cast %arg8 : i32 to index
      %c0_74 = arith.constant 0 : index
      %c0_75 = arith.constant 0 : index
      %228 = vector.load %arg7[%c0_73, %227, %c0_74, %c0_75] : memref<1x26x32x26xbf16, #tpu.memory_space<vmem>>, vector<1x1x32x26xbf16>
      %229 = vector.shape_cast %228 : vector<1x1x32x26xbf16> to vector<32x26xbf16>
      %230 = vector.shape_cast %226 : vector<32x26xbf16> to vector<1x1x32x26xbf16>
      tpu.vector_store %arg7[%c0_73, %227, %c0_74, %c0_75], %230 {strides = array<i32>} : memref<1x26x32x26xbf16, #tpu.memory_space<vmem>>, vector<1x1x32x26xbf16>,
    }
    %c26_i32_7 = arith.constant 26 : i32
    return
  }
  func.func @transform_0(%arg0: i32) -> (i32, i32, i32, i32) {
    %c0_i32 = arith.constant 0 : i32
    %c0_i32_0 = arith.constant 0 : i32
    %c0_i32_1 = arith.constant 0 : i32
    %c0_i32_2 = arith.constant 0 : i32
    return %arg0, %c0_i32, %c0_i32_0, %c0_i32_1 : i32, i32, i32, i32
  }
  func.func @transform_1(%arg0: i32) -> (i32, i32, i32, i32) {
    %c0_i32 = arith.constant 0 : i32
    %c0_i32_0 = arith.constant 0 : i32
    %c0_i32_1 = arith.constant 0 : i32
    %c0_i32_2 = arith.constant 0 : i32
    return %arg0, %c0_i32, %c0_i32_0, %c0_i32_1 : i32, i32, i32, i32
  }
  func.func @transform_2(%arg0: i32) -> (i32, i32) {
    %c0_i32 = arith.constant 0 : i32
    %c0_i32_0 = arith.constant 0 : i32
    %c0_i32_1 = arith.constant 0 : i32
    return %c0_i32, %c0_i32_0 : i32, i32
  }
  func.func @transform_3(%arg0: i32) -> (i32, i32) {
    %c0_i32 = arith.constant 0 : i32
    %c0_i32_0 = arith.constant 0 : i32
    %c0_i32_1 = arith.constant 0 : i32
    return %c0_i32, %c0_i32_0 : i32, i32
  }
  func.func @transform_4(%arg0: i32) -> (i32, i32) {
    %c0_i32 = arith.constant 0 : i32
    %c0_i32_0 = arith.constant 0 : i32
    %c0_i32_1 = arith.constant 0 : i32
    return %c0_i32, %c0_i32_0 : i32, i32
  }
  func.func @transform_5(%arg0: i32) -> (i32, i32) {
    %c0_i32 = arith.constant 0 : i32
    %c0_i32_0 = arith.constant 0 : i32
    %c0_i32_1 = arith.constant 0 : i32
    return %c0_i32, %c0_i32_0 : i32, i32
  }
  func.func @transform_6(%arg0: i32) -> (i32, i32, i32, i32) {
    %c0_i32 = arith.constant 0 : i32
    %c0_i32_0 = arith.constant 0 : i32
    %c0_i32_1 = arith.constant 0 : i32
    %c0_i32_2 = arith.constant 0 : i32
    return %arg0, %c0_i32, %c0_i32_0, %c0_i32_1 : i32, i32, i32, i32
  }
}

module attributes {stable_mosaic.version = 11 : i64} {
  func.func @_conv_pool_bn_kernel(%arg0: i32, %arg1: memref<1x28x32x14xbf16, #tpu.memory_space<vmem>>, %arg2: memref<1x28x32x14xbf16, #tpu.memory_space<vmem>>, %arg3: memref<32x800xbf16, #tpu.memory_space<vmem>>, %arg4: memref<32x1xf32, #tpu.memory_space<vmem>>, %arg5: memref<32x1xf32, #tpu.memory_space<vmem>>, %arg6: memref<32x1xf32, #tpu.memory_space<vmem>>, %arg7: memref<1x12x32x12xbf16, #tpu.memory_space<vmem>>) attributes {dimension_semantics = [#tpu.dimension_semantics<parallel>], iteration_bounds = array<i64: 2>, scalar_prefetch = 0 : i64, scratch_operands = 0 : i64, tpu.core_type = #tpu.core_type<tc>, window_params = [{transform_indices = @transform_0, window_bounds = array<i64: 1, 28, 32, 14>}, {transform_indices = @transform_1, window_bounds = array<i64: 1, 28, 32, 14>}, {pipeline_mode = #tpu.pipeline_mode<synchronous>, transform_indices = @transform_2, window_bounds = array<i64: 32, 800>}, {pipeline_mode = #tpu.pipeline_mode<synchronous>, transform_indices = @transform_3, window_bounds = array<i64: 32, 1>}, {pipeline_mode = #tpu.pipeline_mode<synchronous>, transform_indices = @transform_4, window_bounds = array<i64: 32, 1>}, {pipeline_mode = #tpu.pipeline_mode<synchronous>, transform_indices = @transform_5, window_bounds = array<i64: 32, 1>}, {transform_indices = @transform_6, window_bounds = array<i64: 1, 12, 32, 12>}]} {
    %c0 = arith.constant 0 : index
    %c0_0 = arith.constant 0 : index
    %0 = vector.load %arg3[%c0, %c0_0] : memref<32x800xbf16, #tpu.memory_space<vmem>>, vector<32x800xbf16>
    %1 = vector.extract_strided_slice %0 {offsets = [0, 0], sizes = [32, 160], strides = [1, 1]} : vector<32x800xbf16> to vector<32x160xbf16>
    %2 = vector.extract_strided_slice %0 {offsets = [0, 160], sizes = [32, 160], strides = [1, 1]} : vector<32x800xbf16> to vector<32x160xbf16>
    %3 = vector.extract_strided_slice %0 {offsets = [0, 320], sizes = [32, 160], strides = [1, 1]} : vector<32x800xbf16> to vector<32x160xbf16>
    %4 = vector.extract_strided_slice %0 {offsets = [0, 480], sizes = [32, 160], strides = [1, 1]} : vector<32x800xbf16> to vector<32x160xbf16>
    %5 = vector.extract_strided_slice %0 {offsets = [0, 640], sizes = [32, 160], strides = [1, 1]} : vector<32x800xbf16> to vector<32x160xbf16>
    %c0_1 = arith.constant 0 : index
    %c0_2 = arith.constant 0 : index
    %6 = vector.load %arg4[%c0_1, %c0_2] : memref<32x1xf32, #tpu.memory_space<vmem>>, vector<32x1xf32>
    %c0_3 = arith.constant 0 : index
    %c0_4 = arith.constant 0 : index
    %7 = vector.load %arg5[%c0_3, %c0_4] : memref<32x1xf32, #tpu.memory_space<vmem>>, vector<32x1xf32>
    %c0_5 = arith.constant 0 : index
    %c0_6 = arith.constant 0 : index
    %8 = vector.load %arg6[%c0_5, %c0_6] : memref<32x1xf32, #tpu.memory_space<vmem>>, vector<32x1xf32>
    %c0_i32 = arith.constant 0 : i32
    %c12_i32 = arith.constant 12 : i32
    %9 = arith.addi %c0_i32, %c12_i32 : i32
    %c1_i32 = arith.constant 1 : i32
    scf.for %arg8 = %c0_i32 to %9 step %c1_i32  : i32 {
      %c2_i32 = arith.constant 2 : i32
      %10 = arith.muli %c2_i32, %arg8 : i32
      %c0_i32_8 = arith.constant 0 : i32
      %11 = arith.addi %10, %c0_i32_8 : i32
      %c0_9 = arith.constant 0 : index
      %12 = arith.index_cast %11 : i32 to index
      %c0_10 = arith.constant 0 : index
      %c0_11 = arith.constant 0 : index
      %13 = vector.load %arg1[%c0_9, %12, %c0_10, %c0_11] : memref<1x28x32x14xbf16, #tpu.memory_space<vmem>>, vector<1x1x32x14xbf16>
      %14 = vector.shape_cast %13 : vector<1x1x32x14xbf16> to vector<32x14xbf16>
      %c1_i32_12 = arith.constant 1 : i32
      %15 = arith.addi %10, %c1_i32_12 : i32
      %c0_13 = arith.constant 0 : index
      %16 = arith.index_cast %15 : i32 to index
      %c0_14 = arith.constant 0 : index
      %c0_15 = arith.constant 0 : index
      %17 = vector.load %arg1[%c0_13, %16, %c0_14, %c0_15] : memref<1x28x32x14xbf16, #tpu.memory_space<vmem>>, vector<1x1x32x14xbf16>
      %18 = vector.shape_cast %17 : vector<1x1x32x14xbf16> to vector<32x14xbf16>
      %c2_i32_16 = arith.constant 2 : i32
      %19 = arith.addi %10, %c2_i32_16 : i32
      %c0_17 = arith.constant 0 : index
      %20 = arith.index_cast %19 : i32 to index
      %c0_18 = arith.constant 0 : index
      %c0_19 = arith.constant 0 : index
      %21 = vector.load %arg1[%c0_17, %20, %c0_18, %c0_19] : memref<1x28x32x14xbf16, #tpu.memory_space<vmem>>, vector<1x1x32x14xbf16>
      %22 = vector.shape_cast %21 : vector<1x1x32x14xbf16> to vector<32x14xbf16>
      %c3_i32 = arith.constant 3 : i32
      %23 = arith.addi %10, %c3_i32 : i32
      %c0_20 = arith.constant 0 : index
      %24 = arith.index_cast %23 : i32 to index
      %c0_21 = arith.constant 0 : index
      %c0_22 = arith.constant 0 : index
      %25 = vector.load %arg1[%c0_20, %24, %c0_21, %c0_22] : memref<1x28x32x14xbf16, #tpu.memory_space<vmem>>, vector<1x1x32x14xbf16>
      %26 = vector.shape_cast %25 : vector<1x1x32x14xbf16> to vector<32x14xbf16>
      %c4_i32 = arith.constant 4 : i32
      %27 = arith.addi %10, %c4_i32 : i32
      %c0_23 = arith.constant 0 : index
      %28 = arith.index_cast %27 : i32 to index
      %c0_24 = arith.constant 0 : index
      %c0_25 = arith.constant 0 : index
      %29 = vector.load %arg1[%c0_23, %28, %c0_24, %c0_25] : memref<1x28x32x14xbf16, #tpu.memory_space<vmem>>, vector<1x1x32x14xbf16>
      %30 = vector.shape_cast %29 : vector<1x1x32x14xbf16> to vector<32x14xbf16>
      %c5_i32 = arith.constant 5 : i32
      %31 = arith.addi %10, %c5_i32 : i32
      %c0_26 = arith.constant 0 : index
      %32 = arith.index_cast %31 : i32 to index
      %c0_27 = arith.constant 0 : index
      %c0_28 = arith.constant 0 : index
      %33 = vector.load %arg1[%c0_26, %32, %c0_27, %c0_28] : memref<1x28x32x14xbf16, #tpu.memory_space<vmem>>, vector<1x1x32x14xbf16>
      %34 = vector.shape_cast %33 : vector<1x1x32x14xbf16> to vector<32x14xbf16>
      %c0_i32_29 = arith.constant 0 : i32
      %35 = arith.addi %10, %c0_i32_29 : i32
      %c0_30 = arith.constant 0 : index
      %36 = arith.index_cast %35 : i32 to index
      %c0_31 = arith.constant 0 : index
      %c0_32 = arith.constant 0 : index
      %37 = vector.load %arg2[%c0_30, %36, %c0_31, %c0_32] : memref<1x28x32x14xbf16, #tpu.memory_space<vmem>>, vector<1x1x32x14xbf16>
      %38 = vector.shape_cast %37 : vector<1x1x32x14xbf16> to vector<32x14xbf16>
      %c1_i32_33 = arith.constant 1 : i32
      %39 = arith.addi %10, %c1_i32_33 : i32
      %c0_34 = arith.constant 0 : index
      %40 = arith.index_cast %39 : i32 to index
      %c0_35 = arith.constant 0 : index
      %c0_36 = arith.constant 0 : index
      %41 = vector.load %arg2[%c0_34, %40, %c0_35, %c0_36] : memref<1x28x32x14xbf16, #tpu.memory_space<vmem>>, vector<1x1x32x14xbf16>
      %42 = vector.shape_cast %41 : vector<1x1x32x14xbf16> to vector<32x14xbf16>
      %c2_i32_37 = arith.constant 2 : i32
      %43 = arith.addi %10, %c2_i32_37 : i32
      %c0_38 = arith.constant 0 : index
      %44 = arith.index_cast %43 : i32 to index
      %c0_39 = arith.constant 0 : index
      %c0_40 = arith.constant 0 : index
      %45 = vector.load %arg2[%c0_38, %44, %c0_39, %c0_40] : memref<1x28x32x14xbf16, #tpu.memory_space<vmem>>, vector<1x1x32x14xbf16>
      %46 = vector.shape_cast %45 : vector<1x1x32x14xbf16> to vector<32x14xbf16>
      %c3_i32_41 = arith.constant 3 : i32
      %47 = arith.addi %10, %c3_i32_41 : i32
      %c0_42 = arith.constant 0 : index
      %48 = arith.index_cast %47 : i32 to index
      %c0_43 = arith.constant 0 : index
      %c0_44 = arith.constant 0 : index
      %49 = vector.load %arg2[%c0_42, %48, %c0_43, %c0_44] : memref<1x28x32x14xbf16, #tpu.memory_space<vmem>>, vector<1x1x32x14xbf16>
      %50 = vector.shape_cast %49 : vector<1x1x32x14xbf16> to vector<32x14xbf16>
      %c4_i32_45 = arith.constant 4 : i32
      %51 = arith.addi %10, %c4_i32_45 : i32
      %c0_46 = arith.constant 0 : index
      %52 = arith.index_cast %51 : i32 to index
      %c0_47 = arith.constant 0 : index
      %c0_48 = arith.constant 0 : index
      %53 = vector.load %arg2[%c0_46, %52, %c0_47, %c0_48] : memref<1x28x32x14xbf16, #tpu.memory_space<vmem>>, vector<1x1x32x14xbf16>
      %54 = vector.shape_cast %53 : vector<1x1x32x14xbf16> to vector<32x14xbf16>
      %c5_i32_49 = arith.constant 5 : i32
      %55 = arith.addi %10, %c5_i32_49 : i32
      %c0_50 = arith.constant 0 : index
      %56 = arith.index_cast %55 : i32 to index
      %c0_51 = arith.constant 0 : index
      %c0_52 = arith.constant 0 : index
      %57 = vector.load %arg2[%c0_50, %56, %c0_51, %c0_52] : memref<1x28x32x14xbf16, #tpu.memory_space<vmem>>, vector<1x1x32x14xbf16>
      %58 = vector.shape_cast %57 : vector<1x1x32x14xbf16> to vector<32x14xbf16>
      %59 = vector.extract_strided_slice %14 {offsets = [0, 0], sizes = [32, 12], strides = [1, 1]} : vector<32x14xbf16> to vector<32x12xbf16>
      %60 = vector.extract_strided_slice %38 {offsets = [0, 0], sizes = [32, 12], strides = [1, 1]} : vector<32x14xbf16> to vector<32x12xbf16>
      %61 = vector.extract_strided_slice %14 {offsets = [0, 1], sizes = [32, 12], strides = [1, 1]} : vector<32x14xbf16> to vector<32x12xbf16>
      %62 = vector.extract_strided_slice %38 {offsets = [0, 1], sizes = [32, 12], strides = [1, 1]} : vector<32x14xbf16> to vector<32x12xbf16>
      %63 = vector.extract_strided_slice %14 {offsets = [0, 2], sizes = [32, 12], strides = [1, 1]} : vector<32x14xbf16> to vector<32x12xbf16>
      %64 = tpu.concatenate %59, %60, %61, %62, %63 in 0 : vector<32x12xbf16>, vector<32x12xbf16>, vector<32x12xbf16>, vector<32x12xbf16>, vector<32x12xbf16> -> vector<160x12xbf16>
      %cst = arith.constant dense<0.000000e+00> : vector<32x12xf32>
      %65 = tpu.matmul %1, %64, %cst {dimension_numbers = #tpu.dot_dimension_numbers<[1], [0], [0], [1], [0, 0, 1, 1], [], []>} : vector<32x160xbf16>, vector<160x12xbf16>, vector<32x12xf32> -> vector<32x12xf32>
      %66 = vector.extract_strided_slice %18 {offsets = [0, 0], sizes = [32, 12], strides = [1, 1]} : vector<32x14xbf16> to vector<32x12xbf16>
      %67 = vector.extract_strided_slice %42 {offsets = [0, 0], sizes = [32, 12], strides = [1, 1]} : vector<32x14xbf16> to vector<32x12xbf16>
      %68 = vector.extract_strided_slice %18 {offsets = [0, 1], sizes = [32, 12], strides = [1, 1]} : vector<32x14xbf16> to vector<32x12xbf16>
      %69 = vector.extract_strided_slice %42 {offsets = [0, 1], sizes = [32, 12], strides = [1, 1]} : vector<32x14xbf16> to vector<32x12xbf16>
      %70 = vector.extract_strided_slice %18 {offsets = [0, 2], sizes = [32, 12], strides = [1, 1]} : vector<32x14xbf16> to vector<32x12xbf16>
      %71 = tpu.concatenate %66, %67, %68, %69, %70 in 0 : vector<32x12xbf16>, vector<32x12xbf16>, vector<32x12xbf16>, vector<32x12xbf16>, vector<32x12xbf16> -> vector<160x12xbf16>
      %cst_53 = arith.constant dense<0.000000e+00> : vector<32x12xf32>
      %72 = tpu.matmul %2, %71, %cst_53 {dimension_numbers = #tpu.dot_dimension_numbers<[1], [0], [0], [1], [0, 0, 1, 1], [], []>} : vector<32x160xbf16>, vector<160x12xbf16>, vector<32x12xf32> -> vector<32x12xf32>
      %73 = arith.addf %65, %72 : vector<32x12xf32>
      %74 = vector.extract_strided_slice %22 {offsets = [0, 0], sizes = [32, 12], strides = [1, 1]} : vector<32x14xbf16> to vector<32x12xbf16>
      %75 = vector.extract_strided_slice %46 {offsets = [0, 0], sizes = [32, 12], strides = [1, 1]} : vector<32x14xbf16> to vector<32x12xbf16>
      %76 = vector.extract_strided_slice %22 {offsets = [0, 1], sizes = [32, 12], strides = [1, 1]} : vector<32x14xbf16> to vector<32x12xbf16>
      %77 = vector.extract_strided_slice %46 {offsets = [0, 1], sizes = [32, 12], strides = [1, 1]} : vector<32x14xbf16> to vector<32x12xbf16>
      %78 = vector.extract_strided_slice %22 {offsets = [0, 2], sizes = [32, 12], strides = [1, 1]} : vector<32x14xbf16> to vector<32x12xbf16>
      %79 = tpu.concatenate %74, %75, %76, %77, %78 in 0 : vector<32x12xbf16>, vector<32x12xbf16>, vector<32x12xbf16>, vector<32x12xbf16>, vector<32x12xbf16> -> vector<160x12xbf16>
      %cst_54 = arith.constant dense<0.000000e+00> : vector<32x12xf32>
      %80 = tpu.matmul %3, %79, %cst_54 {dimension_numbers = #tpu.dot_dimension_numbers<[1], [0], [0], [1], [0, 0, 1, 1], [], []>} : vector<32x160xbf16>, vector<160x12xbf16>, vector<32x12xf32> -> vector<32x12xf32>
      %81 = arith.addf %73, %80 : vector<32x12xf32>
      %82 = vector.extract_strided_slice %26 {offsets = [0, 0], sizes = [32, 12], strides = [1, 1]} : vector<32x14xbf16> to vector<32x12xbf16>
      %83 = vector.extract_strided_slice %50 {offsets = [0, 0], sizes = [32, 12], strides = [1, 1]} : vector<32x14xbf16> to vector<32x12xbf16>
      %84 = vector.extract_strided_slice %26 {offsets = [0, 1], sizes = [32, 12], strides = [1, 1]} : vector<32x14xbf16> to vector<32x12xbf16>
      %85 = vector.extract_strided_slice %50 {offsets = [0, 1], sizes = [32, 12], strides = [1, 1]} : vector<32x14xbf16> to vector<32x12xbf16>
      %86 = vector.extract_strided_slice %26 {offsets = [0, 2], sizes = [32, 12], strides = [1, 1]} : vector<32x14xbf16> to vector<32x12xbf16>
      %87 = tpu.concatenate %82, %83, %84, %85, %86 in 0 : vector<32x12xbf16>, vector<32x12xbf16>, vector<32x12xbf16>, vector<32x12xbf16>, vector<32x12xbf16> -> vector<160x12xbf16>
      %cst_55 = arith.constant dense<0.000000e+00> : vector<32x12xf32>
      %88 = tpu.matmul %4, %87, %cst_55 {dimension_numbers = #tpu.dot_dimension_numbers<[1], [0], [0], [1], [0, 0, 1, 1], [], []>} : vector<32x160xbf16>, vector<160x12xbf16>, vector<32x12xf32> -> vector<32x12xf32>
      %89 = arith.addf %81, %88 : vector<32x12xf32>
      %90 = vector.extract_strided_slice %30 {offsets = [0, 0], sizes = [32, 12], strides = [1, 1]} : vector<32x14xbf16> to vector<32x12xbf16>
      %91 = vector.extract_strided_slice %54 {offsets = [0, 0], sizes = [32, 12], strides = [1, 1]} : vector<32x14xbf16> to vector<32x12xbf16>
      %92 = vector.extract_strided_slice %30 {offsets = [0, 1], sizes = [32, 12], strides = [1, 1]} : vector<32x14xbf16> to vector<32x12xbf16>
      %93 = vector.extract_strided_slice %54 {offsets = [0, 1], sizes = [32, 12], strides = [1, 1]} : vector<32x14xbf16> to vector<32x12xbf16>
      %94 = vector.extract_strided_slice %30 {offsets = [0, 2], sizes = [32, 12], strides = [1, 1]} : vector<32x14xbf16> to vector<32x12xbf16>
      %95 = tpu.concatenate %90, %91, %92, %93, %94 in 0 : vector<32x12xbf16>, vector<32x12xbf16>, vector<32x12xbf16>, vector<32x12xbf16>, vector<32x12xbf16> -> vector<160x12xbf16>
      %cst_56 = arith.constant dense<0.000000e+00> : vector<32x12xf32>
      %96 = tpu.matmul %5, %95, %cst_56 {dimension_numbers = #tpu.dot_dimension_numbers<[1], [0], [0], [1], [0, 0, 1, 1], [], []>} : vector<32x160xbf16>, vector<160x12xbf16>, vector<32x12xf32> -> vector<32x12xf32>
      %97 = arith.addf %89, %96 : vector<32x12xf32>
      %98 = vector.extract_strided_slice %38 {offsets = [0, 0], sizes = [32, 12], strides = [1, 1]} : vector<32x14xbf16> to vector<32x12xbf16>
      %99 = vector.extract_strided_slice %14 {offsets = [0, 1], sizes = [32, 12], strides = [1, 1]} : vector<32x14xbf16> to vector<32x12xbf16>
      %100 = vector.extract_strided_slice %38 {offsets = [0, 1], sizes = [32, 12], strides = [1, 1]} : vector<32x14xbf16> to vector<32x12xbf16>
      %101 = vector.extract_strided_slice %14 {offsets = [0, 2], sizes = [32, 12], strides = [1, 1]} : vector<32x14xbf16> to vector<32x12xbf16>
      %102 = vector.extract_strided_slice %38 {offsets = [0, 2], sizes = [32, 12], strides = [1, 1]} : vector<32x14xbf16> to vector<32x12xbf16>
      %103 = tpu.concatenate %98, %99, %100, %101, %102 in 0 : vector<32x12xbf16>, vector<32x12xbf16>, vector<32x12xbf16>, vector<32x12xbf16>, vector<32x12xbf16> -> vector<160x12xbf16>
      %cst_57 = arith.constant dense<0.000000e+00> : vector<32x12xf32>
      %104 = tpu.matmul %1, %103, %cst_57 {dimension_numbers = #tpu.dot_dimension_numbers<[1], [0], [0], [1], [0, 0, 1, 1], [], []>} : vector<32x160xbf16>, vector<160x12xbf16>, vector<32x12xf32> -> vector<32x12xf32>
      %105 = vector.extract_strided_slice %42 {offsets = [0, 0], sizes = [32, 12], strides = [1, 1]} : vector<32x14xbf16> to vector<32x12xbf16>
      %106 = vector.extract_strided_slice %18 {offsets = [0, 1], sizes = [32, 12], strides = [1, 1]} : vector<32x14xbf16> to vector<32x12xbf16>
      %107 = vector.extract_strided_slice %42 {offsets = [0, 1], sizes = [32, 12], strides = [1, 1]} : vector<32x14xbf16> to vector<32x12xbf16>
      %108 = vector.extract_strided_slice %18 {offsets = [0, 2], sizes = [32, 12], strides = [1, 1]} : vector<32x14xbf16> to vector<32x12xbf16>
      %109 = vector.extract_strided_slice %42 {offsets = [0, 2], sizes = [32, 12], strides = [1, 1]} : vector<32x14xbf16> to vector<32x12xbf16>
      %110 = tpu.concatenate %105, %106, %107, %108, %109 in 0 : vector<32x12xbf16>, vector<32x12xbf16>, vector<32x12xbf16>, vector<32x12xbf16>, vector<32x12xbf16> -> vector<160x12xbf16>
      %cst_58 = arith.constant dense<0.000000e+00> : vector<32x12xf32>
      %111 = tpu.matmul %2, %110, %cst_58 {dimension_numbers = #tpu.dot_dimension_numbers<[1], [0], [0], [1], [0, 0, 1, 1], [], []>} : vector<32x160xbf16>, vector<160x12xbf16>, vector<32x12xf32> -> vector<32x12xf32>
      %112 = arith.addf %104, %111 : vector<32x12xf32>
      %113 = vector.extract_strided_slice %46 {offsets = [0, 0], sizes = [32, 12], strides = [1, 1]} : vector<32x14xbf16> to vector<32x12xbf16>
      %114 = vector.extract_strided_slice %22 {offsets = [0, 1], sizes = [32, 12], strides = [1, 1]} : vector<32x14xbf16> to vector<32x12xbf16>
      %115 = vector.extract_strided_slice %46 {offsets = [0, 1], sizes = [32, 12], strides = [1, 1]} : vector<32x14xbf16> to vector<32x12xbf16>
      %116 = vector.extract_strided_slice %22 {offsets = [0, 2], sizes = [32, 12], strides = [1, 1]} : vector<32x14xbf16> to vector<32x12xbf16>
      %117 = vector.extract_strided_slice %46 {offsets = [0, 2], sizes = [32, 12], strides = [1, 1]} : vector<32x14xbf16> to vector<32x12xbf16>
      %118 = tpu.concatenate %113, %114, %115, %116, %117 in 0 : vector<32x12xbf16>, vector<32x12xbf16>, vector<32x12xbf16>, vector<32x12xbf16>, vector<32x12xbf16> -> vector<160x12xbf16>
      %cst_59 = arith.constant dense<0.000000e+00> : vector<32x12xf32>
      %119 = tpu.matmul %3, %118, %cst_59 {dimension_numbers = #tpu.dot_dimension_numbers<[1], [0], [0], [1], [0, 0, 1, 1], [], []>} : vector<32x160xbf16>, vector<160x12xbf16>, vector<32x12xf32> -> vector<32x12xf32>
      %120 = arith.addf %112, %119 : vector<32x12xf32>
      %121 = vector.extract_strided_slice %50 {offsets = [0, 0], sizes = [32, 12], strides = [1, 1]} : vector<32x14xbf16> to vector<32x12xbf16>
      %122 = vector.extract_strided_slice %26 {offsets = [0, 1], sizes = [32, 12], strides = [1, 1]} : vector<32x14xbf16> to vector<32x12xbf16>
      %123 = vector.extract_strided_slice %50 {offsets = [0, 1], sizes = [32, 12], strides = [1, 1]} : vector<32x14xbf16> to vector<32x12xbf16>
      %124 = vector.extract_strided_slice %26 {offsets = [0, 2], sizes = [32, 12], strides = [1, 1]} : vector<32x14xbf16> to vector<32x12xbf16>
      %125 = vector.extract_strided_slice %50 {offsets = [0, 2], sizes = [32, 12], strides = [1, 1]} : vector<32x14xbf16> to vector<32x12xbf16>
      %126 = tpu.concatenate %121, %122, %123, %124, %125 in 0 : vector<32x12xbf16>, vector<32x12xbf16>, vector<32x12xbf16>, vector<32x12xbf16>, vector<32x12xbf16> -> vector<160x12xbf16>
      %cst_60 = arith.constant dense<0.000000e+00> : vector<32x12xf32>
      %127 = tpu.matmul %4, %126, %cst_60 {dimension_numbers = #tpu.dot_dimension_numbers<[1], [0], [0], [1], [0, 0, 1, 1], [], []>} : vector<32x160xbf16>, vector<160x12xbf16>, vector<32x12xf32> -> vector<32x12xf32>
      %128 = arith.addf %120, %127 : vector<32x12xf32>
      %129 = vector.extract_strided_slice %54 {offsets = [0, 0], sizes = [32, 12], strides = [1, 1]} : vector<32x14xbf16> to vector<32x12xbf16>
      %130 = vector.extract_strided_slice %30 {offsets = [0, 1], sizes = [32, 12], strides = [1, 1]} : vector<32x14xbf16> to vector<32x12xbf16>
      %131 = vector.extract_strided_slice %54 {offsets = [0, 1], sizes = [32, 12], strides = [1, 1]} : vector<32x14xbf16> to vector<32x12xbf16>
      %132 = vector.extract_strided_slice %30 {offsets = [0, 2], sizes = [32, 12], strides = [1, 1]} : vector<32x14xbf16> to vector<32x12xbf16>
      %133 = vector.extract_strided_slice %54 {offsets = [0, 2], sizes = [32, 12], strides = [1, 1]} : vector<32x14xbf16> to vector<32x12xbf16>
      %134 = tpu.concatenate %129, %130, %131, %132, %133 in 0 : vector<32x12xbf16>, vector<32x12xbf16>, vector<32x12xbf16>, vector<32x12xbf16>, vector<32x12xbf16> -> vector<160x12xbf16>
      %cst_61 = arith.constant dense<0.000000e+00> : vector<32x12xf32>
      %135 = tpu.matmul %5, %134, %cst_61 {dimension_numbers = #tpu.dot_dimension_numbers<[1], [0], [0], [1], [0, 0, 1, 1], [], []>} : vector<32x160xbf16>, vector<160x12xbf16>, vector<32x12xf32> -> vector<32x12xf32>
      %136 = arith.addf %128, %135 : vector<32x12xf32>
      %137 = vector.extract_strided_slice %18 {offsets = [0, 0], sizes = [32, 12], strides = [1, 1]} : vector<32x14xbf16> to vector<32x12xbf16>
      %138 = vector.extract_strided_slice %42 {offsets = [0, 0], sizes = [32, 12], strides = [1, 1]} : vector<32x14xbf16> to vector<32x12xbf16>
      %139 = vector.extract_strided_slice %18 {offsets = [0, 1], sizes = [32, 12], strides = [1, 1]} : vector<32x14xbf16> to vector<32x12xbf16>
      %140 = vector.extract_strided_slice %42 {offsets = [0, 1], sizes = [32, 12], strides = [1, 1]} : vector<32x14xbf16> to vector<32x12xbf16>
      %141 = vector.extract_strided_slice %18 {offsets = [0, 2], sizes = [32, 12], strides = [1, 1]} : vector<32x14xbf16> to vector<32x12xbf16>
      %142 = tpu.concatenate %137, %138, %139, %140, %141 in 0 : vector<32x12xbf16>, vector<32x12xbf16>, vector<32x12xbf16>, vector<32x12xbf16>, vector<32x12xbf16> -> vector<160x12xbf16>
      %cst_62 = arith.constant dense<0.000000e+00> : vector<32x12xf32>
      %143 = tpu.matmul %1, %142, %cst_62 {dimension_numbers = #tpu.dot_dimension_numbers<[1], [0], [0], [1], [0, 0, 1, 1], [], []>} : vector<32x160xbf16>, vector<160x12xbf16>, vector<32x12xf32> -> vector<32x12xf32>
      %144 = vector.extract_strided_slice %22 {offsets = [0, 0], sizes = [32, 12], strides = [1, 1]} : vector<32x14xbf16> to vector<32x12xbf16>
      %145 = vector.extract_strided_slice %46 {offsets = [0, 0], sizes = [32, 12], strides = [1, 1]} : vector<32x14xbf16> to vector<32x12xbf16>
      %146 = vector.extract_strided_slice %22 {offsets = [0, 1], sizes = [32, 12], strides = [1, 1]} : vector<32x14xbf16> to vector<32x12xbf16>
      %147 = vector.extract_strided_slice %46 {offsets = [0, 1], sizes = [32, 12], strides = [1, 1]} : vector<32x14xbf16> to vector<32x12xbf16>
      %148 = vector.extract_strided_slice %22 {offsets = [0, 2], sizes = [32, 12], strides = [1, 1]} : vector<32x14xbf16> to vector<32x12xbf16>
      %149 = tpu.concatenate %144, %145, %146, %147, %148 in 0 : vector<32x12xbf16>, vector<32x12xbf16>, vector<32x12xbf16>, vector<32x12xbf16>, vector<32x12xbf16> -> vector<160x12xbf16>
      %cst_63 = arith.constant dense<0.000000e+00> : vector<32x12xf32>
      %150 = tpu.matmul %2, %149, %cst_63 {dimension_numbers = #tpu.dot_dimension_numbers<[1], [0], [0], [1], [0, 0, 1, 1], [], []>} : vector<32x160xbf16>, vector<160x12xbf16>, vector<32x12xf32> -> vector<32x12xf32>
      %151 = arith.addf %143, %150 : vector<32x12xf32>
      %152 = vector.extract_strided_slice %26 {offsets = [0, 0], sizes = [32, 12], strides = [1, 1]} : vector<32x14xbf16> to vector<32x12xbf16>
      %153 = vector.extract_strided_slice %50 {offsets = [0, 0], sizes = [32, 12], strides = [1, 1]} : vector<32x14xbf16> to vector<32x12xbf16>
      %154 = vector.extract_strided_slice %26 {offsets = [0, 1], sizes = [32, 12], strides = [1, 1]} : vector<32x14xbf16> to vector<32x12xbf16>
      %155 = vector.extract_strided_slice %50 {offsets = [0, 1], sizes = [32, 12], strides = [1, 1]} : vector<32x14xbf16> to vector<32x12xbf16>
      %156 = vector.extract_strided_slice %26 {offsets = [0, 2], sizes = [32, 12], strides = [1, 1]} : vector<32x14xbf16> to vector<32x12xbf16>
      %157 = tpu.concatenate %152, %153, %154, %155, %156 in 0 : vector<32x12xbf16>, vector<32x12xbf16>, vector<32x12xbf16>, vector<32x12xbf16>, vector<32x12xbf16> -> vector<160x12xbf16>
      %cst_64 = arith.constant dense<0.000000e+00> : vector<32x12xf32>
      %158 = tpu.matmul %3, %157, %cst_64 {dimension_numbers = #tpu.dot_dimension_numbers<[1], [0], [0], [1], [0, 0, 1, 1], [], []>} : vector<32x160xbf16>, vector<160x12xbf16>, vector<32x12xf32> -> vector<32x12xf32>
      %159 = arith.addf %151, %158 : vector<32x12xf32>
      %160 = vector.extract_strided_slice %30 {offsets = [0, 0], sizes = [32, 12], strides = [1, 1]} : vector<32x14xbf16> to vector<32x12xbf16>
      %161 = vector.extract_strided_slice %54 {offsets = [0, 0], sizes = [32, 12], strides = [1, 1]} : vector<32x14xbf16> to vector<32x12xbf16>
      %162 = vector.extract_strided_slice %30 {offsets = [0, 1], sizes = [32, 12], strides = [1, 1]} : vector<32x14xbf16> to vector<32x12xbf16>
      %163 = vector.extract_strided_slice %54 {offsets = [0, 1], sizes = [32, 12], strides = [1, 1]} : vector<32x14xbf16> to vector<32x12xbf16>
      %164 = vector.extract_strided_slice %30 {offsets = [0, 2], sizes = [32, 12], strides = [1, 1]} : vector<32x14xbf16> to vector<32x12xbf16>
      %165 = tpu.concatenate %160, %161, %162, %163, %164 in 0 : vector<32x12xbf16>, vector<32x12xbf16>, vector<32x12xbf16>, vector<32x12xbf16>, vector<32x12xbf16> -> vector<160x12xbf16>
      %cst_65 = arith.constant dense<0.000000e+00> : vector<32x12xf32>
      %166 = tpu.matmul %4, %165, %cst_65 {dimension_numbers = #tpu.dot_dimension_numbers<[1], [0], [0], [1], [0, 0, 1, 1], [], []>} : vector<32x160xbf16>, vector<160x12xbf16>, vector<32x12xf32> -> vector<32x12xf32>
      %167 = arith.addf %159, %166 : vector<32x12xf32>
      %168 = vector.extract_strided_slice %34 {offsets = [0, 0], sizes = [32, 12], strides = [1, 1]} : vector<32x14xbf16> to vector<32x12xbf16>
      %169 = vector.extract_strided_slice %58 {offsets = [0, 0], sizes = [32, 12], strides = [1, 1]} : vector<32x14xbf16> to vector<32x12xbf16>
      %170 = vector.extract_strided_slice %34 {offsets = [0, 1], sizes = [32, 12], strides = [1, 1]} : vector<32x14xbf16> to vector<32x12xbf16>
      %171 = vector.extract_strided_slice %58 {offsets = [0, 1], sizes = [32, 12], strides = [1, 1]} : vector<32x14xbf16> to vector<32x12xbf16>
      %172 = vector.extract_strided_slice %34 {offsets = [0, 2], sizes = [32, 12], strides = [1, 1]} : vector<32x14xbf16> to vector<32x12xbf16>
      %173 = tpu.concatenate %168, %169, %170, %171, %172 in 0 : vector<32x12xbf16>, vector<32x12xbf16>, vector<32x12xbf16>, vector<32x12xbf16>, vector<32x12xbf16> -> vector<160x12xbf16>
      %cst_66 = arith.constant dense<0.000000e+00> : vector<32x12xf32>
      %174 = tpu.matmul %5, %173, %cst_66 {dimension_numbers = #tpu.dot_dimension_numbers<[1], [0], [0], [1], [0, 0, 1, 1], [], []>} : vector<32x160xbf16>, vector<160x12xbf16>, vector<32x12xf32> -> vector<32x12xf32>
      %175 = arith.addf %167, %174 : vector<32x12xf32>
      %176 = vector.extract_strided_slice %42 {offsets = [0, 0], sizes = [32, 12], strides = [1, 1]} : vector<32x14xbf16> to vector<32x12xbf16>
      %177 = vector.extract_strided_slice %18 {offsets = [0, 1], sizes = [32, 12], strides = [1, 1]} : vector<32x14xbf16> to vector<32x12xbf16>
      %178 = vector.extract_strided_slice %42 {offsets = [0, 1], sizes = [32, 12], strides = [1, 1]} : vector<32x14xbf16> to vector<32x12xbf16>
      %179 = vector.extract_strided_slice %18 {offsets = [0, 2], sizes = [32, 12], strides = [1, 1]} : vector<32x14xbf16> to vector<32x12xbf16>
      %180 = vector.extract_strided_slice %42 {offsets = [0, 2], sizes = [32, 12], strides = [1, 1]} : vector<32x14xbf16> to vector<32x12xbf16>
      %181 = tpu.concatenate %176, %177, %178, %179, %180 in 0 : vector<32x12xbf16>, vector<32x12xbf16>, vector<32x12xbf16>, vector<32x12xbf16>, vector<32x12xbf16> -> vector<160x12xbf16>
      %cst_67 = arith.constant dense<0.000000e+00> : vector<32x12xf32>
      %182 = tpu.matmul %1, %181, %cst_67 {dimension_numbers = #tpu.dot_dimension_numbers<[1], [0], [0], [1], [0, 0, 1, 1], [], []>} : vector<32x160xbf16>, vector<160x12xbf16>, vector<32x12xf32> -> vector<32x12xf32>
      %183 = vector.extract_strided_slice %46 {offsets = [0, 0], sizes = [32, 12], strides = [1, 1]} : vector<32x14xbf16> to vector<32x12xbf16>
      %184 = vector.extract_strided_slice %22 {offsets = [0, 1], sizes = [32, 12], strides = [1, 1]} : vector<32x14xbf16> to vector<32x12xbf16>
      %185 = vector.extract_strided_slice %46 {offsets = [0, 1], sizes = [32, 12], strides = [1, 1]} : vector<32x14xbf16> to vector<32x12xbf16>
      %186 = vector.extract_strided_slice %22 {offsets = [0, 2], sizes = [32, 12], strides = [1, 1]} : vector<32x14xbf16> to vector<32x12xbf16>
      %187 = vector.extract_strided_slice %46 {offsets = [0, 2], sizes = [32, 12], strides = [1, 1]} : vector<32x14xbf16> to vector<32x12xbf16>
      %188 = tpu.concatenate %183, %184, %185, %186, %187 in 0 : vector<32x12xbf16>, vector<32x12xbf16>, vector<32x12xbf16>, vector<32x12xbf16>, vector<32x12xbf16> -> vector<160x12xbf16>
      %cst_68 = arith.constant dense<0.000000e+00> : vector<32x12xf32>
      %189 = tpu.matmul %2, %188, %cst_68 {dimension_numbers = #tpu.dot_dimension_numbers<[1], [0], [0], [1], [0, 0, 1, 1], [], []>} : vector<32x160xbf16>, vector<160x12xbf16>, vector<32x12xf32> -> vector<32x12xf32>
      %190 = arith.addf %182, %189 : vector<32x12xf32>
      %191 = vector.extract_strided_slice %50 {offsets = [0, 0], sizes = [32, 12], strides = [1, 1]} : vector<32x14xbf16> to vector<32x12xbf16>
      %192 = vector.extract_strided_slice %26 {offsets = [0, 1], sizes = [32, 12], strides = [1, 1]} : vector<32x14xbf16> to vector<32x12xbf16>
      %193 = vector.extract_strided_slice %50 {offsets = [0, 1], sizes = [32, 12], strides = [1, 1]} : vector<32x14xbf16> to vector<32x12xbf16>
      %194 = vector.extract_strided_slice %26 {offsets = [0, 2], sizes = [32, 12], strides = [1, 1]} : vector<32x14xbf16> to vector<32x12xbf16>
      %195 = vector.extract_strided_slice %50 {offsets = [0, 2], sizes = [32, 12], strides = [1, 1]} : vector<32x14xbf16> to vector<32x12xbf16>
      %196 = tpu.concatenate %191, %192, %193, %194, %195 in 0 : vector<32x12xbf16>, vector<32x12xbf16>, vector<32x12xbf16>, vector<32x12xbf16>, vector<32x12xbf16> -> vector<160x12xbf16>
      %cst_69 = arith.constant dense<0.000000e+00> : vector<32x12xf32>
      %197 = tpu.matmul %3, %196, %cst_69 {dimension_numbers = #tpu.dot_dimension_numbers<[1], [0], [0], [1], [0, 0, 1, 1], [], []>} : vector<32x160xbf16>, vector<160x12xbf16>, vector<32x12xf32> -> vector<32x12xf32>
      %198 = arith.addf %190, %197 : vector<32x12xf32>
      %199 = vector.extract_strided_slice %54 {offsets = [0, 0], sizes = [32, 12], strides = [1, 1]} : vector<32x14xbf16> to vector<32x12xbf16>
      %200 = vector.extract_strided_slice %30 {offsets = [0, 1], sizes = [32, 12], strides = [1, 1]} : vector<32x14xbf16> to vector<32x12xbf16>
      %201 = vector.extract_strided_slice %54 {offsets = [0, 1], sizes = [32, 12], strides = [1, 1]} : vector<32x14xbf16> to vector<32x12xbf16>
      %202 = vector.extract_strided_slice %30 {offsets = [0, 2], sizes = [32, 12], strides = [1, 1]} : vector<32x14xbf16> to vector<32x12xbf16>
      %203 = vector.extract_strided_slice %54 {offsets = [0, 2], sizes = [32, 12], strides = [1, 1]} : vector<32x14xbf16> to vector<32x12xbf16>
      %204 = tpu.concatenate %199, %200, %201, %202, %203 in 0 : vector<32x12xbf16>, vector<32x12xbf16>, vector<32x12xbf16>, vector<32x12xbf16>, vector<32x12xbf16> -> vector<160x12xbf16>
      %cst_70 = arith.constant dense<0.000000e+00> : vector<32x12xf32>
      %205 = tpu.matmul %4, %204, %cst_70 {dimension_numbers = #tpu.dot_dimension_numbers<[1], [0], [0], [1], [0, 0, 1, 1], [], []>} : vector<32x160xbf16>, vector<160x12xbf16>, vector<32x12xf32> -> vector<32x12xf32>
      %206 = arith.addf %198, %205 : vector<32x12xf32>
      %207 = vector.extract_strided_slice %58 {offsets = [0, 0], sizes = [32, 12], strides = [1, 1]} : vector<32x14xbf16> to vector<32x12xbf16>
      %208 = vector.extract_strided_slice %34 {offsets = [0, 1], sizes = [32, 12], strides = [1, 1]} : vector<32x14xbf16> to vector<32x12xbf16>
      %209 = vector.extract_strided_slice %58 {offsets = [0, 1], sizes = [32, 12], strides = [1, 1]} : vector<32x14xbf16> to vector<32x12xbf16>
      %210 = vector.extract_strided_slice %34 {offsets = [0, 2], sizes = [32, 12], strides = [1, 1]} : vector<32x14xbf16> to vector<32x12xbf16>
      %211 = vector.extract_strided_slice %58 {offsets = [0, 2], sizes = [32, 12], strides = [1, 1]} : vector<32x14xbf16> to vector<32x12xbf16>
      %212 = tpu.concatenate %207, %208, %209, %210, %211 in 0 : vector<32x12xbf16>, vector<32x12xbf16>, vector<32x12xbf16>, vector<32x12xbf16>, vector<32x12xbf16> -> vector<160x12xbf16>
      %cst_71 = arith.constant dense<0.000000e+00> : vector<32x12xf32>
      %213 = tpu.matmul %5, %212, %cst_71 {dimension_numbers = #tpu.dot_dimension_numbers<[1], [0], [0], [1], [0, 0, 1, 1], [], []>} : vector<32x160xbf16>, vector<160x12xbf16>, vector<32x12xf32> -> vector<32x12xf32>
      %214 = arith.addf %206, %213 : vector<32x12xf32>
      %215 = arith.maximumf %97, %136 : vector<32x12xf32>
      %216 = arith.maximumf %175, %214 : vector<32x12xf32>
      %217 = arith.maximumf %215, %216 : vector<32x12xf32>
      %218 = vector.broadcast %6 : vector<32x1xf32> to vector<32x12xf32>
      %219 = arith.addf %217, %218 : vector<32x12xf32>
      %cst_72 = arith.constant 0.000000e+00 : f32
      %220 = vector.broadcast %cst_72 : f32 to vector<32x12xf32>
      %221 = arith.maximumf %219, %220 : vector<32x12xf32>
      %222 = vector.broadcast %7 : vector<32x1xf32> to vector<32x12xf32>
      %223 = arith.mulf %221, %222 : vector<32x12xf32>
      %224 = vector.broadcast %8 : vector<32x1xf32> to vector<32x12xf32>
      %225 = arith.addf %223, %224 : vector<32x12xf32>
      %226 = arith.truncf %225 : vector<32x12xf32> to vector<32x12xbf16>
      %c0_73 = arith.constant 0 : index
      %227 = arith.index_cast %arg8 : i32 to index
      %c0_74 = arith.constant 0 : index
      %c0_75 = arith.constant 0 : index
      %228 = vector.load %arg7[%c0_73, %227, %c0_74, %c0_75] : memref<1x12x32x12xbf16, #tpu.memory_space<vmem>>, vector<1x1x32x12xbf16>
      %229 = vector.shape_cast %228 : vector<1x1x32x12xbf16> to vector<32x12xbf16>
      %230 = vector.shape_cast %226 : vector<32x12xbf16> to vector<1x1x32x12xbf16>
      tpu.vector_store %arg7[%c0_73, %227, %c0_74, %c0_75], %230 {strides = array<i32>} : memref<1x12x32x12xbf16, #tpu.memory_space<vmem>>, vector<1x1x32x12xbf16>,
    }
    %c12_i32_7 = arith.constant 12 : i32
    return
  }
  func.func @transform_0(%arg0: i32) -> (i32, i32, i32, i32) {
    %c0_i32 = arith.constant 0 : i32
    %c0_i32_0 = arith.constant 0 : i32
    %c0_i32_1 = arith.constant 0 : i32
    %c0_i32_2 = arith.constant 0 : i32
    return %arg0, %c0_i32, %c0_i32_0, %c0_i32_1 : i32, i32, i32, i32
  }
  func.func @transform_1(%arg0: i32) -> (i32, i32, i32, i32) {
    %c0_i32 = arith.constant 0 : i32
    %c0_i32_0 = arith.constant 0 : i32
    %c0_i32_1 = arith.constant 0 : i32
    %c0_i32_2 = arith.constant 0 : i32
    return %arg0, %c0_i32, %c0_i32_0, %c0_i32_1 : i32, i32, i32, i32
  }
  func.func @transform_2(%arg0: i32) -> (i32, i32) {
    %c0_i32 = arith.constant 0 : i32
    %c0_i32_0 = arith.constant 0 : i32
    %c0_i32_1 = arith.constant 0 : i32
    return %c0_i32, %c0_i32_0 : i32, i32
  }
  func.func @transform_3(%arg0: i32) -> (i32, i32) {
    %c0_i32 = arith.constant 0 : i32
    %c0_i32_0 = arith.constant 0 : i32
    %c0_i32_1 = arith.constant 0 : i32
    return %c0_i32, %c0_i32_0 : i32, i32
  }
  func.func @transform_4(%arg0: i32) -> (i32, i32) {
    %c0_i32 = arith.constant 0 : i32
    %c0_i32_0 = arith.constant 0 : i32
    %c0_i32_1 = arith.constant 0 : i32
    return %c0_i32, %c0_i32_0 : i32, i32
  }
  func.func @transform_5(%arg0: i32) -> (i32, i32) {
    %c0_i32 = arith.constant 0 : i32
    %c0_i32_0 = arith.constant 0 : i32
    %c0_i32_1 = arith.constant 0 : i32
    return %c0_i32, %c0_i32_0 : i32, i32
  }
  func.func @transform_6(%arg0: i32) -> (i32, i32, i32, i32) {
    %c0_i32 = arith.constant 0 : i32
    %c0_i32_0 = arith.constant 0 : i32
    %c0_i32_1 = arith.constant 0 : i32
    %c0_i32_2 = arith.constant 0 : i32
    return %arg0, %c0_i32, %c0_i32_0, %c0_i32_1 : i32, i32, i32, i32
  }
}

module attributes {stable_mosaic.version = 11 : i64} {
  func.func @_conv_pool_bn_kernel(%arg0: i32, %arg1: memref<1x14x32x7xbf16, #tpu.memory_space<vmem>>, %arg2: memref<1x14x32x7xbf16, #tpu.memory_space<vmem>>, %arg3: memref<32x800xbf16, #tpu.memory_space<vmem>>, %arg4: memref<32x1xf32, #tpu.memory_space<vmem>>, %arg5: memref<32x1xf32, #tpu.memory_space<vmem>>, %arg6: memref<32x1xf32, #tpu.memory_space<vmem>>, %arg7: memref<1x5x32x5xbf16, #tpu.memory_space<vmem>>) attributes {dimension_semantics = [#tpu.dimension_semantics<parallel>], iteration_bounds = array<i64: 2>, scalar_prefetch = 0 : i64, scratch_operands = 0 : i64, tpu.core_type = #tpu.core_type<tc>, window_params = [{transform_indices = @transform_0, window_bounds = array<i64: 1, 14, 32, 7>}, {transform_indices = @transform_1, window_bounds = array<i64: 1, 14, 32, 7>}, {pipeline_mode = #tpu.pipeline_mode<synchronous>, transform_indices = @transform_2, window_bounds = array<i64: 32, 800>}, {pipeline_mode = #tpu.pipeline_mode<synchronous>, transform_indices = @transform_3, window_bounds = array<i64: 32, 1>}, {pipeline_mode = #tpu.pipeline_mode<synchronous>, transform_indices = @transform_4, window_bounds = array<i64: 32, 1>}, {pipeline_mode = #tpu.pipeline_mode<synchronous>, transform_indices = @transform_5, window_bounds = array<i64: 32, 1>}, {transform_indices = @transform_6, window_bounds = array<i64: 1, 5, 32, 5>}]} {
    %c0 = arith.constant 0 : index
    %c0_0 = arith.constant 0 : index
    %0 = vector.load %arg3[%c0, %c0_0] : memref<32x800xbf16, #tpu.memory_space<vmem>>, vector<32x800xbf16>
    %1 = vector.extract_strided_slice %0 {offsets = [0, 0], sizes = [32, 160], strides = [1, 1]} : vector<32x800xbf16> to vector<32x160xbf16>
    %2 = vector.extract_strided_slice %0 {offsets = [0, 160], sizes = [32, 160], strides = [1, 1]} : vector<32x800xbf16> to vector<32x160xbf16>
    %3 = vector.extract_strided_slice %0 {offsets = [0, 320], sizes = [32, 160], strides = [1, 1]} : vector<32x800xbf16> to vector<32x160xbf16>
    %4 = vector.extract_strided_slice %0 {offsets = [0, 480], sizes = [32, 160], strides = [1, 1]} : vector<32x800xbf16> to vector<32x160xbf16>
    %5 = vector.extract_strided_slice %0 {offsets = [0, 640], sizes = [32, 160], strides = [1, 1]} : vector<32x800xbf16> to vector<32x160xbf16>
    %c0_1 = arith.constant 0 : index
    %c0_2 = arith.constant 0 : index
    %6 = vector.load %arg4[%c0_1, %c0_2] : memref<32x1xf32, #tpu.memory_space<vmem>>, vector<32x1xf32>
    %c0_3 = arith.constant 0 : index
    %c0_4 = arith.constant 0 : index
    %7 = vector.load %arg5[%c0_3, %c0_4] : memref<32x1xf32, #tpu.memory_space<vmem>>, vector<32x1xf32>
    %c0_5 = arith.constant 0 : index
    %c0_6 = arith.constant 0 : index
    %8 = vector.load %arg6[%c0_5, %c0_6] : memref<32x1xf32, #tpu.memory_space<vmem>>, vector<32x1xf32>
    %c0_i32 = arith.constant 0 : i32
    %c5_i32 = arith.constant 5 : i32
    %9 = arith.addi %c0_i32, %c5_i32 : i32
    %c1_i32 = arith.constant 1 : i32
    scf.for %arg8 = %c0_i32 to %9 step %c1_i32  : i32 {
      %c2_i32 = arith.constant 2 : i32
      %10 = arith.muli %c2_i32, %arg8 : i32
      %c0_i32_8 = arith.constant 0 : i32
      %11 = arith.addi %10, %c0_i32_8 : i32
      %c0_9 = arith.constant 0 : index
      %12 = arith.index_cast %11 : i32 to index
      %c0_10 = arith.constant 0 : index
      %c0_11 = arith.constant 0 : index
      %13 = vector.load %arg1[%c0_9, %12, %c0_10, %c0_11] : memref<1x14x32x7xbf16, #tpu.memory_space<vmem>>, vector<1x1x32x7xbf16>
      %14 = vector.shape_cast %13 : vector<1x1x32x7xbf16> to vector<32x7xbf16>
      %c1_i32_12 = arith.constant 1 : i32
      %15 = arith.addi %10, %c1_i32_12 : i32
      %c0_13 = arith.constant 0 : index
      %16 = arith.index_cast %15 : i32 to index
      %c0_14 = arith.constant 0 : index
      %c0_15 = arith.constant 0 : index
      %17 = vector.load %arg1[%c0_13, %16, %c0_14, %c0_15] : memref<1x14x32x7xbf16, #tpu.memory_space<vmem>>, vector<1x1x32x7xbf16>
      %18 = vector.shape_cast %17 : vector<1x1x32x7xbf16> to vector<32x7xbf16>
      %c2_i32_16 = arith.constant 2 : i32
      %19 = arith.addi %10, %c2_i32_16 : i32
      %c0_17 = arith.constant 0 : index
      %20 = arith.index_cast %19 : i32 to index
      %c0_18 = arith.constant 0 : index
      %c0_19 = arith.constant 0 : index
      %21 = vector.load %arg1[%c0_17, %20, %c0_18, %c0_19] : memref<1x14x32x7xbf16, #tpu.memory_space<vmem>>, vector<1x1x32x7xbf16>
      %22 = vector.shape_cast %21 : vector<1x1x32x7xbf16> to vector<32x7xbf16>
      %c3_i32 = arith.constant 3 : i32
      %23 = arith.addi %10, %c3_i32 : i32
      %c0_20 = arith.constant 0 : index
      %24 = arith.index_cast %23 : i32 to index
      %c0_21 = arith.constant 0 : index
      %c0_22 = arith.constant 0 : index
      %25 = vector.load %arg1[%c0_20, %24, %c0_21, %c0_22] : memref<1x14x32x7xbf16, #tpu.memory_space<vmem>>, vector<1x1x32x7xbf16>
      %26 = vector.shape_cast %25 : vector<1x1x32x7xbf16> to vector<32x7xbf16>
      %c4_i32 = arith.constant 4 : i32
      %27 = arith.addi %10, %c4_i32 : i32
      %c0_23 = arith.constant 0 : index
      %28 = arith.index_cast %27 : i32 to index
      %c0_24 = arith.constant 0 : index
      %c0_25 = arith.constant 0 : index
      %29 = vector.load %arg1[%c0_23, %28, %c0_24, %c0_25] : memref<1x14x32x7xbf16, #tpu.memory_space<vmem>>, vector<1x1x32x7xbf16>
      %30 = vector.shape_cast %29 : vector<1x1x32x7xbf16> to vector<32x7xbf16>
      %c5_i32_26 = arith.constant 5 : i32
      %31 = arith.addi %10, %c5_i32_26 : i32
      %c0_27 = arith.constant 0 : index
      %32 = arith.index_cast %31 : i32 to index
      %c0_28 = arith.constant 0 : index
      %c0_29 = arith.constant 0 : index
      %33 = vector.load %arg1[%c0_27, %32, %c0_28, %c0_29] : memref<1x14x32x7xbf16, #tpu.memory_space<vmem>>, vector<1x1x32x7xbf16>
      %34 = vector.shape_cast %33 : vector<1x1x32x7xbf16> to vector<32x7xbf16>
      %c0_i32_30 = arith.constant 0 : i32
      %35 = arith.addi %10, %c0_i32_30 : i32
      %c0_31 = arith.constant 0 : index
      %36 = arith.index_cast %35 : i32 to index
      %c0_32 = arith.constant 0 : index
      %c0_33 = arith.constant 0 : index
      %37 = vector.load %arg2[%c0_31, %36, %c0_32, %c0_33] : memref<1x14x32x7xbf16, #tpu.memory_space<vmem>>, vector<1x1x32x7xbf16>
      %38 = vector.shape_cast %37 : vector<1x1x32x7xbf16> to vector<32x7xbf16>
      %c1_i32_34 = arith.constant 1 : i32
      %39 = arith.addi %10, %c1_i32_34 : i32
      %c0_35 = arith.constant 0 : index
      %40 = arith.index_cast %39 : i32 to index
      %c0_36 = arith.constant 0 : index
      %c0_37 = arith.constant 0 : index
      %41 = vector.load %arg2[%c0_35, %40, %c0_36, %c0_37] : memref<1x14x32x7xbf16, #tpu.memory_space<vmem>>, vector<1x1x32x7xbf16>
      %42 = vector.shape_cast %41 : vector<1x1x32x7xbf16> to vector<32x7xbf16>
      %c2_i32_38 = arith.constant 2 : i32
      %43 = arith.addi %10, %c2_i32_38 : i32
      %c0_39 = arith.constant 0 : index
      %44 = arith.index_cast %43 : i32 to index
      %c0_40 = arith.constant 0 : index
      %c0_41 = arith.constant 0 : index
      %45 = vector.load %arg2[%c0_39, %44, %c0_40, %c0_41] : memref<1x14x32x7xbf16, #tpu.memory_space<vmem>>, vector<1x1x32x7xbf16>
      %46 = vector.shape_cast %45 : vector<1x1x32x7xbf16> to vector<32x7xbf16>
      %c3_i32_42 = arith.constant 3 : i32
      %47 = arith.addi %10, %c3_i32_42 : i32
      %c0_43 = arith.constant 0 : index
      %48 = arith.index_cast %47 : i32 to index
      %c0_44 = arith.constant 0 : index
      %c0_45 = arith.constant 0 : index
      %49 = vector.load %arg2[%c0_43, %48, %c0_44, %c0_45] : memref<1x14x32x7xbf16, #tpu.memory_space<vmem>>, vector<1x1x32x7xbf16>
      %50 = vector.shape_cast %49 : vector<1x1x32x7xbf16> to vector<32x7xbf16>
      %c4_i32_46 = arith.constant 4 : i32
      %51 = arith.addi %10, %c4_i32_46 : i32
      %c0_47 = arith.constant 0 : index
      %52 = arith.index_cast %51 : i32 to index
      %c0_48 = arith.constant 0 : index
      %c0_49 = arith.constant 0 : index
      %53 = vector.load %arg2[%c0_47, %52, %c0_48, %c0_49] : memref<1x14x32x7xbf16, #tpu.memory_space<vmem>>, vector<1x1x32x7xbf16>
      %54 = vector.shape_cast %53 : vector<1x1x32x7xbf16> to vector<32x7xbf16>
      %c5_i32_50 = arith.constant 5 : i32
      %55 = arith.addi %10, %c5_i32_50 : i32
      %c0_51 = arith.constant 0 : index
      %56 = arith.index_cast %55 : i32 to index
      %c0_52 = arith.constant 0 : index
      %c0_53 = arith.constant 0 : index
      %57 = vector.load %arg2[%c0_51, %56, %c0_52, %c0_53] : memref<1x14x32x7xbf16, #tpu.memory_space<vmem>>, vector<1x1x32x7xbf16>
      %58 = vector.shape_cast %57 : vector<1x1x32x7xbf16> to vector<32x7xbf16>
      %59 = vector.extract_strided_slice %14 {offsets = [0, 0], sizes = [32, 5], strides = [1, 1]} : vector<32x7xbf16> to vector<32x5xbf16>
      %60 = vector.extract_strided_slice %38 {offsets = [0, 0], sizes = [32, 5], strides = [1, 1]} : vector<32x7xbf16> to vector<32x5xbf16>
      %61 = vector.extract_strided_slice %14 {offsets = [0, 1], sizes = [32, 5], strides = [1, 1]} : vector<32x7xbf16> to vector<32x5xbf16>
      %62 = vector.extract_strided_slice %38 {offsets = [0, 1], sizes = [32, 5], strides = [1, 1]} : vector<32x7xbf16> to vector<32x5xbf16>
      %63 = vector.extract_strided_slice %14 {offsets = [0, 2], sizes = [32, 5], strides = [1, 1]} : vector<32x7xbf16> to vector<32x5xbf16>
      %64 = tpu.concatenate %59, %60, %61, %62, %63 in 0 : vector<32x5xbf16>, vector<32x5xbf16>, vector<32x5xbf16>, vector<32x5xbf16>, vector<32x5xbf16> -> vector<160x5xbf16>
      %cst = arith.constant dense<0.000000e+00> : vector<32x5xf32>
      %65 = tpu.matmul %1, %64, %cst {dimension_numbers = #tpu.dot_dimension_numbers<[1], [0], [0], [1], [0, 0, 1, 1], [], []>} : vector<32x160xbf16>, vector<160x5xbf16>, vector<32x5xf32> -> vector<32x5xf32>
      %66 = vector.extract_strided_slice %18 {offsets = [0, 0], sizes = [32, 5], strides = [1, 1]} : vector<32x7xbf16> to vector<32x5xbf16>
      %67 = vector.extract_strided_slice %42 {offsets = [0, 0], sizes = [32, 5], strides = [1, 1]} : vector<32x7xbf16> to vector<32x5xbf16>
      %68 = vector.extract_strided_slice %18 {offsets = [0, 1], sizes = [32, 5], strides = [1, 1]} : vector<32x7xbf16> to vector<32x5xbf16>
      %69 = vector.extract_strided_slice %42 {offsets = [0, 1], sizes = [32, 5], strides = [1, 1]} : vector<32x7xbf16> to vector<32x5xbf16>
      %70 = vector.extract_strided_slice %18 {offsets = [0, 2], sizes = [32, 5], strides = [1, 1]} : vector<32x7xbf16> to vector<32x5xbf16>
      %71 = tpu.concatenate %66, %67, %68, %69, %70 in 0 : vector<32x5xbf16>, vector<32x5xbf16>, vector<32x5xbf16>, vector<32x5xbf16>, vector<32x5xbf16> -> vector<160x5xbf16>
      %cst_54 = arith.constant dense<0.000000e+00> : vector<32x5xf32>
      %72 = tpu.matmul %2, %71, %cst_54 {dimension_numbers = #tpu.dot_dimension_numbers<[1], [0], [0], [1], [0, 0, 1, 1], [], []>} : vector<32x160xbf16>, vector<160x5xbf16>, vector<32x5xf32> -> vector<32x5xf32>
      %73 = arith.addf %65, %72 : vector<32x5xf32>
      %74 = vector.extract_strided_slice %22 {offsets = [0, 0], sizes = [32, 5], strides = [1, 1]} : vector<32x7xbf16> to vector<32x5xbf16>
      %75 = vector.extract_strided_slice %46 {offsets = [0, 0], sizes = [32, 5], strides = [1, 1]} : vector<32x7xbf16> to vector<32x5xbf16>
      %76 = vector.extract_strided_slice %22 {offsets = [0, 1], sizes = [32, 5], strides = [1, 1]} : vector<32x7xbf16> to vector<32x5xbf16>
      %77 = vector.extract_strided_slice %46 {offsets = [0, 1], sizes = [32, 5], strides = [1, 1]} : vector<32x7xbf16> to vector<32x5xbf16>
      %78 = vector.extract_strided_slice %22 {offsets = [0, 2], sizes = [32, 5], strides = [1, 1]} : vector<32x7xbf16> to vector<32x5xbf16>
      %79 = tpu.concatenate %74, %75, %76, %77, %78 in 0 : vector<32x5xbf16>, vector<32x5xbf16>, vector<32x5xbf16>, vector<32x5xbf16>, vector<32x5xbf16> -> vector<160x5xbf16>
      %cst_55 = arith.constant dense<0.000000e+00> : vector<32x5xf32>
      %80 = tpu.matmul %3, %79, %cst_55 {dimension_numbers = #tpu.dot_dimension_numbers<[1], [0], [0], [1], [0, 0, 1, 1], [], []>} : vector<32x160xbf16>, vector<160x5xbf16>, vector<32x5xf32> -> vector<32x5xf32>
      %81 = arith.addf %73, %80 : vector<32x5xf32>
      %82 = vector.extract_strided_slice %26 {offsets = [0, 0], sizes = [32, 5], strides = [1, 1]} : vector<32x7xbf16> to vector<32x5xbf16>
      %83 = vector.extract_strided_slice %50 {offsets = [0, 0], sizes = [32, 5], strides = [1, 1]} : vector<32x7xbf16> to vector<32x5xbf16>
      %84 = vector.extract_strided_slice %26 {offsets = [0, 1], sizes = [32, 5], strides = [1, 1]} : vector<32x7xbf16> to vector<32x5xbf16>
      %85 = vector.extract_strided_slice %50 {offsets = [0, 1], sizes = [32, 5], strides = [1, 1]} : vector<32x7xbf16> to vector<32x5xbf16>
      %86 = vector.extract_strided_slice %26 {offsets = [0, 2], sizes = [32, 5], strides = [1, 1]} : vector<32x7xbf16> to vector<32x5xbf16>
      %87 = tpu.concatenate %82, %83, %84, %85, %86 in 0 : vector<32x5xbf16>, vector<32x5xbf16>, vector<32x5xbf16>, vector<32x5xbf16>, vector<32x5xbf16> -> vector<160x5xbf16>
      %cst_56 = arith.constant dense<0.000000e+00> : vector<32x5xf32>
      %88 = tpu.matmul %4, %87, %cst_56 {dimension_numbers = #tpu.dot_dimension_numbers<[1], [0], [0], [1], [0, 0, 1, 1], [], []>} : vector<32x160xbf16>, vector<160x5xbf16>, vector<32x5xf32> -> vector<32x5xf32>
      %89 = arith.addf %81, %88 : vector<32x5xf32>
      %90 = vector.extract_strided_slice %30 {offsets = [0, 0], sizes = [32, 5], strides = [1, 1]} : vector<32x7xbf16> to vector<32x5xbf16>
      %91 = vector.extract_strided_slice %54 {offsets = [0, 0], sizes = [32, 5], strides = [1, 1]} : vector<32x7xbf16> to vector<32x5xbf16>
      %92 = vector.extract_strided_slice %30 {offsets = [0, 1], sizes = [32, 5], strides = [1, 1]} : vector<32x7xbf16> to vector<32x5xbf16>
      %93 = vector.extract_strided_slice %54 {offsets = [0, 1], sizes = [32, 5], strides = [1, 1]} : vector<32x7xbf16> to vector<32x5xbf16>
      %94 = vector.extract_strided_slice %30 {offsets = [0, 2], sizes = [32, 5], strides = [1, 1]} : vector<32x7xbf16> to vector<32x5xbf16>
      %95 = tpu.concatenate %90, %91, %92, %93, %94 in 0 : vector<32x5xbf16>, vector<32x5xbf16>, vector<32x5xbf16>, vector<32x5xbf16>, vector<32x5xbf16> -> vector<160x5xbf16>
      %cst_57 = arith.constant dense<0.000000e+00> : vector<32x5xf32>
      %96 = tpu.matmul %5, %95, %cst_57 {dimension_numbers = #tpu.dot_dimension_numbers<[1], [0], [0], [1], [0, 0, 1, 1], [], []>} : vector<32x160xbf16>, vector<160x5xbf16>, vector<32x5xf32> -> vector<32x5xf32>
      %97 = arith.addf %89, %96 : vector<32x5xf32>
      %98 = vector.extract_strided_slice %38 {offsets = [0, 0], sizes = [32, 5], strides = [1, 1]} : vector<32x7xbf16> to vector<32x5xbf16>
      %99 = vector.extract_strided_slice %14 {offsets = [0, 1], sizes = [32, 5], strides = [1, 1]} : vector<32x7xbf16> to vector<32x5xbf16>
      %100 = vector.extract_strided_slice %38 {offsets = [0, 1], sizes = [32, 5], strides = [1, 1]} : vector<32x7xbf16> to vector<32x5xbf16>
      %101 = vector.extract_strided_slice %14 {offsets = [0, 2], sizes = [32, 5], strides = [1, 1]} : vector<32x7xbf16> to vector<32x5xbf16>
      %102 = vector.extract_strided_slice %38 {offsets = [0, 2], sizes = [32, 5], strides = [1, 1]} : vector<32x7xbf16> to vector<32x5xbf16>
      %103 = tpu.concatenate %98, %99, %100, %101, %102 in 0 : vector<32x5xbf16>, vector<32x5xbf16>, vector<32x5xbf16>, vector<32x5xbf16>, vector<32x5xbf16> -> vector<160x5xbf16>
      %cst_58 = arith.constant dense<0.000000e+00> : vector<32x5xf32>
      %104 = tpu.matmul %1, %103, %cst_58 {dimension_numbers = #tpu.dot_dimension_numbers<[1], [0], [0], [1], [0, 0, 1, 1], [], []>} : vector<32x160xbf16>, vector<160x5xbf16>, vector<32x5xf32> -> vector<32x5xf32>
      %105 = vector.extract_strided_slice %42 {offsets = [0, 0], sizes = [32, 5], strides = [1, 1]} : vector<32x7xbf16> to vector<32x5xbf16>
      %106 = vector.extract_strided_slice %18 {offsets = [0, 1], sizes = [32, 5], strides = [1, 1]} : vector<32x7xbf16> to vector<32x5xbf16>
      %107 = vector.extract_strided_slice %42 {offsets = [0, 1], sizes = [32, 5], strides = [1, 1]} : vector<32x7xbf16> to vector<32x5xbf16>
      %108 = vector.extract_strided_slice %18 {offsets = [0, 2], sizes = [32, 5], strides = [1, 1]} : vector<32x7xbf16> to vector<32x5xbf16>
      %109 = vector.extract_strided_slice %42 {offsets = [0, 2], sizes = [32, 5], strides = [1, 1]} : vector<32x7xbf16> to vector<32x5xbf16>
      %110 = tpu.concatenate %105, %106, %107, %108, %109 in 0 : vector<32x5xbf16>, vector<32x5xbf16>, vector<32x5xbf16>, vector<32x5xbf16>, vector<32x5xbf16> -> vector<160x5xbf16>
      %cst_59 = arith.constant dense<0.000000e+00> : vector<32x5xf32>
      %111 = tpu.matmul %2, %110, %cst_59 {dimension_numbers = #tpu.dot_dimension_numbers<[1], [0], [0], [1], [0, 0, 1, 1], [], []>} : vector<32x160xbf16>, vector<160x5xbf16>, vector<32x5xf32> -> vector<32x5xf32>
      %112 = arith.addf %104, %111 : vector<32x5xf32>
      %113 = vector.extract_strided_slice %46 {offsets = [0, 0], sizes = [32, 5], strides = [1, 1]} : vector<32x7xbf16> to vector<32x5xbf16>
      %114 = vector.extract_strided_slice %22 {offsets = [0, 1], sizes = [32, 5], strides = [1, 1]} : vector<32x7xbf16> to vector<32x5xbf16>
      %115 = vector.extract_strided_slice %46 {offsets = [0, 1], sizes = [32, 5], strides = [1, 1]} : vector<32x7xbf16> to vector<32x5xbf16>
      %116 = vector.extract_strided_slice %22 {offsets = [0, 2], sizes = [32, 5], strides = [1, 1]} : vector<32x7xbf16> to vector<32x5xbf16>
      %117 = vector.extract_strided_slice %46 {offsets = [0, 2], sizes = [32, 5], strides = [1, 1]} : vector<32x7xbf16> to vector<32x5xbf16>
      %118 = tpu.concatenate %113, %114, %115, %116, %117 in 0 : vector<32x5xbf16>, vector<32x5xbf16>, vector<32x5xbf16>, vector<32x5xbf16>, vector<32x5xbf16> -> vector<160x5xbf16>
      %cst_60 = arith.constant dense<0.000000e+00> : vector<32x5xf32>
      %119 = tpu.matmul %3, %118, %cst_60 {dimension_numbers = #tpu.dot_dimension_numbers<[1], [0], [0], [1], [0, 0, 1, 1], [], []>} : vector<32x160xbf16>, vector<160x5xbf16>, vector<32x5xf32> -> vector<32x5xf32>
      %120 = arith.addf %112, %119 : vector<32x5xf32>
      %121 = vector.extract_strided_slice %50 {offsets = [0, 0], sizes = [32, 5], strides = [1, 1]} : vector<32x7xbf16> to vector<32x5xbf16>
      %122 = vector.extract_strided_slice %26 {offsets = [0, 1], sizes = [32, 5], strides = [1, 1]} : vector<32x7xbf16> to vector<32x5xbf16>
      %123 = vector.extract_strided_slice %50 {offsets = [0, 1], sizes = [32, 5], strides = [1, 1]} : vector<32x7xbf16> to vector<32x5xbf16>
      %124 = vector.extract_strided_slice %26 {offsets = [0, 2], sizes = [32, 5], strides = [1, 1]} : vector<32x7xbf16> to vector<32x5xbf16>
      %125 = vector.extract_strided_slice %50 {offsets = [0, 2], sizes = [32, 5], strides = [1, 1]} : vector<32x7xbf16> to vector<32x5xbf16>
      %126 = tpu.concatenate %121, %122, %123, %124, %125 in 0 : vector<32x5xbf16>, vector<32x5xbf16>, vector<32x5xbf16>, vector<32x5xbf16>, vector<32x5xbf16> -> vector<160x5xbf16>
      %cst_61 = arith.constant dense<0.000000e+00> : vector<32x5xf32>
      %127 = tpu.matmul %4, %126, %cst_61 {dimension_numbers = #tpu.dot_dimension_numbers<[1], [0], [0], [1], [0, 0, 1, 1], [], []>} : vector<32x160xbf16>, vector<160x5xbf16>, vector<32x5xf32> -> vector<32x5xf32>
      %128 = arith.addf %120, %127 : vector<32x5xf32>
      %129 = vector.extract_strided_slice %54 {offsets = [0, 0], sizes = [32, 5], strides = [1, 1]} : vector<32x7xbf16> to vector<32x5xbf16>
      %130 = vector.extract_strided_slice %30 {offsets = [0, 1], sizes = [32, 5], strides = [1, 1]} : vector<32x7xbf16> to vector<32x5xbf16>
      %131 = vector.extract_strided_slice %54 {offsets = [0, 1], sizes = [32, 5], strides = [1, 1]} : vector<32x7xbf16> to vector<32x5xbf16>
      %132 = vector.extract_strided_slice %30 {offsets = [0, 2], sizes = [32, 5], strides = [1, 1]} : vector<32x7xbf16> to vector<32x5xbf16>
      %133 = vector.extract_strided_slice %54 {offsets = [0, 2], sizes = [32, 5], strides = [1, 1]} : vector<32x7xbf16> to vector<32x5xbf16>
      %134 = tpu.concatenate %129, %130, %131, %132, %133 in 0 : vector<32x5xbf16>, vector<32x5xbf16>, vector<32x5xbf16>, vector<32x5xbf16>, vector<32x5xbf16> -> vector<160x5xbf16>
      %cst_62 = arith.constant dense<0.000000e+00> : vector<32x5xf32>
      %135 = tpu.matmul %5, %134, %cst_62 {dimension_numbers = #tpu.dot_dimension_numbers<[1], [0], [0], [1], [0, 0, 1, 1], [], []>} : vector<32x160xbf16>, vector<160x5xbf16>, vector<32x5xf32> -> vector<32x5xf32>
      %136 = arith.addf %128, %135 : vector<32x5xf32>
      %137 = vector.extract_strided_slice %18 {offsets = [0, 0], sizes = [32, 5], strides = [1, 1]} : vector<32x7xbf16> to vector<32x5xbf16>
      %138 = vector.extract_strided_slice %42 {offsets = [0, 0], sizes = [32, 5], strides = [1, 1]} : vector<32x7xbf16> to vector<32x5xbf16>
      %139 = vector.extract_strided_slice %18 {offsets = [0, 1], sizes = [32, 5], strides = [1, 1]} : vector<32x7xbf16> to vector<32x5xbf16>
      %140 = vector.extract_strided_slice %42 {offsets = [0, 1], sizes = [32, 5], strides = [1, 1]} : vector<32x7xbf16> to vector<32x5xbf16>
      %141 = vector.extract_strided_slice %18 {offsets = [0, 2], sizes = [32, 5], strides = [1, 1]} : vector<32x7xbf16> to vector<32x5xbf16>
      %142 = tpu.concatenate %137, %138, %139, %140, %141 in 0 : vector<32x5xbf16>, vector<32x5xbf16>, vector<32x5xbf16>, vector<32x5xbf16>, vector<32x5xbf16> -> vector<160x5xbf16>
      %cst_63 = arith.constant dense<0.000000e+00> : vector<32x5xf32>
      %143 = tpu.matmul %1, %142, %cst_63 {dimension_numbers = #tpu.dot_dimension_numbers<[1], [0], [0], [1], [0, 0, 1, 1], [], []>} : vector<32x160xbf16>, vector<160x5xbf16>, vector<32x5xf32> -> vector<32x5xf32>
      %144 = vector.extract_strided_slice %22 {offsets = [0, 0], sizes = [32, 5], strides = [1, 1]} : vector<32x7xbf16> to vector<32x5xbf16>
      %145 = vector.extract_strided_slice %46 {offsets = [0, 0], sizes = [32, 5], strides = [1, 1]} : vector<32x7xbf16> to vector<32x5xbf16>
      %146 = vector.extract_strided_slice %22 {offsets = [0, 1], sizes = [32, 5], strides = [1, 1]} : vector<32x7xbf16> to vector<32x5xbf16>
      %147 = vector.extract_strided_slice %46 {offsets = [0, 1], sizes = [32, 5], strides = [1, 1]} : vector<32x7xbf16> to vector<32x5xbf16>
      %148 = vector.extract_strided_slice %22 {offsets = [0, 2], sizes = [32, 5], strides = [1, 1]} : vector<32x7xbf16> to vector<32x5xbf16>
      %149 = tpu.concatenate %144, %145, %146, %147, %148 in 0 : vector<32x5xbf16>, vector<32x5xbf16>, vector<32x5xbf16>, vector<32x5xbf16>, vector<32x5xbf16> -> vector<160x5xbf16>
      %cst_64 = arith.constant dense<0.000000e+00> : vector<32x5xf32>
      %150 = tpu.matmul %2, %149, %cst_64 {dimension_numbers = #tpu.dot_dimension_numbers<[1], [0], [0], [1], [0, 0, 1, 1], [], []>} : vector<32x160xbf16>, vector<160x5xbf16>, vector<32x5xf32> -> vector<32x5xf32>
      %151 = arith.addf %143, %150 : vector<32x5xf32>
      %152 = vector.extract_strided_slice %26 {offsets = [0, 0], sizes = [32, 5], strides = [1, 1]} : vector<32x7xbf16> to vector<32x5xbf16>
      %153 = vector.extract_strided_slice %50 {offsets = [0, 0], sizes = [32, 5], strides = [1, 1]} : vector<32x7xbf16> to vector<32x5xbf16>
      %154 = vector.extract_strided_slice %26 {offsets = [0, 1], sizes = [32, 5], strides = [1, 1]} : vector<32x7xbf16> to vector<32x5xbf16>
      %155 = vector.extract_strided_slice %50 {offsets = [0, 1], sizes = [32, 5], strides = [1, 1]} : vector<32x7xbf16> to vector<32x5xbf16>
      %156 = vector.extract_strided_slice %26 {offsets = [0, 2], sizes = [32, 5], strides = [1, 1]} : vector<32x7xbf16> to vector<32x5xbf16>
      %157 = tpu.concatenate %152, %153, %154, %155, %156 in 0 : vector<32x5xbf16>, vector<32x5xbf16>, vector<32x5xbf16>, vector<32x5xbf16>, vector<32x5xbf16> -> vector<160x5xbf16>
      %cst_65 = arith.constant dense<0.000000e+00> : vector<32x5xf32>
      %158 = tpu.matmul %3, %157, %cst_65 {dimension_numbers = #tpu.dot_dimension_numbers<[1], [0], [0], [1], [0, 0, 1, 1], [], []>} : vector<32x160xbf16>, vector<160x5xbf16>, vector<32x5xf32> -> vector<32x5xf32>
      %159 = arith.addf %151, %158 : vector<32x5xf32>
      %160 = vector.extract_strided_slice %30 {offsets = [0, 0], sizes = [32, 5], strides = [1, 1]} : vector<32x7xbf16> to vector<32x5xbf16>
      %161 = vector.extract_strided_slice %54 {offsets = [0, 0], sizes = [32, 5], strides = [1, 1]} : vector<32x7xbf16> to vector<32x5xbf16>
      %162 = vector.extract_strided_slice %30 {offsets = [0, 1], sizes = [32, 5], strides = [1, 1]} : vector<32x7xbf16> to vector<32x5xbf16>
      %163 = vector.extract_strided_slice %54 {offsets = [0, 1], sizes = [32, 5], strides = [1, 1]} : vector<32x7xbf16> to vector<32x5xbf16>
      %164 = vector.extract_strided_slice %30 {offsets = [0, 2], sizes = [32, 5], strides = [1, 1]} : vector<32x7xbf16> to vector<32x5xbf16>
      %165 = tpu.concatenate %160, %161, %162, %163, %164 in 0 : vector<32x5xbf16>, vector<32x5xbf16>, vector<32x5xbf16>, vector<32x5xbf16>, vector<32x5xbf16> -> vector<160x5xbf16>
      %cst_66 = arith.constant dense<0.000000e+00> : vector<32x5xf32>
      %166 = tpu.matmul %4, %165, %cst_66 {dimension_numbers = #tpu.dot_dimension_numbers<[1], [0], [0], [1], [0, 0, 1, 1], [], []>} : vector<32x160xbf16>, vector<160x5xbf16>, vector<32x5xf32> -> vector<32x5xf32>
      %167 = arith.addf %159, %166 : vector<32x5xf32>
      %168 = vector.extract_strided_slice %34 {offsets = [0, 0], sizes = [32, 5], strides = [1, 1]} : vector<32x7xbf16> to vector<32x5xbf16>
      %169 = vector.extract_strided_slice %58 {offsets = [0, 0], sizes = [32, 5], strides = [1, 1]} : vector<32x7xbf16> to vector<32x5xbf16>
      %170 = vector.extract_strided_slice %34 {offsets = [0, 1], sizes = [32, 5], strides = [1, 1]} : vector<32x7xbf16> to vector<32x5xbf16>
      %171 = vector.extract_strided_slice %58 {offsets = [0, 1], sizes = [32, 5], strides = [1, 1]} : vector<32x7xbf16> to vector<32x5xbf16>
      %172 = vector.extract_strided_slice %34 {offsets = [0, 2], sizes = [32, 5], strides = [1, 1]} : vector<32x7xbf16> to vector<32x5xbf16>
      %173 = tpu.concatenate %168, %169, %170, %171, %172 in 0 : vector<32x5xbf16>, vector<32x5xbf16>, vector<32x5xbf16>, vector<32x5xbf16>, vector<32x5xbf16> -> vector<160x5xbf16>
      %cst_67 = arith.constant dense<0.000000e+00> : vector<32x5xf32>
      %174 = tpu.matmul %5, %173, %cst_67 {dimension_numbers = #tpu.dot_dimension_numbers<[1], [0], [0], [1], [0, 0, 1, 1], [], []>} : vector<32x160xbf16>, vector<160x5xbf16>, vector<32x5xf32> -> vector<32x5xf32>
      %175 = arith.addf %167, %174 : vector<32x5xf32>
      %176 = vector.extract_strided_slice %42 {offsets = [0, 0], sizes = [32, 5], strides = [1, 1]} : vector<32x7xbf16> to vector<32x5xbf16>
      %177 = vector.extract_strided_slice %18 {offsets = [0, 1], sizes = [32, 5], strides = [1, 1]} : vector<32x7xbf16> to vector<32x5xbf16>
      %178 = vector.extract_strided_slice %42 {offsets = [0, 1], sizes = [32, 5], strides = [1, 1]} : vector<32x7xbf16> to vector<32x5xbf16>
      %179 = vector.extract_strided_slice %18 {offsets = [0, 2], sizes = [32, 5], strides = [1, 1]} : vector<32x7xbf16> to vector<32x5xbf16>
      %180 = vector.extract_strided_slice %42 {offsets = [0, 2], sizes = [32, 5], strides = [1, 1]} : vector<32x7xbf16> to vector<32x5xbf16>
      %181 = tpu.concatenate %176, %177, %178, %179, %180 in 0 : vector<32x5xbf16>, vector<32x5xbf16>, vector<32x5xbf16>, vector<32x5xbf16>, vector<32x5xbf16> -> vector<160x5xbf16>
      %cst_68 = arith.constant dense<0.000000e+00> : vector<32x5xf32>
      %182 = tpu.matmul %1, %181, %cst_68 {dimension_numbers = #tpu.dot_dimension_numbers<[1], [0], [0], [1], [0, 0, 1, 1], [], []>} : vector<32x160xbf16>, vector<160x5xbf16>, vector<32x5xf32> -> vector<32x5xf32>
      %183 = vector.extract_strided_slice %46 {offsets = [0, 0], sizes = [32, 5], strides = [1, 1]} : vector<32x7xbf16> to vector<32x5xbf16>
      %184 = vector.extract_strided_slice %22 {offsets = [0, 1], sizes = [32, 5], strides = [1, 1]} : vector<32x7xbf16> to vector<32x5xbf16>
      %185 = vector.extract_strided_slice %46 {offsets = [0, 1], sizes = [32, 5], strides = [1, 1]} : vector<32x7xbf16> to vector<32x5xbf16>
      %186 = vector.extract_strided_slice %22 {offsets = [0, 2], sizes = [32, 5], strides = [1, 1]} : vector<32x7xbf16> to vector<32x5xbf16>
      %187 = vector.extract_strided_slice %46 {offsets = [0, 2], sizes = [32, 5], strides = [1, 1]} : vector<32x7xbf16> to vector<32x5xbf16>
      %188 = tpu.concatenate %183, %184, %185, %186, %187 in 0 : vector<32x5xbf16>, vector<32x5xbf16>, vector<32x5xbf16>, vector<32x5xbf16>, vector<32x5xbf16> -> vector<160x5xbf16>
      %cst_69 = arith.constant dense<0.000000e+00> : vector<32x5xf32>
      %189 = tpu.matmul %2, %188, %cst_69 {dimension_numbers = #tpu.dot_dimension_numbers<[1], [0], [0], [1], [0, 0, 1, 1], [], []>} : vector<32x160xbf16>, vector<160x5xbf16>, vector<32x5xf32> -> vector<32x5xf32>
      %190 = arith.addf %182, %189 : vector<32x5xf32>
      %191 = vector.extract_strided_slice %50 {offsets = [0, 0], sizes = [32, 5], strides = [1, 1]} : vector<32x7xbf16> to vector<32x5xbf16>
      %192 = vector.extract_strided_slice %26 {offsets = [0, 1], sizes = [32, 5], strides = [1, 1]} : vector<32x7xbf16> to vector<32x5xbf16>
      %193 = vector.extract_strided_slice %50 {offsets = [0, 1], sizes = [32, 5], strides = [1, 1]} : vector<32x7xbf16> to vector<32x5xbf16>
      %194 = vector.extract_strided_slice %26 {offsets = [0, 2], sizes = [32, 5], strides = [1, 1]} : vector<32x7xbf16> to vector<32x5xbf16>
      %195 = vector.extract_strided_slice %50 {offsets = [0, 2], sizes = [32, 5], strides = [1, 1]} : vector<32x7xbf16> to vector<32x5xbf16>
      %196 = tpu.concatenate %191, %192, %193, %194, %195 in 0 : vector<32x5xbf16>, vector<32x5xbf16>, vector<32x5xbf16>, vector<32x5xbf16>, vector<32x5xbf16> -> vector<160x5xbf16>
      %cst_70 = arith.constant dense<0.000000e+00> : vector<32x5xf32>
      %197 = tpu.matmul %3, %196, %cst_70 {dimension_numbers = #tpu.dot_dimension_numbers<[1], [0], [0], [1], [0, 0, 1, 1], [], []>} : vector<32x160xbf16>, vector<160x5xbf16>, vector<32x5xf32> -> vector<32x5xf32>
      %198 = arith.addf %190, %197 : vector<32x5xf32>
      %199 = vector.extract_strided_slice %54 {offsets = [0, 0], sizes = [32, 5], strides = [1, 1]} : vector<32x7xbf16> to vector<32x5xbf16>
      %200 = vector.extract_strided_slice %30 {offsets = [0, 1], sizes = [32, 5], strides = [1, 1]} : vector<32x7xbf16> to vector<32x5xbf16>
      %201 = vector.extract_strided_slice %54 {offsets = [0, 1], sizes = [32, 5], strides = [1, 1]} : vector<32x7xbf16> to vector<32x5xbf16>
      %202 = vector.extract_strided_slice %30 {offsets = [0, 2], sizes = [32, 5], strides = [1, 1]} : vector<32x7xbf16> to vector<32x5xbf16>
      %203 = vector.extract_strided_slice %54 {offsets = [0, 2], sizes = [32, 5], strides = [1, 1]} : vector<32x7xbf16> to vector<32x5xbf16>
      %204 = tpu.concatenate %199, %200, %201, %202, %203 in 0 : vector<32x5xbf16>, vector<32x5xbf16>, vector<32x5xbf16>, vector<32x5xbf16>, vector<32x5xbf16> -> vector<160x5xbf16>
      %cst_71 = arith.constant dense<0.000000e+00> : vector<32x5xf32>
      %205 = tpu.matmul %4, %204, %cst_71 {dimension_numbers = #tpu.dot_dimension_numbers<[1], [0], [0], [1], [0, 0, 1, 1], [], []>} : vector<32x160xbf16>, vector<160x5xbf16>, vector<32x5xf32> -> vector<32x5xf32>
      %206 = arith.addf %198, %205 : vector<32x5xf32>
      %207 = vector.extract_strided_slice %58 {offsets = [0, 0], sizes = [32, 5], strides = [1, 1]} : vector<32x7xbf16> to vector<32x5xbf16>
      %208 = vector.extract_strided_slice %34 {offsets = [0, 1], sizes = [32, 5], strides = [1, 1]} : vector<32x7xbf16> to vector<32x5xbf16>
      %209 = vector.extract_strided_slice %58 {offsets = [0, 1], sizes = [32, 5], strides = [1, 1]} : vector<32x7xbf16> to vector<32x5xbf16>
      %210 = vector.extract_strided_slice %34 {offsets = [0, 2], sizes = [32, 5], strides = [1, 1]} : vector<32x7xbf16> to vector<32x5xbf16>
      %211 = vector.extract_strided_slice %58 {offsets = [0, 2], sizes = [32, 5], strides = [1, 1]} : vector<32x7xbf16> to vector<32x5xbf16>
      %212 = tpu.concatenate %207, %208, %209, %210, %211 in 0 : vector<32x5xbf16>, vector<32x5xbf16>, vector<32x5xbf16>, vector<32x5xbf16>, vector<32x5xbf16> -> vector<160x5xbf16>
      %cst_72 = arith.constant dense<0.000000e+00> : vector<32x5xf32>
      %213 = tpu.matmul %5, %212, %cst_72 {dimension_numbers = #tpu.dot_dimension_numbers<[1], [0], [0], [1], [0, 0, 1, 1], [], []>} : vector<32x160xbf16>, vector<160x5xbf16>, vector<32x5xf32> -> vector<32x5xf32>
      %214 = arith.addf %206, %213 : vector<32x5xf32>
      %215 = arith.maximumf %97, %136 : vector<32x5xf32>
      %216 = arith.maximumf %175, %214 : vector<32x5xf32>
      %217 = arith.maximumf %215, %216 : vector<32x5xf32>
      %218 = vector.broadcast %6 : vector<32x1xf32> to vector<32x5xf32>
      %219 = arith.addf %217, %218 : vector<32x5xf32>
      %cst_73 = arith.constant 0.000000e+00 : f32
      %220 = vector.broadcast %cst_73 : f32 to vector<32x5xf32>
      %221 = arith.maximumf %219, %220 : vector<32x5xf32>
      %222 = vector.broadcast %7 : vector<32x1xf32> to vector<32x5xf32>
      %223 = arith.mulf %221, %222 : vector<32x5xf32>
      %224 = vector.broadcast %8 : vector<32x1xf32> to vector<32x5xf32>
      %225 = arith.addf %223, %224 : vector<32x5xf32>
      %226 = arith.truncf %225 : vector<32x5xf32> to vector<32x5xbf16>
      %c0_74 = arith.constant 0 : index
      %227 = arith.index_cast %arg8 : i32 to index
      %c0_75 = arith.constant 0 : index
      %c0_76 = arith.constant 0 : index
      %228 = vector.load %arg7[%c0_74, %227, %c0_75, %c0_76] : memref<1x5x32x5xbf16, #tpu.memory_space<vmem>>, vector<1x1x32x5xbf16>
      %229 = vector.shape_cast %228 : vector<1x1x32x5xbf16> to vector<32x5xbf16>
      %230 = vector.shape_cast %226 : vector<32x5xbf16> to vector<1x1x32x5xbf16>
      tpu.vector_store %arg7[%c0_74, %227, %c0_75, %c0_76], %230 {strides = array<i32>} : memref<1x5x32x5xbf16, #tpu.memory_space<vmem>>, vector<1x1x32x5xbf16>,
    }
    %c5_i32_7 = arith.constant 5 : i32
    return
  }
  func.func @transform_0(%arg0: i32) -> (i32, i32, i32, i32) {
    %c0_i32 = arith.constant 0 : i32
    %c0_i32_0 = arith.constant 0 : i32
    %c0_i32_1 = arith.constant 0 : i32
    %c0_i32_2 = arith.constant 0 : i32
    return %arg0, %c0_i32, %c0_i32_0, %c0_i32_1 : i32, i32, i32, i32
  }
  func.func @transform_1(%arg0: i32) -> (i32, i32, i32, i32) {
    %c0_i32 = arith.constant 0 : i32
    %c0_i32_0 = arith.constant 0 : i32
    %c0_i32_1 = arith.constant 0 : i32
    %c0_i32_2 = arith.constant 0 : i32
    return %arg0, %c0_i32, %c0_i32_0, %c0_i32_1 : i32, i32, i32, i32
  }
  func.func @transform_2(%arg0: i32) -> (i32, i32) {
    %c0_i32 = arith.constant 0 : i32
    %c0_i32_0 = arith.constant 0 : i32
    %c0_i32_1 = arith.constant 0 : i32
    return %c0_i32, %c0_i32_0 : i32, i32
  }
  func.func @transform_3(%arg0: i32) -> (i32, i32) {
    %c0_i32 = arith.constant 0 : i32
    %c0_i32_0 = arith.constant 0 : i32
    %c0_i32_1 = arith.constant 0 : i32
    return %c0_i32, %c0_i32_0 : i32, i32
  }
  func.func @transform_4(%arg0: i32) -> (i32, i32) {
    %c0_i32 = arith.constant 0 : i32
    %c0_i32_0 = arith.constant 0 : i32
    %c0_i32_1 = arith.constant 0 : i32
    return %c0_i32, %c0_i32_0 : i32, i32
  }
  func.func @transform_5(%arg0: i32) -> (i32, i32) {
    %c0_i32 = arith.constant 0 : i32
    %c0_i32_0 = arith.constant 0 : i32
    %c0_i32_1 = arith.constant 0 : i32
    return %c0_i32, %c0_i32_0 : i32, i32
  }
  func.func @transform_6(%arg0: i32) -> (i32, i32, i32, i32) {
    %c0_i32 = arith.constant 0 : i32
    %c0_i32_0 = arith.constant 0 : i32
    %c0_i32_1 = arith.constant 0 : i32
    %c0_i32_2 = arith.constant 0 : i32
    return %arg0, %c0_i32, %c0_i32_0, %c0_i32_1 : i32, i32, i32, i32
  }
}

module attributes {stable_mosaic.version = 11 : i64} {
  func.func @_fc_kernel(%arg0: i32, %arg1: memref<8x800xbf16, #tpu.memory_space<vmem>>, %arg2: memref<800x512xbf16, #tpu.memory_space<vmem>>, %arg3: memref<1x512xf32, #tpu.memory_space<vmem>>, %arg4: memref<512x2xbf16, #tpu.memory_space<vmem>>, %arg5: memref<1x2xf32, #tpu.memory_space<vmem>>, %arg6: memref<8x2xf32, #tpu.memory_space<vmem>>) attributes {dimension_semantics = [#tpu.dimension_semantics<arbitrary>], iteration_bounds = array<i64: 1>, scalar_prefetch = 0 : i64, scratch_operands = 0 : i64, tpu.core_type = #tpu.core_type<tc>, window_params = [{pipeline_mode = #tpu.pipeline_mode<synchronous>, transform_indices = @transform_0, window_bounds = array<i64: 8, 800>}, {pipeline_mode = #tpu.pipeline_mode<synchronous>, transform_indices = @transform_1, window_bounds = array<i64: 800, 512>}, {pipeline_mode = #tpu.pipeline_mode<synchronous>, transform_indices = @transform_2, window_bounds = array<i64: 1, 512>}, {pipeline_mode = #tpu.pipeline_mode<synchronous>, transform_indices = @transform_3, window_bounds = array<i64: 512, 2>}, {pipeline_mode = #tpu.pipeline_mode<synchronous>, transform_indices = @transform_4, window_bounds = array<i64: 1, 2>}, {pipeline_mode = #tpu.pipeline_mode<synchronous>, transform_indices = @transform_5, window_bounds = array<i64: 8, 2>}]} {
    %c0 = arith.constant 0 : index
    %c0_0 = arith.constant 0 : index
    %0 = vector.load %arg1[%c0, %c0_0] : memref<8x800xbf16, #tpu.memory_space<vmem>>, vector<8x800xbf16>
    %c0_1 = arith.constant 0 : index
    %c0_2 = arith.constant 0 : index
    %1 = vector.load %arg2[%c0_1, %c0_2] : memref<800x512xbf16, #tpu.memory_space<vmem>>, vector<800x512xbf16>
    %cst = arith.constant dense<0.000000e+00> : vector<8x512xf32>
    %2 = tpu.matmul %0, %1, %cst {dimension_numbers = #tpu.dot_dimension_numbers<[1], [0], [0], [1], [0, 0, 1, 1], [], []>} : vector<8x800xbf16>, vector<800x512xbf16>, vector<8x512xf32> -> vector<8x512xf32>
    %c0_3 = arith.constant 0 : index
    %c0_4 = arith.constant 0 : index
    %3 = vector.load %arg3[%c0_3, %c0_4] : memref<1x512xf32, #tpu.memory_space<vmem>>, vector<1x512xf32>
    %4 = vector.broadcast %3 : vector<1x512xf32> to vector<8x512xf32>
    %5 = arith.addf %2, %4 : vector<8x512xf32>
    %cst_5 = arith.constant 0.000000e+00 : f32
    %6 = vector.broadcast %cst_5 : f32 to vector<8x512xf32>
    %7 = arith.maximumf %5, %6 : vector<8x512xf32>
    %8 = arith.truncf %7 : vector<8x512xf32> to vector<8x512xbf16>
    %c0_6 = arith.constant 0 : index
    %c0_7 = arith.constant 0 : index
    %9 = vector.load %arg4[%c0_6, %c0_7] : memref<512x2xbf16, #tpu.memory_space<vmem>>, vector<512x2xbf16>
    %cst_8 = arith.constant dense<0.000000e+00> : vector<8x2xf32>
    %10 = tpu.matmul %8, %9, %cst_8 {dimension_numbers = #tpu.dot_dimension_numbers<[1], [0], [0], [1], [0, 0, 1, 1], [], []>} : vector<8x512xbf16>, vector<512x2xbf16>, vector<8x2xf32> -> vector<8x2xf32>
    %c0_9 = arith.constant 0 : index
    %c0_10 = arith.constant 0 : index
    %11 = vector.load %arg5[%c0_9, %c0_10] : memref<1x2xf32, #tpu.memory_space<vmem>>, vector<1x2xf32>
    %12 = vector.broadcast %11 : vector<1x2xf32> to vector<8x2xf32>
    %13 = arith.addf %10, %12 : vector<8x2xf32>
    %c0_11 = arith.constant 0 : index
    %c0_12 = arith.constant 0 : index
    %14 = vector.load %arg6[%c0_11, %c0_12] : memref<8x2xf32, #tpu.memory_space<vmem>>, vector<8x2xf32>
    tpu.vector_store %arg6[%c0_11, %c0_12], %13 {strides = array<i32>} : memref<8x2xf32, #tpu.memory_space<vmem>>, vector<8x2xf32>,
    return
  }
  func.func @transform_0(%arg0: i32) -> (i32, i32) {
    %c0_i32 = arith.constant 0 : i32
    %c0_i32_0 = arith.constant 0 : i32
    %c0_i32_1 = arith.constant 0 : i32
    return %c0_i32, %c0_i32_0 : i32, i32
  }
  func.func @transform_1(%arg0: i32) -> (i32, i32) {
    %c0_i32 = arith.constant 0 : i32
    %c0_i32_0 = arith.constant 0 : i32
    %c0_i32_1 = arith.constant 0 : i32
    return %c0_i32, %c0_i32_0 : i32, i32
  }
  func.func @transform_2(%arg0: i32) -> (i32, i32) {
    %c0_i32 = arith.constant 0 : i32
    %c0_i32_0 = arith.constant 0 : i32
    %c0_i32_1 = arith.constant 0 : i32
    return %c0_i32, %c0_i32_0 : i32, i32
  }
  func.func @transform_3(%arg0: i32) -> (i32, i32) {
    %c0_i32 = arith.constant 0 : i32
    %c0_i32_0 = arith.constant 0 : i32
    %c0_i32_1 = arith.constant 0 : i32
    return %c0_i32, %c0_i32_0 : i32, i32
  }
  func.func @transform_4(%arg0: i32) -> (i32, i32) {
    %c0_i32 = arith.constant 0 : i32
    %c0_i32_0 = arith.constant 0 : i32
    %c0_i32_1 = arith.constant 0 : i32
    return %c0_i32, %c0_i32_0 : i32, i32
  }
  func.func @transform_5(%arg0: i32) -> (i32, i32) {
    %c0_i32 = arith.constant 0 : i32
    %c0_i32_0 = arith.constant 0 : i32
    %c0_i32_1 = arith.constant 0 : i32
    return %c0_i32, %c0_i32_0 : i32, i32
  }
}

</mosaic_0001>

<bundles_post_ra>
// kernel: net_forward.6
= control target key start
LH: loop header
LB: loop body
LE: loop exit
PB: predicated region body
PF: predicated region fallthrough
CT: control target
= control target key end

     0   :  { %s1668_s21 = smov 0   ;;  %s1935_s0 = inlined_call_operand.vmem [shape: bf16[2,222,16,111], index: 0, kind: input, shape index: {}]   ;;  %s1936_s1 = inlined_call_operand.vmem [shape: bf16[2,222,16,111], index: 1, kind: input, shape index: {}]   ;;  %s1937_s2 = inlined_call_operand.vmem [shape: bf16[32,144], index: 2, kind: input, shape index: {}]   ;;  %s1938_s3 = inlined_call_operand.vmem [shape: f32[32,1], index: 3, kind: input, shape index: {}]   ;;  %s1939_s4 = inlined_call_operand.vmem [shape: f32[32,1], index: 4, kind: input, shape index: {}]   ;;  %s1940_s5 = inlined_call_operand.vmem [shape: f32[32,1], index: 5, kind: input, shape index: {}]   ;;  %s1941_s6 = inlined_call_operand.vmem [shape: bf16[2,110,32,110], index: 6, kind: output, shape index: {}]  }
   0x1 LB: > { %s1275_s22 = sadd.s32 4294967295, %s1623_s21   ;;  %p1279_p0 = scmp.ge.s32.totalorder %s1623_s21, 1  ;;  %s1623_s21 = sphi %s1668_s21, %s16_s21  }
   0x2   : > { %p222_p1 = scmp.lt.s32.totalorder %s1623_s21, 3 }
   0x4   : > { %p223_p2 = pnand %p1279_p0, %p222_p1 }
   0x5   : > { %p257_p3 = scmp.lt.s32.totalorder (!%p223_p2), %s1275_s22, 1  ;;  %v1679_v0 = vld [vmem:[%s1937_s2] sm:$0xff] (!%p223_p2)  ;;  %v1684_v1 = vld [vmem:[%s1937_s2 + $0x8] sm:$0xff] (!%p223_p2)  ;;  %v1689_v2 = vld [vmem:[%s1937_s2 + $0x10] sm:$0xff] (!%p223_p2) }
   0x6   : > { %226 = sbr.rel (%p223_p2) target bundleno = 435 (0x1b3), region = 44  ;;  %v1694_v3 = vld [vmem:[%s1937_s2 + $0x18] sm:$0xff] (!%p223_p2)  ;;  %v1699_v4 = vld [vmem:[%s1938_s3] sm:$0xff] (!%p223_p2)  ;;  %v1704_v5 = vld [vmem:[%s1938_s3 + $0x8] sm:$0xff] (!%p223_p2) }
   0x7   : > { %v1709_v6 = vld [vmem:[%s1938_s3 + $0x10] sm:$0xff] (!%p223_p2)  ;;  %v1714_v7 = vld [vmem:[%s1938_s3 + $0x18] sm:$0xff] (!%p223_p2)  ;;  %v1719_v8 = vld [vmem:[%s1939_s4] sm:$0xff] (!%p223_p2) }
   0x8   : > { %v1724_v9 = vld [vmem:[%s1939_s4 + $0x8] sm:$0xff] (!%p223_p2)  ;;  %v1729_v10 = vld [vmem:[%s1939_s4 + $0x10] sm:$0xff] (!%p223_p2)  ;;  %v1734_v11 = vld [vmem:[%s1939_s4 + $0x18] sm:$0xff] (!%p223_p2) }
   0x9   : > { %v1739_v12 = vld [vmem:[%s1940_s5] sm:$0xff] (!%p223_p2)  ;;  %v1744_v13 = vld [vmem:[%s1940_s5 + $0x8] sm:$0xff] (!%p223_p2)  ;;  %v1749_v14 = vld [vmem:[%s1940_s5 + $0x10] sm:$0xff] (!%p223_p2) }
   0xa   : > { %v1754_v15 = vld [vmem:[%s1940_s5 + $0x18] sm:$0xff] (!%p223_p2) }
   0xd   : > { %s1943_s22 = smov (!%p257_p3, %s1275_s22), 1 }
   0xe   : > { %s1581_s25 = smul.u32 1776, %s1943_s22 }
   0xf   : > { %s1582_s8 = smul.u32 1760, %s1943_s22  ;;  %s1771_s22 = smov 0  }
  0x10   : > { %s1759_s13 = scalar_lea.vmem %s1935_s0, %s1581_s25  ;;  %s1764_s16 = scalar_lea.vmem %s1936_s1, %s1581_s25 }
  0x11   : > { %s1769_s19 = scalar_lea.vmem %s1941_s6, %s1582_s8 }
  0x12 LB: >> { %v1778_v16 = vcombine.low %v1679_v0, %v1684_v1  ;;  %s1629_s20 = smov 80   ;;  %s1782_s23 = sshll.u32 %s1627_s22, 4  ;;  %v1786_v17 = vcombine.low %v1689_v2, %v1694_v3  ;;  %v1323_v24 = vcombine.high %v1679_v0, %v1684_v1  ;;  %v1324_v25 = vcombine.high %v1689_v2, %v1694_v3  ;;  %s1627_s22 = sphi %s1771_s22, %s294_s22  }
  0x13   : >> { %s1790_s24 = scalar_lea.vmem %s1759_s13, %s1782_s23  ;;  %s320_s25 = scalar_lea.vmem %s1764_s16, %s1782_s23  ;;  %v1632_v28 = vmov 0   ;;  %vm379_vm0 = vcmask 392192   ;;  %vm519_vm1 = vcmask 261120   ;;  %vm1168_vm2 = vcmask 896000  }
  0x14   : >> { %375 = vrot.lane.b32.xlu1 %v1778_v16, %s1629_s20  ;;  %v1795_v18 = vld [vmem:[%s1790_s24 + $0x8] sm:$0xff]   ;;  %s1630_s26 = smov 127   ;;  %v1608_v20 = vld [vmem:[%s320_s25] sm:$0xff]   ;;  %v1808_v22 = vld [vmem:[%s320_s25 + $0x10] sm:$0xff]   ;;  %s1631_s27 = smov 32   ;;  %1603 = vset.pattern.permute.xlu0 %v1632_v28 }
  0x15   : >> { %v1797_v19 = vld [vmem:[%s320_s25 + $0x8] sm:$0xff]   ;;  %362 = vrot.lane.b32.xlu0 %v1795_v18, %s1630_s26  ;;  %1429 = vmatprep.subr.bf16.mxu0 %v1795_v18  ;;  %v1607_v21 = vld [vmem:[%s1790_s24] sm:$0xff]   ;;  %v1813_v23 = vld [vmem:[%s1790_s24 + $0x10] sm:$0xff]   ;;  %s1167_s28 = scalar_lea.vmem %s1769_s19, %s1782_s23  ;;  %s294_s22 = sadd.s32 1, %s1627_s22  }
  0x16   : >> { %1459 = vmatprep.subr.bf16.mxu1 %v1797_v19  ;;  %1430 = vmatpush3.bf16.msra.mxu0 %v1795_v18  ;;  %v1821_v26 = vld [vmem:[%s320_s25 + $0x18] sm:$0xff]   ;;  %p291_p4 = scmp.ge.s32.totalorder %s294_s22, 110  }
  0x17   : >> { %1460 = vmatpush3.bf16.msra.mxu1 %v1797_v19  ;;  %1431 = vmatprep.subr.bf16.mxu0 %v1797_v19  ;;  %v1825_v27 = vld [vmem:[%s1790_s24 + $0x18] sm:$0xff]  }
  0x18   : >> { %377 = vrot.lane.b32.xlu1 %v1786_v17, %s1629_s20 }
  0x19   : >> { %584 = vrot.lane.b32.xlu0 %v1797_v19, %s1630_s26  ;;  %1604 = vset.pattern.permute.xlu1 %v1632_v28 }
  0x1a   : >> { %1432 = vmatpush3.bf16.msra.mxu0 %v1797_v19 }
  0x1c   : >> { %581 = vrot.lane.b32.xlu1 %v1608_v20, %s1630_s26 }
  0x1d   : >> { %347 = vrot.lane.b32.xlu0 %v1607_v21, %s1630_s26 }
  0x20   : >> { %685 = vrot.lane.b32.xlu1 %v1808_v22, %s1630_s26 }
  0x21   : >> { %502 = vrot.lane.b32.xlu0 %v1813_v23, %s1630_s26 }
  0x24   : >> { %513 = vrot.lane.b32.xlu1 %v1323_v24, %s1631_s27 }
  0x25   : >> { %511 = vrot.lane.b32.xlu0 %v1778_v16, %s1631_s27 }
  0x28   : >> { %517 = vrot.lane.b32.xlu1 %v1324_v25, %s1631_s27 }
  0x29   : >> { %515 = vrot.lane.b32.xlu0 %v1786_v17, %s1631_s27 }
  0x2c   : >> { %1005 = vrot.lane.b32.xlu1 %v1821_v26, %s1630_s26 }
  0x2d   : >> { %851 = vrot.lane.b32.xlu0 %v1825_v27, %s1630_s26 }
  0x30   : >> { %1080 = vperm.xlu1 %1604, %v1704_v5  }
  0x31   : >> { %1075 = vperm.xlu0 %1603, %v1699_v4  }
  0x34   : >> { %1085 = vperm.xlu1 %1604, %v1709_v6  }
  0x35   : >> { %1090 = vperm.xlu0 %1603, %v1714_v7  }
  0x38   : >> { %1103 = vperm.xlu1 %1604, %v1719_v8  }
  0x39   : >> { %1108 = vperm.xlu0 %1603, %v1724_v9  }
  0x3c   : >> { %1113 = vperm.xlu1 %1604, %v1729_v10  }
  0x3d   : >> { %1118 = vperm.xlu0 %1603, %v1734_v11  }
  0x40   : >> { %1127 = vperm.xlu1 %1604, %v1739_v12  }
  0x41   : >> { %1132 = vperm.xlu0 %1603, %v1744_v13  }
  0x44   : >> { %1137 = vperm.xlu1 %1604, %v1749_v14  }
  0x45   : >> { %1142 = vperm.xlu0 %1603, %v1754_v15  }
  0x86   : >> { %v1841_v29 = vpop.permute.xlu1 %375 }
  0x87   : >> { %1435 = vmatprep.mubr.msk.bf16.mxu0 %vm379_vm0, %v1841_v29  ;;  %1465 = vmatprep.mubr.msk.bf16.mxu1 %vm379_vm0, %v1841_v29  ;;  %v1847_v30 = vpop.permute.xlu0 %362 }
  0x88   : >> { %1433 = vmatprep.subr.bf16.mxu0 %v1847_v30  ;;  %1461 = vmatprep.subr.bf16.mxu1 %v1847_v30 }
  0x89   : >> { %1434 = vmatpush3.bf16.msra.mxu0 %v1847_v30  ;;  %1462 = vmatpush3.bf16.msra.mxu1 %v1847_v30 }
  0x8a   : >> { %v1849_v31 = vpop.permute.xlu1 %377  ;;  %1439 = vmatprep.subr.bf16.mxu0 %v1607_v21 }
  0x8b   : >> { %v1855_v32 = vpop.permute.xlu0 %584 }
  0x8c   : >> { %1436 = vmatmul.mubr.msk.bf16.vlgmr.msra.gmra.mrb[0].mxu0 %vm379_vm0, %v1849_v31  ;;  %1463 = vmatprep.subr.bf16.mxu1 %v1855_v32 }
  0x8d   : >> { %1440 = vmatpush3.bf16.msra.mxu0 %v1607_v21  ;;  %1464 = vmatpush3.bf16.msra.mxu1 %v1855_v32 }
  0x8e   : >> { %v582_v33 = vpop.permute.xlu1 %581  ;;  %1441 = vmatprep.subr.bf16.mxu0 %v1608_v20  ;;  %1469 = vmatprep.subr.bf16.mxu1 %v1608_v20 }
  0x8f   : >> { %v348_v34 = vpop.permute.xlu0 %347  ;;  %1445 = vmatprep.mubr.msk.bf16.mxu0 %vm379_vm0, %v1778_v16 }
  0x90   : >> { %1466 = vmatmul.mubr.msk.bf16.vlgmr.msra.gmra.mrb[0].mxu1 %vm379_vm0, %v1849_v31 }
  0x91   : >> { %1442 = vmatpush3.bf16.msra.mxu0 %v1608_v20  ;;  %1470 = vmatpush3.bf16.msra.mxu1 %v1608_v20 }
  0x92   : >> { %v686_v35 = vpop.permute.xlu1 %685  ;;  %1443 = vmatprep.subr.bf16.mxu0 %v348_v34  ;;  %1471 = vmatprep.subr.bf16.mxu1 %v348_v34 }
  0x93   : >> { %v503_v36 = vpop.permute.xlu0 %502  ;;  %1475 = vmatprep.mubr.msk.bf16.mxu1 %vm379_vm0, %v1778_v16 }
  0x95   : >> { %1444 = vmatpush3.bf16.msra.mxu0 %v348_v34  ;;  %1472 = vmatpush3.bf16.msra.mxu1 %v348_v34 }
  0x96   : >> { %1449 = vmatprep.subr.bf16.mxu0 %v1813_v23  ;;  %1473 = vmatprep.subr.bf16.mxu1 %v582_v33  ;;  %v514_v37 = vpop.permute.xlu1 %513 }
  0x97   : >> { %v512_v38 = vpop.permute.xlu0 %511 }
  0x98   : >> { %1446 = vmatmul.mubr.msk.bf16.vlgmr.msra.gmra.mrb[0].mxu0 %vm379_vm0, %v1786_v17  ;;  %v520_v39 = vsel %vm519_vm1, %v512_v38, %v514_v37 }
  0x99   : >> { %1450 = vmatpush3.bf16.msra.mxu0 %v1813_v23  ;;  %1474 = vmatpush3.bf16.msra.mxu1 %v582_v33 }
  0x9a   : >> { %1451 = vmatprep.subr.bf16.mxu0 %v1808_v22  ;;  %1479 = vmatprep.subr.bf16.mxu1 %v1808_v22  ;;  %v518_v40 = vpop.permute.xlu1 %517 }
  0x9b   : >> { %1455 = vmatprep.mubr.msk.bf16.mxu0 %vm379_vm0, %v520_v39  ;;  %v516_v41 = vpop.permute.xlu0 %515 }
  0x9c   : >> { %1476 = vmatmul.mubr.msk.bf16.vlgmr.msra.gmra.mrb[0].mxu1 %vm379_vm0, %v1786_v17  ;;  %v521_v42 = vsel %vm519_vm1, %v516_v41, %v518_v40 }
  0x9d   : >> { %1452 = vmatpush3.bf16.msra.mxu0 %v1808_v22  ;;  %1480 = vmatpush3.bf16.msra.mxu1 %v1808_v22 }
  0x9e   : >> { %1453 = vmatprep.subr.bf16.mxu0 %v503_v36  ;;  %1481 = vmatprep.subr.bf16.mxu1 %v503_v36  ;;  %v1006_v44 = vpop.permute.xlu1 %1005 }
  0x9f   : >> { %1485 = vmatprep.mubr.msk.bf16.mxu1 %vm379_vm0, %v520_v39  ;;  %v852_v43 = vpop.permute.xlu0 %851 }
  0xa1   : >> { %1454 = vmatpush3.bf16.msra.mxu0 %v503_v36  ;;  %1482 = vmatpush3.bf16.msra.mxu1 %v503_v36 }
  0xa2   : >> { %1483 = vmatprep.subr.bf16.mxu1 %v686_v35  ;;  %1489 = vmatprep.subr.bf16.mxu0 %v1813_v23 }
  0xa4   : >> { %1456 = vmatmul.mubr.msk.bf16.vlgmr.msra.gmra.mrb[0].mxu0 %vm379_vm0, %v521_v42 }
  0xa5   : >> { %1484 = vmatpush3.bf16.msra.mxu1 %v686_v35  ;;  %1490 = vmatpush3.bf16.msra.mxu0 %v1813_v23 }
  0xa6   : >> { %1495 = vmatprep.mubr.msk.bf16.mxu0 %vm379_vm0, %v1841_v29  ;;  %1491 = vmatprep.subr.bf16.mxu0 %v1808_v22 }
  0xa7   : >> { %1519 = vmatprep.subr.bf16.mxu1 %v1808_v22 }
  0xa8   : >> { %1486 = vmatmul.mubr.msk.bf16.vlgmr.msra.gmra.mrb[0].mxu1 %vm379_vm0, %v521_v42 }
  0xa9   : >> { %1492 = vmatpush3.bf16.msra.mxu0 %v1808_v22  ;;  %1520 = vmatpush3.bf16.msra.mxu1 %v1808_v22 }
  0xaa   : >> { %1525 = vmatprep.mubr.msk.bf16.mxu1 %vm379_vm0, %v1841_v29  ;;  %1493 = vmatprep.subr.bf16.mxu0 %v503_v36 }
  0xab   : >> { %1521 = vmatprep.subr.bf16.mxu1 %v503_v36 }
  0xad   : >> { %1494 = vmatpush3.bf16.msra.mxu0 %v503_v36  ;;  %1522 = vmatpush3.bf16.msra.mxu1 %v503_v36 }
  0xae   : >> { %1523 = vmatprep.subr.bf16.mxu1 %v686_v35  ;;  %1499 = vmatprep.subr.bf16.mxu0 %v1795_v18 }
  0xaf   : >> { %v1081_v57 = vpop.permute.xlu1 %1080 }
  0xb0   : >> { %1496 = vmatmul.mubr.msk.bf16.vlgmr.msra.gmra.mrb[4].mxu0 %vm379_vm0, %v1849_v31  ;;  %v1076_v58 = vpop.permute.xlu0 %1075 }
  0xb1   : >> { %1500 = vmatpush3.bf16.msra.mxu0 %v1795_v18  ;;  %1524 = vmatpush3.bf16.msra.mxu1 %v686_v35 }
  0xb2   : >> { %1501 = vmatprep.subr.bf16.mxu0 %v1797_v19  ;;  %1529 = vmatprep.subr.bf16.mxu1 %v1797_v19 }
  0xb3   : >> { %1505 = vmatprep.mubr.msk.bf16.mxu0 %vm379_vm0, %v1778_v16  ;;  %v1086_v59 = vpop.permute.xlu1 %1085 }
  0xb4   : >> { %1526 = vmatmul.mubr.msk.bf16.vlgmr.msra.gmra.mrb[4].mxu1 %vm379_vm0, %v1849_v31  ;;  %v1091_v60 = vpop.permute.xlu0 %1090 }
  0xb5   : >> { %1502 = vmatpush3.bf16.msra.mxu0 %v1797_v19  ;;  %1530 = vmatpush3.bf16.msra.mxu1 %v1797_v19 }
  0xb6   : >> { %1503 = vmatprep.subr.bf16.mxu0 %v1847_v30  ;;  %1531 = vmatprep.subr.bf16.mxu1 %v1847_v30 }
  0xb7   : >> { %1535 = vmatprep.mubr.msk.bf16.mxu1 %vm379_vm0, %v1778_v16  ;;  %v1104_v61 = vpop.permute.xlu1 %1103 }
  0xb8   : >> { %v1109_v62 = vpop.permute.xlu0 %1108 }
  0xb9   : >> { %1504 = vmatpush3.bf16.msra.mxu0 %v1847_v30  ;;  %1532 = vmatpush3.bf16.msra.mxu1 %v1847_v30 }
  0xba   : >> { %1533 = vmatprep.subr.bf16.mxu1 %v1855_v32  ;;  %1509 = vmatprep.subr.bf16.mxu0 %v1825_v27 }
  0xbb   : >> { %v1114_v18 = vpop.permute.xlu1 %1113 }
  0xbc   : >> { %1506 = vmatmul.mubr.msk.bf16.vlgmr.msra.gmra.mrb[4].mxu0 %vm379_vm0, %v1786_v17  ;;  %v1119_v20 = vpop.permute.xlu0 %1118 }
  0xbd   : >> { %1510 = vmatpush3.bf16.msra.mxu0 %v1825_v27  ;;  %1515 = vmatprep.mubr.msk.bf16.mxu0 %vm379_vm0, %v520_v39 }
  0xbe   : >> { %1534 = vmatpush3.bf16.msra.mxu1 %v1855_v32  ;;  %1511 = vmatprep.subr.bf16.mxu0 %v1821_v26 }
  0xbf   : >> { %1539 = vmatprep.subr.bf16.mxu1 %v1821_v26  ;;  %v1128_v29 = vpop.permute.xlu1 %1127 }
  0xc0   : >> { %v1133_v34 = vpop.permute.xlu0 %1132 }
  0xc1   : >> { %1536 = vmatmul.mubr.msk.bf16.vlgmr.msra.gmra.mrb[4].mxu1 %vm379_vm0, %v1786_v17  ;;  %1512 = vmatpush3.bf16.msra.mxu0 %v1821_v26 }
  0xc2   : >> { %1540 = vmatpush3.bf16.msra.mxu1 %v1821_v26  ;;  %1545 = vmatprep.mubr.msk.bf16.mxu1 %vm379_vm0, %v520_v39 }
  0xc3   : >> { %1513 = vmatprep.subr.bf16.mxu0 %v852_v43  ;;  %1541 = vmatprep.subr.bf16.mxu1 %v852_v43 }
  0xc5   : >> { %1514 = vmatpush3.bf16.msra.mxu0 %v852_v43 }
  0xc6   : >> { %1542 = vmatpush3.bf16.msra.mxu1 %v852_v43  ;;  %v1138_v43 = vpop.permute.xlu1 %1137 }
  0xc7   : >> { %1543 = vmatprep.subr.bf16.mxu1 %v1006_v44 }
  0xc8   : >> { %1516 = vmatmul.mubr.msk.bf16.vlgmr.msra.gmra.mrb[4].mxu0 %vm379_vm0, %v521_v42 }
  0xca   : >> { %1544 = vmatpush3.bf16.msra.mxu1 %v1006_v44 }
  0xcd   : >> { %1546 = vmatmul.mubr.msk.bf16.vlgmr.msra.gmra.mrb[4].mxu1 %vm379_vm0, %v521_v42 }
 0x177   : >> { %v1457_v45 = vpop.f32.mrb[0].mxu0 }
 0x178   : >> { %v562_v46 = vpop.f32.mrb[1].mxu0 }
 0x179   : >> { %v1458_v47 = vpop.f32.mrb[2].mxu0 }
 0x17a   : >> { %v565_v48 = vpop.f32.mrb[3].mxu0 }
 0x17b   : >> { %v1487_v49 = vpop.f32.mrb[0].mxu1 }
 0x17c   : >> { %v1063_v50 = vmax.f32 %v1457_v45, %v1487_v49  ;;  %v722_v51 = vpop.f32.mrb[1].mxu1 }
 0x17d   : >> { %v1061_v52 = vmax.f32 %v562_v46, %v722_v51  ;;  %v1488_v53 = vpop.f32.mrb[2].mxu1 }
 0x17e   : >> { %v1064_v54 = vmax.f32 %v1458_v47, %v1488_v53  ;;  %v725_v55 = vpop.f32.mrb[3].mxu1 }
 0x17f   : >> { %v1062_v56 = vmax.f32 %v565_v48, %v725_v55  ;;  %v1143_v48 = vpop.permute.xlu0 %1142 }
 0x19b   : >> { %v1517_v63 = vpop.f32.mrb[4].mxu0 }
 0x19c   : >> { %v888_v16 = vpop.f32.mrb[5].mxu0 }
 0x19d   : >> { %v1518_v17 = vpop.f32.mrb[6].mxu0 }
 0x19e   : >> { %v891_v19 = vpop.f32.mrb[7].mxu0 }
 0x1a0   : >> { %v1547_v21 = vpop.f32.mrb[4].mxu1 }
 0x1a1   : >> { %v1067_v22 = vmax.f32 %v1517_v63, %v1547_v21  ;;  %v1042_v23 = vpop.f32.mrb[5].mxu1 }
 0x1a2   : >> { %v1065_v24 = vmax.f32 %v888_v16, %v1042_v23  ;;  %v1548_v25 = vpop.f32.mrb[6].mxu1 }
 0x1a3   : >> { %v1071_v26 = vmax.f32 %v1063_v50, %v1067_v22  ;;  %v1068_v27 = vmax.f32 %v1518_v17, %v1548_v25  ;;  %v1045_v28 = vpop.f32.mrb[7].mxu1 }
 0x1a4   : >> { %v1069_v30 = vmax.f32 %v1061_v52, %v1065_v24  ;;  %v1066_v31 = vmax.f32 %v891_v19, %v1045_v28 }
 0x1a5   : >> { %v1095_v32 = vadd.f32 %v1086_v59, %v1071_v26  ;;  %v1072_v33 = vmax.f32 %v1064_v54, %v1068_v27 }
 0x1a6   : >> { %v1093_v35 = vadd.f32 %v1076_v58, %v1069_v30  ;;  %v1070_v36 = vmax.f32 %v1062_v56, %v1066_v31 }
 0x1a7   : >> { %v1099_v37 = vmax.f32 %v1095_v32, 0.0  ;;  %v1096_v38 = vadd.f32 %v1091_v60, %v1072_v33 }
 0x1a8   : >> { %v1097_v39 = vmax.f32 %v1093_v35, 0.0  ;;  %v1094_v40 = vadd.f32 %v1081_v57, %v1070_v36 }
 0x1a9   : >> { %v1123_v41 = vmul.f32 %v1114_v18, %v1099_v37  ;;  %v1100_v42 = vmax.f32 %v1096_v38, 0.0 }
 0x1aa   : >> { %v1121_v44 = vmul.f32 %v1104_v61, %v1097_v39  ;;  %v1098_v45 = vmax.f32 %v1094_v40, 0.0 }
 0x1ab   : >> { %v1147_v46 = vadd.f32 %v1138_v43, %v1123_v41  ;;  %v1124_v47 = vmul.f32 %v1119_v20, %v1100_v42 }
 0x1ac   : >> { %v1145_v49 = vadd.f32 %v1128_v29, %v1121_v44  ;;  %v1122_v50 = vmul.f32 %v1109_v62, %v1098_v45  ;;  %293 = sbr.rel (!%p291_p4) target bundleno = 18 (0x12), region = 93 }
 0x1ad   : >> { %v1366_v51 = vpack.c.bf16 %v1147_v46, %v1147_v46  ;;  %v1148_v52 = vadd.f32 %v1143_v48, %v1124_v47 }
 0x1ae   : >> { %v1364_v53 = vpack.c.bf16 %v1145_v49, %v1145_v49  ;;  %v1146_v54 = vadd.f32 %v1133_v34, %v1122_v50 }
 0x1af   : >> { %1171 = vst.msk [vmem:[%s1167_s28 + $0x8] sm:$0xf] %vm1168_vm2, %v1366_v51  ;;  %v1367_v55 = vpack.c.bf16 %v1148_v52, %v1148_v52 }
 0x1b0   : >> { %1169 = vst.msk [vmem:[%s1167_s28] sm:$0xf] %vm1168_vm2, %v1364_v53  ;;  %v1365_v56 = vpack.c.bf16 %v1146_v54, %v1146_v54 }
 0x1b1   : >> { %1172 = vst.msk [vmem:[%s1167_s28 + $0xc] sm:$0xf] %vm1168_vm2, %v1367_v55 }
 0x1b2   : >> { %1170 = vst.msk [vmem:[%s1167_s28 + $0x4] sm:$0xf] %vm1168_vm2, %v1365_v56 }
 0x1b3 PF: > { %s16_s21 = sadd.s32 1, %s1623_s21  }
 0x1b4   : > { %p13_p5 = scmp.ge.s32.totalorder %s16_s21, 4  }
 0x1b6   :  { %15 = sbr.rel (!%p13_p5) target bundleno = 1 (0x1), region = 104 }

// kernel: net_forward.7
= control target key start
LH: loop header
LB: loop body
LE: loop exit
PB: predicated region body
PF: predicated region fallthrough
CT: control target
= control target key end

     0   :  { %s2480_s21 = smov 0   ;;  %s3487_s0 = inlined_call_operand.vmem [shape: bf16[2,112,32,56], index: 0, kind: input, shape index: {}]   ;;  %s3488_s1 = inlined_call_operand.vmem [shape: bf16[2,112,32,56], index: 1, kind: input, shape index: {}]   ;;  %s3489_s2 = inlined_call_operand.vmem [shape: bf16[32,800], index: 2, kind: input, shape index: {}]   ;;  %s3490_s3 = inlined_call_operand.vmem [shape: f32[32,1], index: 3, kind: input, shape index: {}]   ;;  %s3491_s4 = inlined_call_operand.vmem [shape: f32[32,1], index: 4, kind: input, shape index: {}]   ;;  %s3492_s5 = inlined_call_operand.vmem [shape: f32[32,1], index: 5, kind: input, shape index: {}]   ;;  %s3493_s6 = inlined_call_operand.vmem [shape: bf16[2,54,32,54], index: 6, kind: output, shape index: {}]  }
   0x1 LB: > { %s2069_s22 = sadd.s32 4294967295, %s2433_s21   ;;  %p2073_p0 = scmp.ge.s32.totalorder %s2433_s21, 1  ;;  %s2433_s21 = sphi %s2480_s21, %s16_s21  }
   0x2   : > { %p222_p1 = scmp.lt.s32.totalorder %s2433_s21, 3 }
   0x4   : > { %p223_p2 = pnand %p2073_p0, %p222_p1 }
   0x5   : > { %p257_p3 = scmp.lt.s32.totalorder (!%p223_p2), %s2069_s22, 1  ;;  %v2491_v0 = vld [vmem:[%s3489_s2] sm:$0xff] (!%p223_p2)  ;;  %v2496_v1 = vld [vmem:[%s3489_s2 + $0x8] sm:$0xff] (!%p223_p2)  ;;  %v2501_v2 = vld [vmem:[%s3489_s2 + $0x10] sm:$0xff] (!%p223_p2)  ;;  %s2643_s24 = smov (!%p223_p2), 0  }
   0x6   : > { %226 = sbr.rel (%p223_p2) target bundleno = 767 (0x2ff), region = 44  ;;  %3544 = vst [vmem:[#allocation2_spill] sm:$0xff] (!%p223_p2), %v2491_v0  ;;  %3545 = vst [vmem:[#allocation3_spill] sm:$0xff] (!%p223_p2), %v2496_v1  ;;  %v2506_v3 = vld [vmem:[%s3489_s2 + $0x18] sm:$0xf] (!%p223_p2)  ;;  %v2511_v4 = vld [vmem:[%s3489_s2 + $0x1c] sm:$0xff] (!%p223_p2) }
   0x7   : > { %3546 = vst [vmem:[#allocation4_spill] sm:$0xff] (!%p223_p2), %v2501_v2  ;;  %3547 = vst [vmem:[#allocation5_spill] sm:$0xff] (!%p223_p2), %v2506_v3  ;;  %v2516_v5 = vld [vmem:[%s3489_s2 + $0x24] sm:$0xff] (!%p223_p2)  ;;  %v2521_v6 = vld [vmem:[%s3489_s2 + $0x2c] sm:$0xff] (!%p223_p2) }
   0x8   : > { %3548 = vst [vmem:[#allocation6_spill] sm:$0xff] (!%p223_p2), %v2511_v4  ;;  %3549 = vst [vmem:[#allocation7_spill] sm:$0xff] (!%p223_p2), %v2516_v5  ;;  %v2526_v7 = vld [vmem:[%s3489_s2 + $0x34] sm:$0xf] (!%p223_p2)  ;;  %v2531_v8 = vld [vmem:[%s3489_s2 + $0x38] sm:$0xff] (!%p223_p2) }
   0x9   : > { %3550 = vst [vmem:[#allocation8_spill] sm:$0xff] (!%p223_p2), %v2521_v6  ;;  %3551 = vst [vmem:[#allocation9_spill] sm:$0xff] (!%p223_p2), %v2526_v7  ;;  %v2536_v9 = vld [vmem:[%s3489_s2 + $0x40] sm:$0xff] (!%p223_p2)  ;;  %v2541_v10 = vld [vmem:[%s3489_s2 + $0x48] sm:$0xff] (!%p223_p2) }
   0xa   : > { %3552 = vst [vmem:[#allocation10_spill] sm:$0xff] (!%p223_p2), %v2531_v8  ;;  %3553 = vst [vmem:[#allocation11_spill] sm:$0xff] (!%p223_p2), %v2536_v9  ;;  %v2546_v11 = vld [vmem:[%s3489_s2 + $0x50] sm:$0xf] (!%p223_p2)  ;;  %v2551_v12 = vld [vmem:[%s3489_s2 + $0x54] sm:$0xff] (!%p223_p2) }
   0xb   : > { %3554 = vst [vmem:[#allocation12_spill] sm:$0xff] (!%p223_p2), %v2551_v12  ;;  %v2556_v13 = vld [vmem:[%s3489_s2 + $0x5c] sm:$0xff] (!%p223_p2)  ;;  %v2561_v14 = vld [vmem:[%s3489_s2 + $0x64] sm:$0xff] (!%p223_p2)  ;;  %v2566_v15 = vld [vmem:[%s3489_s2 + $0x6c] sm:$0xf] (!%p223_p2) }
   0xc   : > { %3555 = vst [vmem:[#allocation13_spill] sm:$0xff] (!%p223_p2), %v2556_v13  ;;  %v2571_v16 = vld [vmem:[%s3490_s3] sm:$0xff] (!%p223_p2)  ;;  %v2576_v17 = vld [vmem:[%s3490_s3 + $0x8] sm:$0xff] (!%p223_p2)  ;;  %v2591_v18 = vld [vmem:[%s3490_s3 + $0x10] sm:$0xff] (!%p223_p2) }
   0xd   : > { %s3619_s22 = smov (!%p257_p3, %s2069_s22), 1  ;;  %3556 = vst [vmem:[#allocation14_spill] sm:$0xff] %v2571_v16  ;;  %3557 = vst [vmem:[#allocation15_spill] sm:$0xff] %v2576_v17  ;;  %v2596_v19 = vld [vmem:[%s3490_s3 + $0x18] sm:$0xff]  ;;  %v2601_v20 = vld [vmem:[%s3491_s4] sm:$0xff] }
   0xe   : > { %s2373_s25 = smul.u32 1792, %s3619_s22  ;;  %3558 = vst [vmem:[#allocation16_spill] sm:$0xff] %v2596_v19  ;;  %v2611_v21 = vld [vmem:[%s3491_s4 + $0x8] sm:$0xff]  ;;  %v2616_v22 = vld [vmem:[%s3491_s4 + $0x10] sm:$0xff]  ;;  %v2621_v23 = vld [vmem:[%s3491_s4 + $0x18] sm:$0xff] }
   0xf   : > { %s2374_s8 = smul.u32 864, %s3619_s22  ;;  %v2626_v24 = vld [vmem:[%s3492_s5] sm:$0xff]  ;;  %v2631_v25 = vld [vmem:[%s3492_s5 + $0x8] sm:$0xff]  ;;  %v2636_v26 = vld [vmem:[%s3492_s5 + $0x10] sm:$0xff] }
  0x10   : > { %s2581_s17 = scalar_lea.vmem %s3487_s0, %s2373_s25  ;;  %s2586_s19 = scalar_lea.vmem %s3488_s1, %s2373_s25  ;;  %v2641_v27 = vld [vmem:[%s3492_s5 + $0x18] sm:$0xff] }
  0x11   : > { %s2606_s25 = scalar_lea.vmem %s3493_s6, %s2374_s8 }
  0x12 LB: >> { %v3559_v6 = vld [vmem:[#allocation8_spill] sm:$0xff]  ;;  %v3562_v8 = vld [vmem:[#allocation10_spill] sm:$0xff]  ;;  %v3566_v9 = vld [vmem:[#allocation11_spill] sm:$0xff]  ;;  %s2228_s26 = sshll.u32 %s2437_s24, 5  ;;  %v2439_v28 = vmov 0   ;;  %s2440_s29 = smov 127   ;;  %v2172_v56 = vcombine.low %v2541_v10, %v2561_v14  ;;  %s2437_s24 = sphi %s2643_s24, %s306_s24  }
  0x13   : >> { %v3560_v2 = vld [vmem:[#allocation4_spill] sm:$0xff]  ;;  %v3563_v4 = vld [vmem:[#allocation6_spill] sm:$0xff]  ;;  %v3565_v13 = vld [vmem:[#allocation13_spill] sm:$0xff]  ;;  %515 = vmatprep.subr.bf16.mxu0 %v2439_v28  ;;  %1002 = vmatprep.subr.bf16.mxu1 %v2439_v28  ;;  %s2652_s27 = scalar_lea.vmem %s2581_s17, %s2228_s26  ;;  %s2655_s28 = scalar_lea.vmem %s2586_s19, %s2228_s26  ;;  %vm508_vm0 = vcmask 261120   ;;  %vm503_vm1 = vcmask 785408   ;;  %vm683_vm2 = vcmask 523264  }
  0x14   : >> { %v3561_v12 = vld [vmem:[#allocation12_spill] sm:$0xff]  ;;  %v3564_v0 = vld [vmem:[#allocation2_spill] sm:$0xff]  ;;  %v3567_v5 = vld [vmem:[#allocation7_spill] sm:$0xff]  ;;  %2398 = vset.pattern.permute.xlu1 %v2439_v28  ;;  %2397 = vset.pattern.permute.xlu0 %v2439_v28  ;;  %s2441_s30 = smov 126   ;;  %s2442_s7 = smov 96   ;;  %v2152_v40 = vcombine.low %v3566_v9, %v3565_v13  ;;  %v2164_v50 = vcombine.high %v3566_v9, %v3565_v13  ;;  %v2171_v51 = vcombine.low %v3560_v2, %v3559_v6  ;;  %vm1946_vm3 = vcmask 437248  }
  0x15   : >> { %v3568_v1 = vld [vmem:[#allocation3_spill] sm:$0xff]  ;;  %v2660_v29 = vld [vmem:[%s2652_s27 + $0x10] sm:$0xff]   ;;  %v2663_v30 = vld [vmem:[%s2652_s27 + $0x18] sm:$0xff]   ;;  %v2697_v33 = vcombine.high %v3564_v0, %v3563_v4  ;;  %v2730_v39 = vcombine.high %v3562_v8, %v3561_v12  ;;  %s2443_s9 = smov 64   ;;  %s2444_s10 = smov 32  }
  0x16   : >> { %457 = vrot.lane.b32.xlu0 %v2660_v29, %s2440_s29  ;;  %v2668_v31 = vld [vmem:[%s2655_s28 + $0x10] sm:$0xff]   ;;  %516 = vmatpush1.bf16.msra.mxu0 %v2660_v29  ;;  %v2675_v32 = vld [vmem:[%s2655_s28 + $0x18] sm:$0xff]   ;;  %v2150_v34 = vcombine.low %v3568_v1, %v3567_v5  ;;  %v2706_v35 = vld [vmem:[%s2652_s27] sm:$0xff]   ;;  %v2163_v45 = vcombine.high %v3568_v1, %v3567_v5  ;;  %s2244_s11 = sshll.u32 %s2437_s24, 4  ;;  %s306_s24 = sadd.s32 1, %s2437_s24  }
  0x17   : >> { %517 = vmatprep.subr.bf16.mxu0 %v2439_v28  ;;  %463 = vrot.lane.b32.xlu1 %v2668_v31, %s2440_s29  ;;  %v2710_v36 = vld [vmem:[%s2652_s27 + $0x8] sm:$0xff]   ;;  %v2715_v37 = vld [vmem:[%s2655_s28] sm:$0xff]   ;;  %3569 = vst [vmem:[#allocation17_spill] sm:$0xff] %v2730_v39  ;;  %v2772_v46 = vld [vmem:[%s2652_s27 + $0x30] sm:$0xff]   ;;  %s1945_s12 = scalar_lea.vmem %s2606_s25, %s2244_s11  ;;  %p303_p4 = scmp.ge.s32.totalorder %s306_s24, 54  }
  0x18   : >> { %1003 = vmatpush1.bf16.msra.mxu1 %v2668_v31  ;;  %v2720_v38 = vld [vmem:[%s2655_s28 + $0x8] sm:$0xff]   ;;  %v2740_v41 = vld [vmem:[%s2652_s27 + $0x20] sm:$0xff]   ;;  %v2775_v47 = vld [vmem:[%s2652_s27 + $0x38] sm:$0xff]  }
  0x19   : >> { %1004 = vmatprep.subr.bf16.mxu1 %v2439_v28  ;;  %v2745_v42 = vld [vmem:[%s2652_s27 + $0x28] sm:$0xff]   ;;  %v2750_v43 = vld [vmem:[%s2655_s28 + $0x20] sm:$0xff]   ;;  %3570 = vst [vmem:[#allocation18_spill] sm:$0xff] %v2775_v47  ;;  %v2780_v48 = vld [vmem:[%s2655_s28 + $0x30] sm:$0xff]  }
  0x1a   : >> { %459 = vrot.lane.b32.xlu0 %v2663_v30, %s2440_s29  ;;  %518 = vmatpush1.bf16.msra.mxu0 %v2663_v30  ;;  %v2755_v44 = vld [vmem:[%s2655_s28 + $0x28] sm:$0xff]   ;;  %3571 = vst [vmem:[#allocation19_spill] sm:$0xff] %v2780_v48  ;;  %v2785_v49 = vld [vmem:[%s2655_s28 + $0x38] sm:$0xff]   ;;  %v2804_v52 = vld [vmem:[%s2652_s27 + $0x40] sm:$0xff]  }
  0x1b   : >> { %519 = vmatprep.subr.bf16.mxu0 %v2439_v28  ;;  %465 = vrot.lane.b32.xlu1 %v2675_v32, %s2440_s29  ;;  %3572 = vst [vmem:[#allocation20_spill] sm:$0xff] %v2785_v49  ;;  %v2807_v53 = vld [vmem:[%s2652_s27 + $0x48] sm:$0xff]   ;;  %v2812_v54 = vld [vmem:[%s2655_s28 + $0x40] sm:$0xff]   ;;  %v3593_v19 = vld [vmem:[#allocation16_spill] sm:$0xff] }
  0x1c   : >> { %1005 = vmatpush1.bf16.msra.mxu1 %v2675_v32  ;;  %v2817_v55 = vld [vmem:[%s2655_s28 + $0x48] sm:$0xff]   ;;  %v3591_v16 = vld [vmem:[#allocation14_spill] sm:$0xff]  ;;  %v3594_v7 = vld [vmem:[#allocation9_spill] sm:$0xff] }
  0x1d   : >> { %1006 = vmatprep.subr.bf16.mxu1 %v2439_v28  ;;  %v3592_v17 = vld [vmem:[#allocation15_spill] sm:$0xff]  ;;  %v3595_v3 = vld [vmem:[#allocation5_spill] sm:$0xff] }
  0x1e   : >> { %469 = vrot.lane.b32.xlu0 %v2660_v29, %s2441_s30  ;;  %520 = vmatpush1.bf16.msra.mxu0 %v2668_v31 }
  0x1f   : >> { %521 = vmatprep.subr.bf16.mxu0 %v2439_v28  ;;  %471 = vrot.lane.b32.xlu1 %v2663_v30, %s2441_s30 }
  0x22   : >> { %996 = vrot.lane.b32.xlu0 %v2668_v31, %s2441_s30  ;;  %522 = vmatpush1.bf16.msra.mxu0 %v2675_v32 }
  0x23   : >> { %523 = vmatprep.subr.bf16.mxu0 %v2439_v28  ;;  %998 = vrot.lane.b32.xlu1 %v2675_v32, %s2441_s30 }
  0x26   : >> { %495 = vrot.lane.b32.xlu0 %v2697_v33, %s2442_s7 }
  0x27   : >> { %497 = vrot.lane.b32.xlu1 %v2150_v34, %s2442_s7 }
  0x2a   : >> { %415 = vrot.lane.b32.xlu0 %v2706_v35, %s2440_s29 }
  0x2b   : >> { %417 = vrot.lane.b32.xlu1 %v2710_v36, %s2440_s29 }
  0x2e   : >> { %421 = vrot.lane.b32.xlu0 %v2715_v37, %s2440_s29 }
  0x2f   : >> { %423 = vrot.lane.b32.xlu1 %v2720_v38, %s2440_s29 }
  0x32   : >> { %427 = vrot.lane.b32.xlu0 %v2706_v35, %s2441_s30 }
  0x33   : >> { %429 = vrot.lane.b32.xlu1 %v2710_v36, %s2441_s30 }
  0x36   : >> { %499 = vrot.lane.b32.xlu0 %v2730_v39, %s2442_s7 }
  0x37   : >> { %501 = vrot.lane.b32.xlu1 %v2152_v40, %s2442_s7 }
  0x3a   : >> { %990 = vrot.lane.b32.xlu0 %v2715_v37, %s2441_s30 }
  0x3b   : >> { %992 = vrot.lane.b32.xlu1 %v2720_v38, %s2441_s30 }
  0x3e   : >> { %651 = vrot.lane.b32.xlu0 %v2740_v41, %s2440_s29 }
  0x3f   : >> { %653 = vrot.lane.b32.xlu1 %v2745_v42, %s2440_s29 }
  0x42   : >> { %657 = vrot.lane.b32.xlu0 %v2750_v43, %s2440_s29 }
  0x43   : >> { %659 = vrot.lane.b32.xlu1 %v2755_v44, %s2440_s29 }
  0x46   : >> { %663 = vrot.lane.b32.xlu0 %v2740_v41, %s2441_s30 }
  0x47   : >> { %665 = vrot.lane.b32.xlu1 %v2745_v42, %s2441_s30 }
  0x4a   : >> { %1100 = vrot.lane.b32.xlu0 %v2750_v43, %s2441_s30 }
  0x4b   : >> { %1102 = vrot.lane.b32.xlu1 %v2755_v44, %s2441_s30 }
  0x4e   : >> { %675 = vrot.lane.b32.xlu0 %v2150_v34, %s2443_s9 }
  0x4f   : >> { %677 = vrot.lane.b32.xlu1 %v2163_v45, %s2443_s9 }
  0x52   : >> { %771 = vrot.lane.b32.xlu0 %v2772_v46, %s2440_s29 }
  0x53   : >> { %773 = vrot.lane.b32.xlu1 %v2775_v47, %s2440_s29 }
  0x56   : >> { %777 = vrot.lane.b32.xlu0 %v2780_v48, %s2440_s29 }
  0x57   : >> { %779 = vrot.lane.b32.xlu1 %v2785_v49, %s2440_s29 }
  0x5a   : >> { %783 = vrot.lane.b32.xlu0 %v2772_v46, %s2441_s30 }
  0x5b   : >> { %785 = vrot.lane.b32.xlu1 %v2775_v47, %s2441_s30 }
  0x5e   : >> { %679 = vrot.lane.b32.xlu0 %v2152_v40, %s2443_s9 }
  0x5f   : >> { %681 = vrot.lane.b32.xlu1 %v2164_v50, %s2443_s9 }
  0x62   : >> { %1159 = vrot.lane.b32.xlu0 %v2780_v48, %s2441_s30 }
  0x63   : >> { %1161 = vrot.lane.b32.xlu1 %v2785_v49, %s2441_s30 }
  0x66   : >> { %799 = vrot.lane.b32.xlu0 %v2163_v45, %s2444_s10 }
  0x67   : >> { %801 = vrot.lane.b32.xlu1 %v2171_v51, %s2444_s10 }
  0x6a   : >> { %895 = vrot.lane.b32.xlu0 %v2804_v52, %s2440_s29 }
  0x6b   : >> { %897 = vrot.lane.b32.xlu1 %v2807_v53, %s2440_s29 }
  0x6e   : >> { %901 = vrot.lane.b32.xlu0 %v2812_v54, %s2440_s29 }
  0x6f   : >> { %903 = vrot.lane.b32.xlu1 %v2817_v55, %s2440_s29 }
  0x72   : >> { %907 = vrot.lane.b32.xlu0 %v2804_v52, %s2441_s30 }
  0x73   : >> { %909 = vrot.lane.b32.xlu1 %v2807_v53, %s2441_s30 }
  0x76   : >> { %803 = vrot.lane.b32.xlu0 %v2164_v50, %s2444_s10 }
  0x77   : >> { %805 = vrot.lane.b32.xlu1 %v2172_v56, %s2444_s10 }
  0x7a   : >> { %1218 = vrot.lane.b32.xlu0 %v2812_v54, %s2441_s30 }
  0x7b   : >> { %1220 = vrot.lane.b32.xlu1 %v2817_v55, %s2441_s30 }
  0x88   : >> { %v2833_v57 = vpop.permute.xlu0 %457 }
  0x89   : >> { %524 = vmatpush1.bf16.msra.mxu0 %v2833_v57  ;;  %1007 = vmatpush1.bf16.msra.mxu1 %v2833_v57  ;;  %v2839_v58 = vpop.permute.xlu1 %463 }
  0x8a   : >> { %1008 = vmatprep.subr.bf16.mxu1 %v2439_v28  ;;  %525 = vmatprep.subr.bf16.mxu0 %v2439_v28  ;;  %3573 = vst [vmem:[#allocation21_spill] sm:$0xff] %v2839_v58 }
  0x8c   : >> { %v2841_v59 = vpop.permute.xlu0 %459 }
  0x8d   : >> { %526 = vmatpush1.bf16.msra.mxu0 %v2841_v59  ;;  %1009 = vmatpush1.bf16.msra.mxu1 %v2841_v59  ;;  %v2847_v60 = vpop.permute.xlu1 %465 }
  0x8e   : >> { %527 = vmatprep.subr.bf16.mxu0 %v2439_v28  ;;  %1010 = vmatprep.subr.bf16.mxu1 %v2439_v28  ;;  %3574 = vst [vmem:[#allocation22_spill] sm:$0xff] %v2847_v60 }
  0x90   : >> { %v2849_v61 = vpop.permute.xlu0 %469 }
  0x91   : >> { %3575 = vst [vmem:[#allocation23_spill] sm:$0xff] %v2849_v61  ;;  %528 = vmatpush1.bf16.msra.mxu0 %v2839_v58  ;;  %1011 = vmatpush1.bf16.msra.mxu1 %v2839_v58  ;;  %v2855_v62 = vpop.permute.xlu1 %471 }
  0x92   : >> { %529 = vmatprep.subr.bf16.mxu0 %v2439_v28  ;;  %1012 = vmatprep.subr.bf16.mxu1 %v2439_v28  ;;  %3576 = vst [vmem:[#allocation24_spill] sm:$0xff] %v2855_v62 }
  0x94   : >> { %v2857_v63 = vpop.permute.xlu0 %996 }
  0x95   : >> { %3577 = vst [vmem:[#allocation25_spill] sm:$0xff] %v2857_v63  ;;  %530 = vmatpush1.bf16.msra.mxu0 %v2847_v60  ;;  %1013 = vmatpush1.bf16.msra.mxu1 %v2847_v60  ;;  %v2863_v34 = vpop.permute.xlu1 %998 }
  0x96   : >> { %531 = vmatprep.subr.bf16.mxu0 %v2439_v28  ;;  %1014 = vmatprep.subr.bf16.mxu1 %v2439_v28  ;;  %3578 = vst [vmem:[#allocation26_spill] sm:$0xff] %v2863_v34 }
  0x98   : >> { %v496_v40 = vpop.permute.xlu0 %495 }
  0x99   : >> { %532 = vmatpush1.bf16.msra.mxu0 %v2849_v61  ;;  %1015 = vmatpush1.bf16.msra.mxu1 %v2849_v61  ;;  %v2869_v45 = vpop.permute.xlu1 %497 }
  0x9a   : >> { %533 = vmatprep.subr.bf16.mxu0 %v2439_v28  ;;  %1016 = vmatprep.subr.bf16.mxu1 %v2439_v28  ;;  %v2879_v51 = vsel %vm503_vm1, %v496_v40, %v2869_v45 }
  0x9b   : >> { %2153 = vmatprep.mubr.msk.bf16.mxu0 %vm508_vm0, %v2869_v45  ;;  %2185 = vmatprep.mubr.msk.bf16.mxu1 %vm508_vm0, %v2869_v45 }
  0x9c   : >> { %v416_v50 = vpop.permute.xlu0 %415 }
  0x9d   : >> { %534 = vmatpush1.bf16.msra.mxu0 %v2855_v62  ;;  %1017 = vmatpush1.bf16.msra.mxu1 %v2855_v62  ;;  %v418_v56 = vpop.permute.xlu1 %417 }
  0x9e   : >> { %578 = vmatprep.subr.bf16.mxu0 %v2439_v28  ;;  %1018 = vmatprep.subr.bf16.mxu1 %v2439_v28 }
  0xa0   : >> { %548 = vmatmul.mubr.bf16.vlgmr.msra.gmra.mrb[0].mxu0 %v2879_v51  ;;  %v422_v1 = vpop.permute.xlu0 %421 }
  0xa1   : >> { %1019 = vmatpush1.bf16.msra.mxu1 %v2857_v63  ;;  %579 = vmatpush1.bf16.msra.mxu0 %v2706_v35  ;;  %v424_v5 = vpop.permute.xlu1 %423 }
  0xa2   : >> { %580 = vmatprep.subr.bf16.mxu0 %v2439_v28  ;;  %1020 = vmatprep.subr.bf16.mxu1 %v2439_v28 }
  0xa4   : >> { %v428_v9 = vpop.permute.xlu0 %427 }
  0xa5   : >> { %1021 = vmatpush1.bf16.msra.mxu1 %v2863_v34  ;;  %581 = vmatpush1.bf16.msra.mxu0 %v2710_v36  ;;  %v430_v40 = vpop.permute.xlu1 %429 }
  0xa6   : >> { %582 = vmatprep.subr.bf16.mxu0 %v2439_v28  ;;  %1051 = vmatprep.subr.bf16.mxu1 %v2439_v28 }
  0xa8   : >> { %1035 = vmatmul.mubr.bf16.vlgmr.msra.gmra.mrb[0].mxu1 %v2879_v51  ;;  %v500_v13 = vpop.permute.xlu0 %499 }
  0xa9   : >> { %583 = vmatpush1.bf16.msra.mxu0 %v2715_v37  ;;  %1052 = vmatpush1.bf16.msra.mxu1 %v2715_v37  ;;  %v2897_v35 = vpop.permute.xlu1 %501 }
  0xaa   : >> { %584 = vmatprep.subr.bf16.mxu0 %v2439_v28  ;;  %1053 = vmatprep.subr.bf16.mxu1 %v2439_v28  ;;  %v2901_v36 = vsel %vm503_vm1, %v500_v13, %v2897_v35 }
  0xab   : >> { %2154 = vmatprep.mubr.msk.bf16.mxu0 %vm508_vm0, %v2897_v35  ;;  %2186 = vmatprep.mubr.msk.bf16.mxu1 %vm508_vm0, %v2897_v35 }
  0xac   : >> { %556 = vmatmul.mubr.bf16.gmra.mrb[4].mxu0 %v2901_v36 }
  0xad   : >> { %585 = vmatpush1.bf16.msra.mxu0 %v2720_v38  ;;  %1054 = vmatpush1.bf16.msra.mxu1 %v2720_v38  ;;  %v993_v13 = vpop.permute.xlu1 %992 }
  0xae   : >> { %1055 = vmatprep.subr.bf16.mxu1 %v2439_v28  ;;  %586 = vmatprep.subr.bf16.mxu0 %v2439_v28 }
  0xaf   : >> { %2157 = vmatprep.mubr.msk.bf16.mxu0 %vm508_vm0, %v2697_v33 }
  0xb0   : >> { %1043 = vmatmul.mubr.bf16.gmra.mrb[4].mxu1 %v2901_v36 }
  0xb1   : >> { %587 = vmatpush1.bf16.msra.mxu0 %v416_v50  ;;  %1056 = vmatpush1.bf16.msra.mxu1 %v416_v50  ;;  %v2923_v37 = vpop.permute.xlu1 %653 }
  0xb2   : >> { %588 = vmatprep.subr.bf16.mxu0 %v2439_v28  ;;  %1057 = vmatprep.subr.bf16.mxu1 %v2439_v28 }
  0xb3   : >> { %2187 = vmatprep.mubr.msk.bf16.mxu1 %vm508_vm0, %v2697_v33 }
  0xb5   : >> { %589 = vmatpush1.bf16.msra.mxu0 %v418_v56  ;;  %1058 = vmatpush1.bf16.msra.mxu1 %v418_v56  ;;  %v2927_v38 = vpop.permute.xlu1 %659 }
  0xb6   : >> { %590 = vmatprep.subr.bf16.mxu0 %v2439_v28  ;;  %1059 = vmatprep.subr.bf16.mxu1 %v2439_v28 }
  0xb9   : >> { %591 = vmatpush1.bf16.msra.mxu0 %v422_v1  ;;  %1060 = vmatpush1.bf16.msra.mxu1 %v422_v1  ;;  %v2933_v1 = vcombine.low %v3564_v0, %v3563_v4  ;;  %v2935_v50 = vpop.permute.xlu1 %665 }
  0xba   : >> { %592 = vmatprep.subr.bf16.mxu0 %v2439_v28  ;;  %1061 = vmatprep.subr.bf16.mxu1 %v2439_v28 }
  0xbb   : >> { %3579 = vst [vmem:[#allocation27_spill] sm:$0xff] %v2933_v1 }
  0xbd   : >> { %593 = vmatpush1.bf16.msra.mxu0 %v424_v5  ;;  %1062 = vmatpush1.bf16.msra.mxu1 %v424_v5  ;;  %v991_v5 = vpop.permute.xlu0 %990  ;;  %v2945_v56 = vpop.permute.xlu1 %1102 }
  0xbe   : >> { %594 = vmatprep.subr.bf16.mxu0 %v2439_v28  ;;  %1063 = vmatprep.subr.bf16.mxu1 %v2439_v28 }
  0xc1   : >> { %595 = vmatpush1.bf16.msra.mxu0 %v428_v9  ;;  %1064 = vmatpush1.bf16.msra.mxu1 %v428_v9  ;;  %v2943_v9 = vpop.permute.xlu0 %651  ;;  %v2960_v0 = vpop.permute.xlu1 %677 }
  0xc2   : >> { %596 = vmatprep.subr.bf16.mxu0 %v2439_v28  ;;  %1065 = vmatprep.subr.bf16.mxu1 %v2439_v28  ;;  %3581 = vst [vmem:[#allocation29_spill] sm:$0xff] %v2960_v0 }
  0xc5   : >> { %597 = vmatpush1.bf16.msra.mxu0 %v430_v40  ;;  %1066 = vmatpush1.bf16.msra.mxu1 %v430_v40  ;;  %v2951_v40 = vcombine.low %v3562_v8, %v3561_v12  ;;  %v2983_v8 = vpop.permute.xlu1 %773 }
  0xc6   : >> { %1067 = vmatprep.subr.bf16.mxu1 %v2439_v28  ;;  %694 = vmatprep.subr.bf16.mxu0 %v2439_v28  ;;  %3582 = vst [vmem:[#allocation30_spill] sm:$0xff] %v2983_v8 }
  0xc7   : >> { %3580 = vst [vmem:[#allocation28_spill] sm:$0xff] %v2951_v40 }
  0xc8   : >> { %611 = vmatmul.mubr.bf16.vlgmr.msra.gmra.mrb[0].mxu0 %v2933_v1 }
  0xc9   : >> { %695 = vmatpush1.bf16.msra.mxu0 %v2740_v41  ;;  %1068 = vmatpush1.bf16.msra.mxu1 %v991_v5  ;;  %v2956_v5 = vpop.permute.xlu0 %657 }
  0xca   : >> { %696 = vmatprep.subr.bf16.mxu0 %v2439_v28  ;;  %1069 = vmatprep.subr.bf16.mxu1 %v2439_v28 }
  0xcb   : >> { %2158 = vmatprep.mubr.msk.bf16.mxu0 %vm508_vm0, %v2730_v39 }
  0xcd   : >> { %697 = vmatpush1.bf16.msra.mxu0 %v2745_v42  ;;  %1070 = vmatpush1.bf16.msra.mxu1 %v993_v13  ;;  %v2966_v13 = vpop.permute.xlu0 %663 }
  0xce   : >> { %698 = vmatprep.subr.bf16.mxu0 %v2439_v28  ;;  %1106 = vmatprep.subr.bf16.mxu1 %v2439_v28 }
  0xd0   : >> { %1084 = vmatmul.mubr.bf16.vlgmr.msra.gmra.mrb[0].mxu1 %v2933_v1  ;;  %619 = vmatmul.mubr.bf16.gmra.mrb[4].mxu0 %v2951_v40 }
  0xd1   : >> { %699 = vmatpush1.bf16.msra.mxu0 %v2750_v43  ;;  %1107 = vmatpush1.bf16.msra.mxu1 %v2750_v43  ;;  %v2976_v4 = vpop.permute.xlu0 %1100 }
  0xd2   : >> { %700 = vmatprep.subr.bf16.mxu0 %v2439_v28  ;;  %1108 = vmatprep.subr.bf16.mxu1 %v2439_v28 }
  0xd3   : >> { %2165 = vmatprep.mubr.msk.bf16.mxu0 %vm508_vm0, %v2960_v0  ;;  %2188 = vmatprep.mubr.msk.bf16.mxu1 %vm508_vm0, %v2730_v39 }
  0xd5   : >> { %701 = vmatpush1.bf16.msra.mxu0 %v2755_v44  ;;  %1109 = vmatpush1.bf16.msra.mxu1 %v2755_v44  ;;  %v676_v12 = vpop.permute.xlu0 %675 }
  0xd6   : >> { %1110 = vmatprep.subr.bf16.mxu1 %v2439_v28  ;;  %702 = vmatprep.subr.bf16.mxu0 %v2439_v28  ;;  %v3019_v61 = vsel %vm683_vm2, %v676_v12, %v2960_v0 }
  0xd7   : >> { %3587 = vst [vmem:[#allocation35_spill] sm:$0xff] %v3019_v61 }
  0xd8   : >> { %1092 = vmatmul.mubr.bf16.gmra.mrb[4].mxu1 %v2951_v40  ;;  %v2991_v40 = vpop.permute.xlu1 %779 }
  0xd9   : >> { %703 = vmatpush1.bf16.msra.mxu0 %v2943_v9  ;;  %1111 = vmatpush1.bf16.msra.mxu1 %v2943_v9  ;;  %3583 = vst [vmem:[#allocation31_spill] sm:$0xff] %v2991_v40  ;;  %v2997_v34 = vpop.permute.xlu0 %771 }
  0xda   : >> { %704 = vmatprep.subr.bf16.mxu0 %v2439_v28  ;;  %1112 = vmatprep.subr.bf16.mxu1 %v2439_v28  ;;  %3584 = vst [vmem:[#allocation32_spill] sm:$0xff] %v2997_v34 }
  0xdb   : >> { %2189 = vmatprep.mubr.msk.bf16.mxu1 %vm508_vm0, %v2960_v0 }
  0xdc   : >> { %v3005_v39 = vpop.permute.xlu1 %785 }
  0xdd   : >> { %705 = vmatpush1.bf16.msra.mxu0 %v2923_v37  ;;  %1113 = vmatpush1.bf16.msra.mxu1 %v2923_v37  ;;  %v3003_v63 = vpop.permute.xlu0 %777 }
  0xde   : >> { %1114 = vmatprep.subr.bf16.mxu1 %v2439_v28  ;;  %706 = vmatprep.subr.bf16.mxu0 %v2439_v28  ;;  %3585 = vst [vmem:[#allocation33_spill] sm:$0xff] %v3003_v63 }
  0xe0   : >> { %v3013_v62 = vpop.permute.xlu1 %681 }
  0xe1   : >> { %707 = vmatpush1.bf16.msra.mxu0 %v2956_v5  ;;  %1115 = vmatpush1.bf16.msra.mxu1 %v2956_v5  ;;  %v3011_v1 = vpop.permute.xlu0 %783  ;;  %3586 = vst [vmem:[#allocation34_spill] sm:$0xff] %v3013_v62 }
  0xe2   : >> { %708 = vmatprep.subr.bf16.mxu0 %v2439_v28  ;;  %1116 = vmatprep.subr.bf16.mxu1 %v2439_v28 }
  0xe4   : >> { %v3028_v58 = vpop.permute.xlu1 %1161 }
  0xe5   : >> { %709 = vmatpush1.bf16.msra.mxu0 %v2927_v38  ;;  %1117 = vmatpush1.bf16.msra.mxu1 %v2927_v38  ;;  %v680_v60 = vpop.permute.xlu0 %679 }
  0xe6   : >> { %710 = vmatprep.subr.bf16.mxu0 %v2439_v28  ;;  %1118 = vmatprep.subr.bf16.mxu1 %v2439_v28  ;;  %v3036_v12 = vsel %vm683_vm2, %v680_v60, %v3013_v62  ;;  %v3055_v60 = vld [vmem:[%s2652_s27 + $0x50] sm:$0xff]  }
  0xe7   : >> { %3588 = vst [vmem:[#allocation36_spill] sm:$0xff] %v3036_v12  ;;  %3589 = vst [vmem:[#allocation37_spill] sm:$0xff] %v3055_v60  ;;  %1505 = vrot.lane.b32.xlu0 %v3055_v60, %s2440_s29 }
  0xe8   : >> { %v3042_v0 = vpop.permute.xlu1 %801 }
  0xe9   : >> { %711 = vmatpush1.bf16.msra.mxu0 %v2966_v13  ;;  %1119 = vmatpush1.bf16.msra.mxu1 %v2966_v13 }
  0xea   : >> { %712 = vmatprep.subr.bf16.mxu0 %v2439_v28  ;;  %1120 = vmatprep.subr.bf16.mxu1 %v2439_v28 }
  0xed   : >> { %713 = vmatpush1.bf16.msra.mxu0 %v2935_v50  ;;  %1121 = vmatpush1.bf16.msra.mxu1 %v2935_v50 }
  0xee   : >> { %818 = vmatprep.subr.bf16.mxu0 %v2439_v28  ;;  %1122 = vmatprep.subr.bf16.mxu1 %v2439_v28 }
  0xf0   : >> { %727 = vmatmul.mubr.bf16.vlgmr.msra.gmra.mrb[0].mxu0 %v3019_v61 }
  0xf1   : >> { %819 = vmatpush1.bf16.msra.mxu0 %v2772_v46  ;;  %1123 = vmatpush1.bf16.msra.mxu1 %v2976_v4 }
  0xf2   : >> { %820 = vmatprep.subr.bf16.mxu0 %v2439_v28  ;;  %1124 = vmatprep.subr.bf16.mxu1 %v2439_v28 }
  0xf3   : >> { %2166 = vmatprep.mubr.msk.bf16.mxu0 %vm508_vm0, %v3013_v62 }
  0xf5   : >> { %821 = vmatpush1.bf16.msra.mxu0 %v2775_v47  ;;  %1125 = vmatpush1.bf16.msra.mxu1 %v2945_v56 }
  0xf6   : >> { %822 = vmatprep.subr.bf16.mxu0 %v2439_v28  ;;  %1165 = vmatprep.subr.bf16.mxu1 %v2439_v28 }
  0xf8   : >> { %1139 = vmatmul.mubr.bf16.vlgmr.msra.gmra.mrb[0].mxu1 %v3019_v61  ;;  %735 = vmatmul.mubr.bf16.gmra.mrb[4].mxu0 %v3036_v12  ;;  %v3061_v61 = vpop.permute.xlu0 %1159 }
  0xf9   : >> { %823 = vmatpush1.bf16.msra.mxu0 %v2780_v48  ;;  %1166 = vmatpush1.bf16.msra.mxu1 %v2780_v48  ;;  %v3089_v48 = vld [vmem:[%s2655_s28 + $0x58] sm:$0xff]  }
  0xfa   : >> { %824 = vmatprep.subr.bf16.mxu0 %v2439_v28  ;;  %1167 = vmatprep.subr.bf16.mxu1 %v2439_v28 }
  0xfb   : >> { %2190 = vmatprep.mubr.msk.bf16.mxu1 %vm508_vm0, %v3013_v62  ;;  %2173 = vmatprep.mubr.msk.bf16.mxu0 %vm508_vm0, %v3042_v0  ;;  %v3067_v62 = vld [vmem:[%s2652_s27 + $0x58] sm:$0xff]  }
  0xfc   : >> { %1507 = vrot.lane.b32.xlu1 %v3067_v62, %s2440_s29 }
  0xfd   : >> { %825 = vmatpush1.bf16.msra.mxu0 %v2785_v49  ;;  %1168 = vmatpush1.bf16.msra.mxu1 %v2785_v49  ;;  %v3082_v49 = vpop.permute.xlu1 %897 }
  0xfe   : >> { %1169 = vmatprep.subr.bf16.mxu1 %v2439_v28  ;;  %826 = vmatprep.subr.bf16.mxu0 %v2439_v28 }
 0x100   : >> { %1147 = vmatmul.mubr.bf16.gmra.mrb[4].mxu1 %v3036_v12  ;;  %v3078_v12 = vld [vmem:[%s2655_s28 + $0x50] sm:$0xff]   ;;  %1513 = vrot.lane.b32.xlu1 %v3089_v48, %s2440_s29 }
 0x101   : >> { %827 = vmatpush1.bf16.msra.mxu0 %v2997_v34  ;;  %1170 = vmatpush1.bf16.msra.mxu1 %v2997_v34  ;;  %3590 = vst [vmem:[#allocation38_spill] sm:$0xff] %v3078_v12  ;;  %v800_v34 = vpop.permute.xlu0 %799  ;;  %v3099_v47 = vpop.permute.xlu1 %903 }
 0x102   : >> { %828 = vmatprep.subr.bf16.mxu0 %v2439_v28  ;;  %1171 = vmatprep.subr.bf16.mxu1 %v2439_v28 }
 0x103   : >> { %2191 = vmatprep.mubr.msk.bf16.mxu1 %vm508_vm0, %v3042_v0  ;;  %1511 = vrot.lane.b32.xlu0 %v3078_v12, %s2440_s29 }
 0x104   : >> { %1519 = vrot.lane.b32.xlu1 %v3067_v62, %s2441_s30 }
 0x105   : >> { %829 = vmatpush1.bf16.msra.mxu0 %v2983_v8  ;;  %1172 = vmatpush1.bf16.msra.mxu1 %v2983_v8  ;;  %v3093_v8 = vpop.permute.xlu0 %895 }
 0x106   : >> { %830 = vmatprep.subr.bf16.mxu0 %v2439_v28  ;;  %1173 = vmatprep.subr.bf16.mxu1 %v2439_v28 }
 0x107   : >> { %1517 = vrot.lane.b32.xlu0 %v3055_v60, %s2441_s30  ;;  %v3115_v60 = vpop.permute.xlu1 %909 }
 0x108   : >> { %1782 = vrot.lane.b32.xlu1 %v3089_v48, %s2441_s30 }
 0x109   : >> { %831 = vmatpush1.bf16.msra.mxu0 %v3003_v63  ;;  %1174 = vmatpush1.bf16.msra.mxu1 %v3003_v63  ;;  %v3105_v63 = vpop.permute.xlu0 %901 }
 0x10a   : >> { %832 = vmatprep.subr.bf16.mxu0 %v2439_v28  ;;  %1175 = vmatprep.subr.bf16.mxu1 %v2439_v28 }
 0x10b   : >> { %1780 = vrot.lane.b32.xlu0 %v3078_v12, %s2441_s30  ;;  %v3126_v12 = vsel %vm508_vm0, %v800_v34, %v3042_v0 }
 0x10c   : >> { %1858 = vperm.xlu1 %2398, %v3592_v17  }
 0x10d   : >> { %833 = vmatpush1.bf16.msra.mxu0 %v2991_v40  ;;  %1176 = vmatpush1.bf16.msra.mxu1 %v2991_v40  ;;  %v3120_v40 = vpop.permute.xlu0 %907 }
 0x10e   : >> { %834 = vmatprep.subr.bf16.mxu0 %v2439_v28  ;;  %1177 = vmatprep.subr.bf16.mxu1 %v2439_v28 }
 0x10f   : >> { %1853 = vperm.xlu0 %2397, %v3591_v16   ;;  %v3133_v16 = vpop.permute.xlu1 %805 }
 0x110   : >> { %1863 = vperm.xlu1 %2398, %v2591_v18  }
 0x111   : >> { %835 = vmatpush1.bf16.msra.mxu0 %v3011_v1  ;;  %1178 = vmatpush1.bf16.msra.mxu1 %v3011_v1  ;;  %v804_v34 = vpop.permute.xlu0 %803 }
 0x112   : >> { %836 = vmatprep.subr.bf16.mxu0 %v2439_v28  ;;  %1179 = vmatprep.subr.bf16.mxu1 %v2439_v28  ;;  %v3147_v17 = vsel %vm508_vm0, %v804_v34, %v3133_v16  ;;  %v3201_v34 = vcombine.high %v3560_v2, %v3559_v6  ;;  %v3224_v6 = vcombine.high %v2541_v10, %v2561_v14 }
 0x113   : >> { %1868 = vperm.xlu0 %2397, %v3593_v19   ;;  %v3153_v19 = vcombine.low %v3595_v3, %v3594_v7  ;;  %v3211_v7 = vcombine.low %v2546_v11, %v2566_v15  ;;  %v3216_v2 = vpop.permute.xlu1 %1220 }
 0x114   : >> { %1881 = vperm.xlu1 %2398, %v2601_v20  }
 0x115   : >> { %837 = vmatpush1.bf16.msra.mxu0 %v3005_v39  ;;  %1180 = vmatpush1.bf16.msra.mxu1 %v3005_v39  ;;  %v3206_v3 = vpop.permute.xlu0 %1218 }
 0x116   : >> { %937 = vmatprep.subr.bf16.mxu0 %v2439_v28  ;;  %1181 = vmatprep.subr.bf16.mxu1 %v2439_v28 }
 0x117   : >> { %1886 = vperm.xlu0 %2397, %v2611_v21  }
 0x118   : >> { %851 = vmatmul.mubr.bf16.vlgmr.msra.gmra.mrb[0].mxu0 %v3126_v12  ;;  %1891 = vperm.xlu1 %2398, %v2616_v22  }
 0x119   : >> { %938 = vmatpush1.bf16.msra.mxu0 %v2804_v52  ;;  %1182 = vmatpush1.bf16.msra.mxu1 %v3061_v61 }
 0x11a   : >> { %939 = vmatprep.subr.bf16.mxu0 %v2439_v28  ;;  %1183 = vmatprep.subr.bf16.mxu1 %v2439_v28 }
 0x11b   : >> { %2174 = vmatprep.mubr.msk.bf16.mxu0 %vm508_vm0, %v3133_v16  ;;  %1896 = vperm.xlu0 %2397, %v2621_v23  }
 0x11c   : >> { %1905 = vperm.xlu1 %2398, %v2626_v24  }
 0x11d   : >> { %940 = vmatpush1.bf16.msra.mxu0 %v2807_v53  ;;  %1184 = vmatpush1.bf16.msra.mxu1 %v3028_v58 }
 0x11e   : >> { %941 = vmatprep.subr.bf16.mxu0 %v2439_v28  ;;  %1224 = vmatprep.subr.bf16.mxu1 %v2439_v28 }
 0x11f   : >> { %1910 = vperm.xlu0 %2397, %v2631_v25  }
 0x120   : >> { %1198 = vmatmul.mubr.bf16.vlgmr.msra.gmra.mrb[0].mxu1 %v3126_v12  ;;  %859 = vmatmul.mubr.bf16.gmra.mrb[4].mxu0 %v3147_v17 }
 0x121   : >> { %942 = vmatpush1.bf16.msra.mxu0 %v2812_v54  ;;  %1225 = vmatpush1.bf16.msra.mxu1 %v2812_v54 }
 0x122   : >> { %943 = vmatprep.subr.bf16.mxu0 %v2439_v28  ;;  %1226 = vmatprep.subr.bf16.mxu1 %v2439_v28 }
 0x123   : >> { %2192 = vmatprep.mubr.msk.bf16.mxu1 %vm508_vm0, %v3133_v16  ;;  %2183 = vmatprep.mubr.msk.bf16.mxu0 %vm508_vm0, %v3153_v19 }
 0x124   : >> { %1915 = vperm.xlu1 %2398, %v2636_v26   ;;  %1920 = vperm.xlu0 %2397, %v2641_v27  }
 0x125   : >> { %944 = vmatpush1.bf16.msra.mxu0 %v2817_v55  ;;  %1227 = vmatpush1.bf16.msra.mxu1 %v2817_v55 }
 0x126   : >> { %1228 = vmatprep.subr.bf16.mxu1 %v2439_v28  ;;  %945 = vmatprep.subr.bf16.mxu0 %v2439_v28 }
 0x128   : >> { %1206 = vmatmul.mubr.bf16.gmra.mrb[4].mxu1 %v3147_v17 }
 0x129   : >> { %946 = vmatpush1.bf16.msra.mxu0 %v3093_v8  ;;  %1229 = vmatpush1.bf16.msra.mxu1 %v3093_v8 }
 0x12a   : >> { %947 = vmatprep.subr.bf16.mxu0 %v2439_v28  ;;  %1230 = vmatprep.subr.bf16.mxu1 %v2439_v28 }
 0x12b   : >> { %2193 = vmatprep.mubr.msk.bf16.mxu1 %vm508_vm0, %v3153_v19 }
 0x12d   : >> { %948 = vmatpush1.bf16.msra.mxu0 %v3082_v49  ;;  %1231 = vmatpush1.bf16.msra.mxu1 %v3082_v49 }
 0x12e   : >> { %949 = vmatprep.subr.bf16.mxu0 %v2439_v28  ;;  %1232 = vmatprep.subr.bf16.mxu1 %v2439_v28 }
 0x131   : >> { %950 = vmatpush1.bf16.msra.mxu0 %v3105_v63  ;;  %1233 = vmatpush1.bf16.msra.mxu1 %v3105_v63 }
 0x132   : >> { %951 = vmatprep.subr.bf16.mxu0 %v2439_v28  ;;  %1234 = vmatprep.subr.bf16.mxu1 %v2439_v28 }
 0x135   : >> { %952 = vmatpush1.bf16.msra.mxu0 %v3099_v47  ;;  %1235 = vmatpush1.bf16.msra.mxu1 %v3099_v47 }
 0x136   : >> { %953 = vmatprep.subr.bf16.mxu0 %v2439_v28  ;;  %1236 = vmatprep.subr.bf16.mxu1 %v2439_v28 }
 0x139   : >> { %954 = vmatpush1.bf16.msra.mxu0 %v3120_v40  ;;  %1237 = vmatpush1.bf16.msra.mxu1 %v3120_v40 }
 0x13a   : >> { %955 = vmatprep.subr.bf16.mxu0 %v2439_v28  ;;  %1238 = vmatprep.subr.bf16.mxu1 %v2439_v28 }
 0x13d   : >> { %956 = vmatpush1.bf16.msra.mxu0 %v3115_v60  ;;  %1239 = vmatpush1.bf16.msra.mxu1 %v3115_v60 }
 0x13e   : >> { %1240 = vmatprep.subr.bf16.mxu1 %v2439_v28  ;;  %1277 = vmatprep.subr.bf16.mxu0 %v2439_v28 }
 0x140   : >> { %970 = vmatmul.mubr.bf16.vlgmr.msra.gmra.mrb[0].mxu0 %v3201_v34 }
 0x141   : >> { %1241 = vmatpush1.bf16.msra.mxu1 %v3206_v3  ;;  %1278 = vmatpush1.bf16.msra.mxu0 %v2740_v41  ;;  %v3602_v41 = vld [vmem:[#allocation25_spill] sm:$0xff] }
 0x142   : >> { %1242 = vmatprep.subr.bf16.mxu1 %v2439_v28  ;;  %1279 = vmatprep.subr.bf16.mxu0 %v2439_v28 }
 0x143   : >> { %2184 = vmatprep.mubr.msk.bf16.mxu0 %vm508_vm0, %v3211_v7 }
 0x145   : >> { %1243 = vmatpush1.bf16.msra.mxu1 %v3216_v2  ;;  %1280 = vmatpush1.bf16.msra.mxu0 %v2745_v42  ;;  %v3603_v42 = vld [vmem:[#allocation18_spill] sm:$0xff] }
 0x146   : >> { %1281 = vmatprep.subr.bf16.mxu0 %v2439_v28  ;;  %1576 = vmatprep.subr.bf16.mxu1 %v2439_v28 }
 0x148   : >> { %978 = vmatmul.mubr.bf16.gmra.mrb[4].mxu0 %v3224_v6  ;;  %1257 = vmatmul.mubr.bf16.vlgmr.msra.gmra.mrb[0].mxu1 %v3201_v34 }
 0x149   : >> { %1282 = vmatpush1.bf16.msra.mxu0 %v2750_v43  ;;  %2195 = vmatprep.mubr.msk.bf16.mxu0 %vm508_vm0, %v2869_v45 }
 0x14a   : >> { %1577 = vmatpush1.bf16.msra.mxu1 %v2750_v43  ;;  %1283 = vmatprep.subr.bf16.mxu0 %v2439_v28  ;;  %v3604_v43 = vld [vmem:[#allocation26_spill] sm:$0xff] }
 0x14b   : >> { %1578 = vmatprep.subr.bf16.mxu1 %v2439_v28  ;;  %2194 = vmatprep.mubr.msk.bf16.mxu1 %vm508_vm0, %v3211_v7 }
 0x14d   : >> { %1284 = vmatpush1.bf16.msra.mxu0 %v2755_v44 }
 0x14e   : >> { %1579 = vmatpush1.bf16.msra.mxu1 %v2755_v44  ;;  %1285 = vmatprep.subr.bf16.mxu0 %v2439_v28  ;;  %v3605_v44 = vld [vmem:[#allocation28_spill] sm:$0xff] }
 0x14f   : >> { %1580 = vmatprep.subr.bf16.mxu1 %v2439_v28 }
 0x150   : >> { %1265 = vmatmul.mubr.bf16.gmra.mrb[4].mxu1 %v3224_v6 }
 0x151   : >> { %1286 = vmatpush1.bf16.msra.mxu0 %v2943_v9  ;;  %2209 = vmatprep.mubr.msk.bf16.mxu1 %vm508_vm0, %v2869_v45  ;;  %v3609_v45 = vld [vmem:[#allocation32_spill] sm:$0xff] }
 0x152   : >> { %1581 = vmatpush1.bf16.msra.mxu1 %v2943_v9  ;;  %1287 = vmatprep.subr.bf16.mxu0 %v2439_v28 }
 0x153   : >> { %1582 = vmatprep.subr.bf16.mxu1 %v2439_v28 }
 0x155   : >> { %1288 = vmatpush1.bf16.msra.mxu0 %v2923_v37 }
 0x156   : >> { %1583 = vmatpush1.bf16.msra.mxu1 %v2923_v37  ;;  %1289 = vmatprep.subr.bf16.mxu0 %v2439_v28  ;;  %v3613_v37 = vld [vmem:[#allocation35_spill] sm:$0xff] }
 0x157   : >> { %1584 = vmatprep.subr.bf16.mxu1 %v2439_v28 }
 0x159   : >> { %1290 = vmatpush1.bf16.msra.mxu0 %v2956_v5 }
 0x15a   : >> { %1585 = vmatpush1.bf16.msra.mxu1 %v2956_v5  ;;  %1291 = vmatprep.subr.bf16.mxu0 %v2439_v28 }
 0x15b   : >> { %1586 = vmatprep.subr.bf16.mxu1 %v2439_v28 }
 0x15d   : >> { %1292 = vmatpush1.bf16.msra.mxu0 %v2927_v38 }
 0x15e   : >> { %1587 = vmatpush1.bf16.msra.mxu1 %v2927_v38  ;;  %1293 = vmatprep.subr.bf16.mxu0 %v2439_v28  ;;  %v3614_v38 = vld [vmem:[#allocation34_spill] sm:$0xff] }
 0x15f   : >> { %1588 = vmatprep.subr.bf16.mxu1 %v2439_v28 }
 0x161   : >> { %1294 = vmatpush1.bf16.msra.mxu0 %v2966_v13 }
 0x162   : >> { %1589 = vmatpush1.bf16.msra.mxu1 %v2966_v13  ;;  %1295 = vmatprep.subr.bf16.mxu0 %v2439_v28 }
 0x163   : >> { %1590 = vmatprep.subr.bf16.mxu1 %v2439_v28 }
 0x165   : >> { %1296 = vmatpush1.bf16.msra.mxu0 %v2935_v50 }
 0x166   : >> { %1591 = vmatpush1.bf16.msra.mxu1 %v2935_v50  ;;  %1326 = vmatprep.subr.bf16.mxu0 %v2439_v28 }
 0x167   : >> { %1592 = vmatprep.subr.bf16.mxu1 %v2439_v28 }
 0x168   : >> { %1310 = vmatmul.mubr.bf16.vlgmr.msra.gmra.mrb[8].mxu0 %v2879_v51 }
 0x169   : >> { %2196 = vmatprep.mubr.msk.bf16.mxu0 %vm508_vm0, %v2897_v35  ;;  %1327 = vmatpush1.bf16.msra.mxu0 %v2660_v29  ;;  %v3597_v29 = vld [vmem:[#allocation22_spill] sm:$0xff] }
 0x16a   : >> { %1593 = vmatpush1.bf16.msra.mxu1 %v2976_v4  ;;  %1328 = vmatprep.subr.bf16.mxu0 %v2439_v28  ;;  %v3596_v4 = vld [vmem:[#allocation21_spill] sm:$0xff] }
 0x16b   : >> { %1594 = vmatprep.subr.bf16.mxu1 %v2439_v28 }
 0x16d   : >> { %1329 = vmatpush1.bf16.msra.mxu0 %v2663_v30  ;;  %v3598_v30 = vld [vmem:[#allocation23_spill] sm:$0xff] }
 0x16e   : >> { %1595 = vmatpush1.bf16.msra.mxu1 %v2945_v56  ;;  %1330 = vmatprep.subr.bf16.mxu0 %v2439_v28 }
 0x16f   : >> { %1625 = vmatprep.subr.bf16.mxu1 %v2439_v28 }
 0x170   : >> { %1318 = vmatmul.mubr.bf16.gmra.mrb[12].mxu0 %v2901_v36 }
 0x171   : >> { %1609 = vmatmul.mubr.bf16.vlgmr.msra.gmra.mrb[8].mxu1 %v2879_v51  ;;  %1331 = vmatpush1.bf16.msra.mxu0 %v2668_v31  ;;  %v3610_v51 = vld [vmem:[#allocation30_spill] sm:$0xff] }
 0x172   : >> { %2210 = vmatprep.mubr.msk.bf16.mxu1 %vm508_vm0, %v2897_v35  ;;  %1626 = vmatpush1.bf16.msra.mxu1 %v2668_v31  ;;  %v3599_v31 = vld [vmem:[#allocation24_spill] sm:$0xff]  ;;  %v3611_v35 = vld [vmem:[#allocation33_spill] sm:$0xff] }
 0x173   : >> { %1332 = vmatprep.subr.bf16.mxu0 %v2439_v28  ;;  %1627 = vmatprep.subr.bf16.mxu1 %v2439_v28 }
 0x174   : >> { %2197 = vmatprep.mubr.msk.bf16.mxu0 %vm508_vm0, %v2697_v33 }
 0x175   : >> { %1333 = vmatpush1.bf16.msra.mxu0 %v2675_v32 }
 0x176   : >> { %1628 = vmatpush1.bf16.msra.mxu1 %v2675_v32  ;;  %1334 = vmatprep.subr.bf16.mxu0 %v2439_v28  ;;  %v3600_v32 = vld [vmem:[#allocation27_spill] sm:$0xff] }
 0x177   : >> { %1629 = vmatprep.subr.bf16.mxu1 %v2439_v28 }
 0x179   : >> { %1617 = vmatmul.mubr.bf16.gmra.mrb[12].mxu1 %v2901_v36  ;;  %1335 = vmatpush1.bf16.msra.mxu0 %v2833_v57  ;;  %v3612_v36 = vld [vmem:[#allocation31_spill] sm:$0xff] }
 0x17a   : >> { %1630 = vmatpush1.bf16.msra.mxu1 %v2833_v57  ;;  %1336 = vmatprep.subr.bf16.mxu0 %v2439_v28  ;;  %v3607_v57 = vld [vmem:[#allocation29_spill] sm:$0xff] }
 0x17b   : >> { %1631 = vmatprep.subr.bf16.mxu1 %v2439_v28  ;;  %2211 = vmatprep.mubr.msk.bf16.mxu1 %vm508_vm0, %v2697_v33  ;;  %v3601_v33 = vld [vmem:[#allocation17_spill] sm:$0xff] }
 0x17d   : >> { %1337 = vmatpush1.bf16.msra.mxu0 %v2841_v59 }
 0x17e   : >> { %1632 = vmatpush1.bf16.msra.mxu1 %v2841_v59  ;;  %1338 = vmatprep.subr.bf16.mxu0 %v2439_v28  ;;  %v3608_v59 = vld [vmem:[#allocation20_spill] sm:$0xff] }
 0x17f   : >> { %1633 = vmatprep.subr.bf16.mxu1 %v2439_v28 }
 0x181   : >> { %1339 = vmatpush1.bf16.msra.mxu0 %v3596_v4 }
 0x182   : >> { %1634 = vmatpush1.bf16.msra.mxu1 %v3596_v4  ;;  %1340 = vmatprep.subr.bf16.mxu0 %v2439_v28 }
 0x183   : >> { %1635 = vmatprep.subr.bf16.mxu1 %v2439_v28 }
 0x185   : >> { %1341 = vmatpush1.bf16.msra.mxu0 %v3597_v29 }
 0x186   : >> { %1636 = vmatpush1.bf16.msra.mxu1 %v3597_v29  ;;  %1342 = vmatprep.subr.bf16.mxu0 %v2439_v28 }
 0x187   : >> { %1637 = vmatprep.subr.bf16.mxu1 %v2439_v28 }
 0x189   : >> { %1343 = vmatpush1.bf16.msra.mxu0 %v3598_v30 }
 0x18a   : >> { %1638 = vmatpush1.bf16.msra.mxu1 %v3598_v30  ;;  %1344 = vmatprep.subr.bf16.mxu0 %v2439_v28 }
 0x18b   : >> { %1639 = vmatprep.subr.bf16.mxu1 %v2439_v28 }
 0x18d   : >> { %1345 = vmatpush1.bf16.msra.mxu0 %v3599_v31 }
 0x18e   : >> { %1640 = vmatpush1.bf16.msra.mxu1 %v3599_v31  ;;  %1375 = vmatprep.subr.bf16.mxu0 %v2439_v28 }
 0x18f   : >> { %1641 = vmatprep.subr.bf16.mxu1 %v2439_v28 }
 0x190   : >> { %1359 = vmatmul.mubr.bf16.vlgmr.msra.gmra.mrb[8].mxu0 %v3600_v32 }
 0x191   : >> { %1376 = vmatpush1.bf16.msra.mxu0 %v2772_v46  ;;  %2198 = vmatprep.mubr.msk.bf16.mxu0 %vm508_vm0, %v3601_v33  ;;  %v3606_v46 = vld [vmem:[#allocation19_spill] sm:$0xff] }
 0x192   : >> { %1642 = vmatpush1.bf16.msra.mxu1 %v3602_v41  ;;  %1377 = vmatprep.subr.bf16.mxu0 %v2439_v28 }
 0x193   : >> { %1643 = vmatprep.subr.bf16.mxu1 %v2439_v28 }
 0x195   : >> { %1378 = vmatpush1.bf16.msra.mxu0 %v3603_v42 }
 0x196   : >> { %1644 = vmatpush1.bf16.msra.mxu1 %v3604_v43  ;;  %1379 = vmatprep.subr.bf16.mxu0 %v2439_v28 }
 0x197   : >> { %1674 = vmatprep.subr.bf16.mxu1 %v2439_v28 }
 0x198   : >> { %1367 = vmatmul.mubr.bf16.gmra.mrb[12].mxu0 %v3605_v44 }
 0x199   : >> { %1658 = vmatmul.mubr.bf16.vlgmr.msra.gmra.mrb[8].mxu1 %v3600_v32  ;;  %1380 = vmatpush1.bf16.msra.mxu0 %v3606_v46 }
 0x19a   : >> { %2199 = vmatprep.mubr.msk.bf16.mxu0 %vm508_vm0, %v3607_v57  ;;  %1675 = vmatpush1.bf16.msra.mxu1 %v3606_v46 }
 0x19b   : >> { %1381 = vmatprep.subr.bf16.mxu0 %v2439_v28  ;;  %1676 = vmatprep.subr.bf16.mxu1 %v2439_v28 }
 0x19c   : >> { %2212 = vmatprep.mubr.msk.bf16.mxu1 %vm508_vm0, %v3601_v33 }
 0x19d   : >> { %1382 = vmatpush1.bf16.msra.mxu0 %v3608_v59 }
 0x19e   : >> { %1677 = vmatpush1.bf16.msra.mxu1 %v3608_v59  ;;  %1383 = vmatprep.subr.bf16.mxu0 %v2439_v28 }
 0x19f   : >> { %1678 = vmatprep.subr.bf16.mxu1 %v2439_v28 }
 0x1a1   : >> { %1666 = vmatmul.mubr.bf16.gmra.mrb[12].mxu1 %v3605_v44  ;;  %1384 = vmatpush1.bf16.msra.mxu0 %v3609_v45 }
 0x1a2   : >> { %1679 = vmatpush1.bf16.msra.mxu1 %v3609_v45  ;;  %2213 = vmatprep.mubr.msk.bf16.mxu1 %vm508_vm0, %v3607_v57 }
 0x1a3   : >> { %1385 = vmatprep.subr.bf16.mxu0 %v2439_v28  ;;  %1680 = vmatprep.subr.bf16.mxu1 %v2439_v28 }
 0x1a5   : >> { %1386 = vmatpush1.bf16.msra.mxu0 %v3610_v51 }
 0x1a6   : >> { %1681 = vmatpush1.bf16.msra.mxu1 %v3610_v51  ;;  %1387 = vmatprep.subr.bf16.mxu0 %v2439_v28 }
 0x1a7   : >> { %1682 = vmatprep.subr.bf16.mxu1 %v2439_v28 }
 0x1a9   : >> { %1388 = vmatpush1.bf16.msra.mxu0 %v3611_v35 }
 0x1aa   : >> { %1683 = vmatpush1.bf16.msra.mxu1 %v3611_v35  ;;  %1389 = vmatprep.subr.bf16.mxu0 %v2439_v28 }
 0x1ab   : >> { %1684 = vmatprep.subr.bf16.mxu1 %v2439_v28 }
 0x1ad   : >> { %1390 = vmatpush1.bf16.msra.mxu0 %v3612_v36 }
 0x1ae   : >> { %1685 = vmatpush1.bf16.msra.mxu1 %v3612_v36  ;;  %1391 = vmatprep.subr.bf16.mxu0 %v2439_v28 }
 0x1af   : >> { %1686 = vmatprep.subr.bf16.mxu1 %v2439_v28 }
 0x1b1   : >> { %1392 = vmatpush1.bf16.msra.mxu0 %v3011_v1 }
 0x1b2   : >> { %1687 = vmatpush1.bf16.msra.mxu1 %v3011_v1  ;;  %1393 = vmatprep.subr.bf16.mxu0 %v2439_v28 }
 0x1b3   : >> { %1688 = vmatprep.subr.bf16.mxu1 %v2439_v28 }
 0x1b5   : >> { %1394 = vmatpush1.bf16.msra.mxu0 %v3005_v39 }
 0x1b6   : >> { %1689 = vmatpush1.bf16.msra.mxu1 %v3005_v39  ;;  %1428 = vmatprep.subr.bf16.mxu0 %v2439_v28  ;;  %v3615_v39 = vld [vmem:[#allocation36_spill] sm:$0xff] }
 0x1b7   : >> { %1690 = vmatprep.subr.bf16.mxu1 %v2439_v28 }
 0x1b8   : >> { %1408 = vmatmul.mubr.bf16.vlgmr.msra.gmra.mrb[8].mxu0 %v3613_v37 }
 0x1b9   : >> { %2200 = vmatprep.mubr.msk.bf16.mxu0 %vm508_vm0, %v3614_v38  ;;  %1429 = vmatpush1.bf16.msra.mxu0 %v2804_v52 }
 0x1ba   : >> { %1691 = vmatpush1.bf16.msra.mxu1 %v3061_v61  ;;  %1430 = vmatprep.subr.bf16.mxu0 %v2439_v28 }
 0x1bb   : >> { %1692 = vmatprep.subr.bf16.mxu1 %v2439_v28 }
 0x1bd   : >> { %1431 = vmatpush1.bf16.msra.mxu0 %v2807_v53 }
 0x1be   : >> { %1693 = vmatpush1.bf16.msra.mxu1 %v3028_v58  ;;  %1432 = vmatprep.subr.bf16.mxu0 %v2439_v28 }
 0x1bf   : >> { %1727 = vmatprep.subr.bf16.mxu1 %v2439_v28 }
 0x1c0   : >> { %1416 = vmatmul.mubr.bf16.gmra.mrb[12].mxu0 %v3615_v39 }
 0x1c1   : >> { %1707 = vmatmul.mubr.bf16.vlgmr.msra.gmra.mrb[8].mxu1 %v3613_v37  ;;  %1433 = vmatpush1.bf16.msra.mxu0 %v2812_v54 }
 0x1c2   : >> { %2201 = vmatprep.mubr.msk.bf16.mxu0 %vm508_vm0, %v3042_v0  ;;  %2214 = vmatprep.mubr.msk.bf16.mxu1 %vm508_vm0, %v3614_v38 }
 0x1c3   : >> { %1728 = vmatpush1.bf16.msra.mxu1 %v2812_v54  ;;  %1434 = vmatprep.subr.bf16.mxu0 %v2439_v28 }
 0x1c4   : >> { %1729 = vmatprep.subr.bf16.mxu1 %v2439_v28 }
 0x1c5   : >> { %1435 = vmatpush1.bf16.msra.mxu0 %v2817_v55 }
 0x1c6   : >> { %1436 = vmatprep.subr.bf16.mxu0 %v2439_v28 }
 0x1c7   : >> { %1730 = vmatpush1.bf16.msra.mxu1 %v2817_v55 }
 0x1c8   : >> { %1731 = vmatprep.subr.bf16.mxu1 %v2439_v28 }
 0x1c9   : >> { %1715 = vmatmul.mubr.bf16.gmra.mrb[12].mxu1 %v3615_v39  ;;  %1437 = vmatpush1.bf16.msra.mxu0 %v3093_v8 }
 0x1ca   : >> { %2215 = vmatprep.mubr.msk.bf16.mxu1 %vm508_vm0, %v3042_v0  ;;  %1438 = vmatprep.subr.bf16.mxu0 %v2439_v28  ;;  %v3616_v0 = vld [vmem:[#allocation37_spill] sm:$0xff] }
 0x1cb   : >> { %1732 = vmatpush1.bf16.msra.mxu1 %v3093_v8  ;;  %v3617_v8 = vld [vmem:[#allocation38_spill] sm:$0xff] }
 0x1cc   : >> { %1733 = vmatprep.subr.bf16.mxu1 %v2439_v28 }
 0x1cd   : >> { %1439 = vmatpush1.bf16.msra.mxu0 %v3082_v49 }
 0x1ce   : >> { %1440 = vmatprep.subr.bf16.mxu0 %v2439_v28 }
 0x1cf   : >> { %1734 = vmatpush1.bf16.msra.mxu1 %v3082_v49 }
 0x1d0   : >> { %1735 = vmatprep.subr.bf16.mxu1 %v2439_v28 }
 0x1d1   : >> { %1441 = vmatpush1.bf16.msra.mxu0 %v3105_v63 }
 0x1d2   : >> { %1442 = vmatprep.subr.bf16.mxu0 %v2439_v28 }
 0x1d3   : >> { %1736 = vmatpush1.bf16.msra.mxu1 %v3105_v63 }
 0x1d4   : >> { %1737 = vmatprep.subr.bf16.mxu1 %v2439_v28 }
 0x1d5   : >> { %1443 = vmatpush1.bf16.msra.mxu0 %v3099_v47 }
 0x1d6   : >> { %1444 = vmatprep.subr.bf16.mxu0 %v2439_v28 }
 0x1d7   : >> { %1738 = vmatpush1.bf16.msra.mxu1 %v3099_v47 }
 0x1d8   : >> { %1739 = vmatprep.subr.bf16.mxu1 %v2439_v28 }
 0x1d9   : >> { %1445 = vmatpush1.bf16.msra.mxu0 %v3120_v40 }
 0x1da   : >> { %1446 = vmatprep.subr.bf16.mxu0 %v2439_v28 }
 0x1db   : >> { %1740 = vmatpush1.bf16.msra.mxu1 %v3120_v40 }
 0x1dc   : >> { %1741 = vmatprep.subr.bf16.mxu1 %v2439_v28 }
 0x1dd   : >> { %1447 = vmatpush1.bf16.msra.mxu0 %v3115_v60 }
 0x1de   : >> { %1523 = vmatprep.subr.bf16.mxu0 %v2439_v28 }
 0x1df   : >> { %1742 = vmatpush1.bf16.msra.mxu1 %v3115_v60 }
 0x1e0   : >> { %1461 = vmatmul.mubr.bf16.vlgmr.msra.gmra.mrb[8].mxu0 %v3126_v12  ;;  %1743 = vmatprep.subr.bf16.mxu1 %v2439_v28 }
 0x1e1   : >> { %2202 = vmatprep.mubr.msk.bf16.mxu0 %vm508_vm0, %v3133_v16  ;;  %1524 = vmatpush1.bf16.msra.mxu0 %v3616_v0 }
 0x1e2   : >> { %1525 = vmatprep.subr.bf16.mxu0 %v2439_v28 }
 0x1e3   : >> { %1744 = vmatpush1.bf16.msra.mxu1 %v3206_v3  ;;  %v1508_v3 = vpop.permute.xlu1 %1507 }
 0x1e4   : >> { %1745 = vmatprep.subr.bf16.mxu1 %v2439_v28 }
 0x1e5   : >> { %1526 = vmatpush1.bf16.msra.mxu0 %v3067_v62 }
 0x1e6   : >> { %1527 = vmatprep.subr.bf16.mxu0 %v2439_v28 }
 0x1e7   : >> { %1746 = vmatpush1.bf16.msra.mxu1 %v3216_v2  ;;  %v1506_v2 = vpop.permute.xlu0 %1505  ;;  %v1514_v47 = vpop.permute.xlu1 %1513 }
 0x1e8   : >> { %1469 = vmatmul.mubr.bf16.gmra.mrb[12].mxu0 %v3147_v17  ;;  %1786 = vmatprep.subr.bf16.mxu1 %v2439_v28 }
 0x1e9   : >> { %1528 = vmatpush1.bf16.msra.mxu0 %v3617_v8  ;;  %2207 = vmatprep.mubr.msk.bf16.mxu0 %vm508_vm0, %v3153_v19 }
 0x1ea   : >> { %1760 = vmatmul.mubr.bf16.vlgmr.msra.gmra.mrb[8].mxu1 %v3126_v12  ;;  %1529 = vmatprep.subr.bf16.mxu0 %v2439_v28 }
 0x1eb   : >> { %2216 = vmatprep.mubr.msk.bf16.mxu1 %vm508_vm0, %v3133_v16  ;;  %1787 = vmatpush1.bf16.msra.mxu1 %v3617_v8  ;;  %v1512_v16 = vpop.permute.xlu0 %1511 }
 0x1ec   : >> { %1788 = vmatprep.subr.bf16.mxu1 %v2439_v28 }
 0x1ed   : >> { %1530 = vmatpush1.bf16.msra.mxu0 %v3089_v48 }
 0x1ee   : >> { %1531 = vmatprep.subr.bf16.mxu0 %v2439_v28 }
 0x1ef   : >> { %1789 = vmatpush1.bf16.msra.mxu1 %v3089_v48 }
 0x1f0   : >> { %1790 = vmatprep.subr.bf16.mxu1 %v2439_v28 }
 0x1f1   : >> { %1532 = vmatpush1.bf16.msra.mxu0 %v1506_v2 }
 0x1f2   : >> { %1768 = vmatmul.mubr.bf16.gmra.mrb[12].mxu1 %v3147_v17  ;;  %1533 = vmatprep.subr.bf16.mxu0 %v2439_v28  ;;  %v1518_v17 = vpop.permute.xlu0 %1517 }
 0x1f3   : >> { %1791 = vmatpush1.bf16.msra.mxu1 %v1506_v2  ;;  %2217 = vmatprep.mubr.msk.bf16.mxu1 %vm508_vm0, %v3153_v19  ;;  %v1520_v19 = vpop.permute.xlu1 %1519 }
 0x1f4   : >> { %1792 = vmatprep.subr.bf16.mxu1 %v2439_v28 }
 0x1f5   : >> { %1534 = vmatpush1.bf16.msra.mxu0 %v1508_v3 }
 0x1f6   : >> { %1535 = vmatprep.subr.bf16.mxu0 %v2439_v28  ;;  %v1781_v48 = vpop.permute.xlu0 %1780 }
 0x1f7   : >> { %1793 = vmatpush1.bf16.msra.mxu1 %v1508_v3  ;;  %v1783_v49 = vpop.permute.xlu1 %1782 }
 0x1f8   : >> { %1794 = vmatprep.subr.bf16.mxu1 %v2439_v28 }
 0x1f9   : >> { %1536 = vmatpush1.bf16.msra.mxu0 %v1512_v16 }
 0x1fa   : >> { %1537 = vmatprep.subr.bf16.mxu0 %v2439_v28  ;;  %v1854_v29 = vpop.permute.xlu0 %1853 }
 0x1fb   : >> { %1795 = vmatpush1.bf16.msra.mxu1 %v1512_v16  ;;  %v1859_v4 = vpop.permute.xlu1 %1858 }
 0x1fc   : >> { %1796 = vmatprep.subr.bf16.mxu1 %v2439_v28 }
 0x1fd   : >> { %1538 = vmatpush1.bf16.msra.mxu0 %v1514_v47 }
 0x1fe   : >> { %1539 = vmatprep.subr.bf16.mxu0 %v2439_v28  ;;  %v1869_v33 = vpop.permute.xlu0 %1868 }
 0x1ff   : >> { %1797 = vmatpush1.bf16.msra.mxu1 %v1514_v47  ;;  %v1864_v31 = vpop.permute.xlu1 %1863 }
 0x200   : >> { %1798 = vmatprep.subr.bf16.mxu1 %v2439_v28 }
 0x201   : >> { %1540 = vmatpush1.bf16.msra.mxu0 %v1518_v17 }
 0x202   : >> { %1541 = vmatprep.subr.bf16.mxu0 %v2439_v28  ;;  %v1887_v44 = vpop.permute.xlu0 %1886 }
 0x203   : >> { %1799 = vmatpush1.bf16.msra.mxu1 %v1518_v17  ;;  %v1882_v42 = vpop.permute.xlu1 %1881 }
 0x204   : >> { %1800 = vmatprep.subr.bf16.mxu1 %v2439_v28 }
 0x205   : >> { %1542 = vmatpush1.bf16.msra.mxu0 %v1520_v19 }
 0x206   : >> { %v1897_v3 = vpop.permute.xlu0 %1896 }
 0x207   : >> { %1801 = vmatpush1.bf16.msra.mxu1 %v1520_v19  ;;  %v1892_v0 = vpop.permute.xlu1 %1891 }
 0x208   : >> { %1802 = vmatprep.subr.bf16.mxu1 %v2439_v28  ;;  %1556 = vmatmul.mubr.bf16.vlgmr.msra.gmra.mrb[8].mxu0 %v3201_v34 }
 0x209   : >> { %2208 = vmatprep.mubr.msk.bf16.mxu0 %vm508_vm0, %v3211_v7 }
 0x20b   : >> { %1803 = vmatpush1.bf16.msra.mxu1 %v1781_v48 }
 0x20c   : >> { %1804 = vmatprep.subr.bf16.mxu1 %v2439_v28 }
 0x20f   : >> { %1805 = vmatpush1.bf16.msra.mxu1 %v1783_v49 }
 0x210   : >> { %1564 = vmatmul.mubr.bf16.gmra.mrb[12].mxu0 %v3224_v6 }
 0x212   : >> { %1819 = vmatmul.mubr.bf16.vlgmr.msra.gmra.mrb[8].mxu1 %v3201_v34 }
 0x213   : >> { %v971_v52 = vpop.f32.mrb[0].mxu0  ;;  %2218 = vmatprep.mubr.msk.bf16.mxu1 %vm508_vm0, %v3211_v7 }
 0x214   : >> { %v973_v53 = vpop.f32.mrb[1].mxu0 }
 0x215   : >> { %v974_v54 = vpop.f32.mrb[2].mxu0  ;;  %v1906_v53 = vpop.permute.xlu1 %1905 }
 0x216   : >> { %v976_v55 = vpop.f32.mrb[3].mxu0 }
 0x21a   : >> { %1827 = vmatmul.mubr.bf16.gmra.mrb[12].mxu1 %v3224_v6 }
 0x21b   : >> { %v979_v58 = vpop.f32.mrb[4].mxu0  ;;  %v1258_v61 = vpop.f32.mrb[0].mxu1 }
 0x21c   : >> { %v1839_v62 = vmax.f32 %v971_v52, %v1258_v61  ;;  %v981_v63 = vpop.f32.mrb[5].mxu0  ;;  %v1260_v1 = vpop.f32.mrb[1].mxu1 }
 0x21d   : >> { %v982_v28 = vpop.f32.mrb[6].mxu0  ;;  %v1261_v50 = vpop.f32.mrb[2].mxu1 }
 0x21e   : >> { %v1840_v9 = vmax.f32 %v974_v54, %v1261_v50  ;;  %v984_v56 = vpop.f32.mrb[7].mxu0  ;;  %v1263_v40 = vpop.f32.mrb[3].mxu1 }
 0x21f   : >> { %v1911_v1 = vpop.permute.xlu0 %1910 }
 0x223   : >> { %v1266_v5 = vpop.f32.mrb[4].mxu1 }
 0x224   : >> { %v1841_v13 = vmax.f32 %v979_v58, %v1266_v5  ;;  %v1268_v12 = vpop.f32.mrb[5].mxu1 }
 0x225   : >> { %v1269_v60 = vpop.f32.mrb[6].mxu1 }
 0x226   : >> { %v1842_v7 = vmax.f32 %v982_v28, %v1269_v60  ;;  %v1271_v34 = vpop.f32.mrb[7].mxu1 }
 0x2db   : >> { %v1557_v30 = vpop.f32.mrb[8].mxu0 }
 0x2dc   : >> { %v1559_v6 = vpop.f32.mrb[9].mxu0 }
 0x2dd   : >> { %v1560_v32 = vpop.f32.mrb[10].mxu0 }
 0x2de   : >> { %v1562_v41 = vpop.f32.mrb[11].mxu0 }
 0x2e3   : >> { %v1565_v43 = vpop.f32.mrb[12].mxu0 }
 0x2e4   : >> { %v1567_v46 = vpop.f32.mrb[13].mxu0 }
 0x2e5   : >> { %v1820_v57 = vpop.f32.mrb[8].mxu1  ;;  %v1568_v59 = vpop.f32.mrb[14].mxu0 }
 0x2e6   : >> { %v1843_v45 = vmax.f32 %v1557_v30, %v1820_v57  ;;  %v1822_v51 = vpop.f32.mrb[9].mxu1  ;;  %v1570_v35 = vpop.f32.mrb[15].mxu0 }
 0x2e7   : >> { %v1823_v36 = vpop.f32.mrb[10].mxu1  ;;  %v1921_v30 = vpop.permute.xlu0 %1920 }
 0x2e8   : >> { %v1847_v37 = vmax.f32 %v1839_v62, %v1843_v45  ;;  %v1844_v38 = vmax.f32 %v1560_v32, %v1823_v36  ;;  %v1825_v39 = vpop.f32.mrb[11].mxu1 }
 0x2ea   : >> { %v1871_v8 = vadd.f32 %v1854_v29, %v1847_v37  ;;  %v1848_v2 = vmax.f32 %v1840_v9, %v1844_v38 }
 0x2ec   : >> { %v1875_v16 = vmax.f32 %v1871_v8, 0.0  ;;  %v1872_v47 = vadd.f32 %v1859_v4, %v1848_v2  ;;  %v1916_v4 = vpop.permute.xlu1 %1915 }
 0x2ed   : >> { %v1828_v17 = vpop.f32.mrb[12].mxu1 }
 0x2ee   : >> { %v1899_v19 = vmul.f32 %v1882_v42, %v1875_v16  ;;  %v1876_v48 = vmax.f32 %v1872_v47, 0.0  ;;  %v1845_v49 = vmax.f32 %v1565_v43, %v1828_v17  ;;  %v1830_v52 = vpop.f32.mrb[13].mxu1 }
 0x2ef   : >> { %v1831_v54 = vpop.f32.mrb[14].mxu1 }
 0x2f0   : >> { %v1923_v55 = vadd.f32 %v1906_v53, %v1899_v19  ;;  %v1900_v58 = vmul.f32 %v1887_v44, %v1876_v48  ;;  %v1849_v61 = vmax.f32 %v1841_v13, %v1845_v49  ;;  %v1846_v62 = vmax.f32 %v1568_v59, %v1831_v54  ;;  %v1833_v63 = vpop.f32.mrb[15].mxu1 }
 0x2f2   : >> { %v2240_v28 = vpack.c.bf16 %v1923_v55, %v1923_v55  ;;  %v1924_v50 = vadd.f32 %v1911_v1, %v1900_v58  ;;  %v1873_v9 = vadd.f32 %v1864_v31, %v1849_v61  ;;  %v1850_v56 = vmax.f32 %v1842_v7, %v1846_v62 }
 0x2f4   : >> { %1947 = vst.msk [vmem:[%s1945_s12] sm:$0xf] %vm1946_vm3, %v2240_v28  ;;  %v2241_v40 = vpack.c.bf16 %v1924_v50, %v1924_v50  ;;  %v1877_v5 = vmax.f32 %v1873_v9, 0.0  ;;  %v1874_v12 = vadd.f32 %v1869_v33, %v1850_v56 }
 0x2f6   : >> { %1948 = vst.msk [vmem:[%s1945_s12 + $0x4] sm:$0xf] %vm1946_vm3, %v2241_v40  ;;  %v1901_v60 = vmul.f32 %v1892_v0, %v1877_v5  ;;  %v1878_v34 = vmax.f32 %v1874_v12, 0.0 }
 0x2f8   : >> { %v1925_v13 = vadd.f32 %v1916_v4, %v1901_v60  ;;  %v1902_v29 = vmul.f32 %v1897_v3, %v1878_v34  ;;  %305 = sbr.rel (!%p303_p4) target bundleno = 18 (0x12), region = 97 }
 0x2fa   : >> { %v2242_v6 = vpack.c.bf16 %v1925_v13, %v1925_v13  ;;  %v1926_v32 = vadd.f32 %v1921_v30, %v1902_v29 }
 0x2fc   : >> { %1949 = vst.msk [vmem:[%s1945_s12 + $0x8] sm:$0xf] %vm1946_vm3, %v2242_v6  ;;  %v2243_v41 = vpack.c.bf16 %v1926_v32, %v1926_v32 }
 0x2fe   : >> { %1950 = vst.msk [vmem:[%s1945_s12 + $0xc] sm:$0xf] %vm1946_vm3, %v2243_v41 }
 0x2ff PF: > { %s16_s21 = sadd.s32 1, %s2433_s21  }
 0x300   : > { %p13_p5 = scmp.ge.s32.totalorder %s16_s21, 4  }
 0x302   :  { %15 = sbr.rel (!%p13_p5) target bundleno = 1 (0x1), region = 108 }

// kernel: net_forward.8
= control target key start
LH: loop header
LB: loop body
LE: loop exit
PB: predicated region body
PF: predicated region fallthrough
CT: control target
= control target key end

     0   :  { %s2480_s21 = smov 0   ;;  %s3487_s0 = inlined_call_operand.vmem [shape: bf16[2,56,32,28], index: 0, kind: input, shape index: {}]   ;;  %s3488_s1 = inlined_call_operand.vmem [shape: bf16[2,56,32,28], index: 1, kind: input, shape index: {}]   ;;  %s3489_s2 = inlined_call_operand.vmem [shape: bf16[32,800], index: 2, kind: input, shape index: {}]   ;;  %s3490_s3 = inlined_call_operand.vmem [shape: f32[32,1], index: 3, kind: input, shape index: {}]   ;;  %s3491_s4 = inlined_call_operand.vmem [shape: f32[32,1], index: 4, kind: input, shape index: {}]   ;;  %s3492_s5 = inlined_call_operand.vmem [shape: f32[32,1], index: 5, kind: input, shape index: {}]   ;;  %s3493_s6 = inlined_call_operand.vmem [shape: bf16[2,26,32,26], index: 6, kind: output, shape index: {}]  }
   0x1 LB: > { %s2069_s22 = sadd.s32 4294967295, %s2433_s21   ;;  %p2073_p0 = scmp.ge.s32.totalorder %s2433_s21, 1  ;;  %s2433_s21 = sphi %s2480_s21, %s16_s21  }
   0x2   : > { %p222_p1 = scmp.lt.s32.totalorder %s2433_s21, 3 }
   0x4   : > { %p223_p2 = pnand %p2073_p0, %p222_p1 }
   0x5   : > { %p257_p3 = scmp.lt.s32.totalorder (!%p223_p2), %s2069_s22, 1  ;;  %v2491_v0 = vld [vmem:[%s3489_s2] sm:$0xff] (!%p223_p2)  ;;  %v2496_v1 = vld [vmem:[%s3489_s2 + $0x8] sm:$0xff] (!%p223_p2)  ;;  %v2501_v2 = vld [vmem:[%s3489_s2 + $0x10] sm:$0xff] (!%p223_p2)  ;;  %s2643_s24 = smov (!%p223_p2), 0  }
   0x6   : > { %226 = sbr.rel (%p223_p2) target bundleno = 767 (0x2ff), region = 44  ;;  %3544 = vst [vmem:[#allocation2_spill] sm:$0xff] (!%p223_p2), %v2491_v0  ;;  %3545 = vst [vmem:[#allocation3_spill] sm:$0xff] (!%p223_p2), %v2496_v1  ;;  %v2506_v3 = vld [vmem:[%s3489_s2 + $0x18] sm:$0xf] (!%p223_p2)  ;;  %v2511_v4 = vld [vmem:[%s3489_s2 + $0x1c] sm:$0xff] (!%p223_p2) }
   0x7   : > { %3546 = vst [vmem:[#allocation4_spill] sm:$0xff] (!%p223_p2), %v2501_v2  ;;  %3547 = vst [vmem:[#allocation5_spill] sm:$0xff] (!%p223_p2), %v2506_v3  ;;  %v2516_v5 = vld [vmem:[%s3489_s2 + $0x24] sm:$0xff] (!%p223_p2)  ;;  %v2521_v6 = vld [vmem:[%s3489_s2 + $0x2c] sm:$0xff] (!%p223_p2) }
   0x8   : > { %3548 = vst [vmem:[#allocation6_spill] sm:$0xff] (!%p223_p2), %v2511_v4  ;;  %3549 = vst [vmem:[#allocation7_spill] sm:$0xff] (!%p223_p2), %v2516_v5  ;;  %v2526_v7 = vld [vmem:[%s3489_s2 + $0x34] sm:$0xf] (!%p223_p2)  ;;  %v2531_v8 = vld [vmem:[%s3489_s2 + $0x38] sm:$0xff] (!%p223_p2) }
   0x9   : > { %3550 = vst [vmem:[#allocation8_spill] sm:$0xff] (!%p223_p2), %v2521_v6  ;;  %3551 = vst [vmem:[#allocation9_spill] sm:$0xff] (!%p223_p2), %v2526_v7  ;;  %v2536_v9 = vld [vmem:[%s3489_s2 + $0x40] sm:$0xff] (!%p223_p2)  ;;  %v2541_v10 = vld [vmem:[%s3489_s2 + $0x48] sm:$0xff] (!%p223_p2) }
   0xa   : > { %3552 = vst [vmem:[#allocation10_spill] sm:$0xff] (!%p223_p2), %v2531_v8  ;;  %3553 = vst [vmem:[#allocation11_spill] sm:$0xff] (!%p223_p2), %v2536_v9  ;;  %v2546_v11 = vld [vmem:[%s3489_s2 + $0x50] sm:$0xf] (!%p223_p2)  ;;  %v2551_v12 = vld [vmem:[%s3489_s2 + $0x54] sm:$0xff] (!%p223_p2) }
   0xb   : > { %3554 = vst [vmem:[#allocation12_spill] sm:$0xff] (!%p223_p2), %v2551_v12  ;;  %v2556_v13 = vld [vmem:[%s3489_s2 + $0x5c] sm:$0xff] (!%p223_p2)  ;;  %v2561_v14 = vld [vmem:[%s3489_s2 + $0x64] sm:$0xff] (!%p223_p2)  ;;  %v2566_v15 = vld [vmem:[%s3489_s2 + $0x6c] sm:$0xf] (!%p223_p2) }
   0xc   : > { %3555 = vst [vmem:[#allocation13_spill] sm:$0xff] (!%p223_p2), %v2556_v13  ;;  %v2571_v16 = vld [vmem:[%s3490_s3] sm:$0xff] (!%p223_p2)  ;;  %v2576_v17 = vld [vmem:[%s3490_s3 + $0x8] sm:$0xff] (!%p223_p2)  ;;  %v2591_v18 = vld [vmem:[%s3490_s3 + $0x10] sm:$0xff] (!%p223_p2) }
   0xd   : > { %s3619_s22 = smov (!%p257_p3, %s2069_s22), 1  ;;  %3556 = vst [vmem:[#allocation14_spill] sm:$0xff] %v2571_v16  ;;  %3557 = vst [vmem:[#allocation15_spill] sm:$0xff] %v2576_v17  ;;  %v2596_v19 = vld [vmem:[%s3490_s3 + $0x18] sm:$0xff]  ;;  %v2601_v20 = vld [vmem:[%s3491_s4] sm:$0xff] }
   0xe   : > { %s2373_s25 = smul.u32 896, %s3619_s22  ;;  %3558 = vst [vmem:[#allocation16_spill] sm:$0xff] %v2596_v19  ;;  %v2611_v21 = vld [vmem:[%s3491_s4 + $0x8] sm:$0xff]  ;;  %v2616_v22 = vld [vmem:[%s3491_s4 + $0x10] sm:$0xff]  ;;  %v2621_v23 = vld [vmem:[%s3491_s4 + $0x18] sm:$0xff] }
   0xf   : > { %s2374_s8 = smul.u32 416, %s3619_s22  ;;  %v2626_v24 = vld [vmem:[%s3492_s5] sm:$0xff]  ;;  %v2631_v25 = vld [vmem:[%s3492_s5 + $0x8] sm:$0xff]  ;;  %v2636_v26 = vld [vmem:[%s3492_s5 + $0x10] sm:$0xff] }
  0x10   : > { %s2581_s17 = scalar_lea.vmem %s3487_s0, %s2373_s25  ;;  %s2586_s19 = scalar_lea.vmem %s3488_s1, %s2373_s25  ;;  %v2641_v27 = vld [vmem:[%s3492_s5 + $0x18] sm:$0xff] }
  0x11   : > { %s2606_s25 = scalar_lea.vmem %s3493_s6, %s2374_s8 }
  0x12 LB: >> { %v3559_v6 = vld [vmem:[#allocation8_spill] sm:$0xff]  ;;  %v3562_v8 = vld [vmem:[#allocation10_spill] sm:$0xff]  ;;  %v3566_v9 = vld [vmem:[#allocation11_spill] sm:$0xff]  ;;  %s2228_s26 = sshll.u32 %s2437_s24, 5  ;;  %v2439_v28 = vmov 0   ;;  %s2440_s29 = smov 127   ;;  %v2172_v56 = vcombine.low %v2541_v10, %v2561_v14  ;;  %s2437_s24 = sphi %s2643_s24, %s306_s24  }
  0x13   : >> { %v3560_v2 = vld [vmem:[#allocation4_spill] sm:$0xff]  ;;  %v3563_v4 = vld [vmem:[#allocation6_spill] sm:$0xff]  ;;  %v3565_v13 = vld [vmem:[#allocation13_spill] sm:$0xff]  ;;  %515 = vmatprep.subr.bf16.mxu0 %v2439_v28  ;;  %1002 = vmatprep.subr.bf16.mxu1 %v2439_v28  ;;  %s2652_s27 = scalar_lea.vmem %s2581_s17, %s2228_s26  ;;  %s2655_s28 = scalar_lea.vmem %s2586_s19, %s2228_s26  ;;  %vm508_vm0 = vcmask 261120   ;;  %vm503_vm1 = vcmask 785408   ;;  %vm683_vm2 = vcmask 523264  }
  0x14   : >> { %v3561_v12 = vld [vmem:[#allocation12_spill] sm:$0xff]  ;;  %v3564_v0 = vld [vmem:[#allocation2_spill] sm:$0xff]  ;;  %v3567_v5 = vld [vmem:[#allocation7_spill] sm:$0xff]  ;;  %2398 = vset.pattern.permute.xlu1 %v2439_v28  ;;  %2397 = vset.pattern.permute.xlu0 %v2439_v28  ;;  %s2441_s30 = smov 126   ;;  %s2442_s7 = smov 96   ;;  %v2152_v40 = vcombine.low %v3566_v9, %v3565_v13  ;;  %v2164_v50 = vcombine.high %v3566_v9, %v3565_v13  ;;  %v2171_v51 = vcombine.low %v3560_v2, %v3559_v6  ;;  %vm1946_vm3 = vcmask 207872  }
  0x15   : >> { %v3568_v1 = vld [vmem:[#allocation3_spill] sm:$0xff]  ;;  %v2660_v29 = vld [vmem:[%s2652_s27 + $0x10] sm:$0xff]   ;;  %v2663_v30 = vld [vmem:[%s2652_s27 + $0x18] sm:$0xff]   ;;  %v2697_v33 = vcombine.high %v3564_v0, %v3563_v4  ;;  %v2730_v39 = vcombine.high %v3562_v8, %v3561_v12  ;;  %s2443_s9 = smov 64   ;;  %s2444_s10 = smov 32  }
  0x16   : >> { %457 = vrot.lane.b32.xlu0 %v2660_v29, %s2440_s29  ;;  %v2668_v31 = vld [vmem:[%s2655_s28 + $0x10] sm:$0xff]   ;;  %516 = vmatpush1.bf16.msra.mxu0 %v2660_v29  ;;  %v2675_v32 = vld [vmem:[%s2655_s28 + $0x18] sm:$0xff]   ;;  %v2150_v34 = vcombine.low %v3568_v1, %v3567_v5  ;;  %v2706_v35 = vld [vmem:[%s2652_s27] sm:$0xff]   ;;  %v2163_v45 = vcombine.high %v3568_v1, %v3567_v5  ;;  %s2244_s11 = sshll.u32 %s2437_s24, 4  ;;  %s306_s24 = sadd.s32 1, %s2437_s24  }
  0x17   : >> { %517 = vmatprep.subr.bf16.mxu0 %v2439_v28  ;;  %463 = vrot.lane.b32.xlu1 %v2668_v31, %s2440_s29  ;;  %v2710_v36 = vld [vmem:[%s2652_s27 + $0x8] sm:$0xff]   ;;  %v2715_v37 = vld [vmem:[%s2655_s28] sm:$0xff]   ;;  %3569 = vst [vmem:[#allocation17_spill] sm:$0xff] %v2730_v39  ;;  %v2772_v46 = vld [vmem:[%s2652_s27 + $0x30] sm:$0xff]   ;;  %s1945_s12 = scalar_lea.vmem %s2606_s25, %s2244_s11  ;;  %p303_p4 = scmp.ge.s32.totalorder %s306_s24, 26  }
  0x18   : >> { %1003 = vmatpush1.bf16.msra.mxu1 %v2668_v31  ;;  %v2720_v38 = vld [vmem:[%s2655_s28 + $0x8] sm:$0xff]   ;;  %v2740_v41 = vld [vmem:[%s2652_s27 + $0x20] sm:$0xff]   ;;  %v2775_v47 = vld [vmem:[%s2652_s27 + $0x38] sm:$0xff]  }
  0x19   : >> { %1004 = vmatprep.subr.bf16.mxu1 %v2439_v28  ;;  %v2745_v42 = vld [vmem:[%s2652_s27 + $0x28] sm:$0xff]   ;;  %v2750_v43 = vld [vmem:[%s2655_s28 + $0x20] sm:$0xff]   ;;  %3570 = vst [vmem:[#allocation18_spill] sm:$0xff] %v2775_v47  ;;  %v2780_v48 = vld [vmem:[%s2655_s28 + $0x30] sm:$0xff]  }
  0x1a   : >> { %459 = vrot.lane.b32.xlu0 %v2663_v30, %s2440_s29  ;;  %518 = vmatpush1.bf16.msra.mxu0 %v2663_v30  ;;  %v2755_v44 = vld [vmem:[%s2655_s28 + $0x28] sm:$0xff]   ;;  %3571 = vst [vmem:[#allocation19_spill] sm:$0xff] %v2780_v48  ;;  %v2785_v49 = vld [vmem:[%s2655_s28 + $0x38] sm:$0xff]   ;;  %v2804_v52 = vld [vmem:[%s2652_s27 + $0x40] sm:$0xff]  }
  0x1b   : >> { %519 = vmatprep.subr.bf16.mxu0 %v2439_v28  ;;  %465 = vrot.lane.b32.xlu1 %v2675_v32, %s2440_s29  ;;  %3572 = vst [vmem:[#allocation20_spill] sm:$0xff] %v2785_v49  ;;  %v2807_v53 = vld [vmem:[%s2652_s27 + $0x48] sm:$0xff]   ;;  %v2812_v54 = vld [vmem:[%s2655_s28 + $0x40] sm:$0xff]   ;;  %v3593_v19 = vld [vmem:[#allocation16_spill] sm:$0xff] }
  0x1c   : >> { %1005 = vmatpush1.bf16.msra.mxu1 %v2675_v32  ;;  %v2817_v55 = vld [vmem:[%s2655_s28 + $0x48] sm:$0xff]   ;;  %v3591_v16 = vld [vmem:[#allocation14_spill] sm:$0xff]  ;;  %v3594_v7 = vld [vmem:[#allocation9_spill] sm:$0xff] }
  0x1d   : >> { %1006 = vmatprep.subr.bf16.mxu1 %v2439_v28  ;;  %v3592_v17 = vld [vmem:[#allocation15_spill] sm:$0xff]  ;;  %v3595_v3 = vld [vmem:[#allocation5_spill] sm:$0xff] }
  0x1e   : >> { %469 = vrot.lane.b32.xlu0 %v2660_v29, %s2441_s30  ;;  %520 = vmatpush1.bf16.msra.mxu0 %v2668_v31 }
  0x1f   : >> { %521 = vmatprep.subr.bf16.mxu0 %v2439_v28  ;;  %471 = vrot.lane.b32.xlu1 %v2663_v30, %s2441_s30 }
  0x22   : >> { %996 = vrot.lane.b32.xlu0 %v2668_v31, %s2441_s30  ;;  %522 = vmatpush1.bf16.msra.mxu0 %v2675_v32 }
  0x23   : >> { %523 = vmatprep.subr.bf16.mxu0 %v2439_v28  ;;  %998 = vrot.lane.b32.xlu1 %v2675_v32, %s2441_s30 }
  0x26   : >> { %495 = vrot.lane.b32.xlu0 %v2697_v33, %s2442_s7 }
  0x27   : >> { %497 = vrot.lane.b32.xlu1 %v2150_v34, %s2442_s7 }
  0x2a   : >> { %415 = vrot.lane.b32.xlu0 %v2706_v35, %s2440_s29 }
  0x2b   : >> { %417 = vrot.lane.b32.xlu1 %v2710_v36, %s2440_s29 }
  0x2e   : >> { %421 = vrot.lane.b32.xlu0 %v2715_v37, %s2440_s29 }
  0x2f   : >> { %423 = vrot.lane.b32.xlu1 %v2720_v38, %s2440_s29 }
  0x32   : >> { %427 = vrot.lane.b32.xlu0 %v2706_v35, %s2441_s30 }
  0x33   : >> { %429 = vrot.lane.b32.xlu1 %v2710_v36, %s2441_s30 }
  0x36   : >> { %499 = vrot.lane.b32.xlu0 %v2730_v39, %s2442_s7 }
  0x37   : >> { %501 = vrot.lane.b32.xlu1 %v2152_v40, %s2442_s7 }
  0x3a   : >> { %990 = vrot.lane.b32.xlu0 %v2715_v37, %s2441_s30 }
  0x3b   : >> { %992 = vrot.lane.b32.xlu1 %v2720_v38, %s2441_s30 }
  0x3e   : >> { %651 = vrot.lane.b32.xlu0 %v2740_v41, %s2440_s29 }
  0x3f   : >> { %653 = vrot.lane.b32.xlu1 %v2745_v42, %s2440_s29 }
  0x42   : >> { %657 = vrot.lane.b32.xlu0 %v2750_v43, %s2440_s29 }
  0x43   : >> { %659 = vrot.lane.b32.xlu1 %v2755_v44, %s2440_s29 }
  0x46   : >> { %663 = vrot.lane.b32.xlu0 %v2740_v41, %s2441_s30 }
  0x47   : >> { %665 = vrot.lane.b32.xlu1 %v2745_v42, %s2441_s30 }
  0x4a   : >> { %1100 = vrot.lane.b32.xlu0 %v2750_v43, %s2441_s30 }
  0x4b   : >> { %1102 = vrot.lane.b32.xlu1 %v2755_v44, %s2441_s30 }
  0x4e   : >> { %675 = vrot.lane.b32.xlu0 %v2150_v34, %s2443_s9 }
  0x4f   : >> { %677 = vrot.lane.b32.xlu1 %v2163_v45, %s2443_s9 }
  0x52   : >> { %771 = vrot.lane.b32.xlu0 %v2772_v46, %s2440_s29 }
  0x53   : >> { %773 = vrot.lane.b32.xlu1 %v2775_v47, %s2440_s29 }
  0x56   : >> { %777 = vrot.lane.b32.xlu0 %v2780_v48, %s2440_s29 }
  0x57   : >> { %779 = vrot.lane.b32.xlu1 %v2785_v49, %s2440_s29 }
  0x5a   : >> { %783 = vrot.lane.b32.xlu0 %v2772_v46, %s2441_s30 }
  0x5b   : >> { %785 = vrot.lane.b32.xlu1 %v2775_v47, %s2441_s30 }
  0x5e   : >> { %679 = vrot.lane.b32.xlu0 %v2152_v40, %s2443_s9 }
  0x5f   : >> { %681 = vrot.lane.b32.xlu1 %v2164_v50, %s2443_s9 }
  0x62   : >> { %1159 = vrot.lane.b32.xlu0 %v2780_v48, %s2441_s30 }
  0x63   : >> { %1161 = vrot.lane.b32.xlu1 %v2785_v49, %s2441_s30 }
  0x66   : >> { %799 = vrot.lane.b32.xlu0 %v2163_v45, %s2444_s10 }
  0x67   : >> { %801 = vrot.lane.b32.xlu1 %v2171_v51, %s2444_s10 }
  0x6a   : >> { %895 = vrot.lane.b32.xlu0 %v2804_v52, %s2440_s29 }
  0x6b   : >> { %897 = vrot.lane.b32.xlu1 %v2807_v53, %s2440_s29 }
  0x6e   : >> { %901 = vrot.lane.b32.xlu0 %v2812_v54, %s2440_s29 }
  0x6f   : >> { %903 = vrot.lane.b32.xlu1 %v2817_v55, %s2440_s29 }
  0x72   : >> { %907 = vrot.lane.b32.xlu0 %v2804_v52, %s2441_s30 }
  0x73   : >> { %909 = vrot.lane.b32.xlu1 %v2807_v53, %s2441_s30 }
  0x76   : >> { %803 = vrot.lane.b32.xlu0 %v2164_v50, %s2444_s10 }
  0x77   : >> { %805 = vrot.lane.b32.xlu1 %v2172_v56, %s2444_s10 }
  0x7a   : >> { %1218 = vrot.lane.b32.xlu0 %v2812_v54, %s2441_s30 }
  0x7b   : >> { %1220 = vrot.lane.b32.xlu1 %v2817_v55, %s2441_s30 }
  0x88   : >> { %v2833_v57 = vpop.permute.xlu0 %457 }
  0x89   : >> { %524 = vmatpush1.bf16.msra.mxu0 %v2833_v57  ;;  %1007 = vmatpush1.bf16.msra.mxu1 %v2833_v57  ;;  %v2839_v58 = vpop.permute.xlu1 %463 }
  0x8a   : >> { %1008 = vmatprep.subr.bf16.mxu1 %v2439_v28  ;;  %525 = vmatprep.subr.bf16.mxu0 %v2439_v28  ;;  %3573 = vst [vmem:[#allocation21_spill] sm:$0xff] %v2839_v58 }
  0x8c   : >> { %v2841_v59 = vpop.permute.xlu0 %459 }
  0x8d   : >> { %526 = vmatpush1.bf16.msra.mxu0 %v2841_v59  ;;  %1009 = vmatpush1.bf16.msra.mxu1 %v2841_v59  ;;  %v2847_v60 = vpop.permute.xlu1 %465 }
  0x8e   : >> { %527 = vmatprep.subr.bf16.mxu0 %v2439_v28  ;;  %1010 = vmatprep.subr.bf16.mxu1 %v2439_v28  ;;  %3574 = vst [vmem:[#allocation22_spill] sm:$0xff] %v2847_v60 }
  0x90   : >> { %v2849_v61 = vpop.permute.xlu0 %469 }
  0x91   : >> { %3575 = vst [vmem:[#allocation23_spill] sm:$0xff] %v2849_v61  ;;  %528 = vmatpush1.bf16.msra.mxu0 %v2839_v58  ;;  %1011 = vmatpush1.bf16.msra.mxu1 %v2839_v58  ;;  %v2855_v62 = vpop.permute.xlu1 %471 }
  0x92   : >> { %529 = vmatprep.subr.bf16.mxu0 %v2439_v28  ;;  %1012 = vmatprep.subr.bf16.mxu1 %v2439_v28  ;;  %3576 = vst [vmem:[#allocation24_spill] sm:$0xff] %v2855_v62 }
  0x94   : >> { %v2857_v63 = vpop.permute.xlu0 %996 }
  0x95   : >> { %3577 = vst [vmem:[#allocation25_spill] sm:$0xff] %v2857_v63  ;;  %530 = vmatpush1.bf16.msra.mxu0 %v2847_v60  ;;  %1013 = vmatpush1.bf16.msra.mxu1 %v2847_v60  ;;  %v2863_v34 = vpop.permute.xlu1 %998 }
  0x96   : >> { %531 = vmatprep.subr.bf16.mxu0 %v2439_v28  ;;  %1014 = vmatprep.subr.bf16.mxu1 %v2439_v28  ;;  %3578 = vst [vmem:[#allocation26_spill] sm:$0xff] %v2863_v34 }
  0x98   : >> { %v496_v40 = vpop.permute.xlu0 %495 }
  0x99   : >> { %532 = vmatpush1.bf16.msra.mxu0 %v2849_v61  ;;  %1015 = vmatpush1.bf16.msra.mxu1 %v2849_v61  ;;  %v2869_v45 = vpop.permute.xlu1 %497 }
  0x9a   : >> { %533 = vmatprep.subr.bf16.mxu0 %v2439_v28  ;;  %1016 = vmatprep.subr.bf16.mxu1 %v2439_v28  ;;  %v2879_v51 = vsel %vm503_vm1, %v496_v40, %v2869_v45 }
  0x9b   : >> { %2153 = vmatprep.mubr.msk.bf16.mxu0 %vm508_vm0, %v2869_v45  ;;  %2185 = vmatprep.mubr.msk.bf16.mxu1 %vm508_vm0, %v2869_v45 }
  0x9c   : >> { %v416_v50 = vpop.permute.xlu0 %415 }
  0x9d   : >> { %534 = vmatpush1.bf16.msra.mxu0 %v2855_v62  ;;  %1017 = vmatpush1.bf16.msra.mxu1 %v2855_v62  ;;  %v418_v56 = vpop.permute.xlu1 %417 }
  0x9e   : >> { %578 = vmatprep.subr.bf16.mxu0 %v2439_v28  ;;  %1018 = vmatprep.subr.bf16.mxu1 %v2439_v28 }
  0xa0   : >> { %548 = vmatmul.mubr.bf16.vlgmr.msra.gmra.mrb[0].mxu0 %v2879_v51  ;;  %v422_v1 = vpop.permute.xlu0 %421 }
  0xa1   : >> { %1019 = vmatpush1.bf16.msra.mxu1 %v2857_v63  ;;  %579 = vmatpush1.bf16.msra.mxu0 %v2706_v35  ;;  %v424_v5 = vpop.permute.xlu1 %423 }
  0xa2   : >> { %580 = vmatprep.subr.bf16.mxu0 %v2439_v28  ;;  %1020 = vmatprep.subr.bf16.mxu1 %v2439_v28 }
  0xa4   : >> { %v428_v9 = vpop.permute.xlu0 %427 }
  0xa5   : >> { %1021 = vmatpush1.bf16.msra.mxu1 %v2863_v34  ;;  %581 = vmatpush1.bf16.msra.mxu0 %v2710_v36  ;;  %v430_v40 = vpop.permute.xlu1 %429 }
  0xa6   : >> { %582 = vmatprep.subr.bf16.mxu0 %v2439_v28  ;;  %1051 = vmatprep.subr.bf16.mxu1 %v2439_v28 }
  0xa8   : >> { %1035 = vmatmul.mubr.bf16.vlgmr.msra.gmra.mrb[0].mxu1 %v2879_v51  ;;  %v500_v13 = vpop.permute.xlu0 %499 }
  0xa9   : >> { %583 = vmatpush1.bf16.msra.mxu0 %v2715_v37  ;;  %1052 = vmatpush1.bf16.msra.mxu1 %v2715_v37  ;;  %v2897_v35 = vpop.permute.xlu1 %501 }
  0xaa   : >> { %584 = vmatprep.subr.bf16.mxu0 %v2439_v28  ;;  %1053 = vmatprep.subr.bf16.mxu1 %v2439_v28  ;;  %v2901_v36 = vsel %vm503_vm1, %v500_v13, %v2897_v35 }
  0xab   : >> { %2154 = vmatprep.mubr.msk.bf16.mxu0 %vm508_vm0, %v2897_v35  ;;  %2186 = vmatprep.mubr.msk.bf16.mxu1 %vm508_vm0, %v2897_v35 }
  0xac   : >> { %556 = vmatmul.mubr.bf16.gmra.mrb[4].mxu0 %v2901_v36 }
  0xad   : >> { %585 = vmatpush1.bf16.msra.mxu0 %v2720_v38  ;;  %1054 = vmatpush1.bf16.msra.mxu1 %v2720_v38  ;;  %v993_v13 = vpop.permute.xlu1 %992 }
  0xae   : >> { %1055 = vmatprep.subr.bf16.mxu1 %v2439_v28  ;;  %586 = vmatprep.subr.bf16.mxu0 %v2439_v28 }
  0xaf   : >> { %2157 = vmatprep.mubr.msk.bf16.mxu0 %vm508_vm0, %v2697_v33 }
  0xb0   : >> { %1043 = vmatmul.mubr.bf16.gmra.mrb[4].mxu1 %v2901_v36 }
  0xb1   : >> { %587 = vmatpush1.bf16.msra.mxu0 %v416_v50  ;;  %1056 = vmatpush1.bf16.msra.mxu1 %v416_v50  ;;  %v2923_v37 = vpop.permute.xlu1 %653 }
  0xb2   : >> { %588 = vmatprep.subr.bf16.mxu0 %v2439_v28  ;;  %1057 = vmatprep.subr.bf16.mxu1 %v2439_v28 }
  0xb3   : >> { %2187 = vmatprep.mubr.msk.bf16.mxu1 %vm508_vm0, %v2697_v33 }
  0xb5   : >> { %589 = vmatpush1.bf16.msra.mxu0 %v418_v56  ;;  %1058 = vmatpush1.bf16.msra.mxu1 %v418_v56  ;;  %v2927_v38 = vpop.permute.xlu1 %659 }
  0xb6   : >> { %590 = vmatprep.subr.bf16.mxu0 %v2439_v28  ;;  %1059 = vmatprep.subr.bf16.mxu1 %v2439_v28 }
  0xb9   : >> { %591 = vmatpush1.bf16.msra.mxu0 %v422_v1  ;;  %1060 = vmatpush1.bf16.msra.mxu1 %v422_v1  ;;  %v2933_v1 = vcombine.low %v3564_v0, %v3563_v4  ;;  %v2935_v50 = vpop.permute.xlu1 %665 }
  0xba   : >> { %592 = vmatprep.subr.bf16.mxu0 %v2439_v28  ;;  %1061 = vmatprep.subr.bf16.mxu1 %v2439_v28 }
  0xbb   : >> { %3579 = vst [vmem:[#allocation27_spill] sm:$0xff] %v2933_v1 }
  0xbd   : >> { %593 = vmatpush1.bf16.msra.mxu0 %v424_v5  ;;  %1062 = vmatpush1.bf16.msra.mxu1 %v424_v5  ;;  %v991_v5 = vpop.permute.xlu0 %990  ;;  %v2945_v56 = vpop.permute.xlu1 %1102 }
  0xbe   : >> { %594 = vmatprep.subr.bf16.mxu0 %v2439_v28  ;;  %1063 = vmatprep.subr.bf16.mxu1 %v2439_v28 }
  0xc1   : >> { %595 = vmatpush1.bf16.msra.mxu0 %v428_v9  ;;  %1064 = vmatpush1.bf16.msra.mxu1 %v428_v9  ;;  %v2943_v9 = vpop.permute.xlu0 %651  ;;  %v2960_v0 = vpop.permute.xlu1 %677 }
  0xc2   : >> { %596 = vmatprep.subr.bf16.mxu0 %v2439_v28  ;;  %1065 = vmatprep.subr.bf16.mxu1 %v2439_v28  ;;  %3581 = vst [vmem:[#allocation29_spill] sm:$0xff] %v2960_v0 }
  0xc5   : >> { %597 = vmatpush1.bf16.msra.mxu0 %v430_v40  ;;  %1066 = vmatpush1.bf16.msra.mxu1 %v430_v40  ;;  %v2951_v40 = vcombine.low %v3562_v8, %v3561_v12  ;;  %v2983_v8 = vpop.permute.xlu1 %773 }
  0xc6   : >> { %1067 = vmatprep.subr.bf16.mxu1 %v2439_v28  ;;  %694 = vmatprep.subr.bf16.mxu0 %v2439_v28  ;;  %3582 = vst [vmem:[#allocation30_spill] sm:$0xff] %v2983_v8 }
  0xc7   : >> { %3580 = vst [vmem:[#allocation28_spill] sm:$0xff] %v2951_v40 }
  0xc8   : >> { %611 = vmatmul.mubr.bf16.vlgmr.msra.gmra.mrb[0].mxu0 %v2933_v1 }
  0xc9   : >> { %695 = vmatpush1.bf16.msra.mxu0 %v2740_v41  ;;  %1068 = vmatpush1.bf16.msra.mxu1 %v991_v5  ;;  %v2956_v5 = vpop.permute.xlu0 %657 }
  0xca   : >> { %696 = vmatprep.subr.bf16.mxu0 %v2439_v28  ;;  %1069 = vmatprep.subr.bf16.mxu1 %v2439_v28 }
  0xcb   : >> { %2158 = vmatprep.mubr.msk.bf16.mxu0 %vm508_vm0, %v2730_v39 }
  0xcd   : >> { %697 = vmatpush1.bf16.msra.mxu0 %v2745_v42  ;;  %1070 = vmatpush1.bf16.msra.mxu1 %v993_v13  ;;  %v2966_v13 = vpop.permute.xlu0 %663 }
  0xce   : >> { %698 = vmatprep.subr.bf16.mxu0 %v2439_v28  ;;  %1106 = vmatprep.subr.bf16.mxu1 %v2439_v28 }
  0xd0   : >> { %1084 = vmatmul.mubr.bf16.vlgmr.msra.gmra.mrb[0].mxu1 %v2933_v1  ;;  %619 = vmatmul.mubr.bf16.gmra.mrb[4].mxu0 %v2951_v40 }
  0xd1   : >> { %699 = vmatpush1.bf16.msra.mxu0 %v2750_v43  ;;  %1107 = vmatpush1.bf16.msra.mxu1 %v2750_v43  ;;  %v2976_v4 = vpop.permute.xlu0 %1100 }
  0xd2   : >> { %700 = vmatprep.subr.bf16.mxu0 %v2439_v28  ;;  %1108 = vmatprep.subr.bf16.mxu1 %v2439_v28 }
  0xd3   : >> { %2165 = vmatprep.mubr.msk.bf16.mxu0 %vm508_vm0, %v2960_v0  ;;  %2188 = vmatprep.mubr.msk.bf16.mxu1 %vm508_vm0, %v2730_v39 }
  0xd5   : >> { %701 = vmatpush1.bf16.msra.mxu0 %v2755_v44  ;;  %1109 = vmatpush1.bf16.msra.mxu1 %v2755_v44  ;;  %v676_v12 = vpop.permute.xlu0 %675 }
  0xd6   : >> { %1110 = vmatprep.subr.bf16.mxu1 %v2439_v28  ;;  %702 = vmatprep.subr.bf16.mxu0 %v2439_v28  ;;  %v3019_v61 = vsel %vm683_vm2, %v676_v12, %v2960_v0 }
  0xd7   : >> { %3587 = vst [vmem:[#allocation35_spill] sm:$0xff] %v3019_v61 }
  0xd8   : >> { %1092 = vmatmul.mubr.bf16.gmra.mrb[4].mxu1 %v2951_v40  ;;  %v2991_v40 = vpop.permute.xlu1 %779 }
  0xd9   : >> { %703 = vmatpush1.bf16.msra.mxu0 %v2943_v9  ;;  %1111 = vmatpush1.bf16.msra.mxu1 %v2943_v9  ;;  %3583 = vst [vmem:[#allocation31_spill] sm:$0xff] %v2991_v40  ;;  %v2997_v34 = vpop.permute.xlu0 %771 }
  0xda   : >> { %704 = vmatprep.subr.bf16.mxu0 %v2439_v28  ;;  %1112 = vmatprep.subr.bf16.mxu1 %v2439_v28  ;;  %3584 = vst [vmem:[#allocation32_spill] sm:$0xff] %v2997_v34 }
  0xdb   : >> { %2189 = vmatprep.mubr.msk.bf16.mxu1 %vm508_vm0, %v2960_v0 }
  0xdc   : >> { %v3005_v39 = vpop.permute.xlu1 %785 }
  0xdd   : >> { %705 = vmatpush1.bf16.msra.mxu0 %v2923_v37  ;;  %1113 = vmatpush1.bf16.msra.mxu1 %v2923_v37  ;;  %v3003_v63 = vpop.permute.xlu0 %777 }
  0xde   : >> { %1114 = vmatprep.subr.bf16.mxu1 %v2439_v28  ;;  %706 = vmatprep.subr.bf16.mxu0 %v2439_v28  ;;  %3585 = vst [vmem:[#allocation33_spill] sm:$0xff] %v3003_v63 }
  0xe0   : >> { %v3013_v62 = vpop.permute.xlu1 %681 }
  0xe1   : >> { %707 = vmatpush1.bf16.msra.mxu0 %v2956_v5  ;;  %1115 = vmatpush1.bf16.msra.mxu1 %v2956_v5  ;;  %v3011_v1 = vpop.permute.xlu0 %783  ;;  %3586 = vst [vmem:[#allocation34_spill] sm:$0xff] %v3013_v62 }
  0xe2   : >> { %708 = vmatprep.subr.bf16.mxu0 %v2439_v28  ;;  %1116 = vmatprep.subr.bf16.mxu1 %v2439_v28 }
  0xe4   : >> { %v3028_v58 = vpop.permute.xlu1 %1161 }
  0xe5   : >> { %709 = vmatpush1.bf16.msra.mxu0 %v2927_v38  ;;  %1117 = vmatpush1.bf16.msra.mxu1 %v2927_v38  ;;  %v680_v60 = vpop.permute.xlu0 %679 }
  0xe6   : >> { %710 = vmatprep.subr.bf16.mxu0 %v2439_v28  ;;  %1118 = vmatprep.subr.bf16.mxu1 %v2439_v28  ;;  %v3036_v12 = vsel %vm683_vm2, %v680_v60, %v3013_v62  ;;  %v3055_v60 = vld [vmem:[%s2652_s27 + $0x50] sm:$0xff]  }
  0xe7   : >> { %3588 = vst [vmem:[#allocation36_spill] sm:$0xff] %v3036_v12  ;;  %3589 = vst [vmem:[#allocation37_spill] sm:$0xff] %v3055_v60  ;;  %1505 = vrot.lane.b32.xlu0 %v3055_v60, %s2440_s29 }
  0xe8   : >> { %v3042_v0 = vpop.permute.xlu1 %801 }
  0xe9   : >> { %711 = vmatpush1.bf16.msra.mxu0 %v2966_v13  ;;  %1119 = vmatpush1.bf16.msra.mxu1 %v2966_v13 }
  0xea   : >> { %712 = vmatprep.subr.bf16.mxu0 %v2439_v28  ;;  %1120 = vmatprep.subr.bf16.mxu1 %v2439_v28 }
  0xed   : >> { %713 = vmatpush1.bf16.msra.mxu0 %v2935_v50  ;;  %1121 = vmatpush1.bf16.msra.mxu1 %v2935_v50 }
  0xee   : >> { %818 = vmatprep.subr.bf16.mxu0 %v2439_v28  ;;  %1122 = vmatprep.subr.bf16.mxu1 %v2439_v28 }
  0xf0   : >> { %727 = vmatmul.mubr.bf16.vlgmr.msra.gmra.mrb[0].mxu0 %v3019_v61 }
  0xf1   : >> { %819 = vmatpush1.bf16.msra.mxu0 %v2772_v46  ;;  %1123 = vmatpush1.bf16.msra.mxu1 %v2976_v4 }
  0xf2   : >> { %820 = vmatprep.subr.bf16.mxu0 %v2439_v28  ;;  %1124 = vmatprep.subr.bf16.mxu1 %v2439_v28 }
  0xf3   : >> { %2166 = vmatprep.mubr.msk.bf16.mxu0 %vm508_vm0, %v3013_v62 }
  0xf5   : >> { %821 = vmatpush1.bf16.msra.mxu0 %v2775_v47  ;;  %1125 = vmatpush1.bf16.msra.mxu1 %v2945_v56 }
  0xf6   : >> { %822 = vmatprep.subr.bf16.mxu0 %v2439_v28  ;;  %1165 = vmatprep.subr.bf16.mxu1 %v2439_v28 }
  0xf8   : >> { %1139 = vmatmul.mubr.bf16.vlgmr.msra.gmra.mrb[0].mxu1 %v3019_v61  ;;  %735 = vmatmul.mubr.bf16.gmra.mrb[4].mxu0 %v3036_v12  ;;  %v3061_v61 = vpop.permute.xlu0 %1159 }
  0xf9   : >> { %823 = vmatpush1.bf16.msra.mxu0 %v2780_v48  ;;  %1166 = vmatpush1.bf16.msra.mxu1 %v2780_v48  ;;  %v3089_v48 = vld [vmem:[%s2655_s28 + $0x58] sm:$0xff]  }
  0xfa   : >> { %824 = vmatprep.subr.bf16.mxu0 %v2439_v28  ;;  %1167 = vmatprep.subr.bf16.mxu1 %v2439_v28 }
  0xfb   : >> { %2190 = vmatprep.mubr.msk.bf16.mxu1 %vm508_vm0, %v3013_v62  ;;  %2173 = vmatprep.mubr.msk.bf16.mxu0 %vm508_vm0, %v3042_v0  ;;  %v3067_v62 = vld [vmem:[%s2652_s27 + $0x58] sm:$0xff]  }
  0xfc   : >> { %1507 = vrot.lane.b32.xlu1 %v3067_v62, %s2440_s29 }
  0xfd   : >> { %825 = vmatpush1.bf16.msra.mxu0 %v2785_v49  ;;  %1168 = vmatpush1.bf16.msra.mxu1 %v2785_v49  ;;  %v3082_v49 = vpop.permute.xlu1 %897 }
  0xfe   : >> { %1169 = vmatprep.subr.bf16.mxu1 %v2439_v28  ;;  %826 = vmatprep.subr.bf16.mxu0 %v2439_v28 }
 0x100   : >> { %1147 = vmatmul.mubr.bf16.gmra.mrb[4].mxu1 %v3036_v12  ;;  %v3078_v12 = vld [vmem:[%s2655_s28 + $0x50] sm:$0xff]   ;;  %1513 = vrot.lane.b32.xlu1 %v3089_v48, %s2440_s29 }
 0x101   : >> { %827 = vmatpush1.bf16.msra.mxu0 %v2997_v34  ;;  %1170 = vmatpush1.bf16.msra.mxu1 %v2997_v34  ;;  %3590 = vst [vmem:[#allocation38_spill] sm:$0xff] %v3078_v12  ;;  %v800_v34 = vpop.permute.xlu0 %799  ;;  %v3099_v47 = vpop.permute.xlu1 %903 }
 0x102   : >> { %828 = vmatprep.subr.bf16.mxu0 %v2439_v28  ;;  %1171 = vmatprep.subr.bf16.mxu1 %v2439_v28 }
 0x103   : >> { %2191 = vmatprep.mubr.msk.bf16.mxu1 %vm508_vm0, %v3042_v0  ;;  %1511 = vrot.lane.b32.xlu0 %v3078_v12, %s2440_s29 }
 0x104   : >> { %1519 = vrot.lane.b32.xlu1 %v3067_v62, %s2441_s30 }
 0x105   : >> { %829 = vmatpush1.bf16.msra.mxu0 %v2983_v8  ;;  %1172 = vmatpush1.bf16.msra.mxu1 %v2983_v8  ;;  %v3093_v8 = vpop.permute.xlu0 %895 }
 0x106   : >> { %830 = vmatprep.subr.bf16.mxu0 %v2439_v28  ;;  %1173 = vmatprep.subr.bf16.mxu1 %v2439_v28 }
 0x107   : >> { %1517 = vrot.lane.b32.xlu0 %v3055_v60, %s2441_s30  ;;  %v3115_v60 = vpop.permute.xlu1 %909 }
 0x108   : >> { %1782 = vrot.lane.b32.xlu1 %v3089_v48, %s2441_s30 }
 0x109   : >> { %831 = vmatpush1.bf16.msra.mxu0 %v3003_v63  ;;  %1174 = vmatpush1.bf16.msra.mxu1 %v3003_v63  ;;  %v3105_v63 = vpop.permute.xlu0 %901 }
 0x10a   : >> { %832 = vmatprep.subr.bf16.mxu0 %v2439_v28  ;;  %1175 = vmatprep.subr.bf16.mxu1 %v2439_v28 }
 0x10b   : >> { %1780 = vrot.lane.b32.xlu0 %v3078_v12, %s2441_s30  ;;  %v3126_v12 = vsel %vm508_vm0, %v800_v34, %v3042_v0 }
 0x10c   : >> { %1858 = vperm.xlu1 %2398, %v3592_v17  }
 0x10d   : >> { %833 = vmatpush1.bf16.msra.mxu0 %v2991_v40  ;;  %1176 = vmatpush1.bf16.msra.mxu1 %v2991_v40  ;;  %v3120_v40 = vpop.permute.xlu0 %907 }
 0x10e   : >> { %834 = vmatprep.subr.bf16.mxu0 %v2439_v28  ;;  %1177 = vmatprep.subr.bf16.mxu1 %v2439_v28 }
 0x10f   : >> { %1853 = vperm.xlu0 %2397, %v3591_v16   ;;  %v3133_v16 = vpop.permute.xlu1 %805 }
 0x110   : >> { %1863 = vperm.xlu1 %2398, %v2591_v18  }
 0x111   : >> { %835 = vmatpush1.bf16.msra.mxu0 %v3011_v1  ;;  %1178 = vmatpush1.bf16.msra.mxu1 %v3011_v1  ;;  %v804_v34 = vpop.permute.xlu0 %803 }
 0x112   : >> { %836 = vmatprep.subr.bf16.mxu0 %v2439_v28  ;;  %1179 = vmatprep.subr.bf16.mxu1 %v2439_v28  ;;  %v3147_v17 = vsel %vm508_vm0, %v804_v34, %v3133_v16  ;;  %v3201_v34 = vcombine.high %v3560_v2, %v3559_v6  ;;  %v3224_v6 = vcombine.high %v2541_v10, %v2561_v14 }
 0x113   : >> { %1868 = vperm.xlu0 %2397, %v3593_v19   ;;  %v3153_v19 = vcombine.low %v3595_v3, %v3594_v7  ;;  %v3211_v7 = vcombine.low %v2546_v11, %v2566_v15  ;;  %v3216_v2 = vpop.permute.xlu1 %1220 }
 0x114   : >> { %1881 = vperm.xlu1 %2398, %v2601_v20  }
 0x115   : >> { %837 = vmatpush1.bf16.msra.mxu0 %v3005_v39  ;;  %1180 = vmatpush1.bf16.msra.mxu1 %v3005_v39  ;;  %v3206_v3 = vpop.permute.xlu0 %1218 }
 0x116   : >> { %937 = vmatprep.subr.bf16.mxu0 %v2439_v28  ;;  %1181 = vmatprep.subr.bf16.mxu1 %v2439_v28 }
 0x117   : >> { %1886 = vperm.xlu0 %2397, %v2611_v21  }
 0x118   : >> { %851 = vmatmul.mubr.bf16.vlgmr.msra.gmra.mrb[0].mxu0 %v3126_v12  ;;  %1891 = vperm.xlu1 %2398, %v2616_v22  }
 0x119   : >> { %938 = vmatpush1.bf16.msra.mxu0 %v2804_v52  ;;  %1182 = vmatpush1.bf16.msra.mxu1 %v3061_v61 }
 0x11a   : >> { %939 = vmatprep.subr.bf16.mxu0 %v2439_v28  ;;  %1183 = vmatprep.subr.bf16.mxu1 %v2439_v28 }
 0x11b   : >> { %2174 = vmatprep.mubr.msk.bf16.mxu0 %vm508_vm0, %v3133_v16  ;;  %1896 = vperm.xlu0 %2397, %v2621_v23  }
 0x11c   : >> { %1905 = vperm.xlu1 %2398, %v2626_v24  }
 0x11d   : >> { %940 = vmatpush1.bf16.msra.mxu0 %v2807_v53  ;;  %1184 = vmatpush1.bf16.msra.mxu1 %v3028_v58 }
 0x11e   : >> { %941 = vmatprep.subr.bf16.mxu0 %v2439_v28  ;;  %1224 = vmatprep.subr.bf16.mxu1 %v2439_v28 }
 0x11f   : >> { %1910 = vperm.xlu0 %2397, %v2631_v25  }
 0x120   : >> { %1198 = vmatmul.mubr.bf16.vlgmr.msra.gmra.mrb[0].mxu1 %v3126_v12  ;;  %859 = vmatmul.mubr.bf16.gmra.mrb[4].mxu0 %v3147_v17 }
 0x121   : >> { %942 = vmatpush1.bf16.msra.mxu0 %v2812_v54  ;;  %1225 = vmatpush1.bf16.msra.mxu1 %v2812_v54 }
 0x122   : >> { %943 = vmatprep.subr.bf16.mxu0 %v2439_v28  ;;  %1226 = vmatprep.subr.bf16.mxu1 %v2439_v28 }
 0x123   : >> { %2192 = vmatprep.mubr.msk.bf16.mxu1 %vm508_vm0, %v3133_v16  ;;  %2183 = vmatprep.mubr.msk.bf16.mxu0 %vm508_vm0, %v3153_v19 }
 0x124   : >> { %1915 = vperm.xlu1 %2398, %v2636_v26   ;;  %1920 = vperm.xlu0 %2397, %v2641_v27  }
 0x125   : >> { %944 = vmatpush1.bf16.msra.mxu0 %v2817_v55  ;;  %1227 = vmatpush1.bf16.msra.mxu1 %v2817_v55 }
 0x126   : >> { %1228 = vmatprep.subr.bf16.mxu1 %v2439_v28  ;;  %945 = vmatprep.subr.bf16.mxu0 %v2439_v28 }
 0x128   : >> { %1206 = vmatmul.mubr.bf16.gmra.mrb[4].mxu1 %v3147_v17 }
 0x129   : >> { %946 = vmatpush1.bf16.msra.mxu0 %v3093_v8  ;;  %1229 = vmatpush1.bf16.msra.mxu1 %v3093_v8 }
 0x12a   : >> { %947 = vmatprep.subr.bf16.mxu0 %v2439_v28  ;;  %1230 = vmatprep.subr.bf16.mxu1 %v2439_v28 }
 0x12b   : >> { %2193 = vmatprep.mubr.msk.bf16.mxu1 %vm508_vm0, %v3153_v19 }
 0x12d   : >> { %948 = vmatpush1.bf16.msra.mxu0 %v3082_v49  ;;  %1231 = vmatpush1.bf16.msra.mxu1 %v3082_v49 }
 0x12e   : >> { %949 = vmatprep.subr.bf16.mxu0 %v2439_v28  ;;  %1232 = vmatprep.subr.bf16.mxu1 %v2439_v28 }
 0x131   : >> { %950 = vmatpush1.bf16.msra.mxu0 %v3105_v63  ;;  %1233 = vmatpush1.bf16.msra.mxu1 %v3105_v63 }
 0x132   : >> { %951 = vmatprep.subr.bf16.mxu0 %v2439_v28  ;;  %1234 = vmatprep.subr.bf16.mxu1 %v2439_v28 }
 0x135   : >> { %952 = vmatpush1.bf16.msra.mxu0 %v3099_v47  ;;  %1235 = vmatpush1.bf16.msra.mxu1 %v3099_v47 }
 0x136   : >> { %953 = vmatprep.subr.bf16.mxu0 %v2439_v28  ;;  %1236 = vmatprep.subr.bf16.mxu1 %v2439_v28 }
 0x139   : >> { %954 = vmatpush1.bf16.msra.mxu0 %v3120_v40  ;;  %1237 = vmatpush1.bf16.msra.mxu1 %v3120_v40 }
 0x13a   : >> { %955 = vmatprep.subr.bf16.mxu0 %v2439_v28  ;;  %1238 = vmatprep.subr.bf16.mxu1 %v2439_v28 }
 0x13d   : >> { %956 = vmatpush1.bf16.msra.mxu0 %v3115_v60  ;;  %1239 = vmatpush1.bf16.msra.mxu1 %v3115_v60 }
 0x13e   : >> { %1240 = vmatprep.subr.bf16.mxu1 %v2439_v28  ;;  %1277 = vmatprep.subr.bf16.mxu0 %v2439_v28 }
 0x140   : >> { %970 = vmatmul.mubr.bf16.vlgmr.msra.gmra.mrb[0].mxu0 %v3201_v34 }
 0x141   : >> { %1241 = vmatpush1.bf16.msra.mxu1 %v3206_v3  ;;  %1278 = vmatpush1.bf16.msra.mxu0 %v2740_v41  ;;  %v3602_v41 = vld [vmem:[#allocation25_spill] sm:$0xff] }
 0x142   : >> { %1242 = vmatprep.subr.bf16.mxu1 %v2439_v28  ;;  %1279 = vmatprep.subr.bf16.mxu0 %v2439_v28 }
 0x143   : >> { %2184 = vmatprep.mubr.msk.bf16.mxu0 %vm508_vm0, %v3211_v7 }
 0x145   : >> { %1243 = vmatpush1.bf16.msra.mxu1 %v3216_v2  ;;  %1280 = vmatpush1.bf16.msra.mxu0 %v2745_v42  ;;  %v3603_v42 = vld [vmem:[#allocation18_spill] sm:$0xff] }
 0x146   : >> { %1281 = vmatprep.subr.bf16.mxu0 %v2439_v28  ;;  %1576 = vmatprep.subr.bf16.mxu1 %v2439_v28 }
 0x148   : >> { %978 = vmatmul.mubr.bf16.gmra.mrb[4].mxu0 %v3224_v6  ;;  %1257 = vmatmul.mubr.bf16.vlgmr.msra.gmra.mrb[0].mxu1 %v3201_v34 }
 0x149   : >> { %1282 = vmatpush1.bf16.msra.mxu0 %v2750_v43  ;;  %2195 = vmatprep.mubr.msk.bf16.mxu0 %vm508_vm0, %v2869_v45 }
 0x14a   : >> { %1577 = vmatpush1.bf16.msra.mxu1 %v2750_v43  ;;  %1283 = vmatprep.subr.bf16.mxu0 %v2439_v28  ;;  %v3604_v43 = vld [vmem:[#allocation26_spill] sm:$0xff] }
 0x14b   : >> { %1578 = vmatprep.subr.bf16.mxu1 %v2439_v28  ;;  %2194 = vmatprep.mubr.msk.bf16.mxu1 %vm508_vm0, %v3211_v7 }
 0x14d   : >> { %1284 = vmatpush1.bf16.msra.mxu0 %v2755_v44 }
 0x14e   : >> { %1579 = vmatpush1.bf16.msra.mxu1 %v2755_v44  ;;  %1285 = vmatprep.subr.bf16.mxu0 %v2439_v28  ;;  %v3605_v44 = vld [vmem:[#allocation28_spill] sm:$0xff] }
 0x14f   : >> { %1580 = vmatprep.subr.bf16.mxu1 %v2439_v28 }
 0x150   : >> { %1265 = vmatmul.mubr.bf16.gmra.mrb[4].mxu1 %v3224_v6 }
 0x151   : >> { %1286 = vmatpush1.bf16.msra.mxu0 %v2943_v9  ;;  %2209 = vmatprep.mubr.msk.bf16.mxu1 %vm508_vm0, %v2869_v45  ;;  %v3609_v45 = vld [vmem:[#allocation32_spill] sm:$0xff] }
 0x152   : >> { %1581 = vmatpush1.bf16.msra.mxu1 %v2943_v9  ;;  %1287 = vmatprep.subr.bf16.mxu0 %v2439_v28 }
 0x153   : >> { %1582 = vmatprep.subr.bf16.mxu1 %v2439_v28 }
 0x155   : >> { %1288 = vmatpush1.bf16.msra.mxu0 %v2923_v37 }
 0x156   : >> { %1583 = vmatpush1.bf16.msra.mxu1 %v2923_v37  ;;  %1289 = vmatprep.subr.bf16.mxu0 %v2439_v28  ;;  %v3613_v37 = vld [vmem:[#allocation35_spill] sm:$0xff] }
 0x157   : >> { %1584 = vmatprep.subr.bf16.mxu1 %v2439_v28 }
 0x159   : >> { %1290 = vmatpush1.bf16.msra.mxu0 %v2956_v5 }
 0x15a   : >> { %1585 = vmatpush1.bf16.msra.mxu1 %v2956_v5  ;;  %1291 = vmatprep.subr.bf16.mxu0 %v2439_v28 }
 0x15b   : >> { %1586 = vmatprep.subr.bf16.mxu1 %v2439_v28 }
 0x15d   : >> { %1292 = vmatpush1.bf16.msra.mxu0 %v2927_v38 }
 0x15e   : >> { %1587 = vmatpush1.bf16.msra.mxu1 %v2927_v38  ;;  %1293 = vmatprep.subr.bf16.mxu0 %v2439_v28  ;;  %v3614_v38 = vld [vmem:[#allocation34_spill] sm:$0xff] }
 0x15f   : >> { %1588 = vmatprep.subr.bf16.mxu1 %v2439_v28 }
 0x161   : >> { %1294 = vmatpush1.bf16.msra.mxu0 %v2966_v13 }
 0x162   : >> { %1589 = vmatpush1.bf16.msra.mxu1 %v2966_v13  ;;  %1295 = vmatprep.subr.bf16.mxu0 %v2439_v28 }
 0x163   : >> { %1590 = vmatprep.subr.bf16.mxu1 %v2439_v28 }
 0x165   : >> { %1296 = vmatpush1.bf16.msra.mxu0 %v2935_v50 }
 0x166   : >> { %1591 = vmatpush1.bf16.msra.mxu1 %v2935_v50  ;;  %1326 = vmatprep.subr.bf16.mxu0 %v2439_v28 }
 0x167   : >> { %1592 = vmatprep.subr.bf16.mxu1 %v2439_v28 }
 0x168   : >> { %1310 = vmatmul.mubr.bf16.vlgmr.msra.gmra.mrb[8].mxu0 %v2879_v51 }
 0x169   : >> { %2196 = vmatprep.mubr.msk.bf16.mxu0 %vm508_vm0, %v2897_v35  ;;  %1327 = vmatpush1.bf16.msra.mxu0 %v2660_v29  ;;  %v3597_v29 = vld [vmem:[#allocation22_spill] sm:$0xff] }
 0x16a   : >> { %1593 = vmatpush1.bf16.msra.mxu1 %v2976_v4  ;;  %1328 = vmatprep.subr.bf16.mxu0 %v2439_v28  ;;  %v3596_v4 = vld [vmem:[#allocation21_spill] sm:$0xff] }
 0x16b   : >> { %1594 = vmatprep.subr.bf16.mxu1 %v2439_v28 }
 0x16d   : >> { %1329 = vmatpush1.bf16.msra.mxu0 %v2663_v30  ;;  %v3598_v30 = vld [vmem:[#allocation23_spill] sm:$0xff] }
 0x16e   : >> { %1595 = vmatpush1.bf16.msra.mxu1 %v2945_v56  ;;  %1330 = vmatprep.subr.bf16.mxu0 %v2439_v28 }
 0x16f   : >> { %1625 = vmatprep.subr.bf16.mxu1 %v2439_v28 }
 0x170   : >> { %1318 = vmatmul.mubr.bf16.gmra.mrb[12].mxu0 %v2901_v36 }
 0x171   : >> { %1609 = vmatmul.mubr.bf16.vlgmr.msra.gmra.mrb[8].mxu1 %v2879_v51  ;;  %1331 = vmatpush1.bf16.msra.mxu0 %v2668_v31  ;;  %v3610_v51 = vld [vmem:[#allocation30_spill] sm:$0xff] }
 0x172   : >> { %2210 = vmatprep.mubr.msk.bf16.mxu1 %vm508_vm0, %v2897_v35  ;;  %1626 = vmatpush1.bf16.msra.mxu1 %v2668_v31  ;;  %v3599_v31 = vld [vmem:[#allocation24_spill] sm:$0xff]  ;;  %v3611_v35 = vld [vmem:[#allocation33_spill] sm:$0xff] }
 0x173   : >> { %1332 = vmatprep.subr.bf16.mxu0 %v2439_v28  ;;  %1627 = vmatprep.subr.bf16.mxu1 %v2439_v28 }
 0x174   : >> { %2197 = vmatprep.mubr.msk.bf16.mxu0 %vm508_vm0, %v2697_v33 }
 0x175   : >> { %1333 = vmatpush1.bf16.msra.mxu0 %v2675_v32 }
 0x176   : >> { %1628 = vmatpush1.bf16.msra.mxu1 %v2675_v32  ;;  %1334 = vmatprep.subr.bf16.mxu0 %v2439_v28  ;;  %v3600_v32 = vld [vmem:[#allocation27_spill] sm:$0xff] }
 0x177   : >> { %1629 = vmatprep.subr.bf16.mxu1 %v2439_v28 }
 0x179   : >> { %1617 = vmatmul.mubr.bf16.gmra.mrb[12].mxu1 %v2901_v36  ;;  %1335 = vmatpush1.bf16.msra.mxu0 %v2833_v57  ;;  %v3612_v36 = vld [vmem:[#allocation31_spill] sm:$0xff] }
 0x17a   : >> { %1630 = vmatpush1.bf16.msra.mxu1 %v2833_v57  ;;  %1336 = vmatprep.subr.bf16.mxu0 %v2439_v28  ;;  %v3607_v57 = vld [vmem:[#allocation29_spill] sm:$0xff] }
 0x17b   : >> { %1631 = vmatprep.subr.bf16.mxu1 %v2439_v28  ;;  %2211 = vmatprep.mubr.msk.bf16.mxu1 %vm508_vm0, %v2697_v33  ;;  %v3601_v33 = vld [vmem:[#allocation17_spill] sm:$0xff] }
 0x17d   : >> { %1337 = vmatpush1.bf16.msra.mxu0 %v2841_v59 }
 0x17e   : >> { %1632 = vmatpush1.bf16.msra.mxu1 %v2841_v59  ;;  %1338 = vmatprep.subr.bf16.mxu0 %v2439_v28  ;;  %v3608_v59 = vld [vmem:[#allocation20_spill] sm:$0xff] }
 0x17f   : >> { %1633 = vmatprep.subr.bf16.mxu1 %v2439_v28 }
 0x181   : >> { %1339 = vmatpush1.bf16.msra.mxu0 %v3596_v4 }
 0x182   : >> { %1634 = vmatpush1.bf16.msra.mxu1 %v3596_v4  ;;  %1340 = vmatprep.subr.bf16.mxu0 %v2439_v28 }
 0x183   : >> { %1635 = vmatprep.subr.bf16.mxu1 %v2439_v28 }
 0x185   : >> { %1341 = vmatpush1.bf16.msra.mxu0 %v3597_v29 }
 0x186   : >> { %1636 = vmatpush1.bf16.msra.mxu1 %v3597_v29  ;;  %1342 = vmatprep.subr.bf16.mxu0 %v2439_v28 }
 0x187   : >> { %1637 = vmatprep.subr.bf16.mxu1 %v2439_v28 }
 0x189   : >> { %1343 = vmatpush1.bf16.msra.mxu0 %v3598_v30 }
 0x18a   : >> { %1638 = vmatpush1.bf16.msra.mxu1 %v3598_v30  ;;  %1344 = vmatprep.subr.bf16.mxu0 %v2439_v28 }
 0x18b   : >> { %1639 = vmatprep.subr.bf16.mxu1 %v2439_v28 }
 0x18d   : >> { %1345 = vmatpush1.bf16.msra.mxu0 %v3599_v31 }
 0x18e   : >> { %1640 = vmatpush1.bf16.msra.mxu1 %v3599_v31  ;;  %1375 = vmatprep.subr.bf16.mxu0 %v2439_v28 }
 0x18f   : >> { %1641 = vmatprep.subr.bf16.mxu1 %v2439_v28 }
 0x190   : >> { %1359 = vmatmul.mubr.bf16.vlgmr.msra.gmra.mrb[8].mxu0 %v3600_v32 }
 0x191   : >> { %1376 = vmatpush1.bf16.msra.mxu0 %v2772_v46  ;;  %2198 = vmatprep.mubr.msk.bf16.mxu0 %vm508_vm0, %v3601_v33  ;;  %v3606_v46 = vld [vmem:[#allocation19_spill] sm:$0xff] }
 0x192   : >> { %1642 = vmatpush1.bf16.msra.mxu1 %v3602_v41  ;;  %1377 = vmatprep.subr.bf16.mxu0 %v2439_v28 }
 0x193   : >> { %1643 = vmatprep.subr.bf16.mxu1 %v2439_v28 }
 0x195   : >> { %1378 = vmatpush1.bf16.msra.mxu0 %v3603_v42 }
 0x196   : >> { %1644 = vmatpush1.bf16.msra.mxu1 %v3604_v43  ;;  %1379 = vmatprep.subr.bf16.mxu0 %v2439_v28 }
 0x197   : >> { %1674 = vmatprep.subr.bf16.mxu1 %v2439_v28 }
 0x198   : >> { %1367 = vmatmul.mubr.bf16.gmra.mrb[12].mxu0 %v3605_v44 }
 0x199   : >> { %1658 = vmatmul.mubr.bf16.vlgmr.msra.gmra.mrb[8].mxu1 %v3600_v32  ;;  %1380 = vmatpush1.bf16.msra.mxu0 %v3606_v46 }
 0x19a   : >> { %2199 = vmatprep.mubr.msk.bf16.mxu0 %vm508_vm0, %v3607_v57  ;;  %1675 = vmatpush1.bf16.msra.mxu1 %v3606_v46 }
 0x19b   : >> { %1381 = vmatprep.subr.bf16.mxu0 %v2439_v28  ;;  %1676 = vmatprep.subr.bf16.mxu1 %v2439_v28 }
 0x19c   : >> { %2212 = vmatprep.mubr.msk.bf16.mxu1 %vm508_vm0, %v3601_v33 }
 0x19d   : >> { %1382 = vmatpush1.bf16.msra.mxu0 %v3608_v59 }
 0x19e   : >> { %1677 = vmatpush1.bf16.msra.mxu1 %v3608_v59  ;;  %1383 = vmatprep.subr.bf16.mxu0 %v2439_v28 }
 0x19f   : >> { %1678 = vmatprep.subr.bf16.mxu1 %v2439_v28 }
 0x1a1   : >> { %1666 = vmatmul.mubr.bf16.gmra.mrb[12].mxu1 %v3605_v44  ;;  %1384 = vmatpush1.bf16.msra.mxu0 %v3609_v45 }
 0x1a2   : >> { %1679 = vmatpush1.bf16.msra.mxu1 %v3609_v45  ;;  %2213 = vmatprep.mubr.msk.bf16.mxu1 %vm508_vm0, %v3607_v57 }
 0x1a3   : >> { %1385 = vmatprep.subr.bf16.mxu0 %v2439_v28  ;;  %1680 = vmatprep.subr.bf16.mxu1 %v2439_v28 }
 0x1a5   : >> { %1386 = vmatpush1.bf16.msra.mxu0 %v3610_v51 }
 0x1a6   : >> { %1681 = vmatpush1.bf16.msra.mxu1 %v3610_v51  ;;  %1387 = vmatprep.subr.bf16.mxu0 %v2439_v28 }
 0x1a7   : >> { %1682 = vmatprep.subr.bf16.mxu1 %v2439_v28 }
 0x1a9   : >> { %1388 = vmatpush1.bf16.msra.mxu0 %v3611_v35 }
 0x1aa   : >> { %1683 = vmatpush1.bf16.msra.mxu1 %v3611_v35  ;;  %1389 = vmatprep.subr.bf16.mxu0 %v2439_v28 }
 0x1ab   : >> { %1684 = vmatprep.subr.bf16.mxu1 %v2439_v28 }
 0x1ad   : >> { %1390 = vmatpush1.bf16.msra.mxu0 %v3612_v36 }
 0x1ae   : >> { %1685 = vmatpush1.bf16.msra.mxu1 %v3612_v36  ;;  %1391 = vmatprep.subr.bf16.mxu0 %v2439_v28 }
 0x1af   : >> { %1686 = vmatprep.subr.bf16.mxu1 %v2439_v28 }
 0x1b1   : >> { %1392 = vmatpush1.bf16.msra.mxu0 %v3011_v1 }
 0x1b2   : >> { %1687 = vmatpush1.bf16.msra.mxu1 %v3011_v1  ;;  %1393 = vmatprep.subr.bf16.mxu0 %v2439_v28 }
 0x1b3   : >> { %1688 = vmatprep.subr.bf16.mxu1 %v2439_v28 }
 0x1b5   : >> { %1394 = vmatpush1.bf16.msra.mxu0 %v3005_v39 }
 0x1b6   : >> { %1689 = vmatpush1.bf16.msra.mxu1 %v3005_v39  ;;  %1428 = vmatprep.subr.bf16.mxu0 %v2439_v28  ;;  %v3615_v39 = vld [vmem:[#allocation36_spill] sm:$0xff] }
 0x1b7   : >> { %1690 = vmatprep.subr.bf16.mxu1 %v2439_v28 }
 0x1b8   : >> { %1408 = vmatmul.mubr.bf16.vlgmr.msra.gmra.mrb[8].mxu0 %v3613_v37 }
 0x1b9   : >> { %2200 = vmatprep.mubr.msk.bf16.mxu0 %vm508_vm0, %v3614_v38  ;;  %1429 = vmatpush1.bf16.msra.mxu0 %v2804_v52 }
 0x1ba   : >> { %1691 = vmatpush1.bf16.msra.mxu1 %v3061_v61  ;;  %1430 = vmatprep.subr.bf16.mxu0 %v2439_v28 }
 0x1bb   : >> { %1692 = vmatprep.subr.bf16.mxu1 %v2439_v28 }
 0x1bd   : >> { %1431 = vmatpush1.bf16.msra.mxu0 %v2807_v53 }
 0x1be   : >> { %1693 = vmatpush1.bf16.msra.mxu1 %v3028_v58  ;;  %1432 = vmatprep.subr.bf16.mxu0 %v2439_v28 }
 0x1bf   : >> { %1727 = vmatprep.subr.bf16.mxu1 %v2439_v28 }
 0x1c0   : >> { %1416 = vmatmul.mubr.bf16.gmra.mrb[12].mxu0 %v3615_v39 }
 0x1c1   : >> { %1707 = vmatmul.mubr.bf16.vlgmr.msra.gmra.mrb[8].mxu1 %v3613_v37  ;;  %1433 = vmatpush1.bf16.msra.mxu0 %v2812_v54 }
 0x1c2   : >> { %2201 = vmatprep.mubr.msk.bf16.mxu0 %vm508_vm0, %v3042_v0  ;;  %2214 = vmatprep.mubr.msk.bf16.mxu1 %vm508_vm0, %v3614_v38 }
 0x1c3   : >> { %1728 = vmatpush1.bf16.msra.mxu1 %v2812_v54  ;;  %1434 = vmatprep.subr.bf16.mxu0 %v2439_v28 }
 0x1c4   : >> { %1729 = vmatprep.subr.bf16.mxu1 %v2439_v28 }
 0x1c5   : >> { %1435 = vmatpush1.bf16.msra.mxu0 %v2817_v55 }
 0x1c6   : >> { %1436 = vmatprep.subr.bf16.mxu0 %v2439_v28 }
 0x1c7   : >> { %1730 = vmatpush1.bf16.msra.mxu1 %v2817_v55 }
 0x1c8   : >> { %1731 = vmatprep.subr.bf16.mxu1 %v2439_v28 }
 0x1c9   : >> { %1715 = vmatmul.mubr.bf16.gmra.mrb[12].mxu1 %v3615_v39  ;;  %1437 = vmatpush1.bf16.msra.mxu0 %v3093_v8 }
 0x1ca   : >> { %2215 = vmatprep.mubr.msk.bf16.mxu1 %vm508_vm0, %v3042_v0  ;;  %1438 = vmatprep.subr.bf16.mxu0 %v2439_v28  ;;  %v3616_v0 = vld [vmem:[#allocation37_spill] sm:$0xff] }
 0x1cb   : >> { %1732 = vmatpush1.bf16.msra.mxu1 %v3093_v8  ;;  %v3617_v8 = vld [vmem:[#allocation38_spill] sm:$0xff] }
 0x1cc   : >> { %1733 = vmatprep.subr.bf16.mxu1 %v2439_v28 }
 0x1cd   : >> { %1439 = vmatpush1.bf16.msra.mxu0 %v3082_v49 }
 0x1ce   : >> { %1440 = vmatprep.subr.bf16.mxu0 %v2439_v28 }
 0x1cf   : >> { %1734 = vmatpush1.bf16.msra.mxu1 %v3082_v49 }
 0x1d0   : >> { %1735 = vmatprep.subr.bf16.mxu1 %v2439_v28 }
 0x1d1   : >> { %1441 = vmatpush1.bf16.msra.mxu0 %v3105_v63 }
 0x1d2   : >> { %1442 = vmatprep.subr.bf16.mxu0 %v2439_v28 }
 0x1d3   : >> { %1736 = vmatpush1.bf16.msra.mxu1 %v3105_v63 }
 0x1d4   : >> { %1737 = vmatprep.subr.bf16.mxu1 %v2439_v28 }
 0x1d5   : >> { %1443 = vmatpush1.bf16.msra.mxu0 %v3099_v47 }
 0x1d6   : >> { %1444 = vmatprep.subr.bf16.mxu0 %v2439_v28 }
 0x1d7   : >> { %1738 = vmatpush1.bf16.msra.mxu1 %v3099_v47 }
 0x1d8   : >> { %1739 = vmatprep.subr.bf16.mxu1 %v2439_v28 }
 0x1d9   : >> { %1445 = vmatpush1.bf16.msra.mxu0 %v3120_v40 }
 0x1da   : >> { %1446 = vmatprep.subr.bf16.mxu0 %v2439_v28 }
 0x1db   : >> { %1740 = vmatpush1.bf16.msra.mxu1 %v3120_v40 }
 0x1dc   : >> { %1741 = vmatprep.subr.bf16.mxu1 %v2439_v28 }
 0x1dd   : >> { %1447 = vmatpush1.bf16.msra.mxu0 %v3115_v60 }
 0x1de   : >> { %1523 = vmatprep.subr.bf16.mxu0 %v2439_v28 }
 0x1df   : >> { %1742 = vmatpush1.bf16.msra.mxu1 %v3115_v60 }
 0x1e0   : >> { %1461 = vmatmul.mubr.bf16.vlgmr.msra.gmra.mrb[8].mxu0 %v3126_v12  ;;  %1743 = vmatprep.subr.bf16.mxu1 %v2439_v28 }
 0x1e1   : >> { %2202 = vmatprep.mubr.msk.bf16.mxu0 %vm508_vm0, %v3133_v16  ;;  %1524 = vmatpush1.bf16.msra.mxu0 %v3616_v0 }
 0x1e2   : >> { %1525 = vmatprep.subr.bf16.mxu0 %v2439_v28 }
 0x1e3   : >> { %1744 = vmatpush1.bf16.msra.mxu1 %v3206_v3  ;;  %v1508_v3 = vpop.permute.xlu1 %1507 }
 0x1e4   : >> { %1745 = vmatprep.subr.bf16.mxu1 %v2439_v28 }
 0x1e5   : >> { %1526 = vmatpush1.bf16.msra.mxu0 %v3067_v62 }
 0x1e6   : >> { %1527 = vmatprep.subr.bf16.mxu0 %v2439_v28 }
 0x1e7   : >> { %1746 = vmatpush1.bf16.msra.mxu1 %v3216_v2  ;;  %v1506_v2 = vpop.permute.xlu0 %1505  ;;  %v1514_v47 = vpop.permute.xlu1 %1513 }
 0x1e8   : >> { %1469 = vmatmul.mubr.bf16.gmra.mrb[12].mxu0 %v3147_v17  ;;  %1786 = vmatprep.subr.bf16.mxu1 %v2439_v28 }
 0x1e9   : >> { %1528 = vmatpush1.bf16.msra.mxu0 %v3617_v8  ;;  %2207 = vmatprep.mubr.msk.bf16.mxu0 %vm508_vm0, %v3153_v19 }
 0x1ea   : >> { %1760 = vmatmul.mubr.bf16.vlgmr.msra.gmra.mrb[8].mxu1 %v3126_v12  ;;  %1529 = vmatprep.subr.bf16.mxu0 %v2439_v28 }
 0x1eb   : >> { %2216 = vmatprep.mubr.msk.bf16.mxu1 %vm508_vm0, %v3133_v16  ;;  %1787 = vmatpush1.bf16.msra.mxu1 %v3617_v8  ;;  %v1512_v16 = vpop.permute.xlu0 %1511 }
 0x1ec   : >> { %1788 = vmatprep.subr.bf16.mxu1 %v2439_v28 }
 0x1ed   : >> { %1530 = vmatpush1.bf16.msra.mxu0 %v3089_v48 }
 0x1ee   : >> { %1531 = vmatprep.subr.bf16.mxu0 %v2439_v28 }
 0x1ef   : >> { %1789 = vmatpush1.bf16.msra.mxu1 %v3089_v48 }
 0x1f0   : >> { %1790 = vmatprep.subr.bf16.mxu1 %v2439_v28 }
 0x1f1   : >> { %1532 = vmatpush1.bf16.msra.mxu0 %v1506_v2 }
 0x1f2   : >> { %1768 = vmatmul.mubr.bf16.gmra.mrb[12].mxu1 %v3147_v17  ;;  %1533 = vmatprep.subr.bf16.mxu0 %v2439_v28  ;;  %v1518_v17 = vpop.permute.xlu0 %1517 }
 0x1f3   : >> { %1791 = vmatpush1.bf16.msra.mxu1 %v1506_v2  ;;  %2217 = vmatprep.mubr.msk.bf16.mxu1 %vm508_vm0, %v3153_v19  ;;  %v1520_v19 = vpop.permute.xlu1 %1519 }
 0x1f4   : >> { %1792 = vmatprep.subr.bf16.mxu1 %v2439_v28 }
 0x1f5   : >> { %1534 = vmatpush1.bf16.msra.mxu0 %v1508_v3 }
 0x1f6   : >> { %1535 = vmatprep.subr.bf16.mxu0 %v2439_v28  ;;  %v1781_v48 = vpop.permute.xlu0 %1780 }
 0x1f7   : >> { %1793 = vmatpush1.bf16.msra.mxu1 %v1508_v3  ;;  %v1783_v49 = vpop.permute.xlu1 %1782 }
 0x1f8   : >> { %1794 = vmatprep.subr.bf16.mxu1 %v2439_v28 }
 0x1f9   : >> { %1536 = vmatpush1.bf16.msra.mxu0 %v1512_v16 }
 0x1fa   : >> { %1537 = vmatprep.subr.bf16.mxu0 %v2439_v28  ;;  %v1854_v29 = vpop.permute.xlu0 %1853 }
 0x1fb   : >> { %1795 = vmatpush1.bf16.msra.mxu1 %v1512_v16  ;;  %v1859_v4 = vpop.permute.xlu1 %1858 }
 0x1fc   : >> { %1796 = vmatprep.subr.bf16.mxu1 %v2439_v28 }
 0x1fd   : >> { %1538 = vmatpush1.bf16.msra.mxu0 %v1514_v47 }
 0x1fe   : >> { %1539 = vmatprep.subr.bf16.mxu0 %v2439_v28  ;;  %v1869_v33 = vpop.permute.xlu0 %1868 }
 0x1ff   : >> { %1797 = vmatpush1.bf16.msra.mxu1 %v1514_v47  ;;  %v1864_v31 = vpop.permute.xlu1 %1863 }
 0x200   : >> { %1798 = vmatprep.subr.bf16.mxu1 %v2439_v28 }
 0x201   : >> { %1540 = vmatpush1.bf16.msra.mxu0 %v1518_v17 }
 0x202   : >> { %1541 = vmatprep.subr.bf16.mxu0 %v2439_v28  ;;  %v1887_v44 = vpop.permute.xlu0 %1886 }
 0x203   : >> { %1799 = vmatpush1.bf16.msra.mxu1 %v1518_v17  ;;  %v1882_v42 = vpop.permute.xlu1 %1881 }
 0x204   : >> { %1800 = vmatprep.subr.bf16.mxu1 %v2439_v28 }
 0x205   : >> { %1542 = vmatpush1.bf16.msra.mxu0 %v1520_v19 }
 0x206   : >> { %v1897_v3 = vpop.permute.xlu0 %1896 }
 0x207   : >> { %1801 = vmatpush1.bf16.msra.mxu1 %v1520_v19  ;;  %v1892_v0 = vpop.permute.xlu1 %1891 }
 0x208   : >> { %1802 = vmatprep.subr.bf16.mxu1 %v2439_v28  ;;  %1556 = vmatmul.mubr.bf16.vlgmr.msra.gmra.mrb[8].mxu0 %v3201_v34 }
 0x209   : >> { %2208 = vmatprep.mubr.msk.bf16.mxu0 %vm508_vm0, %v3211_v7 }
 0x20b   : >> { %1803 = vmatpush1.bf16.msra.mxu1 %v1781_v48 }
 0x20c   : >> { %1804 = vmatprep.subr.bf16.mxu1 %v2439_v28 }
 0x20f   : >> { %1805 = vmatpush1.bf16.msra.mxu1 %v1783_v49 }
 0x210   : >> { %1564 = vmatmul.mubr.bf16.gmra.mrb[12].mxu0 %v3224_v6 }
 0x212   : >> { %1819 = vmatmul.mubr.bf16.vlgmr.msra.gmra.mrb[8].mxu1 %v3201_v34 }
 0x213   : >> { %v971_v52 = vpop.f32.mrb[0].mxu0  ;;  %2218 = vmatprep.mubr.msk.bf16.mxu1 %vm508_vm0, %v3211_v7 }
 0x214   : >> { %v973_v53 = vpop.f32.mrb[1].mxu0 }
 0x215   : >> { %v974_v54 = vpop.f32.mrb[2].mxu0  ;;  %v1906_v53 = vpop.permute.xlu1 %1905 }
 0x216   : >> { %v976_v55 = vpop.f32.mrb[3].mxu0 }
 0x21a   : >> { %1827 = vmatmul.mubr.bf16.gmra.mrb[12].mxu1 %v3224_v6 }
 0x21b   : >> { %v979_v58 = vpop.f32.mrb[4].mxu0  ;;  %v1258_v61 = vpop.f32.mrb[0].mxu1 }
 0x21c   : >> { %v1839_v62 = vmax.f32 %v971_v52, %v1258_v61  ;;  %v981_v63 = vpop.f32.mrb[5].mxu0  ;;  %v1260_v1 = vpop.f32.mrb[1].mxu1 }
 0x21d   : >> { %v982_v28 = vpop.f32.mrb[6].mxu0  ;;  %v1261_v50 = vpop.f32.mrb[2].mxu1 }
 0x21e   : >> { %v1840_v9 = vmax.f32 %v974_v54, %v1261_v50  ;;  %v984_v56 = vpop.f32.mrb[7].mxu0  ;;  %v1263_v40 = vpop.f32.mrb[3].mxu1 }
 0x21f   : >> { %v1911_v1 = vpop.permute.xlu0 %1910 }
 0x223   : >> { %v1266_v5 = vpop.f32.mrb[4].mxu1 }
 0x224   : >> { %v1841_v13 = vmax.f32 %v979_v58, %v1266_v5  ;;  %v1268_v12 = vpop.f32.mrb[5].mxu1 }
 0x225   : >> { %v1269_v60 = vpop.f32.mrb[6].mxu1 }
 0x226   : >> { %v1842_v7 = vmax.f32 %v982_v28, %v1269_v60  ;;  %v1271_v34 = vpop.f32.mrb[7].mxu1 }
 0x2db   : >> { %v1557_v30 = vpop.f32.mrb[8].mxu0 }
 0x2dc   : >> { %v1559_v6 = vpop.f32.mrb[9].mxu0 }
 0x2dd   : >> { %v1560_v32 = vpop.f32.mrb[10].mxu0 }
 0x2de   : >> { %v1562_v41 = vpop.f32.mrb[11].mxu0 }
 0x2e3   : >> { %v1565_v43 = vpop.f32.mrb[12].mxu0 }
 0x2e4   : >> { %v1567_v46 = vpop.f32.mrb[13].mxu0 }
 0x2e5   : >> { %v1820_v57 = vpop.f32.mrb[8].mxu1  ;;  %v1568_v59 = vpop.f32.mrb[14].mxu0 }
 0x2e6   : >> { %v1843_v45 = vmax.f32 %v1557_v30, %v1820_v57  ;;  %v1822_v51 = vpop.f32.mrb[9].mxu1  ;;  %v1570_v35 = vpop.f32.mrb[15].mxu0 }
 0x2e7   : >> { %v1823_v36 = vpop.f32.mrb[10].mxu1  ;;  %v1921_v30 = vpop.permute.xlu0 %1920 }
 0x2e8   : >> { %v1847_v37 = vmax.f32 %v1839_v62, %v1843_v45  ;;  %v1844_v38 = vmax.f32 %v1560_v32, %v1823_v36  ;;  %v1825_v39 = vpop.f32.mrb[11].mxu1 }
 0x2ea   : >> { %v1871_v8 = vadd.f32 %v1854_v29, %v1847_v37  ;;  %v1848_v2 = vmax.f32 %v1840_v9, %v1844_v38 }
 0x2ec   : >> { %v1875_v16 = vmax.f32 %v1871_v8, 0.0  ;;  %v1872_v47 = vadd.f32 %v1859_v4, %v1848_v2  ;;  %v1916_v4 = vpop.permute.xlu1 %1915 }
 0x2ed   : >> { %v1828_v17 = vpop.f32.mrb[12].mxu1 }
 0x2ee   : >> { %v1899_v19 = vmul.f32 %v1882_v42, %v1875_v16  ;;  %v1876_v48 = vmax.f32 %v1872_v47, 0.0  ;;  %v1845_v49 = vmax.f32 %v1565_v43, %v1828_v17  ;;  %v1830_v52 = vpop.f32.mrb[13].mxu1 }
 0x2ef   : >> { %v1831_v54 = vpop.f32.mrb[14].mxu1 }
 0x2f0   : >> { %v1923_v55 = vadd.f32 %v1906_v53, %v1899_v19  ;;  %v1900_v58 = vmul.f32 %v1887_v44, %v1876_v48  ;;  %v1849_v61 = vmax.f32 %v1841_v13, %v1845_v49  ;;  %v1846_v62 = vmax.f32 %v1568_v59, %v1831_v54  ;;  %v1833_v63 = vpop.f32.mrb[15].mxu1 }
 0x2f2   : >> { %v2240_v28 = vpack.c.bf16 %v1923_v55, %v1923_v55  ;;  %v1924_v50 = vadd.f32 %v1911_v1, %v1900_v58  ;;  %v1873_v9 = vadd.f32 %v1864_v31, %v1849_v61  ;;  %v1850_v56 = vmax.f32 %v1842_v7, %v1846_v62 }
 0x2f4   : >> { %1947 = vst.msk [vmem:[%s1945_s12] sm:$0xf] %vm1946_vm3, %v2240_v28  ;;  %v2241_v40 = vpack.c.bf16 %v1924_v50, %v1924_v50  ;;  %v1877_v5 = vmax.f32 %v1873_v9, 0.0  ;;  %v1874_v12 = vadd.f32 %v1869_v33, %v1850_v56 }
 0x2f6   : >> { %1948 = vst.msk [vmem:[%s1945_s12 + $0x4] sm:$0xf] %vm1946_vm3, %v2241_v40  ;;  %v1901_v60 = vmul.f32 %v1892_v0, %v1877_v5  ;;  %v1878_v34 = vmax.f32 %v1874_v12, 0.0 }
 0x2f8   : >> { %v1925_v13 = vadd.f32 %v1916_v4, %v1901_v60  ;;  %v1902_v29 = vmul.f32 %v1897_v3, %v1878_v34  ;;  %305 = sbr.rel (!%p303_p4) target bundleno = 18 (0x12), region = 97 }
 0x2fa   : >> { %v2242_v6 = vpack.c.bf16 %v1925_v13, %v1925_v13  ;;  %v1926_v32 = vadd.f32 %v1921_v30, %v1902_v29 }
 0x2fc   : >> { %1949 = vst.msk [vmem:[%s1945_s12 + $0x8] sm:$0xf] %vm1946_vm3, %v2242_v6  ;;  %v2243_v41 = vpack.c.bf16 %v1926_v32, %v1926_v32 }
 0x2fe   : >> { %1950 = vst.msk [vmem:[%s1945_s12 + $0xc] sm:$0xf] %vm1946_vm3, %v2243_v41 }
 0x2ff PF: > { %s16_s21 = sadd.s32 1, %s2433_s21  }
 0x300   : > { %p13_p5 = scmp.ge.s32.totalorder %s16_s21, 4  }
 0x302   :  { %15 = sbr.rel (!%p13_p5) target bundleno = 1 (0x1), region = 108 }

// kernel: net_forward.9
= control target key start
LH: loop header
LB: loop body
LE: loop exit
PB: predicated region body
PF: predicated region fallthrough
CT: control target
= control target key end

     0   :  { %s2480_s21 = smov 0   ;;  %s3487_s0 = inlined_call_operand.vmem [shape: bf16[2,28,32,14], index: 0, kind: input, shape index: {}]   ;;  %s3488_s1 = inlined_call_operand.vmem [shape: bf16[2,28,32,14], index: 1, kind: input, shape index: {}]   ;;  %s3489_s2 = inlined_call_operand.vmem [shape: bf16[32,800], index: 2, kind: input, shape index: {}]   ;;  %s3490_s3 = inlined_call_operand.vmem [shape: f32[32,1], index: 3, kind: input, shape index: {}]   ;;  %s3491_s4 = inlined_call_operand.vmem [shape: f32[32,1], index: 4, kind: input, shape index: {}]   ;;  %s3492_s5 = inlined_call_operand.vmem [shape: f32[32,1], index: 5, kind: input, shape index: {}]   ;;  %s3493_s6 = inlined_call_operand.vmem [shape: bf16[2,12,32,12], index: 6, kind: output, shape index: {}]  }
   0x1 LB: > { %s2069_s22 = sadd.s32 4294967295, %s2433_s21   ;;  %p2073_p0 = scmp.ge.s32.totalorder %s2433_s21, 1  ;;  %s2433_s21 = sphi %s2480_s21, %s16_s21  }
   0x2   : > { %p222_p1 = scmp.lt.s32.totalorder %s2433_s21, 3 }
   0x4   : > { %p223_p2 = pnand %p2073_p0, %p222_p1 }
   0x5   : > { %p257_p3 = scmp.lt.s32.totalorder (!%p223_p2), %s2069_s22, 1  ;;  %v2491_v0 = vld [vmem:[%s3489_s2] sm:$0xff] (!%p223_p2)  ;;  %v2496_v1 = vld [vmem:[%s3489_s2 + $0x8] sm:$0xff] (!%p223_p2)  ;;  %v2501_v2 = vld [vmem:[%s3489_s2 + $0x10] sm:$0xff] (!%p223_p2)  ;;  %s2643_s24 = smov (!%p223_p2), 0  }
   0x6   : > { %226 = sbr.rel (%p223_p2) target bundleno = 767 (0x2ff), region = 44  ;;  %3544 = vst [vmem:[#allocation2_spill] sm:$0xff] (!%p223_p2), %v2491_v0  ;;  %3545 = vst [vmem:[#allocation3_spill] sm:$0xff] (!%p223_p2), %v2496_v1  ;;  %v2506_v3 = vld [vmem:[%s3489_s2 + $0x18] sm:$0xf] (!%p223_p2)  ;;  %v2511_v4 = vld [vmem:[%s3489_s2 + $0x1c] sm:$0xff] (!%p223_p2) }
   0x7   : > { %3546 = vst [vmem:[#allocation4_spill] sm:$0xff] (!%p223_p2), %v2501_v2  ;;  %3547 = vst [vmem:[#allocation5_spill] sm:$0xff] (!%p223_p2), %v2506_v3  ;;  %v2516_v5 = vld [vmem:[%s3489_s2 + $0x24] sm:$0xff] (!%p223_p2)  ;;  %v2521_v6 = vld [vmem:[%s3489_s2 + $0x2c] sm:$0xff] (!%p223_p2) }
   0x8   : > { %3548 = vst [vmem:[#allocation6_spill] sm:$0xff] (!%p223_p2), %v2511_v4  ;;  %3549 = vst [vmem:[#allocation7_spill] sm:$0xff] (!%p223_p2), %v2516_v5  ;;  %v2526_v7 = vld [vmem:[%s3489_s2 + $0x34] sm:$0xf] (!%p223_p2)  ;;  %v2531_v8 = vld [vmem:[%s3489_s2 + $0x38] sm:$0xff] (!%p223_p2) }
   0x9   : > { %3550 = vst [vmem:[#allocation8_spill] sm:$0xff] (!%p223_p2), %v2521_v6  ;;  %3551 = vst [vmem:[#allocation9_spill] sm:$0xff] (!%p223_p2), %v2526_v7  ;;  %v2536_v9 = vld [vmem:[%s3489_s2 + $0x40] sm:$0xff] (!%p223_p2)  ;;  %v2541_v10 = vld [vmem:[%s3489_s2 + $0x48] sm:$0xff] (!%p223_p2) }
   0xa   : > { %3552 = vst [vmem:[#allocation10_spill] sm:$0xff] (!%p223_p2), %v2531_v8  ;;  %3553 = vst [vmem:[#allocation11_spill] sm:$0xff] (!%p223_p2), %v2536_v9  ;;  %v2546_v11 = vld [vmem:[%s3489_s2 + $0x50] sm:$0xf] (!%p223_p2)  ;;  %v2551_v12 = vld [vmem:[%s3489_s2 + $0x54] sm:$0xff] (!%p223_p2) }
   0xb   : > { %3554 = vst [vmem:[#allocation12_spill] sm:$0xff] (!%p223_p2), %v2551_v12  ;;  %v2556_v13 = vld [vmem:[%s3489_s2 + $0x5c] sm:$0xff] (!%p223_p2)  ;;  %v2561_v14 = vld [vmem:[%s3489_s2 + $0x64] sm:$0xff] (!%p223_p2)  ;;  %v2566_v15 = vld [vmem:[%s3489_s2 + $0x6c] sm:$0xf] (!%p223_p2) }
   0xc   : > { %3555 = vst [vmem:[#allocation13_spill] sm:$0xff] (!%p223_p2), %v2556_v13  ;;  %v2571_v16 = vld [vmem:[%s3490_s3] sm:$0xff] (!%p223_p2)  ;;  %v2576_v17 = vld [vmem:[%s3490_s3 + $0x8] sm:$0xff] (!%p223_p2)  ;;  %v2591_v18 = vld [vmem:[%s3490_s3 + $0x10] sm:$0xff] (!%p223_p2) }
   0xd   : > { %s3619_s22 = smov (!%p257_p3, %s2069_s22), 1  ;;  %3556 = vst [vmem:[#allocation14_spill] sm:$0xff] %v2571_v16  ;;  %3557 = vst [vmem:[#allocation15_spill] sm:$0xff] %v2576_v17  ;;  %v2596_v19 = vld [vmem:[%s3490_s3 + $0x18] sm:$0xff]  ;;  %v2601_v20 = vld [vmem:[%s3491_s4] sm:$0xff] }
   0xe   : > { %s2373_s25 = smul.u32 448, %s3619_s22  ;;  %3558 = vst [vmem:[#allocation16_spill] sm:$0xff] %v2596_v19  ;;  %v2611_v21 = vld [vmem:[%s3491_s4 + $0x8] sm:$0xff]  ;;  %v2616_v22 = vld [vmem:[%s3491_s4 + $0x10] sm:$0xff]  ;;  %v2621_v23 = vld [vmem:[%s3491_s4 + $0x18] sm:$0xff] }
   0xf   : > { %s2374_s8 = smul.u32 192, %s3619_s22  ;;  %v2626_v24 = vld [vmem:[%s3492_s5] sm:$0xff]  ;;  %v2631_v25 = vld [vmem:[%s3492_s5 + $0x8] sm:$0xff]  ;;  %v2636_v26 = vld [vmem:[%s3492_s5 + $0x10] sm:$0xff] }
  0x10   : > { %s2581_s17 = scalar_lea.vmem %s3487_s0, %s2373_s25  ;;  %s2586_s19 = scalar_lea.vmem %s3488_s1, %s2373_s25  ;;  %v2641_v27 = vld [vmem:[%s3492_s5 + $0x18] sm:$0xff] }
  0x11   : > { %s2606_s25 = scalar_lea.vmem %s3493_s6, %s2374_s8 }
  0x12 LB: >> { %v3559_v6 = vld [vmem:[#allocation8_spill] sm:$0xff]  ;;  %v3562_v8 = vld [vmem:[#allocation10_spill] sm:$0xff]  ;;  %v3566_v9 = vld [vmem:[#allocation11_spill] sm:$0xff]  ;;  %s2228_s26 = sshll.u32 %s2437_s24, 5  ;;  %v2439_v28 = vmov 0   ;;  %s2440_s29 = smov 127   ;;  %v2172_v56 = vcombine.low %v2541_v10, %v2561_v14  ;;  %s2437_s24 = sphi %s2643_s24, %s306_s24  }
  0x13   : >> { %v3560_v2 = vld [vmem:[#allocation4_spill] sm:$0xff]  ;;  %v3563_v4 = vld [vmem:[#allocation6_spill] sm:$0xff]  ;;  %v3565_v13 = vld [vmem:[#allocation13_spill] sm:$0xff]  ;;  %515 = vmatprep.subr.bf16.mxu0 %v2439_v28  ;;  %1002 = vmatprep.subr.bf16.mxu1 %v2439_v28  ;;  %s2652_s27 = scalar_lea.vmem %s2581_s17, %s2228_s26  ;;  %s2655_s28 = scalar_lea.vmem %s2586_s19, %s2228_s26  ;;  %vm508_vm0 = vcmask 261120   ;;  %vm503_vm1 = vcmask 785408   ;;  %vm683_vm2 = vcmask 523264  }
  0x14   : >> { %v3561_v12 = vld [vmem:[#allocation12_spill] sm:$0xff]  ;;  %v3564_v0 = vld [vmem:[#allocation2_spill] sm:$0xff]  ;;  %v3567_v5 = vld [vmem:[#allocation7_spill] sm:$0xff]  ;;  %2398 = vset.pattern.permute.xlu1 %v2439_v28  ;;  %2397 = vset.pattern.permute.xlu0 %v2439_v28  ;;  %s2441_s30 = smov 126   ;;  %s2442_s7 = smov 96   ;;  %v2152_v40 = vcombine.low %v3566_v9, %v3565_v13  ;;  %v2164_v50 = vcombine.high %v3566_v9, %v3565_v13  ;;  %v2171_v51 = vcombine.low %v3560_v2, %v3559_v6  ;;  %vm1946_vm3 = vcmask 93184  }
  0x15   : >> { %v3568_v1 = vld [vmem:[#allocation3_spill] sm:$0xff]  ;;  %v2660_v29 = vld [vmem:[%s2652_s27 + $0x10] sm:$0xff]   ;;  %v2663_v30 = vld [vmem:[%s2652_s27 + $0x18] sm:$0xff]   ;;  %v2697_v33 = vcombine.high %v3564_v0, %v3563_v4  ;;  %v2730_v39 = vcombine.high %v3562_v8, %v3561_v12  ;;  %s2443_s9 = smov 64   ;;  %s2444_s10 = smov 32  }
  0x16   : >> { %457 = vrot.lane.b32.xlu0 %v2660_v29, %s2440_s29  ;;  %v2668_v31 = vld [vmem:[%s2655_s28 + $0x10] sm:$0xff]   ;;  %516 = vmatpush1.bf16.msra.mxu0 %v2660_v29  ;;  %v2675_v32 = vld [vmem:[%s2655_s28 + $0x18] sm:$0xff]   ;;  %v2150_v34 = vcombine.low %v3568_v1, %v3567_v5  ;;  %v2706_v35 = vld [vmem:[%s2652_s27] sm:$0xff]   ;;  %v2163_v45 = vcombine.high %v3568_v1, %v3567_v5  ;;  %s2244_s11 = sshll.u32 %s2437_s24, 4  ;;  %s306_s24 = sadd.s32 1, %s2437_s24  }
  0x17   : >> { %517 = vmatprep.subr.bf16.mxu0 %v2439_v28  ;;  %463 = vrot.lane.b32.xlu1 %v2668_v31, %s2440_s29  ;;  %v2710_v36 = vld [vmem:[%s2652_s27 + $0x8] sm:$0xff]   ;;  %v2715_v37 = vld [vmem:[%s2655_s28] sm:$0xff]   ;;  %3569 = vst [vmem:[#allocation17_spill] sm:$0xff] %v2730_v39  ;;  %v2772_v46 = vld [vmem:[%s2652_s27 + $0x30] sm:$0xff]   ;;  %s1945_s12 = scalar_lea.vmem %s2606_s25, %s2244_s11  ;;  %p303_p4 = scmp.ge.s32.totalorder %s306_s24, 12  }
  0x18   : >> { %1003 = vmatpush1.bf16.msra.mxu1 %v2668_v31  ;;  %v2720_v38 = vld [vmem:[%s2655_s28 + $0x8] sm:$0xff]   ;;  %v2740_v41 = vld [vmem:[%s2652_s27 + $0x20] sm:$0xff]   ;;  %v2775_v47 = vld [vmem:[%s2652_s27 + $0x38] sm:$0xff]  }
  0x19   : >> { %1004 = vmatprep.subr.bf16.mxu1 %v2439_v28  ;;  %v2745_v42 = vld [vmem:[%s2652_s27 + $0x28] sm:$0xff]   ;;  %v2750_v43 = vld [vmem:[%s2655_s28 + $0x20] sm:$0xff]   ;;  %3570 = vst [vmem:[#allocation18_spill] sm:$0xff] %v2775_v47  ;;  %v2780_v48 = vld [vmem:[%s2655_s28 + $0x30] sm:$0xff]  }
  0x1a   : >> { %459 = vrot.lane.b32.xlu0 %v2663_v30, %s2440_s29  ;;  %518 = vmatpush1.bf16.msra.mxu0 %v2663_v30  ;;  %v2755_v44 = vld [vmem:[%s2655_s28 + $0x28] sm:$0xff]   ;;  %3571 = vst [vmem:[#allocation19_spill] sm:$0xff] %v2780_v48  ;;  %v2785_v49 = vld [vmem:[%s2655_s28 + $0x38] sm:$0xff]   ;;  %v2804_v52 = vld [vmem:[%s2652_s27 + $0x40] sm:$0xff]  }
  0x1b   : >> { %519 = vmatprep.subr.bf16.mxu0 %v2439_v28  ;;  %465 = vrot.lane.b32.xlu1 %v2675_v32, %s2440_s29  ;;  %3572 = vst [vmem:[#allocation20_spill] sm:$0xff] %v2785_v49  ;;  %v2807_v53 = vld [vmem:[%s2652_s27 + $0x48] sm:$0xff]   ;;  %v2812_v54 = vld [vmem:[%s2655_s28 + $0x40] sm:$0xff]   ;;  %v3593_v19 = vld [vmem:[#allocation16_spill] sm:$0xff] }
  0x1c   : >> { %1005 = vmatpush1.bf16.msra.mxu1 %v2675_v32  ;;  %v2817_v55 = vld [vmem:[%s2655_s28 + $0x48] sm:$0xff]   ;;  %v3591_v16 = vld [vmem:[#allocation14_spill] sm:$0xff]  ;;  %v3594_v7 = vld [vmem:[#allocation9_spill] sm:$0xff] }
  0x1d   : >> { %1006 = vmatprep.subr.bf16.mxu1 %v2439_v28  ;;  %v3592_v17 = vld [vmem:[#allocation15_spill] sm:$0xff]  ;;  %v3595_v3 = vld [vmem:[#allocation5_spill] sm:$0xff] }
  0x1e   : >> { %469 = vrot.lane.b32.xlu0 %v2660_v29, %s2441_s30  ;;  %520 = vmatpush1.bf16.msra.mxu0 %v2668_v31 }
  0x1f   : >> { %521 = vmatprep.subr.bf16.mxu0 %v2439_v28  ;;  %471 = vrot.lane.b32.xlu1 %v2663_v30, %s2441_s30 }
  0x22   : >> { %996 = vrot.lane.b32.xlu0 %v2668_v31, %s2441_s30  ;;  %522 = vmatpush1.bf16.msra.mxu0 %v2675_v32 }
  0x23   : >> { %523 = vmatprep.subr.bf16.mxu0 %v2439_v28  ;;  %998 = vrot.lane.b32.xlu1 %v2675_v32, %s2441_s30 }
  0x26   : >> { %495 = vrot.lane.b32.xlu0 %v2697_v33, %s2442_s7 }
  0x27   : >> { %497 = vrot.lane.b32.xlu1 %v2150_v34, %s2442_s7 }
  0x2a   : >> { %415 = vrot.lane.b32.xlu0 %v2706_v35, %s2440_s29 }
  0x2b   : >> { %417 = vrot.lane.b32.xlu1 %v2710_v36, %s2440_s29 }
  0x2e   : >> { %421 = vrot.lane.b32.xlu0 %v2715_v37, %s2440_s29 }
  0x2f   : >> { %423 = vrot.lane.b32.xlu1 %v2720_v38, %s2440_s29 }
  0x32   : >> { %427 = vrot.lane.b32.xlu0 %v2706_v35, %s2441_s30 }
  0x33   : >> { %429 = vrot.lane.b32.xlu1 %v2710_v36, %s2441_s30 }
  0x36   : >> { %499 = vrot.lane.b32.xlu0 %v2730_v39, %s2442_s7 }
  0x37   : >> { %501 = vrot.lane.b32.xlu1 %v2152_v40, %s2442_s7 }
  0x3a   : >> { %990 = vrot.lane.b32.xlu0 %v2715_v37, %s2441_s30 }
  0x3b   : >> { %992 = vrot.lane.b32.xlu1 %v2720_v38, %s2441_s30 }
  0x3e   : >> { %651 = vrot.lane.b32.xlu0 %v2740_v41, %s2440_s29 }
  0x3f   : >> { %653 = vrot.lane.b32.xlu1 %v2745_v42, %s2440_s29 }
  0x42   : >> { %657 = vrot.lane.b32.xlu0 %v2750_v43, %s2440_s29 }
  0x43   : >> { %659 = vrot.lane.b32.xlu1 %v2755_v44, %s2440_s29 }
  0x46   : >> { %663 = vrot.lane.b32.xlu0 %v2740_v41, %s2441_s30 }
  0x47   : >> { %665 = vrot.lane.b32.xlu1 %v2745_v42, %s2441_s30 }
  0x4a   : >> { %1100 = vrot.lane.b32.xlu0 %v2750_v43, %s2441_s30 }
  0x4b   : >> { %1102 = vrot.lane.b32.xlu1 %v2755_v44, %s2441_s30 }
  0x4e   : >> { %675 = vrot.lane.b32.xlu0 %v2150_v34, %s2443_s9 }
  0x4f   : >> { %677 = vrot.lane.b32.xlu1 %v2163_v45, %s2443_s9 }
  0x52   : >> { %771 = vrot.lane.b32.xlu0 %v2772_v46, %s2440_s29 }
  0x53   : >> { %773 = vrot.lane.b32.xlu1 %v2775_v47, %s2440_s29 }
  0x56   : >> { %777 = vrot.lane.b32.xlu0 %v2780_v48, %s2440_s29 }
  0x57   : >> { %779 = vrot.lane.b32.xlu1 %v2785_v49, %s2440_s29 }
  0x5a   : >> { %783 = vrot.lane.b32.xlu0 %v2772_v46, %s2441_s30 }
  0x5b   : >> { %785 = vrot.lane.b32.xlu1 %v2775_v47, %s2441_s30 }
  0x5e   : >> { %679 = vrot.lane.b32.xlu0 %v2152_v40, %s2443_s9 }
  0x5f   : >> { %681 = vrot.lane.b32.xlu1 %v2164_v50, %s2443_s9 }
  0x62   : >> { %1159 = vrot.lane.b32.xlu0 %v2780_v48, %s2441_s30 }
  0x63   : >> { %1161 = vrot.lane.b32.xlu1 %v2785_v49, %s2441_s30 }
  0x66   : >> { %799 = vrot.lane.b32.xlu0 %v2163_v45, %s2444_s10 }
  0x67   : >> { %801 = vrot.lane.b32.xlu1 %v2171_v51, %s2444_s10 }
  0x6a   : >> { %895 = vrot.lane.b32.xlu0 %v2804_v52, %s2440_s29 }
  0x6b   : >> { %897 = vrot.lane.b32.xlu1 %v2807_v53, %s2440_s29 }
  0x6e   : >> { %901 = vrot.lane.b32.xlu0 %v2812_v54, %s2440_s29 }
  0x6f   : >> { %903 = vrot.lane.b32.xlu1 %v2817_v55, %s2440_s29 }
  0x72   : >> { %907 = vrot.lane.b32.xlu0 %v2804_v52, %s2441_s30 }
  0x73   : >> { %909 = vrot.lane.b32.xlu1 %v2807_v53, %s2441_s30 }
  0x76   : >> { %803 = vrot.lane.b32.xlu0 %v2164_v50, %s2444_s10 }
  0x77   : >> { %805 = vrot.lane.b32.xlu1 %v2172_v56, %s2444_s10 }
  0x7a   : >> { %1218 = vrot.lane.b32.xlu0 %v2812_v54, %s2441_s30 }
  0x7b   : >> { %1220 = vrot.lane.b32.xlu1 %v2817_v55, %s2441_s30 }
  0x88   : >> { %v2833_v57 = vpop.permute.xlu0 %457 }
  0x89   : >> { %524 = vmatpush1.bf16.msra.mxu0 %v2833_v57  ;;  %1007 = vmatpush1.bf16.msra.mxu1 %v2833_v57  ;;  %v2839_v58 = vpop.permute.xlu1 %463 }
  0x8a   : >> { %1008 = vmatprep.subr.bf16.mxu1 %v2439_v28  ;;  %525 = vmatprep.subr.bf16.mxu0 %v2439_v28  ;;  %3573 = vst [vmem:[#allocation21_spill] sm:$0xff] %v2839_v58 }
  0x8c   : >> { %v2841_v59 = vpop.permute.xlu0 %459 }
  0x8d   : >> { %526 = vmatpush1.bf16.msra.mxu0 %v2841_v59  ;;  %1009 = vmatpush1.bf16.msra.mxu1 %v2841_v59  ;;  %v2847_v60 = vpop.permute.xlu1 %465 }
  0x8e   : >> { %527 = vmatprep.subr.bf16.mxu0 %v2439_v28  ;;  %1010 = vmatprep.subr.bf16.mxu1 %v2439_v28  ;;  %3574 = vst [vmem:[#allocation22_spill] sm:$0xff] %v2847_v60 }
  0x90   : >> { %v2849_v61 = vpop.permute.xlu0 %469 }
  0x91   : >> { %3575 = vst [vmem:[#allocation23_spill] sm:$0xff] %v2849_v61  ;;  %528 = vmatpush1.bf16.msra.mxu0 %v2839_v58  ;;  %1011 = vmatpush1.bf16.msra.mxu1 %v2839_v58  ;;  %v2855_v62 = vpop.permute.xlu1 %471 }
  0x92   : >> { %529 = vmatprep.subr.bf16.mxu0 %v2439_v28  ;;  %1012 = vmatprep.subr.bf16.mxu1 %v2439_v28  ;;  %3576 = vst [vmem:[#allocation24_spill] sm:$0xff] %v2855_v62 }
  0x94   : >> { %v2857_v63 = vpop.permute.xlu0 %996 }
  0x95   : >> { %3577 = vst [vmem:[#allocation25_spill] sm:$0xff] %v2857_v63  ;;  %530 = vmatpush1.bf16.msra.mxu0 %v2847_v60  ;;  %1013 = vmatpush1.bf16.msra.mxu1 %v2847_v60  ;;  %v2863_v34 = vpop.permute.xlu1 %998 }
  0x96   : >> { %531 = vmatprep.subr.bf16.mxu0 %v2439_v28  ;;  %1014 = vmatprep.subr.bf16.mxu1 %v2439_v28  ;;  %3578 = vst [vmem:[#allocation26_spill] sm:$0xff] %v2863_v34 }
  0x98   : >> { %v496_v40 = vpop.permute.xlu0 %495 }
  0x99   : >> { %532 = vmatpush1.bf16.msra.mxu0 %v2849_v61  ;;  %1015 = vmatpush1.bf16.msra.mxu1 %v2849_v61  ;;  %v2869_v45 = vpop.permute.xlu1 %497 }
  0x9a   : >> { %533 = vmatprep.subr.bf16.mxu0 %v2439_v28  ;;  %1016 = vmatprep.subr.bf16.mxu1 %v2439_v28  ;;  %v2879_v51 = vsel %vm503_vm1, %v496_v40, %v2869_v45 }
  0x9b   : >> { %2153 = vmatprep.mubr.msk.bf16.mxu0 %vm508_vm0, %v2869_v45  ;;  %2185 = vmatprep.mubr.msk.bf16.mxu1 %vm508_vm0, %v2869_v45 }
  0x9c   : >> { %v416_v50 = vpop.permute.xlu0 %415 }
  0x9d   : >> { %534 = vmatpush1.bf16.msra.mxu0 %v2855_v62  ;;  %1017 = vmatpush1.bf16.msra.mxu1 %v2855_v62  ;;  %v418_v56 = vpop.permute.xlu1 %417 }
  0x9e   : >> { %578 = vmatprep.subr.bf16.mxu0 %v2439_v28  ;;  %1018 = vmatprep.subr.bf16.mxu1 %v2439_v28 }
  0xa0   : >> { %548 = vmatmul.mubr.bf16.vlgmr.msra.gmra.mrb[0].mxu0 %v2879_v51  ;;  %v422_v1 = vpop.permute.xlu0 %421 }
  0xa1   : >> { %1019 = vmatpush1.bf16.msra.mxu1 %v2857_v63  ;;  %579 = vmatpush1.bf16.msra.mxu0 %v2706_v35  ;;  %v424_v5 = vpop.permute.xlu1 %423 }
  0xa2   : >> { %580 = vmatprep.subr.bf16.mxu0 %v2439_v28  ;;  %1020 = vmatprep.subr.bf16.mxu1 %v2439_v28 }
  0xa4   : >> { %v428_v9 = vpop.permute.xlu0 %427 }
  0xa5   : >> { %1021 = vmatpush1.bf16.msra.mxu1 %v2863_v34  ;;  %581 = vmatpush1.bf16.msra.mxu0 %v2710_v36  ;;  %v430_v40 = vpop.permute.xlu1 %429 }
  0xa6   : >> { %582 = vmatprep.subr.bf16.mxu0 %v2439_v28  ;;  %1051 = vmatprep.subr.bf16.mxu1 %v2439_v28 }
  0xa8   : >> { %1035 = vmatmul.mubr.bf16.vlgmr.msra.gmra.mrb[0].mxu1 %v2879_v51  ;;  %v500_v13 = vpop.permute.xlu0 %499 }
  0xa9   : >> { %583 = vmatpush1.bf16.msra.mxu0 %v2715_v37  ;;  %1052 = vmatpush1.bf16.msra.mxu1 %v2715_v37  ;;  %v2897_v35 = vpop.permute.xlu1 %501 }
  0xaa   : >> { %584 = vmatprep.subr.bf16.mxu0 %v2439_v28  ;;  %1053 = vmatprep.subr.bf16.mxu1 %v2439_v28  ;;  %v2901_v36 = vsel %vm503_vm1, %v500_v13, %v2897_v35 }
  0xab   : >> { %2154 = vmatprep.mubr.msk.bf16.mxu0 %vm508_vm0, %v2897_v35  ;;  %2186 = vmatprep.mubr.msk.bf16.mxu1 %vm508_vm0, %v2897_v35 }
  0xac   : >> { %556 = vmatmul.mubr.bf16.gmra.mrb[4].mxu0 %v2901_v36 }
  0xad   : >> { %585 = vmatpush1.bf16.msra.mxu0 %v2720_v38  ;;  %1054 = vmatpush1.bf16.msra.mxu1 %v2720_v38  ;;  %v993_v13 = vpop.permute.xlu1 %992 }
  0xae   : >> { %1055 = vmatprep.subr.bf16.mxu1 %v2439_v28  ;;  %586 = vmatprep.subr.bf16.mxu0 %v2439_v28 }
  0xaf   : >> { %2157 = vmatprep.mubr.msk.bf16.mxu0 %vm508_vm0, %v2697_v33 }
  0xb0   : >> { %1043 = vmatmul.mubr.bf16.gmra.mrb[4].mxu1 %v2901_v36 }
  0xb1   : >> { %587 = vmatpush1.bf16.msra.mxu0 %v416_v50  ;;  %1056 = vmatpush1.bf16.msra.mxu1 %v416_v50  ;;  %v2923_v37 = vpop.permute.xlu1 %653 }
  0xb2   : >> { %588 = vmatprep.subr.bf16.mxu0 %v2439_v28  ;;  %1057 = vmatprep.subr.bf16.mxu1 %v2439_v28 }
  0xb3   : >> { %2187 = vmatprep.mubr.msk.bf16.mxu1 %vm508_vm0, %v2697_v33 }
  0xb5   : >> { %589 = vmatpush1.bf16.msra.mxu0 %v418_v56  ;;  %1058 = vmatpush1.bf16.msra.mxu1 %v418_v56  ;;  %v2927_v38 = vpop.permute.xlu1 %659 }
  0xb6   : >> { %590 = vmatprep.subr.bf16.mxu0 %v2439_v28  ;;  %1059 = vmatprep.subr.bf16.mxu1 %v2439_v28 }
  0xb9   : >> { %591 = vmatpush1.bf16.msra.mxu0 %v422_v1  ;;  %1060 = vmatpush1.bf16.msra.mxu1 %v422_v1  ;;  %v2933_v1 = vcombine.low %v3564_v0, %v3563_v4  ;;  %v2935_v50 = vpop.permute.xlu1 %665 }
  0xba   : >> { %592 = vmatprep.subr.bf16.mxu0 %v2439_v28  ;;  %1061 = vmatprep.subr.bf16.mxu1 %v2439_v28 }
  0xbb   : >> { %3579 = vst [vmem:[#allocation27_spill] sm:$0xff] %v2933_v1 }
  0xbd   : >> { %593 = vmatpush1.bf16.msra.mxu0 %v424_v5  ;;  %1062 = vmatpush1.bf16.msra.mxu1 %v424_v5  ;;  %v991_v5 = vpop.permute.xlu0 %990  ;;  %v2945_v56 = vpop.permute.xlu1 %1102 }
  0xbe   : >> { %594 = vmatprep.subr.bf16.mxu0 %v2439_v28  ;;  %1063 = vmatprep.subr.bf16.mxu1 %v2439_v28 }
  0xc1   : >> { %595 = vmatpush1.bf16.msra.mxu0 %v428_v9  ;;  %1064 = vmatpush1.bf16.msra.mxu1 %v428_v9  ;;  %v2943_v9 = vpop.permute.xlu0 %651  ;;  %v2960_v0 = vpop.permute.xlu1 %677 }
  0xc2   : >> { %596 = vmatprep.subr.bf16.mxu0 %v2439_v28  ;;  %1065 = vmatprep.subr.bf16.mxu1 %v2439_v28  ;;  %3581 = vst [vmem:[#allocation29_spill] sm:$0xff] %v2960_v0 }
  0xc5   : >> { %597 = vmatpush1.bf16.msra.mxu0 %v430_v40  ;;  %1066 = vmatpush1.bf16.msra.mxu1 %v430_v40  ;;  %v2951_v40 = vcombine.low %v3562_v8, %v3561_v12  ;;  %v2983_v8 = vpop.permute.xlu1 %773 }
  0xc6   : >> { %1067 = vmatprep.subr.bf16.mxu1 %v2439_v28  ;;  %694 = vmatprep.subr.bf16.mxu0 %v2439_v28  ;;  %3582 = vst [vmem:[#allocation30_spill] sm:$0xff] %v2983_v8 }
  0xc7   : >> { %3580 = vst [vmem:[#allocation28_spill] sm:$0xff] %v2951_v40 }
  0xc8   : >> { %611 = vmatmul.mubr.bf16.vlgmr.msra.gmra.mrb[0].mxu0 %v2933_v1 }
  0xc9   : >> { %695 = vmatpush1.bf16.msra.mxu0 %v2740_v41  ;;  %1068 = vmatpush1.bf16.msra.mxu1 %v991_v5  ;;  %v2956_v5 = vpop.permute.xlu0 %657 }
  0xca   : >> { %696 = vmatprep.subr.bf16.mxu0 %v2439_v28  ;;  %1069 = vmatprep.subr.bf16.mxu1 %v2439_v28 }
  0xcb   : >> { %2158 = vmatprep.mubr.msk.bf16.mxu0 %vm508_vm0, %v2730_v39 }
  0xcd   : >> { %697 = vmatpush1.bf16.msra.mxu0 %v2745_v42  ;;  %1070 = vmatpush1.bf16.msra.mxu1 %v993_v13  ;;  %v2966_v13 = vpop.permute.xlu0 %663 }
  0xce   : >> { %698 = vmatprep.subr.bf16.mxu0 %v2439_v28  ;;  %1106 = vmatprep.subr.bf16.mxu1 %v2439_v28 }
  0xd0   : >> { %1084 = vmatmul.mubr.bf16.vlgmr.msra.gmra.mrb[0].mxu1 %v2933_v1  ;;  %619 = vmatmul.mubr.bf16.gmra.mrb[4].mxu0 %v2951_v40 }
  0xd1   : >> { %699 = vmatpush1.bf16.msra.mxu0 %v2750_v43  ;;  %1107 = vmatpush1.bf16.msra.mxu1 %v2750_v43  ;;  %v2976_v4 = vpop.permute.xlu0 %1100 }
  0xd2   : >> { %700 = vmatprep.subr.bf16.mxu0 %v2439_v28  ;;  %1108 = vmatprep.subr.bf16.mxu1 %v2439_v28 }
  0xd3   : >> { %2165 = vmatprep.mubr.msk.bf16.mxu0 %vm508_vm0, %v2960_v0  ;;  %2188 = vmatprep.mubr.msk.bf16.mxu1 %vm508_vm0, %v2730_v39 }
  0xd5   : >> { %701 = vmatpush1.bf16.msra.mxu0 %v2755_v44  ;;  %1109 = vmatpush1.bf16.msra.mxu1 %v2755_v44  ;;  %v676_v12 = vpop.permute.xlu0 %675 }
  0xd6   : >> { %1110 = vmatprep.subr.bf16.mxu1 %v2439_v28  ;;  %702 = vmatprep.subr.bf16.mxu0 %v2439_v28  ;;  %v3019_v61 = vsel %vm683_vm2, %v676_v12, %v2960_v0 }
  0xd7   : >> { %3587 = vst [vmem:[#allocation35_spill] sm:$0xff] %v3019_v61 }
  0xd8   : >> { %1092 = vmatmul.mubr.bf16.gmra.mrb[4].mxu1 %v2951_v40  ;;  %v2991_v40 = vpop.permute.xlu1 %779 }
  0xd9   : >> { %703 = vmatpush1.bf16.msra.mxu0 %v2943_v9  ;;  %1111 = vmatpush1.bf16.msra.mxu1 %v2943_v9  ;;  %3583 = vst [vmem:[#allocation31_spill] sm:$0xff] %v2991_v40  ;;  %v2997_v34 = vpop.permute.xlu0 %771 }
  0xda   : >> { %704 = vmatprep.subr.bf16.mxu0 %v2439_v28  ;;  %1112 = vmatprep.subr.bf16.mxu1 %v2439_v28  ;;  %3584 = vst [vmem:[#allocation32_spill] sm:$0xff] %v2997_v34 }
  0xdb   : >> { %2189 = vmatprep.mubr.msk.bf16.mxu1 %vm508_vm0, %v2960_v0 }
  0xdc   : >> { %v3005_v39 = vpop.permute.xlu1 %785 }
  0xdd   : >> { %705 = vmatpush1.bf16.msra.mxu0 %v2923_v37  ;;  %1113 = vmatpush1.bf16.msra.mxu1 %v2923_v37  ;;  %v3003_v63 = vpop.permute.xlu0 %777 }
  0xde   : >> { %1114 = vmatprep.subr.bf16.mxu1 %v2439_v28  ;;  %706 = vmatprep.subr.bf16.mxu0 %v2439_v28  ;;  %3585 = vst [vmem:[#allocation33_spill] sm:$0xff] %v3003_v63 }
  0xe0   : >> { %v3013_v62 = vpop.permute.xlu1 %681 }
  0xe1   : >> { %707 = vmatpush1.bf16.msra.mxu0 %v2956_v5  ;;  %1115 = vmatpush1.bf16.msra.mxu1 %v2956_v5  ;;  %v3011_v1 = vpop.permute.xlu0 %783  ;;  %3586 = vst [vmem:[#allocation34_spill] sm:$0xff] %v3013_v62 }
  0xe2   : >> { %708 = vmatprep.subr.bf16.mxu0 %v2439_v28  ;;  %1116 = vmatprep.subr.bf16.mxu1 %v2439_v28 }
  0xe4   : >> { %v3028_v58 = vpop.permute.xlu1 %1161 }
  0xe5   : >> { %709 = vmatpush1.bf16.msra.mxu0 %v2927_v38  ;;  %1117 = vmatpush1.bf16.msra.mxu1 %v2927_v38  ;;  %v680_v60 = vpop.permute.xlu0 %679 }
  0xe6   : >> { %710 = vmatprep.subr.bf16.mxu0 %v2439_v28  ;;  %1118 = vmatprep.subr.bf16.mxu1 %v2439_v28  ;;  %v3036_v12 = vsel %vm683_vm2, %v680_v60, %v3013_v62  ;;  %v3055_v60 = vld [vmem:[%s2652_s27 + $0x50] sm:$0xff]  }
  0xe7   : >> { %3588 = vst [vmem:[#allocation36_spill] sm:$0xff] %v3036_v12  ;;  %3589 = vst [vmem:[#allocation37_spill] sm:$0xff] %v3055_v60  ;;  %1505 = vrot.lane.b32.xlu0 %v3055_v60, %s2440_s29 }
  0xe8   : >> { %v3042_v0 = vpop.permute.xlu1 %801 }
  0xe9   : >> { %711 = vmatpush1.bf16.msra.mxu0 %v2966_v13  ;;  %1119 = vmatpush1.bf16.msra.mxu1 %v2966_v13 }
  0xea   : >> { %712 = vmatprep.subr.bf16.mxu0 %v2439_v28  ;;  %1120 = vmatprep.subr.bf16.mxu1 %v2439_v28 }
  0xed   : >> { %713 = vmatpush1.bf16.msra.mxu0 %v2935_v50  ;;  %1121 = vmatpush1.bf16.msra.mxu1 %v2935_v50 }
  0xee   : >> { %818 = vmatprep.subr.bf16.mxu0 %v2439_v28  ;;  %1122 = vmatprep.subr.bf16.mxu1 %v2439_v28 }
  0xf0   : >> { %727 = vmatmul.mubr.bf16.vlgmr.msra.gmra.mrb[0].mxu0 %v3019_v61 }
  0xf1   : >> { %819 = vmatpush1.bf16.msra.mxu0 %v2772_v46  ;;  %1123 = vmatpush1.bf16.msra.mxu1 %v2976_v4 }
  0xf2   : >> { %820 = vmatprep.subr.bf16.mxu0 %v2439_v28  ;;  %1124 = vmatprep.subr.bf16.mxu1 %v2439_v28 }
  0xf3   : >> { %2166 = vmatprep.mubr.msk.bf16.mxu0 %vm508_vm0, %v3013_v62 }
  0xf5   : >> { %821 = vmatpush1.bf16.msra.mxu0 %v2775_v47  ;;  %1125 = vmatpush1.bf16.msra.mxu1 %v2945_v56 }
  0xf6   : >> { %822 = vmatprep.subr.bf16.mxu0 %v2439_v28  ;;  %1165 = vmatprep.subr.bf16.mxu1 %v2439_v28 }
  0xf8   : >> { %1139 = vmatmul.mubr.bf16.vlgmr.msra.gmra.mrb[0].mxu1 %v3019_v61  ;;  %735 = vmatmul.mubr.bf16.gmra.mrb[4].mxu0 %v3036_v12  ;;  %v3061_v61 = vpop.permute.xlu0 %1159 }
  0xf9   : >> { %823 = vmatpush1.bf16.msra.mxu0 %v2780_v48  ;;  %1166 = vmatpush1.bf16.msra.mxu1 %v2780_v48  ;;  %v3089_v48 = vld [vmem:[%s2655_s28 + $0x58] sm:$0xff]  }
  0xfa   : >> { %824 = vmatprep.subr.bf16.mxu0 %v2439_v28  ;;  %1167 = vmatprep.subr.bf16.mxu1 %v2439_v28 }
  0xfb   : >> { %2190 = vmatprep.mubr.msk.bf16.mxu1 %vm508_vm0, %v3013_v62  ;;  %2173 = vmatprep.mubr.msk.bf16.mxu0 %vm508_vm0, %v3042_v0  ;;  %v3067_v62 = vld [vmem:[%s2652_s27 + $0x58] sm:$0xff]  }
  0xfc   : >> { %1507 = vrot.lane.b32.xlu1 %v3067_v62, %s2440_s29 }
  0xfd   : >> { %825 = vmatpush1.bf16.msra.mxu0 %v2785_v49  ;;  %1168 = vmatpush1.bf16.msra.mxu1 %v2785_v49  ;;  %v3082_v49 = vpop.permute.xlu1 %897 }
  0xfe   : >> { %1169 = vmatprep.subr.bf16.mxu1 %v2439_v28  ;;  %826 = vmatprep.subr.bf16.mxu0 %v2439_v28 }
 0x100   : >> { %1147 = vmatmul.mubr.bf16.gmra.mrb[4].mxu1 %v3036_v12  ;;  %v3078_v12 = vld [vmem:[%s2655_s28 + $0x50] sm:$0xff]   ;;  %1513 = vrot.lane.b32.xlu1 %v3089_v48, %s2440_s29 }
 0x101   : >> { %827 = vmatpush1.bf16.msra.mxu0 %v2997_v34  ;;  %1170 = vmatpush1.bf16.msra.mxu1 %v2997_v34  ;;  %3590 = vst [vmem:[#allocation38_spill] sm:$0xff] %v3078_v12  ;;  %v800_v34 = vpop.permute.xlu0 %799  ;;  %v3099_v47 = vpop.permute.xlu1 %903 }
 0x102   : >> { %828 = vmatprep.subr.bf16.mxu0 %v2439_v28  ;;  %1171 = vmatprep.subr.bf16.mxu1 %v2439_v28 }
 0x103   : >> { %2191 = vmatprep.mubr.msk.bf16.mxu1 %vm508_vm0, %v3042_v0  ;;  %1511 = vrot.lane.b32.xlu0 %v3078_v12, %s2440_s29 }
 0x104   : >> { %1519 = vrot.lane.b32.xlu1 %v3067_v62, %s2441_s30 }
 0x105   : >> { %829 = vmatpush1.bf16.msra.mxu0 %v2983_v8  ;;  %1172 = vmatpush1.bf16.msra.mxu1 %v2983_v8  ;;  %v3093_v8 = vpop.permute.xlu0 %895 }
 0x106   : >> { %830 = vmatprep.subr.bf16.mxu0 %v2439_v28  ;;  %1173 = vmatprep.subr.bf16.mxu1 %v2439_v28 }
 0x107   : >> { %1517 = vrot.lane.b32.xlu0 %v3055_v60, %s2441_s30  ;;  %v3115_v60 = vpop.permute.xlu1 %909 }
 0x108   : >> { %1782 = vrot.lane.b32.xlu1 %v3089_v48, %s2441_s30 }
 0x109   : >> { %831 = vmatpush1.bf16.msra.mxu0 %v3003_v63  ;;  %1174 = vmatpush1.bf16.msra.mxu1 %v3003_v63  ;;  %v3105_v63 = vpop.permute.xlu0 %901 }
 0x10a   : >> { %832 = vmatprep.subr.bf16.mxu0 %v2439_v28  ;;  %1175 = vmatprep.subr.bf16.mxu1 %v2439_v28 }
 0x10b   : >> { %1780 = vrot.lane.b32.xlu0 %v3078_v12, %s2441_s30  ;;  %v3126_v12 = vsel %vm508_vm0, %v800_v34, %v3042_v0 }
 0x10c   : >> { %1858 = vperm.xlu1 %2398, %v3592_v17  }
 0x10d   : >> { %833 = vmatpush1.bf16.msra.mxu0 %v2991_v40  ;;  %1176 = vmatpush1.bf16.msra.mxu1 %v2991_v40  ;;  %v3120_v40 = vpop.permute.xlu0 %907 }
 0x10e   : >> { %834 = vmatprep.subr.bf16.mxu0 %v2439_v28  ;;  %1177 = vmatprep.subr.bf16.mxu1 %v2439_v28 }
 0x10f   : >> { %1853 = vperm.xlu0 %2397, %v3591_v16   ;;  %v3133_v16 = vpop.permute.xlu1 %805 }
 0x110   : >> { %1863 = vperm.xlu1 %2398, %v2591_v18  }
 0x111   : >> { %835 = vmatpush1.bf16.msra.mxu0 %v3011_v1  ;;  %1178 = vmatpush1.bf16.msra.mxu1 %v3011_v1  ;;  %v804_v34 = vpop.permute.xlu0 %803 }
 0x112   : >> { %836 = vmatprep.subr.bf16.mxu0 %v2439_v28  ;;  %1179 = vmatprep.subr.bf16.mxu1 %v2439_v28  ;;  %v3147_v17 = vsel %vm508_vm0, %v804_v34, %v3133_v16  ;;  %v3201_v34 = vcombine.high %v3560_v2, %v3559_v6  ;;  %v3224_v6 = vcombine.high %v2541_v10, %v2561_v14 }
 0x113   : >> { %1868 = vperm.xlu0 %2397, %v3593_v19   ;;  %v3153_v19 = vcombine.low %v3595_v3, %v3594_v7  ;;  %v3211_v7 = vcombine.low %v2546_v11, %v2566_v15  ;;  %v3216_v2 = vpop.permute.xlu1 %1220 }
 0x114   : >> { %1881 = vperm.xlu1 %2398, %v2601_v20  }
 0x115   : >> { %837 = vmatpush1.bf16.msra.mxu0 %v3005_v39  ;;  %1180 = vmatpush1.bf16.msra.mxu1 %v3005_v39  ;;  %v3206_v3 = vpop.permute.xlu0 %1218 }
 0x116   : >> { %937 = vmatprep.subr.bf16.mxu0 %v2439_v28  ;;  %1181 = vmatprep.subr.bf16.mxu1 %v2439_v28 }
 0x117   : >> { %1886 = vperm.xlu0 %2397, %v2611_v21  }
 0x118   : >> { %851 = vmatmul.mubr.bf16.vlgmr.msra.gmra.mrb[0].mxu0 %v3126_v12  ;;  %1891 = vperm.xlu1 %2398, %v2616_v22  }
 0x119   : >> { %938 = vmatpush1.bf16.msra.mxu0 %v2804_v52  ;;  %1182 = vmatpush1.bf16.msra.mxu1 %v3061_v61 }
 0x11a   : >> { %939 = vmatprep.subr.bf16.mxu0 %v2439_v28  ;;  %1183 = vmatprep.subr.bf16.mxu1 %v2439_v28 }
 0x11b   : >> { %2174 = vmatprep.mubr.msk.bf16.mxu0 %vm508_vm0, %v3133_v16  ;;  %1896 = vperm.xlu0 %2397, %v2621_v23  }
 0x11c   : >> { %1905 = vperm.xlu1 %2398, %v2626_v24  }
 0x11d   : >> { %940 = vmatpush1.bf16.msra.mxu0 %v2807_v53  ;;  %1184 = vmatpush1.bf16.msra.mxu1 %v3028_v58 }
 0x11e   : >> { %941 = vmatprep.subr.bf16.mxu0 %v2439_v28  ;;  %1224 = vmatprep.subr.bf16.mxu1 %v2439_v28 }
 0x11f   : >> { %1910 = vperm.xlu0 %2397, %v2631_v25  }
 0x120   : >> { %1198 = vmatmul.mubr.bf16.vlgmr.msra.gmra.mrb[0].mxu1 %v3126_v12  ;;  %859 = vmatmul.mubr.bf16.gmra.mrb[4].mxu0 %v3147_v17 }
 0x121   : >> { %942 = vmatpush1.bf16.msra.mxu0 %v2812_v54  ;;  %1225 = vmatpush1.bf16.msra.mxu1 %v2812_v54 }
 0x122   : >> { %943 = vmatprep.subr.bf16.mxu0 %v2439_v28  ;;  %1226 = vmatprep.subr.bf16.mxu1 %v2439_v28 }
 0x123   : >> { %2192 = vmatprep.mubr.msk.bf16.mxu1 %vm508_vm0, %v3133_v16  ;;  %2183 = vmatprep.mubr.msk.bf16.mxu0 %vm508_vm0, %v3153_v19 }
 0x124   : >> { %1915 = vperm.xlu1 %2398, %v2636_v26   ;;  %1920 = vperm.xlu0 %2397, %v2641_v27  }
 0x125   : >> { %944 = vmatpush1.bf16.msra.mxu0 %v2817_v55  ;;  %1227 = vmatpush1.bf16.msra.mxu1 %v2817_v55 }
 0x126   : >> { %1228 = vmatprep.subr.bf16.mxu1 %v2439_v28  ;;  %945 = vmatprep.subr.bf16.mxu0 %v2439_v28 }
 0x128   : >> { %1206 = vmatmul.mubr.bf16.gmra.mrb[4].mxu1 %v3147_v17 }
 0x129   : >> { %946 = vmatpush1.bf16.msra.mxu0 %v3093_v8  ;;  %1229 = vmatpush1.bf16.msra.mxu1 %v3093_v8 }
 0x12a   : >> { %947 = vmatprep.subr.bf16.mxu0 %v2439_v28  ;;  %1230 = vmatprep.subr.bf16.mxu1 %v2439_v28 }
 0x12b   : >> { %2193 = vmatprep.mubr.msk.bf16.mxu1 %vm508_vm0, %v3153_v19 }
 0x12d   : >> { %948 = vmatpush1.bf16.msra.mxu0 %v3082_v49  ;;  %1231 = vmatpush1.bf16.msra.mxu1 %v3082_v49 }
 0x12e   : >> { %949 = vmatprep.subr.bf16.mxu0 %v2439_v28  ;;  %1232 = vmatprep.subr.bf16.mxu1 %v2439_v28 }
 0x131   : >> { %950 = vmatpush1.bf16.msra.mxu0 %v3105_v63  ;;  %1233 = vmatpush1.bf16.msra.mxu1 %v3105_v63 }
 0x132   : >> { %951 = vmatprep.subr.bf16.mxu0 %v2439_v28  ;;  %1234 = vmatprep.subr.bf16.mxu1 %v2439_v28 }
 0x135   : >> { %952 = vmatpush1.bf16.msra.mxu0 %v3099_v47  ;;  %1235 = vmatpush1.bf16.msra.mxu1 %v3099_v47 }
 0x136   : >> { %953 = vmatprep.subr.bf16.mxu0 %v2439_v28  ;;  %1236 = vmatprep.subr.bf16.mxu1 %v2439_v28 }
 0x139   : >> { %954 = vmatpush1.bf16.msra.mxu0 %v3120_v40  ;;  %1237 = vmatpush1.bf16.msra.mxu1 %v3120_v40 }
 0x13a   : >> { %955 = vmatprep.subr.bf16.mxu0 %v2439_v28  ;;  %1238 = vmatprep.subr.bf16.mxu1 %v2439_v28 }
 0x13d   : >> { %956 = vmatpush1.bf16.msra.mxu0 %v3115_v60  ;;  %1239 = vmatpush1.bf16.msra.mxu1 %v3115_v60 }
 0x13e   : >> { %1240 = vmatprep.subr.bf16.mxu1 %v2439_v28  ;;  %1277 = vmatprep.subr.bf16.mxu0 %v2439_v28 }
 0x140   : >> { %970 = vmatmul.mubr.bf16.vlgmr.msra.gmra.mrb[0].mxu0 %v3201_v34 }
 0x141   : >> { %1241 = vmatpush1.bf16.msra.mxu1 %v3206_v3  ;;  %1278 = vmatpush1.bf16.msra.mxu0 %v2740_v41  ;;  %v3602_v41 = vld [vmem:[#allocation25_spill] sm:$0xff] }
 0x142   : >> { %1242 = vmatprep.subr.bf16.mxu1 %v2439_v28  ;;  %1279 = vmatprep.subr.bf16.mxu0 %v2439_v28 }
 0x143   : >> { %2184 = vmatprep.mubr.msk.bf16.mxu0 %vm508_vm0, %v3211_v7 }
 0x145   : >> { %1243 = vmatpush1.bf16.msra.mxu1 %v3216_v2  ;;  %1280 = vmatpush1.bf16.msra.mxu0 %v2745_v42  ;;  %v3603_v42 = vld [vmem:[#allocation18_spill] sm:$0xff] }
 0x146   : >> { %1281 = vmatprep.subr.bf16.mxu0 %v2439_v28  ;;  %1576 = vmatprep.subr.bf16.mxu1 %v2439_v28 }
 0x148   : >> { %978 = vmatmul.mubr.bf16.gmra.mrb[4].mxu0 %v3224_v6  ;;  %1257 = vmatmul.mubr.bf16.vlgmr.msra.gmra.mrb[0].mxu1 %v3201_v34 }
 0x149   : >> { %1282 = vmatpush1.bf16.msra.mxu0 %v2750_v43  ;;  %2195 = vmatprep.mubr.msk.bf16.mxu0 %vm508_vm0, %v2869_v45 }
 0x14a   : >> { %1577 = vmatpush1.bf16.msra.mxu1 %v2750_v43  ;;  %1283 = vmatprep.subr.bf16.mxu0 %v2439_v28  ;;  %v3604_v43 = vld [vmem:[#allocation26_spill] sm:$0xff] }
 0x14b   : >> { %1578 = vmatprep.subr.bf16.mxu1 %v2439_v28  ;;  %2194 = vmatprep.mubr.msk.bf16.mxu1 %vm508_vm0, %v3211_v7 }
 0x14d   : >> { %1284 = vmatpush1.bf16.msra.mxu0 %v2755_v44 }
 0x14e   : >> { %1579 = vmatpush1.bf16.msra.mxu1 %v2755_v44  ;;  %1285 = vmatprep.subr.bf16.mxu0 %v2439_v28  ;;  %v3605_v44 = vld [vmem:[#allocation28_spill] sm:$0xff] }
 0x14f   : >> { %1580 = vmatprep.subr.bf16.mxu1 %v2439_v28 }
 0x150   : >> { %1265 = vmatmul.mubr.bf16.gmra.mrb[4].mxu1 %v3224_v6 }
 0x151   : >> { %1286 = vmatpush1.bf16.msra.mxu0 %v2943_v9  ;;  %2209 = vmatprep.mubr.msk.bf16.mxu1 %vm508_vm0, %v2869_v45  ;;  %v3609_v45 = vld [vmem:[#allocation32_spill] sm:$0xff] }
 0x152   : >> { %1581 = vmatpush1.bf16.msra.mxu1 %v2943_v9  ;;  %1287 = vmatprep.subr.bf16.mxu0 %v2439_v28 }
 0x153   : >> { %1582 = vmatprep.subr.bf16.mxu1 %v2439_v28 }
 0x155   : >> { %1288 = vmatpush1.bf16.msra.mxu0 %v2923_v37 }
 0x156   : >> { %1583 = vmatpush1.bf16.msra.mxu1 %v2923_v37  ;;  %1289 = vmatprep.subr.bf16.mxu0 %v2439_v28  ;;  %v3613_v37 = vld [vmem:[#allocation35_spill] sm:$0xff] }
 0x157   : >> { %1584 = vmatprep.subr.bf16.mxu1 %v2439_v28 }
 0x159   : >> { %1290 = vmatpush1.bf16.msra.mxu0 %v2956_v5 }
 0x15a   : >> { %1585 = vmatpush1.bf16.msra.mxu1 %v2956_v5  ;;  %1291 = vmatprep.subr.bf16.mxu0 %v2439_v28 }
 0x15b   : >> { %1586 = vmatprep.subr.bf16.mxu1 %v2439_v28 }
 0x15d   : >> { %1292 = vmatpush1.bf16.msra.mxu0 %v2927_v38 }
 0x15e   : >> { %1587 = vmatpush1.bf16.msra.mxu1 %v2927_v38  ;;  %1293 = vmatprep.subr.bf16.mxu0 %v2439_v28  ;;  %v3614_v38 = vld [vmem:[#allocation34_spill] sm:$0xff] }
 0x15f   : >> { %1588 = vmatprep.subr.bf16.mxu1 %v2439_v28 }
 0x161   : >> { %1294 = vmatpush1.bf16.msra.mxu0 %v2966_v13 }
 0x162   : >> { %1589 = vmatpush1.bf16.msra.mxu1 %v2966_v13  ;;  %1295 = vmatprep.subr.bf16.mxu0 %v2439_v28 }
 0x163   : >> { %1590 = vmatprep.subr.bf16.mxu1 %v2439_v28 }
 0x165   : >> { %1296 = vmatpush1.bf16.msra.mxu0 %v2935_v50 }
 0x166   : >> { %1591 = vmatpush1.bf16.msra.mxu1 %v2935_v50  ;;  %1326 = vmatprep.subr.bf16.mxu0 %v2439_v28 }
 0x167   : >> { %1592 = vmatprep.subr.bf16.mxu1 %v2439_v28 }
 0x168   : >> { %1310 = vmatmul.mubr.bf16.vlgmr.msra.gmra.mrb[8].mxu0 %v2879_v51 }
 0x169   : >> { %2196 = vmatprep.mubr.msk.bf16.mxu0 %vm508_vm0, %v2897_v35  ;;  %1327 = vmatpush1.bf16.msra.mxu0 %v2660_v29  ;;  %v3597_v29 = vld [vmem:[#allocation22_spill] sm:$0xff] }
 0x16a   : >> { %1593 = vmatpush1.bf16.msra.mxu1 %v2976_v4  ;;  %1328 = vmatprep.subr.bf16.mxu0 %v2439_v28  ;;  %v3596_v4 = vld [vmem:[#allocation21_spill] sm:$0xff] }
 0x16b   : >> { %1594 = vmatprep.subr.bf16.mxu1 %v2439_v28 }
 0x16d   : >> { %1329 = vmatpush1.bf16.msra.mxu0 %v2663_v30  ;;  %v3598_v30 = vld [vmem:[#allocation23_spill] sm:$0xff] }
 0x16e   : >> { %1595 = vmatpush1.bf16.msra.mxu1 %v2945_v56  ;;  %1330 = vmatprep.subr.bf16.mxu0 %v2439_v28 }
 0x16f   : >> { %1625 = vmatprep.subr.bf16.mxu1 %v2439_v28 }
 0x170   : >> { %1318 = vmatmul.mubr.bf16.gmra.mrb[12].mxu0 %v2901_v36 }
 0x171   : >> { %1609 = vmatmul.mubr.bf16.vlgmr.msra.gmra.mrb[8].mxu1 %v2879_v51  ;;  %1331 = vmatpush1.bf16.msra.mxu0 %v2668_v31  ;;  %v3610_v51 = vld [vmem:[#allocation30_spill] sm:$0xff] }
 0x172   : >> { %2210 = vmatprep.mubr.msk.bf16.mxu1 %vm508_vm0, %v2897_v35  ;;  %1626 = vmatpush1.bf16.msra.mxu1 %v2668_v31  ;;  %v3599_v31 = vld [vmem:[#allocation24_spill] sm:$0xff]  ;;  %v3611_v35 = vld [vmem:[#allocation33_spill] sm:$0xff] }
 0x173   : >> { %1332 = vmatprep.subr.bf16.mxu0 %v2439_v28  ;;  %1627 = vmatprep.subr.bf16.mxu1 %v2439_v28 }
 0x174   : >> { %2197 = vmatprep.mubr.msk.bf16.mxu0 %vm508_vm0, %v2697_v33 }
 0x175   : >> { %1333 = vmatpush1.bf16.msra.mxu0 %v2675_v32 }
 0x176   : >> { %1628 = vmatpush1.bf16.msra.mxu1 %v2675_v32  ;;  %1334 = vmatprep.subr.bf16.mxu0 %v2439_v28  ;;  %v3600_v32 = vld [vmem:[#allocation27_spill] sm:$0xff] }
 0x177   : >> { %1629 = vmatprep.subr.bf16.mxu1 %v2439_v28 }
 0x179   : >> { %1617 = vmatmul.mubr.bf16.gmra.mrb[12].mxu1 %v2901_v36  ;;  %1335 = vmatpush1.bf16.msra.mxu0 %v2833_v57  ;;  %v3612_v36 = vld [vmem:[#allocation31_spill] sm:$0xff] }
 0x17a   : >> { %1630 = vmatpush1.bf16.msra.mxu1 %v2833_v57  ;;  %1336 = vmatprep.subr.bf16.mxu0 %v2439_v28  ;;  %v3607_v57 = vld [vmem:[#allocation29_spill] sm:$0xff] }
 0x17b   : >> { %1631 = vmatprep.subr.bf16.mxu1 %v2439_v28  ;;  %2211 = vmatprep.mubr.msk.bf16.mxu1 %vm508_vm0, %v2697_v33  ;;  %v3601_v33 = vld [vmem:[#allocation17_spill] sm:$0xff] }
 0x17d   : >> { %1337 = vmatpush1.bf16.msra.mxu0 %v2841_v59 }
 0x17e   : >> { %1632 = vmatpush1.bf16.msra.mxu1 %v2841_v59  ;;  %1338 = vmatprep.subr.bf16.mxu0 %v2439_v28  ;;  %v3608_v59 = vld [vmem:[#allocation20_spill] sm:$0xff] }
 0x17f   : >> { %1633 = vmatprep.subr.bf16.mxu1 %v2439_v28 }
 0x181   : >> { %1339 = vmatpush1.bf16.msra.mxu0 %v3596_v4 }
 0x182   : >> { %1634 = vmatpush1.bf16.msra.mxu1 %v3596_v4  ;;  %1340 = vmatprep.subr.bf16.mxu0 %v2439_v28 }
 0x183   : >> { %1635 = vmatprep.subr.bf16.mxu1 %v2439_v28 }
 0x185   : >> { %1341 = vmatpush1.bf16.msra.mxu0 %v3597_v29 }
 0x186   : >> { %1636 = vmatpush1.bf16.msra.mxu1 %v3597_v29  ;;  %1342 = vmatprep.subr.bf16.mxu0 %v2439_v28 }
 0x187   : >> { %1637 = vmatprep.subr.bf16.mxu1 %v2439_v28 }
 0x189   : >> { %1343 = vmatpush1.bf16.msra.mxu0 %v3598_v30 }
 0x18a   : >> { %1638 = vmatpush1.bf16.msra.mxu1 %v3598_v30  ;;  %1344 = vmatprep.subr.bf16.mxu0 %v2439_v28 }
 0x18b   : >> { %1639 = vmatprep.subr.bf16.mxu1 %v2439_v28 }
 0x18d   : >> { %1345 = vmatpush1.bf16.msra.mxu0 %v3599_v31 }
 0x18e   : >> { %1640 = vmatpush1.bf16.msra.mxu1 %v3599_v31  ;;  %1375 = vmatprep.subr.bf16.mxu0 %v2439_v28 }
 0x18f   : >> { %1641 = vmatprep.subr.bf16.mxu1 %v2439_v28 }
 0x190   : >> { %1359 = vmatmul.mubr.bf16.vlgmr.msra.gmra.mrb[8].mxu0 %v3600_v32 }
 0x191   : >> { %1376 = vmatpush1.bf16.msra.mxu0 %v2772_v46  ;;  %2198 = vmatprep.mubr.msk.bf16.mxu0 %vm508_vm0, %v3601_v33  ;;  %v3606_v46 = vld [vmem:[#allocation19_spill] sm:$0xff] }
 0x192   : >> { %1642 = vmatpush1.bf16.msra.mxu1 %v3602_v41  ;;  %1377 = vmatprep.subr.bf16.mxu0 %v2439_v28 }
 0x193   : >> { %1643 = vmatprep.subr.bf16.mxu1 %v2439_v28 }
 0x195   : >> { %1378 = vmatpush1.bf16.msra.mxu0 %v3603_v42 }
 0x196   : >> { %1644 = vmatpush1.bf16.msra.mxu1 %v3604_v43  ;;  %1379 = vmatprep.subr.bf16.mxu0 %v2439_v28 }
 0x197   : >> { %1674 = vmatprep.subr.bf16.mxu1 %v2439_v28 }
 0x198   : >> { %1367 = vmatmul.mubr.bf16.gmra.mrb[12].mxu0 %v3605_v44 }
 0x199   : >> { %1658 = vmatmul.mubr.bf16.vlgmr.msra.gmra.mrb[8].mxu1 %v3600_v32  ;;  %1380 = vmatpush1.bf16.msra.mxu0 %v3606_v46 }
 0x19a   : >> { %2199 = vmatprep.mubr.msk.bf16.mxu0 %vm508_vm0, %v3607_v57  ;;  %1675 = vmatpush1.bf16.msra.mxu1 %v3606_v46 }
 0x19b   : >> { %1381 = vmatprep.subr.bf16.mxu0 %v2439_v28  ;;  %1676 = vmatprep.subr.bf16.mxu1 %v2439_v28 }
 0x19c   : >> { %2212 = vmatprep.mubr.msk.bf16.mxu1 %vm508_vm0, %v3601_v33 }
 0x19d   : >> { %1382 = vmatpush1.bf16.msra.mxu0 %v3608_v59 }
 0x19e   : >> { %1677 = vmatpush1.bf16.msra.mxu1 %v3608_v59  ;;  %1383 = vmatprep.subr.bf16.mxu0 %v2439_v28 }
 0x19f   : >> { %1678 = vmatprep.subr.bf16.mxu1 %v2439_v28 }
 0x1a1   : >> { %1666 = vmatmul.mubr.bf16.gmra.mrb[12].mxu1 %v3605_v44  ;;  %1384 = vmatpush1.bf16.msra.mxu0 %v3609_v45 }
 0x1a2   : >> { %1679 = vmatpush1.bf16.msra.mxu1 %v3609_v45  ;;  %2213 = vmatprep.mubr.msk.bf16.mxu1 %vm508_vm0, %v3607_v57 }
 0x1a3   : >> { %1385 = vmatprep.subr.bf16.mxu0 %v2439_v28  ;;  %1680 = vmatprep.subr.bf16.mxu1 %v2439_v28 }
 0x1a5   : >> { %1386 = vmatpush1.bf16.msra.mxu0 %v3610_v51 }
 0x1a6   : >> { %1681 = vmatpush1.bf16.msra.mxu1 %v3610_v51  ;;  %1387 = vmatprep.subr.bf16.mxu0 %v2439_v28 }
 0x1a7   : >> { %1682 = vmatprep.subr.bf16.mxu1 %v2439_v28 }
 0x1a9   : >> { %1388 = vmatpush1.bf16.msra.mxu0 %v3611_v35 }
 0x1aa   : >> { %1683 = vmatpush1.bf16.msra.mxu1 %v3611_v35  ;;  %1389 = vmatprep.subr.bf16.mxu0 %v2439_v28 }
 0x1ab   : >> { %1684 = vmatprep.subr.bf16.mxu1 %v2439_v28 }
 0x1ad   : >> { %1390 = vmatpush1.bf16.msra.mxu0 %v3612_v36 }
 0x1ae   : >> { %1685 = vmatpush1.bf16.msra.mxu1 %v3612_v36  ;;  %1391 = vmatprep.subr.bf16.mxu0 %v2439_v28 }
 0x1af   : >> { %1686 = vmatprep.subr.bf16.mxu1 %v2439_v28 }
 0x1b1   : >> { %1392 = vmatpush1.bf16.msra.mxu0 %v3011_v1 }
 0x1b2   : >> { %1687 = vmatpush1.bf16.msra.mxu1 %v3011_v1  ;;  %1393 = vmatprep.subr.bf16.mxu0 %v2439_v28 }
 0x1b3   : >> { %1688 = vmatprep.subr.bf16.mxu1 %v2439_v28 }
 0x1b5   : >> { %1394 = vmatpush1.bf16.msra.mxu0 %v3005_v39 }
 0x1b6   : >> { %1689 = vmatpush1.bf16.msra.mxu1 %v3005_v39  ;;  %1428 = vmatprep.subr.bf16.mxu0 %v2439_v28  ;;  %v3615_v39 = vld [vmem:[#allocation36_spill] sm:$0xff] }
 0x1b7   : >> { %1690 = vmatprep.subr.bf16.mxu1 %v2439_v28 }
 0x1b8   : >> { %1408 = vmatmul.mubr.bf16.vlgmr.msra.gmra.mrb[8].mxu0 %v3613_v37 }
 0x1b9   : >> { %2200 = vmatprep.mubr.msk.bf16.mxu0 %vm508_vm0, %v3614_v38  ;;  %1429 = vmatpush1.bf16.msra.mxu0 %v2804_v52 }
 0x1ba   : >> { %1691 = vmatpush1.bf16.msra.mxu1 %v3061_v61  ;;  %1430 = vmatprep.subr.bf16.mxu0 %v2439_v28 }
 0x1bb   : >> { %1692 = vmatprep.subr.bf16.mxu1 %v2439_v28 }
 0x1bd   : >> { %1431 = vmatpush1.bf16.msra.mxu0 %v2807_v53 }
 0x1be   : >> { %1693 = vmatpush1.bf16.msra.mxu1 %v3028_v58  ;;  %1432 = vmatprep.subr.bf16.mxu0 %v2439_v28 }
 0x1bf   : >> { %1727 = vmatprep.subr.bf16.mxu1 %v2439_v28 }
 0x1c0   : >> { %1416 = vmatmul.mubr.bf16.gmra.mrb[12].mxu0 %v3615_v39 }
 0x1c1   : >> { %1707 = vmatmul.mubr.bf16.vlgmr.msra.gmra.mrb[8].mxu1 %v3613_v37  ;;  %1433 = vmatpush1.bf16.msra.mxu0 %v2812_v54 }
 0x1c2   : >> { %2201 = vmatprep.mubr.msk.bf16.mxu0 %vm508_vm0, %v3042_v0  ;;  %2214 = vmatprep.mubr.msk.bf16.mxu1 %vm508_vm0, %v3614_v38 }
 0x1c3   : >> { %1728 = vmatpush1.bf16.msra.mxu1 %v2812_v54  ;;  %1434 = vmatprep.subr.bf16.mxu0 %v2439_v28 }
 0x1c4   : >> { %1729 = vmatprep.subr.bf16.mxu1 %v2439_v28 }
 0x1c5   : >> { %1435 = vmatpush1.bf16.msra.mxu0 %v2817_v55 }
 0x1c6   : >> { %1436 = vmatprep.subr.bf16.mxu0 %v2439_v28 }
 0x1c7   : >> { %1730 = vmatpush1.bf16.msra.mxu1 %v2817_v55 }
 0x1c8   : >> { %1731 = vmatprep.subr.bf16.mxu1 %v2439_v28 }
 0x1c9   : >> { %1715 = vmatmul.mubr.bf16.gmra.mrb[12].mxu1 %v3615_v39  ;;  %1437 = vmatpush1.bf16.msra.mxu0 %v3093_v8 }
 0x1ca   : >> { %2215 = vmatprep.mubr.msk.bf16.mxu1 %vm508_vm0, %v3042_v0  ;;  %1438 = vmatprep.subr.bf16.mxu0 %v2439_v28  ;;  %v3616_v0 = vld [vmem:[#allocation37_spill] sm:$0xff] }
 0x1cb   : >> { %1732 = vmatpush1.bf16.msra.mxu1 %v3093_v8  ;;  %v3617_v8 = vld [vmem:[#allocation38_spill] sm:$0xff] }
 0x1cc   : >> { %1733 = vmatprep.subr.bf16.mxu1 %v2439_v28 }
 0x1cd   : >> { %1439 = vmatpush1.bf16.msra.mxu0 %v3082_v49 }
 0x1ce   : >> { %1440 = vmatprep.subr.bf16.mxu0 %v2439_v28 }
 0x1cf   : >> { %1734 = vmatpush1.bf16.msra.mxu1 %v3082_v49 }
 0x1d0   : >> { %1735 = vmatprep.subr.bf16.mxu1 %v2439_v28 }
 0x1d1   : >> { %1441 = vmatpush1.bf16.msra.mxu0 %v3105_v63 }
 0x1d2   : >> { %1442 = vmatprep.subr.bf16.mxu0 %v2439_v28 }
 0x1d3   : >> { %1736 = vmatpush1.bf16.msra.mxu1 %v3105_v63 }
 0x1d4   : >> { %1737 = vmatprep.subr.bf16.mxu1 %v2439_v28 }
 0x1d5   : >> { %1443 = vmatpush1.bf16.msra.mxu0 %v3099_v47 }
 0x1d6   : >> { %1444 = vmatprep.subr.bf16.mxu0 %v2439_v28 }
 0x1d7   : >> { %1738 = vmatpush1.bf16.msra.mxu1 %v3099_v47 }
 0x1d8   : >> { %1739 = vmatprep.subr.bf16.mxu1 %v2439_v28 }
 0x1d9   : >> { %1445 = vmatpush1.bf16.msra.mxu0 %v3120_v40 }
 0x1da   : >> { %1446 = vmatprep.subr.bf16.mxu0 %v2439_v28 }
 0x1db   : >> { %1740 = vmatpush1.bf16.msra.mxu1 %v3120_v40 }
 0x1dc   : >> { %1741 = vmatprep.subr.bf16.mxu1 %v2439_v28 }
 0x1dd   : >> { %1447 = vmatpush1.bf16.msra.mxu0 %v3115_v60 }
 0x1de   : >> { %1523 = vmatprep.subr.bf16.mxu0 %v2439_v28 }
 0x1df   : >> { %1742 = vmatpush1.bf16.msra.mxu1 %v3115_v60 }
 0x1e0   : >> { %1461 = vmatmul.mubr.bf16.vlgmr.msra.gmra.mrb[8].mxu0 %v3126_v12  ;;  %1743 = vmatprep.subr.bf16.mxu1 %v2439_v28 }
 0x1e1   : >> { %2202 = vmatprep.mubr.msk.bf16.mxu0 %vm508_vm0, %v3133_v16  ;;  %1524 = vmatpush1.bf16.msra.mxu0 %v3616_v0 }
 0x1e2   : >> { %1525 = vmatprep.subr.bf16.mxu0 %v2439_v28 }
 0x1e3   : >> { %1744 = vmatpush1.bf16.msra.mxu1 %v3206_v3  ;;  %v1508_v3 = vpop.permute.xlu1 %1507 }
 0x1e4   : >> { %1745 = vmatprep.subr.bf16.mxu1 %v2439_v28 }
 0x1e5   : >> { %1526 = vmatpush1.bf16.msra.mxu0 %v3067_v62 }
 0x1e6   : >> { %1527 = vmatprep.subr.bf16.mxu0 %v2439_v28 }
 0x1e7   : >> { %1746 = vmatpush1.bf16.msra.mxu1 %v3216_v2  ;;  %v1506_v2 = vpop.permute.xlu0 %1505  ;;  %v1514_v47 = vpop.permute.xlu1 %1513 }
 0x1e8   : >> { %1469 = vmatmul.mubr.bf16.gmra.mrb[12].mxu0 %v3147_v17  ;;  %1786 = vmatprep.subr.bf16.mxu1 %v2439_v28 }
 0x1e9   : >> { %1528 = vmatpush1.bf16.msra.mxu0 %v3617_v8  ;;  %2207 = vmatprep.mubr.msk.bf16.mxu0 %vm508_vm0, %v3153_v19 }
 0x1ea   : >> { %1760 = vmatmul.mubr.bf16.vlgmr.msra.gmra.mrb[8].mxu1 %v3126_v12  ;;  %1529 = vmatprep.subr.bf16.mxu0 %v2439_v28 }
 0x1eb   : >> { %2216 = vmatprep.mubr.msk.bf16.mxu1 %vm508_vm0, %v3133_v16  ;;  %1787 = vmatpush1.bf16.msra.mxu1 %v3617_v8  ;;  %v1512_v16 = vpop.permute.xlu0 %1511 }
 0x1ec   : >> { %1788 = vmatprep.subr.bf16.mxu1 %v2439_v28 }
 0x1ed   : >> { %1530 = vmatpush1.bf16.msra.mxu0 %v3089_v48 }
 0x1ee   : >> { %1531 = vmatprep.subr.bf16.mxu0 %v2439_v28 }
 0x1ef   : >> { %1789 = vmatpush1.bf16.msra.mxu1 %v3089_v48 }
 0x1f0   : >> { %1790 = vmatprep.subr.bf16.mxu1 %v2439_v28 }
 0x1f1   : >> { %1532 = vmatpush1.bf16.msra.mxu0 %v1506_v2 }
 0x1f2   : >> { %1768 = vmatmul.mubr.bf16.gmra.mrb[12].mxu1 %v3147_v17  ;;  %1533 = vmatprep.subr.bf16.mxu0 %v2439_v28  ;;  %v1518_v17 = vpop.permute.xlu0 %1517 }
 0x1f3   : >> { %1791 = vmatpush1.bf16.msra.mxu1 %v1506_v2  ;;  %2217 = vmatprep.mubr.msk.bf16.mxu1 %vm508_vm0, %v3153_v19  ;;  %v1520_v19 = vpop.permute.xlu1 %1519 }
 0x1f4   : >> { %1792 = vmatprep.subr.bf16.mxu1 %v2439_v28 }
 0x1f5   : >> { %1534 = vmatpush1.bf16.msra.mxu0 %v1508_v3 }
 0x1f6   : >> { %1535 = vmatprep.subr.bf16.mxu0 %v2439_v28  ;;  %v1781_v48 = vpop.permute.xlu0 %1780 }
 0x1f7   : >> { %1793 = vmatpush1.bf16.msra.mxu1 %v1508_v3  ;;  %v1783_v49 = vpop.permute.xlu1 %1782 }
 0x1f8   : >> { %1794 = vmatprep.subr.bf16.mxu1 %v2439_v28 }
 0x1f9   : >> { %1536 = vmatpush1.bf16.msra.mxu0 %v1512_v16 }
 0x1fa   : >> { %1537 = vmatprep.subr.bf16.mxu0 %v2439_v28  ;;  %v1854_v29 = vpop.permute.xlu0 %1853 }
 0x1fb   : >> { %1795 = vmatpush1.bf16.msra.mxu1 %v1512_v16  ;;  %v1859_v4 = vpop.permute.xlu1 %1858 }
 0x1fc   : >> { %1796 = vmatprep.subr.bf16.mxu1 %v2439_v28 }
 0x1fd   : >> { %1538 = vmatpush1.bf16.msra.mxu0 %v1514_v47 }
 0x1fe   : >> { %1539 = vmatprep.subr.bf16.mxu0 %v2439_v28  ;;  %v1869_v33 = vpop.permute.xlu0 %1868 }
 0x1ff   : >> { %1797 = vmatpush1.bf16.msra.mxu1 %v1514_v47  ;;  %v1864_v31 = vpop.permute.xlu1 %1863 }
 0x200   : >> { %1798 = vmatprep.subr.bf16.mxu1 %v2439_v28 }
 0x201   : >> { %1540 = vmatpush1.bf16.msra.mxu0 %v1518_v17 }
 0x202   : >> { %1541 = vmatprep.subr.bf16.mxu0 %v2439_v28  ;;  %v1887_v44 = vpop.permute.xlu0 %1886 }
 0x203   : >> { %1799 = vmatpush1.bf16.msra.mxu1 %v1518_v17  ;;  %v1882_v42 = vpop.permute.xlu1 %1881 }
 0x204   : >> { %1800 = vmatprep.subr.bf16.mxu1 %v2439_v28 }
 0x205   : >> { %1542 = vmatpush1.bf16.msra.mxu0 %v1520_v19 }
 0x206   : >> { %v1897_v3 = vpop.permute.xlu0 %1896 }
 0x207   : >> { %1801 = vmatpush1.bf16.msra.mxu1 %v1520_v19  ;;  %v1892_v0 = vpop.permute.xlu1 %1891 }
 0x208   : >> { %1802 = vmatprep.subr.bf16.mxu1 %v2439_v28  ;;  %1556 = vmatmul.mubr.bf16.vlgmr.msra.gmra.mrb[8].mxu0 %v3201_v34 }
 0x209   : >> { %2208 = vmatprep.mubr.msk.bf16.mxu0 %vm508_vm0, %v3211_v7 }
 0x20b   : >> { %1803 = vmatpush1.bf16.msra.mxu1 %v1781_v48 }
 0x20c   : >> { %1804 = vmatprep.subr.bf16.mxu1 %v2439_v28 }
 0x20f   : >> { %1805 = vmatpush1.bf16.msra.mxu1 %v1783_v49 }
 0x210   : >> { %1564 = vmatmul.mubr.bf16.gmra.mrb[12].mxu0 %v3224_v6 }
 0x212   : >> { %1819 = vmatmul.mubr.bf16.vlgmr.msra.gmra.mrb[8].mxu1 %v3201_v34 }
 0x213   : >> { %v971_v52 = vpop.f32.mrb[0].mxu0  ;;  %2218 = vmatprep.mubr.msk.bf16.mxu1 %vm508_vm0, %v3211_v7 }
 0x214   : >> { %v973_v53 = vpop.f32.mrb[1].mxu0 }
 0x215   : >> { %v974_v54 = vpop.f32.mrb[2].mxu0  ;;  %v1906_v53 = vpop.permute.xlu1 %1905 }
 0x216   : >> { %v976_v55 = vpop.f32.mrb[3].mxu0 }
 0x21a   : >> { %1827 = vmatmul.mubr.bf16.gmra.mrb[12].mxu1 %v3224_v6 }
 0x21b   : >> { %v979_v58 = vpop.f32.mrb[4].mxu0  ;;  %v1258_v61 = vpop.f32.mrb[0].mxu1 }
 0x21c   : >> { %v1839_v62 = vmax.f32 %v971_v52, %v1258_v61  ;;  %v981_v63 = vpop.f32.mrb[5].mxu0  ;;  %v1260_v1 = vpop.f32.mrb[1].mxu1 }
 0x21d   : >> { %v982_v28 = vpop.f32.mrb[6].mxu0  ;;  %v1261_v50 = vpop.f32.mrb[2].mxu1 }
 0x21e   : >> { %v1840_v9 = vmax.f32 %v974_v54, %v1261_v50  ;;  %v984_v56 = vpop.f32.mrb[7].mxu0  ;;  %v1263_v40 = vpop.f32.mrb[3].mxu1 }
 0x21f   : >> { %v1911_v1 = vpop.permute.xlu0 %1910 }
 0x223   : >> { %v1266_v5 = vpop.f32.mrb[4].mxu1 }
 0x224   : >> { %v1841_v13 = vmax.f32 %v979_v58, %v1266_v5  ;;  %v1268_v12 = vpop.f32.mrb[5].mxu1 }
 0x225   : >> { %v1269_v60 = vpop.f32.mrb[6].mxu1 }
 0x226   : >> { %v1842_v7 = vmax.f32 %v982_v28, %v1269_v60  ;;  %v1271_v34 = vpop.f32.mrb[7].mxu1 }
 0x2db   : >> { %v1557_v30 = vpop.f32.mrb[8].mxu0 }
 0x2dc   : >> { %v1559_v6 = vpop.f32.mrb[9].mxu0 }
 0x2dd   : >> { %v1560_v32 = vpop.f32.mrb[10].mxu0 }
 0x2de   : >> { %v1562_v41 = vpop.f32.mrb[11].mxu0 }
 0x2e3   : >> { %v1565_v43 = vpop.f32.mrb[12].mxu0 }
 0x2e4   : >> { %v1567_v46 = vpop.f32.mrb[13].mxu0 }
 0x2e5   : >> { %v1820_v57 = vpop.f32.mrb[8].mxu1  ;;  %v1568_v59 = vpop.f32.mrb[14].mxu0 }
 0x2e6   : >> { %v1843_v45 = vmax.f32 %v1557_v30, %v1820_v57  ;;  %v1822_v51 = vpop.f32.mrb[9].mxu1  ;;  %v1570_v35 = vpop.f32.mrb[15].mxu0 }
 0x2e7   : >> { %v1823_v36 = vpop.f32.mrb[10].mxu1  ;;  %v1921_v30 = vpop.permute.xlu0 %1920 }
 0x2e8   : >> { %v1847_v37 = vmax.f32 %v1839_v62, %v1843_v45  ;;  %v1844_v38 = vmax.f32 %v1560_v32, %v1823_v36  ;;  %v1825_v39 = vpop.f32.mrb[11].mxu1 }
 0x2ea   : >> { %v1871_v8 = vadd.f32 %v1854_v29, %v1847_v37  ;;  %v1848_v2 = vmax.f32 %v1840_v9, %v1844_v38 }
 0x2ec   : >> { %v1875_v16 = vmax.f32 %v1871_v8, 0.0  ;;  %v1872_v47 = vadd.f32 %v1859_v4, %v1848_v2  ;;  %v1916_v4 = vpop.permute.xlu1 %1915 }
 0x2ed   : >> { %v1828_v17 = vpop.f32.mrb[12].mxu1 }
 0x2ee   : >> { %v1899_v19 = vmul.f32 %v1882_v42, %v1875_v16  ;;  %v1876_v48 = vmax.f32 %v1872_v47, 0.0  ;;  %v1845_v49 = vmax.f32 %v1565_v43, %v1828_v17  ;;  %v1830_v52 = vpop.f32.mrb[13].mxu1 }
 0x2ef   : >> { %v1831_v54 = vpop.f32.mrb[14].mxu1 }
 0x2f0   : >> { %v1923_v55 = vadd.f32 %v1906_v53, %v1899_v19  ;;  %v1900_v58 = vmul.f32 %v1887_v44, %v1876_v48  ;;  %v1849_v61 = vmax.f32 %v1841_v13, %v1845_v49  ;;  %v1846_v62 = vmax.f32 %v1568_v59, %v1831_v54  ;;  %v1833_v63 = vpop.f32.mrb[15].mxu1 }
 0x2f2   : >> { %v2240_v28 = vpack.c.bf16 %v1923_v55, %v1923_v55  ;;  %v1924_v50 = vadd.f32 %v1911_v1, %v1900_v58  ;;  %v1873_v9 = vadd.f32 %v1864_v31, %v1849_v61  ;;  %v1850_v56 = vmax.f32 %v1842_v7, %v1846_v62 }
 0x2f4   : >> { %1947 = vst.msk [vmem:[%s1945_s12] sm:$0xf] %vm1946_vm3, %v2240_v28  ;;  %v2241_v40 = vpack.c.bf16 %v1924_v50, %v1924_v50  ;;  %v1877_v5 = vmax.f32 %v1873_v9, 0.0  ;;  %v1874_v12 = vadd.f32 %v1869_v33, %v1850_v56 }
 0x2f6   : >> { %1948 = vst.msk [vmem:[%s1945_s12 + $0x4] sm:$0xf] %vm1946_vm3, %v2241_v40  ;;  %v1901_v60 = vmul.f32 %v1892_v0, %v1877_v5  ;;  %v1878_v34 = vmax.f32 %v1874_v12, 0.0 }
 0x2f8   : >> { %v1925_v13 = vadd.f32 %v1916_v4, %v1901_v60  ;;  %v1902_v29 = vmul.f32 %v1897_v3, %v1878_v34  ;;  %305 = sbr.rel (!%p303_p4) target bundleno = 18 (0x12), region = 97 }
 0x2fa   : >> { %v2242_v6 = vpack.c.bf16 %v1925_v13, %v1925_v13  ;;  %v1926_v32 = vadd.f32 %v1921_v30, %v1902_v29 }
 0x2fc   : >> { %1949 = vst.msk [vmem:[%s1945_s12 + $0x8] sm:$0xf] %vm1946_vm3, %v2242_v6  ;;  %v2243_v41 = vpack.c.bf16 %v1926_v32, %v1926_v32 }
 0x2fe   : >> { %1950 = vst.msk [vmem:[%s1945_s12 + $0xc] sm:$0xf] %vm1946_vm3, %v2243_v41 }
 0x2ff PF: > { %s16_s21 = sadd.s32 1, %s2433_s21  }
 0x300   : > { %p13_p5 = scmp.ge.s32.totalorder %s16_s21, 4  }
 0x302   :  { %15 = sbr.rel (!%p13_p5) target bundleno = 1 (0x1), region = 108 }

// kernel: net_forward.10
= control target key start
LH: loop header
LB: loop body
LE: loop exit
PB: predicated region body
PF: predicated region fallthrough
CT: control target
= control target key end

     0   :  { %s2480_s21 = smov 0   ;;  %s3487_s0 = inlined_call_operand.vmem [shape: bf16[2,14,32,7], index: 0, kind: input, shape index: {}]   ;;  %s3488_s1 = inlined_call_operand.vmem [shape: bf16[2,14,32,7], index: 1, kind: input, shape index: {}]   ;;  %s3489_s2 = inlined_call_operand.vmem [shape: bf16[32,800], index: 2, kind: input, shape index: {}]   ;;  %s3490_s3 = inlined_call_operand.vmem [shape: f32[32,1], index: 3, kind: input, shape index: {}]   ;;  %s3491_s4 = inlined_call_operand.vmem [shape: f32[32,1], index: 4, kind: input, shape index: {}]   ;;  %s3492_s5 = inlined_call_operand.vmem [shape: f32[32,1], index: 5, kind: input, shape index: {}]   ;;  %s3493_s6 = inlined_call_operand.vmem [shape: bf16[2,5,32,5], index: 6, kind: output, shape index: {}]  }
   0x1 LB: > { %s2069_s22 = sadd.s32 4294967295, %s2433_s21   ;;  %p2073_p0 = scmp.ge.s32.totalorder %s2433_s21, 1  ;;  %s2433_s21 = sphi %s2480_s21, %s16_s21  }
   0x2   : > { %p222_p1 = scmp.lt.s32.totalorder %s2433_s21, 3 }
   0x4   : > { %p223_p2 = pnand %p2073_p0, %p222_p1 }
   0x5   : > { %p257_p3 = scmp.lt.s32.totalorder (!%p223_p2), %s2069_s22, 1  ;;  %v2491_v0 = vld [vmem:[%s3489_s2] sm:$0xff] (!%p223_p2)  ;;  %v2496_v1 = vld [vmem:[%s3489_s2 + $0x8] sm:$0xff] (!%p223_p2)  ;;  %v2501_v2 = vld [vmem:[%s3489_s2 + $0x10] sm:$0xff] (!%p223_p2)  ;;  %s2643_s24 = smov (!%p223_p2), 0  }
   0x6   : > { %226 = sbr.rel (%p223_p2) target bundleno = 767 (0x2ff), region = 44  ;;  %3544 = vst [vmem:[#allocation2_spill] sm:$0xff] (!%p223_p2), %v2491_v0  ;;  %3545 = vst [vmem:[#allocation3_spill] sm:$0xff] (!%p223_p2), %v2496_v1  ;;  %v2506_v3 = vld [vmem:[%s3489_s2 + $0x18] sm:$0xf] (!%p223_p2)  ;;  %v2511_v4 = vld [vmem:[%s3489_s2 + $0x1c] sm:$0xff] (!%p223_p2) }
   0x7   : > { %3546 = vst [vmem:[#allocation4_spill] sm:$0xff] (!%p223_p2), %v2501_v2  ;;  %3547 = vst [vmem:[#allocation5_spill] sm:$0xff] (!%p223_p2), %v2506_v3  ;;  %v2516_v5 = vld [vmem:[%s3489_s2 + $0x24] sm:$0xff] (!%p223_p2)  ;;  %v2521_v6 = vld [vmem:[%s3489_s2 + $0x2c] sm:$0xff] (!%p223_p2) }
   0x8   : > { %3548 = vst [vmem:[#allocation6_spill] sm:$0xff] (!%p223_p2), %v2511_v4  ;;  %3549 = vst [vmem:[#allocation7_spill] sm:$0xff] (!%p223_p2), %v2516_v5  ;;  %v2526_v7 = vld [vmem:[%s3489_s2 + $0x34] sm:$0xf] (!%p223_p2)  ;;  %v2531_v8 = vld [vmem:[%s3489_s2 + $0x38] sm:$0xff] (!%p223_p2) }
   0x9   : > { %3550 = vst [vmem:[#allocation8_spill] sm:$0xff] (!%p223_p2), %v2521_v6  ;;  %3551 = vst [vmem:[#allocation9_spill] sm:$0xff] (!%p223_p2), %v2526_v7  ;;  %v2536_v9 = vld [vmem:[%s3489_s2 + $0x40] sm:$0xff] (!%p223_p2)  ;;  %v2541_v10 = vld [vmem:[%s3489_s2 + $0x48] sm:$0xff] (!%p223_p2) }
   0xa   : > { %3552 = vst [vmem:[#allocation10_spill] sm:$0xff] (!%p223_p2), %v2531_v8  ;;  %3553 = vst [vmem:[#allocation11_spill] sm:$0xff] (!%p223_p2), %v2536_v9  ;;  %v2546_v11 = vld [vmem:[%s3489_s2 + $0x50] sm:$0xf] (!%p223_p2)  ;;  %v2551_v12 = vld [vmem:[%s3489_s2 + $0x54] sm:$0xff] (!%p223_p2) }
   0xb   : > { %3554 = vst [vmem:[#allocation12_spill] sm:$0xff] (!%p223_p2), %v2551_v12  ;;  %v2556_v13 = vld [vmem:[%s3489_s2 + $0x5c] sm:$0xff] (!%p223_p2)  ;;  %v2561_v14 = vld [vmem:[%s3489_s2 + $0x64] sm:$0xff] (!%p223_p2)  ;;  %v2566_v15 = vld [vmem:[%s3489_s2 + $0x6c] sm:$0xf] (!%p223_p2) }
   0xc   : > { %3555 = vst [vmem:[#allocation13_spill] sm:$0xff] (!%p223_p2), %v2556_v13  ;;  %v2571_v16 = vld [vmem:[%s3490_s3] sm:$0xff] (!%p223_p2)  ;;  %v2576_v17 = vld [vmem:[%s3490_s3 + $0x8] sm:$0xff] (!%p223_p2)  ;;  %v2591_v18 = vld [vmem:[%s3490_s3 + $0x10] sm:$0xff] (!%p223_p2) }
   0xd   : > { %s3619_s22 = smov (!%p257_p3, %s2069_s22), 1  ;;  %3556 = vst [vmem:[#allocation14_spill] sm:$0xff] %v2571_v16  ;;  %3557 = vst [vmem:[#allocation15_spill] sm:$0xff] %v2576_v17  ;;  %v2596_v19 = vld [vmem:[%s3490_s3 + $0x18] sm:$0xff]  ;;  %v2601_v20 = vld [vmem:[%s3491_s4] sm:$0xff] }
   0xe   : > { %s2373_s25 = smul.u32 224, %s3619_s22  ;;  %3558 = vst [vmem:[#allocation16_spill] sm:$0xff] %v2596_v19  ;;  %v2611_v21 = vld [vmem:[%s3491_s4 + $0x8] sm:$0xff]  ;;  %v2616_v22 = vld [vmem:[%s3491_s4 + $0x10] sm:$0xff]  ;;  %v2621_v23 = vld [vmem:[%s3491_s4 + $0x18] sm:$0xff] }
   0xf   : > { %s2374_s8 = smul.u32 80, %s3619_s22  ;;  %v2626_v24 = vld [vmem:[%s3492_s5] sm:$0xff]  ;;  %v2631_v25 = vld [vmem:[%s3492_s5 + $0x8] sm:$0xff]  ;;  %v2636_v26 = vld [vmem:[%s3492_s5 + $0x10] sm:$0xff] }
  0x10   : > { %s2581_s17 = scalar_lea.vmem %s3487_s0, %s2373_s25  ;;  %s2586_s19 = scalar_lea.vmem %s3488_s1, %s2373_s25  ;;  %v2641_v27 = vld [vmem:[%s3492_s5 + $0x18] sm:$0xff] }
  0x11   : > { %s2606_s25 = scalar_lea.vmem %s3493_s6, %s2374_s8 }
  0x12 LB: >> { %v3559_v6 = vld [vmem:[#allocation8_spill] sm:$0xff]  ;;  %v3562_v8 = vld [vmem:[#allocation10_spill] sm:$0xff]  ;;  %v3566_v9 = vld [vmem:[#allocation11_spill] sm:$0xff]  ;;  %s2228_s26 = sshll.u32 %s2437_s24, 5  ;;  %v2439_v28 = vmov 0   ;;  %s2440_s29 = smov 127   ;;  %v2172_v56 = vcombine.low %v2541_v10, %v2561_v14  ;;  %s2437_s24 = sphi %s2643_s24, %s306_s24  }
  0x13   : >> { %v3560_v2 = vld [vmem:[#allocation4_spill] sm:$0xff]  ;;  %v3563_v4 = vld [vmem:[#allocation6_spill] sm:$0xff]  ;;  %v3565_v13 = vld [vmem:[#allocation13_spill] sm:$0xff]  ;;  %515 = vmatprep.subr.bf16.mxu0 %v2439_v28  ;;  %1002 = vmatprep.subr.bf16.mxu1 %v2439_v28  ;;  %s2652_s27 = scalar_lea.vmem %s2581_s17, %s2228_s26  ;;  %s2655_s28 = scalar_lea.vmem %s2586_s19, %s2228_s26  ;;  %vm508_vm0 = vcmask 261120   ;;  %vm503_vm1 = vcmask 785408   ;;  %vm683_vm2 = vcmask 523264  }
  0x14   : >> { %v3561_v12 = vld [vmem:[#allocation12_spill] sm:$0xff]  ;;  %v3564_v0 = vld [vmem:[#allocation2_spill] sm:$0xff]  ;;  %v3567_v5 = vld [vmem:[#allocation7_spill] sm:$0xff]  ;;  %2398 = vset.pattern.permute.xlu1 %v2439_v28  ;;  %2397 = vset.pattern.permute.xlu0 %v2439_v28  ;;  %s2441_s30 = smov 126   ;;  %s2442_s7 = smov 96   ;;  %v2152_v40 = vcombine.low %v3566_v9, %v3565_v13  ;;  %v2164_v50 = vcombine.high %v3566_v9, %v3565_v13  ;;  %v2171_v51 = vcombine.low %v3560_v2, %v3559_v6  ;;  %vm1946_vm3 = vcmask 35840  }
  0x15   : >> { %v3568_v1 = vld [vmem:[#allocation3_spill] sm:$0xff]  ;;  %v2660_v29 = vld [vmem:[%s2652_s27 + $0x10] sm:$0xff]   ;;  %v2663_v30 = vld [vmem:[%s2652_s27 + $0x18] sm:$0xff]   ;;  %v2697_v33 = vcombine.high %v3564_v0, %v3563_v4  ;;  %v2730_v39 = vcombine.high %v3562_v8, %v3561_v12  ;;  %s2443_s9 = smov 64   ;;  %s2444_s10 = smov 32  }
  0x16   : >> { %457 = vrot.lane.b32.xlu0 %v2660_v29, %s2440_s29  ;;  %v2668_v31 = vld [vmem:[%s2655_s28 + $0x10] sm:$0xff]   ;;  %516 = vmatpush1.bf16.msra.mxu0 %v2660_v29  ;;  %v2675_v32 = vld [vmem:[%s2655_s28 + $0x18] sm:$0xff]   ;;  %v2150_v34 = vcombine.low %v3568_v1, %v3567_v5  ;;  %v2706_v35 = vld [vmem:[%s2652_s27] sm:$0xff]   ;;  %v2163_v45 = vcombine.high %v3568_v1, %v3567_v5  ;;  %s2244_s11 = sshll.u32 %s2437_s24, 4  ;;  %s306_s24 = sadd.s32 1, %s2437_s24  }
  0x17   : >> { %517 = vmatprep.subr.bf16.mxu0 %v2439_v28  ;;  %463 = vrot.lane.b32.xlu1 %v2668_v31, %s2440_s29  ;;  %v2710_v36 = vld [vmem:[%s2652_s27 + $0x8] sm:$0xff]   ;;  %v2715_v37 = vld [vmem:[%s2655_s28] sm:$0xff]   ;;  %3569 = vst [vmem:[#allocation17_spill] sm:$0xff] %v2730_v39  ;;  %v2772_v46 = vld [vmem:[%s2652_s27 + $0x30] sm:$0xff]   ;;  %s1945_s12 = scalar_lea.vmem %s2606_s25, %s2244_s11  ;;  %p303_p4 = scmp.ge.s32.totalorder %s306_s24, 5  }
  0x18   : >> { %1003 = vmatpush1.bf16.msra.mxu1 %v2668_v31  ;;  %v2720_v38 = vld [vmem:[%s2655_s28 + $0x8] sm:$0xff]   ;;  %v2740_v41 = vld [vmem:[%s2652_s27 + $0x20] sm:$0xff]   ;;  %v2775_v47 = vld [vmem:[%s2652_s27 + $0x38] sm:$0xff]  }
  0x19   : >> { %1004 = vmatprep.subr.bf16.mxu1 %v2439_v28  ;;  %v2745_v42 = vld [vmem:[%s2652_s27 + $0x28] sm:$0xff]   ;;  %v2750_v43 = vld [vmem:[%s2655_s28 + $0x20] sm:$0xff]   ;;  %3570 = vst [vmem:[#allocation18_spill] sm:$0xff] %v2775_v47  ;;  %v2780_v48 = vld [vmem:[%s2655_s28 + $0x30] sm:$0xff]  }
  0x1a   : >> { %459 = vrot.lane.b32.xlu0 %v2663_v30, %s2440_s29  ;;  %518 = vmatpush1.bf16.msra.mxu0 %v2663_v30  ;;  %v2755_v44 = vld [vmem:[%s2655_s28 + $0x28] sm:$0xff]   ;;  %3571 = vst [vmem:[#allocation19_spill] sm:$0xff] %v2780_v48  ;;  %v2785_v49 = vld [vmem:[%s2655_s28 + $0x38] sm:$0xff]   ;;  %v2804_v52 = vld [vmem:[%s2652_s27 + $0x40] sm:$0xff]  }
  0x1b   : >> { %519 = vmatprep.subr.bf16.mxu0 %v2439_v28  ;;  %465 = vrot.lane.b32.xlu1 %v2675_v32, %s2440_s29  ;;  %3572 = vst [vmem:[#allocation20_spill] sm:$0xff] %v2785_v49  ;;  %v2807_v53 = vld [vmem:[%s2652_s27 + $0x48] sm:$0xff]   ;;  %v2812_v54 = vld [vmem:[%s2655_s28 + $0x40] sm:$0xff]   ;;  %v3593_v19 = vld [vmem:[#allocation16_spill] sm:$0xff] }
  0x1c   : >> { %1005 = vmatpush1.bf16.msra.mxu1 %v2675_v32  ;;  %v2817_v55 = vld [vmem:[%s2655_s28 + $0x48] sm:$0xff]   ;;  %v3591_v16 = vld [vmem:[#allocation14_spill] sm:$0xff]  ;;  %v3594_v7 = vld [vmem:[#allocation9_spill] sm:$0xff] }
  0x1d   : >> { %1006 = vmatprep.subr.bf16.mxu1 %v2439_v28  ;;  %v3592_v17 = vld [vmem:[#allocation15_spill] sm:$0xff]  ;;  %v3595_v3 = vld [vmem:[#allocation5_spill] sm:$0xff] }
  0x1e   : >> { %469 = vrot.lane.b32.xlu0 %v2660_v29, %s2441_s30  ;;  %520 = vmatpush1.bf16.msra.mxu0 %v2668_v31 }
  0x1f   : >> { %521 = vmatprep.subr.bf16.mxu0 %v2439_v28  ;;  %471 = vrot.lane.b32.xlu1 %v2663_v30, %s2441_s30 }
  0x22   : >> { %996 = vrot.lane.b32.xlu0 %v2668_v31, %s2441_s30  ;;  %522 = vmatpush1.bf16.msra.mxu0 %v2675_v32 }
  0x23   : >> { %523 = vmatprep.subr.bf16.mxu0 %v2439_v28  ;;  %998 = vrot.lane.b32.xlu1 %v2675_v32, %s2441_s30 }
  0x26   : >> { %495 = vrot.lane.b32.xlu0 %v2697_v33, %s2442_s7 }
  0x27   : >> { %497 = vrot.lane.b32.xlu1 %v2150_v34, %s2442_s7 }
  0x2a   : >> { %415 = vrot.lane.b32.xlu0 %v2706_v35, %s2440_s29 }
  0x2b   : >> { %417 = vrot.lane.b32.xlu1 %v2710_v36, %s2440_s29 }
  0x2e   : >> { %421 = vrot.lane.b32.xlu0 %v2715_v37, %s2440_s29 }
  0x2f   : >> { %423 = vrot.lane.b32.xlu1 %v2720_v38, %s2440_s29 }
  0x32   : >> { %427 = vrot.lane.b32.xlu0 %v2706_v35, %s2441_s30 }
  0x33   : >> { %429 = vrot.lane.b32.xlu1 %v2710_v36, %s2441_s30 }
  0x36   : >> { %499 = vrot.lane.b32.xlu0 %v2730_v39, %s2442_s7 }
  0x37   : >> { %501 = vrot.lane.b32.xlu1 %v2152_v40, %s2442_s7 }
  0x3a   : >> { %990 = vrot.lane.b32.xlu0 %v2715_v37, %s2441_s30 }
  0x3b   : >> { %992 = vrot.lane.b32.xlu1 %v2720_v38, %s2441_s30 }
  0x3e   : >> { %651 = vrot.lane.b32.xlu0 %v2740_v41, %s2440_s29 }
  0x3f   : >> { %653 = vrot.lane.b32.xlu1 %v2745_v42, %s2440_s29 }
  0x42   : >> { %657 = vrot.lane.b32.xlu0 %v2750_v43, %s2440_s29 }
  0x43   : >> { %659 = vrot.lane.b32.xlu1 %v2755_v44, %s2440_s29 }
  0x46   : >> { %663 = vrot.lane.b32.xlu0 %v2740_v41, %s2441_s30 }
  0x47   : >> { %665 = vrot.lane.b32.xlu1 %v2745_v42, %s2441_s30 }
  0x4a   : >> { %1100 = vrot.lane.b32.xlu0 %v2750_v43, %s2441_s30 }
  0x4b   : >> { %1102 = vrot.lane.b32.xlu1 %v2755_v44, %s2441_s30 }
  0x4e   : >> { %675 = vrot.lane.b32.xlu0 %v2150_v34, %s2443_s9 }
  0x4f   : >> { %677 = vrot.lane.b32.xlu1 %v2163_v45, %s2443_s9 }
  0x52   : >> { %771 = vrot.lane.b32.xlu0 %v2772_v46, %s2440_s29 }
  0x53   : >> { %773 = vrot.lane.b32.xlu1 %v2775_v47, %s2440_s29 }
  0x56   : >> { %777 = vrot.lane.b32.xlu0 %v2780_v48, %s2440_s29 }
  0x57   : >> { %779 = vrot.lane.b32.xlu1 %v2785_v49, %s2440_s29 }
  0x5a   : >> { %783 = vrot.lane.b32.xlu0 %v2772_v46, %s2441_s30 }
  0x5b   : >> { %785 = vrot.lane.b32.xlu1 %v2775_v47, %s2441_s30 }
  0x5e   : >> { %679 = vrot.lane.b32.xlu0 %v2152_v40, %s2443_s9 }
  0x5f   : >> { %681 = vrot.lane.b32.xlu1 %v2164_v50, %s2443_s9 }
  0x62   : >> { %1159 = vrot.lane.b32.xlu0 %v2780_v48, %s2441_s30 }
  0x63   : >> { %1161 = vrot.lane.b32.xlu1 %v2785_v49, %s2441_s30 }
  0x66   : >> { %799 = vrot.lane.b32.xlu0 %v2163_v45, %s2444_s10 }
  0x67   : >> { %801 = vrot.lane.b32.xlu1 %v2171_v51, %s2444_s10 }
  0x6a   : >> { %895 = vrot.lane.b32.xlu0 %v2804_v52, %s2440_s29 }
  0x6b   : >> { %897 = vrot.lane.b32.xlu1 %v2807_v53, %s2440_s29 }
  0x6e   : >> { %901 = vrot.lane.b32.xlu0 %v2812_v54, %s2440_s29 }
  0x6f   : >> { %903 = vrot.lane.b32.xlu1 %v2817_v55, %s2440_s29 }
  0x72   : >> { %907 = vrot.lane.b32.xlu0 %v2804_v52, %s2441_s30 }
  0x73   : >> { %909 = vrot.lane.b32.xlu1 %v2807_v53, %s2441_s30 }
  0x76   : >> { %803 = vrot.lane.b32.xlu0 %v2164_v50, %s2444_s10 }
  0x77   : >> { %805 = vrot.lane.b32.xlu1 %v2172_v56, %s2444_s10 }
  0x7a   : >> { %1218 = vrot.lane.b32.xlu0 %v2812_v54, %s2441_s30 }
  0x7b   : >> { %1220 = vrot.lane.b32.xlu1 %v2817_v55, %s2441_s30 }
  0x88   : >> { %v2833_v57 = vpop.permute.xlu0 %457 }
  0x89   : >> { %524 = vmatpush1.bf16.msra.mxu0 %v2833_v57  ;;  %1007 = vmatpush1.bf16.msra.mxu1 %v2833_v57  ;;  %v2839_v58 = vpop.permute.xlu1 %463 }
  0x8a   : >> { %1008 = vmatprep.subr.bf16.mxu1 %v2439_v28  ;;  %525 = vmatprep.subr.bf16.mxu0 %v2439_v28  ;;  %3573 = vst [vmem:[#allocation21_spill] sm:$0xff] %v2839_v58 }
  0x8c   : >> { %v2841_v59 = vpop.permute.xlu0 %459 }
  0x8d   : >> { %526 = vmatpush1.bf16.msra.mxu0 %v2841_v59  ;;  %1009 = vmatpush1.bf16.msra.mxu1 %v2841_v59  ;;  %v2847_v60 = vpop.permute.xlu1 %465 }
  0x8e   : >> { %527 = vmatprep.subr.bf16.mxu0 %v2439_v28  ;;  %1010 = vmatprep.subr.bf16.mxu1 %v2439_v28  ;;  %3574 = vst [vmem:[#allocation22_spill] sm:$0xff] %v2847_v60 }
  0x90   : >> { %v2849_v61 = vpop.permute.xlu0 %469 }
  0x91   : >> { %3575 = vst [vmem:[#allocation23_spill] sm:$0xff] %v2849_v61  ;;  %528 = vmatpush1.bf16.msra.mxu0 %v2839_v58  ;;  %1011 = vmatpush1.bf16.msra.mxu1 %v2839_v58  ;;  %v2855_v62 = vpop.permute.xlu1 %471 }
  0x92   : >> { %529 = vmatprep.subr.bf16.mxu0 %v2439_v28  ;;  %1012 = vmatprep.subr.bf16.mxu1 %v2439_v28  ;;  %3576 = vst [vmem:[#allocation24_spill] sm:$0xff] %v2855_v62 }
  0x94   : >> { %v2857_v63 = vpop.permute.xlu0 %996 }
  0x95   : >> { %3577 = vst [vmem:[#allocation25_spill] sm:$0xff] %v2857_v63  ;;  %530 = vmatpush1.bf16.msra.mxu0 %v2847_v60  ;;  %1013 = vmatpush1.bf16.msra.mxu1 %v2847_v60  ;;  %v2863_v34 = vpop.permute.xlu1 %998 }
  0x96   : >> { %531 = vmatprep.subr.bf16.mxu0 %v2439_v28  ;;  %1014 = vmatprep.subr.bf16.mxu1 %v2439_v28  ;;  %3578 = vst [vmem:[#allocation26_spill] sm:$0xff] %v2863_v34 }
  0x98   : >> { %v496_v40 = vpop.permute.xlu0 %495 }
  0x99   : >> { %532 = vmatpush1.bf16.msra.mxu0 %v2849_v61  ;;  %1015 = vmatpush1.bf16.msra.mxu1 %v2849_v61  ;;  %v2869_v45 = vpop.permute.xlu1 %497 }
  0x9a   : >> { %533 = vmatprep.subr.bf16.mxu0 %v2439_v28  ;;  %1016 = vmatprep.subr.bf16.mxu1 %v2439_v28  ;;  %v2879_v51 = vsel %vm503_vm1, %v496_v40, %v2869_v45 }
  0x9b   : >> { %2153 = vmatprep.mubr.msk.bf16.mxu0 %vm508_vm0, %v2869_v45  ;;  %2185 = vmatprep.mubr.msk.bf16.mxu1 %vm508_vm0, %v2869_v45 }
  0x9c   : >> { %v416_v50 = vpop.permute.xlu0 %415 }
  0x9d   : >> { %534 = vmatpush1.bf16.msra.mxu0 %v2855_v62  ;;  %1017 = vmatpush1.bf16.msra.mxu1 %v2855_v62  ;;  %v418_v56 = vpop.permute.xlu1 %417 }
  0x9e   : >> { %578 = vmatprep.subr.bf16.mxu0 %v2439_v28  ;;  %1018 = vmatprep.subr.bf16.mxu1 %v2439_v28 }
  0xa0   : >> { %548 = vmatmul.mubr.bf16.vlgmr.msra.gmra.mrb[0].mxu0 %v2879_v51  ;;  %v422_v1 = vpop.permute.xlu0 %421 }
  0xa1   : >> { %1019 = vmatpush1.bf16.msra.mxu1 %v2857_v63  ;;  %579 = vmatpush1.bf16.msra.mxu0 %v2706_v35  ;;  %v424_v5 = vpop.permute.xlu1 %423 }
  0xa2   : >> { %580 = vmatprep.subr.bf16.mxu0 %v2439_v28  ;;  %1020 = vmatprep.subr.bf16.mxu1 %v2439_v28 }
  0xa4   : >> { %v428_v9 = vpop.permute.xlu0 %427 }
  0xa5   : >> { %1021 = vmatpush1.bf16.msra.mxu1 %v2863_v34  ;;  %581 = vmatpush1.bf16.msra.mxu0 %v2710_v36  ;;  %v430_v40 = vpop.permute.xlu1 %429 }
  0xa6   : >> { %582 = vmatprep.subr.bf16.mxu0 %v2439_v28  ;;  %1051 = vmatprep.subr.bf16.mxu1 %v2439_v28 }
  0xa8   : >> { %1035 = vmatmul.mubr.bf16.vlgmr.msra.gmra.mrb[0].mxu1 %v2879_v51  ;;  %v500_v13 = vpop.permute.xlu0 %499 }
  0xa9   : >> { %583 = vmatpush1.bf16.msra.mxu0 %v2715_v37  ;;  %1052 = vmatpush1.bf16.msra.mxu1 %v2715_v37  ;;  %v2897_v35 = vpop.permute.xlu1 %501 }
  0xaa   : >> { %584 = vmatprep.subr.bf16.mxu0 %v2439_v28  ;;  %1053 = vmatprep.subr.bf16.mxu1 %v2439_v28  ;;  %v2901_v36 = vsel %vm503_vm1, %v500_v13, %v2897_v35 }
  0xab   : >> { %2154 = vmatprep.mubr.msk.bf16.mxu0 %vm508_vm0, %v2897_v35  ;;  %2186 = vmatprep.mubr.msk.bf16.mxu1 %vm508_vm0, %v2897_v35 }
  0xac   : >> { %556 = vmatmul.mubr.bf16.gmra.mrb[4].mxu0 %v2901_v36 }
  0xad   : >> { %585 = vmatpush1.bf16.msra.mxu0 %v2720_v38  ;;  %1054 = vmatpush1.bf16.msra.mxu1 %v2720_v38  ;;  %v993_v13 = vpop.permute.xlu1 %992 }
  0xae   : >> { %1055 = vmatprep.subr.bf16.mxu1 %v2439_v28  ;;  %586 = vmatprep.subr.bf16.mxu0 %v2439_v28 }
  0xaf   : >> { %2157 = vmatprep.mubr.msk.bf16.mxu0 %vm508_vm0, %v2697_v33 }
  0xb0   : >> { %1043 = vmatmul.mubr.bf16.gmra.mrb[4].mxu1 %v2901_v36 }
  0xb1   : >> { %587 = vmatpush1.bf16.msra.mxu0 %v416_v50  ;;  %1056 = vmatpush1.bf16.msra.mxu1 %v416_v50  ;;  %v2923_v37 = vpop.permute.xlu1 %653 }
  0xb2   : >> { %588 = vmatprep.subr.bf16.mxu0 %v2439_v28  ;;  %1057 = vmatprep.subr.bf16.mxu1 %v2439_v28 }
  0xb3   : >> { %2187 = vmatprep.mubr.msk.bf16.mxu1 %vm508_vm0, %v2697_v33 }
  0xb5   : >> { %589 = vmatpush1.bf16.msra.mxu0 %v418_v56  ;;  %1058 = vmatpush1.bf16.msra.mxu1 %v418_v56  ;;  %v2927_v38 = vpop.permute.xlu1 %659 }
  0xb6   : >> { %590 = vmatprep.subr.bf16.mxu0 %v2439_v28  ;;  %1059 = vmatprep.subr.bf16.mxu1 %v2439_v28 }
  0xb9   : >> { %591 = vmatpush1.bf16.msra.mxu0 %v422_v1  ;;  %1060 = vmatpush1.bf16.msra.mxu1 %v422_v1  ;;  %v2933_v1 = vcombine.low %v3564_v0, %v3563_v4  ;;  %v2935_v50 = vpop.permute.xlu1 %665 }
  0xba   : >> { %592 = vmatprep.subr.bf16.mxu0 %v2439_v28  ;;  %1061 = vmatprep.subr.bf16.mxu1 %v2439_v28 }
  0xbb   : >> { %3579 = vst [vmem:[#allocation27_spill] sm:$0xff] %v2933_v1 }
  0xbd   : >> { %593 = vmatpush1.bf16.msra.mxu0 %v424_v5  ;;  %1062 = vmatpush1.bf16.msra.mxu1 %v424_v5  ;;  %v991_v5 = vpop.permute.xlu0 %990  ;;  %v2945_v56 = vpop.permute.xlu1 %1102 }
  0xbe   : >> { %594 = vmatprep.subr.bf16.mxu0 %v2439_v28  ;;  %1063 = vmatprep.subr.bf16.mxu1 %v2439_v28 }
  0xc1   : >> { %595 = vmatpush1.bf16.msra.mxu0 %v428_v9  ;;  %1064 = vmatpush1.bf16.msra.mxu1 %v428_v9  ;;  %v2943_v9 = vpop.permute.xlu0 %651  ;;  %v2960_v0 = vpop.permute.xlu1 %677 }
  0xc2   : >> { %596 = vmatprep.subr.bf16.mxu0 %v2439_v28  ;;  %1065 = vmatprep.subr.bf16.mxu1 %v2439_v28  ;;  %3581 = vst [vmem:[#allocation29_spill] sm:$0xff] %v2960_v0 }
  0xc5   : >> { %597 = vmatpush1.bf16.msra.mxu0 %v430_v40  ;;  %1066 = vmatpush1.bf16.msra.mxu1 %v430_v40  ;;  %v2951_v40 = vcombine.low %v3562_v8, %v3561_v12  ;;  %v2983_v8 = vpop.permute.xlu1 %773 }
  0xc6   : >> { %1067 = vmatprep.subr.bf16.mxu1 %v2439_v28  ;;  %694 = vmatprep.subr.bf16.mxu0 %v2439_v28  ;;  %3582 = vst [vmem:[#allocation30_spill] sm:$0xff] %v2983_v8 }
  0xc7   : >> { %3580 = vst [vmem:[#allocation28_spill] sm:$0xff] %v2951_v40 }
  0xc8   : >> { %611 = vmatmul.mubr.bf16.vlgmr.msra.gmra.mrb[0].mxu0 %v2933_v1 }
  0xc9   : >> { %695 = vmatpush1.bf16.msra.mxu0 %v2740_v41  ;;  %1068 = vmatpush1.bf16.msra.mxu1 %v991_v5  ;;  %v2956_v5 = vpop.permute.xlu0 %657 }
  0xca   : >> { %696 = vmatprep.subr.bf16.mxu0 %v2439_v28  ;;  %1069 = vmatprep.subr.bf16.mxu1 %v2439_v28 }
  0xcb   : >> { %2158 = vmatprep.mubr.msk.bf16.mxu0 %vm508_vm0, %v2730_v39 }
  0xcd   : >> { %697 = vmatpush1.bf16.msra.mxu0 %v2745_v42  ;;  %1070 = vmatpush1.bf16.msra.mxu1 %v993_v13  ;;  %v2966_v13 = vpop.permute.xlu0 %663 }
  0xce   : >> { %698 = vmatprep.subr.bf16.mxu0 %v2439_v28  ;;  %1106 = vmatprep.subr.bf16.mxu1 %v2439_v28 }
  0xd0   : >> { %1084 = vmatmul.mubr.bf16.vlgmr.msra.gmra.mrb[0].mxu1 %v2933_v1  ;;  %619 = vmatmul.mubr.bf16.gmra.mrb[4].mxu0 %v2951_v40 }
  0xd1   : >> { %699 = vmatpush1.bf16.msra.mxu0 %v2750_v43  ;;  %1107 = vmatpush1.bf16.msra.mxu1 %v2750_v43  ;;  %v2976_v4 = vpop.permute.xlu0 %1100 }
  0xd2   : >> { %700 = vmatprep.subr.bf16.mxu0 %v2439_v28  ;;  %1108 = vmatprep.subr.bf16.mxu1 %v2439_v28 }
  0xd3   : >> { %2165 = vmatprep.mubr.msk.bf16.mxu0 %vm508_vm0, %v2960_v0  ;;  %2188 = vmatprep.mubr.msk.bf16.mxu1 %vm508_vm0, %v2730_v39 }
  0xd5   : >> { %701 = vmatpush1.bf16.msra.mxu0 %v2755_v44  ;;  %1109 = vmatpush1.bf16.msra.mxu1 %v2755_v44  ;;  %v676_v12 = vpop.permute.xlu0 %675 }
  0xd6   : >> { %1110 = vmatprep.subr.bf16.mxu1 %v2439_v28  ;;  %702 = vmatprep.subr.bf16.mxu0 %v2439_v28  ;;  %v3019_v61 = vsel %vm683_vm2, %v676_v12, %v2960_v0 }
  0xd7   : >> { %3587 = vst [vmem:[#allocation35_spill] sm:$0xff] %v3019_v61 }
  0xd8   : >> { %1092 = vmatmul.mubr.bf16.gmra.mrb[4].mxu1 %v2951_v40  ;;  %v2991_v40 = vpop.permute.xlu1 %779 }
  0xd9   : >> { %703 = vmatpush1.bf16.msra.mxu0 %v2943_v9  ;;  %1111 = vmatpush1.bf16.msra.mxu1 %v2943_v9  ;;  %3583 = vst [vmem:[#allocation31_spill] sm:$0xff] %v2991_v40  ;;  %v2997_v34 = vpop.permute.xlu0 %771 }
  0xda   : >> { %704 = vmatprep.subr.bf16.mxu0 %v2439_v28  ;;  %1112 = vmatprep.subr.bf16.mxu1 %v2439_v28  ;;  %3584 = vst [vmem:[#allocation32_spill] sm:$0xff] %v2997_v34 }
  0xdb   : >> { %2189 = vmatprep.mubr.msk.bf16.mxu1 %vm508_vm0, %v2960_v0 }
  0xdc   : >> { %v3005_v39 = vpop.permute.xlu1 %785 }
  0xdd   : >> { %705 = vmatpush1.bf16.msra.mxu0 %v2923_v37  ;;  %1113 = vmatpush1.bf16.msra.mxu1 %v2923_v37  ;;  %v3003_v63 = vpop.permute.xlu0 %777 }
  0xde   : >> { %1114 = vmatprep.subr.bf16.mxu1 %v2439_v28  ;;  %706 = vmatprep.subr.bf16.mxu0 %v2439_v28  ;;  %3585 = vst [vmem:[#allocation33_spill] sm:$0xff] %v3003_v63 }
  0xe0   : >> { %v3013_v62 = vpop.permute.xlu1 %681 }
  0xe1   : >> { %707 = vmatpush1.bf16.msra.mxu0 %v2956_v5  ;;  %1115 = vmatpush1.bf16.msra.mxu1 %v2956_v5  ;;  %v3011_v1 = vpop.permute.xlu0 %783  ;;  %3586 = vst [vmem:[#allocation34_spill] sm:$0xff] %v3013_v62 }
  0xe2   : >> { %708 = vmatprep.subr.bf16.mxu0 %v2439_v28  ;;  %1116 = vmatprep.subr.bf16.mxu1 %v2439_v28 }
  0xe4   : >> { %v3028_v58 = vpop.permute.xlu1 %1161 }
  0xe5   : >> { %709 = vmatpush1.bf16.msra.mxu0 %v2927_v38  ;;  %1117 = vmatpush1.bf16.msra.mxu1 %v2927_v38  ;;  %v680_v60 = vpop.permute.xlu0 %679 }
  0xe6   : >> { %710 = vmatprep.subr.bf16.mxu0 %v2439_v28  ;;  %1118 = vmatprep.subr.bf16.mxu1 %v2439_v28  ;;  %v3036_v12 = vsel %vm683_vm2, %v680_v60, %v3013_v62  ;;  %v3055_v60 = vld [vmem:[%s2652_s27 + $0x50] sm:$0xff]  }
  0xe7   : >> { %3588 = vst [vmem:[#allocation36_spill] sm:$0xff] %v3036_v12  ;;  %3589 = vst [vmem:[#allocation37_spill] sm:$0xff] %v3055_v60  ;;  %1505 = vrot.lane.b32.xlu0 %v3055_v60, %s2440_s29 }
  0xe8   : >> { %v3042_v0 = vpop.permute.xlu1 %801 }
  0xe9   : >> { %711 = vmatpush1.bf16.msra.mxu0 %v2966_v13  ;;  %1119 = vmatpush1.bf16.msra.mxu1 %v2966_v13 }
  0xea   : >> { %712 = vmatprep.subr.bf16.mxu0 %v2439_v28  ;;  %1120 = vmatprep.subr.bf16.mxu1 %v2439_v28 }
  0xed   : >> { %713 = vmatpush1.bf16.msra.mxu0 %v2935_v50  ;;  %1121 = vmatpush1.bf16.msra.mxu1 %v2935_v50 }
  0xee   : >> { %818 = vmatprep.subr.bf16.mxu0 %v2439_v28  ;;  %1122 = vmatprep.subr.bf16.mxu1 %v2439_v28 }
  0xf0   : >> { %727 = vmatmul.mubr.bf16.vlgmr.msra.gmra.mrb[0].mxu0 %v3019_v61 }
  0xf1   : >> { %819 = vmatpush1.bf16.msra.mxu0 %v2772_v46  ;;  %1123 = vmatpush1.bf16.msra.mxu1 %v2976_v4 }
  0xf2   : >> { %820 = vmatprep.subr.bf16.mxu0 %v2439_v28  ;;  %1124 = vmatprep.subr.bf16.mxu1 %v2439_v28 }
  0xf3   : >> { %2166 = vmatprep.mubr.msk.bf16.mxu0 %vm508_vm0, %v3013_v62 }
  0xf5   : >> { %821 = vmatpush1.bf16.msra.mxu0 %v2775_v47  ;;  %1125 = vmatpush1.bf16.msra.mxu1 %v2945_v56 }
  0xf6   : >> { %822 = vmatprep.subr.bf16.mxu0 %v2439_v28  ;;  %1165 = vmatprep.subr.bf16.mxu1 %v2439_v28 }
  0xf8   : >> { %1139 = vmatmul.mubr.bf16.vlgmr.msra.gmra.mrb[0].mxu1 %v3019_v61  ;;  %735 = vmatmul.mubr.bf16.gmra.mrb[4].mxu0 %v3036_v12  ;;  %v3061_v61 = vpop.permute.xlu0 %1159 }
  0xf9   : >> { %823 = vmatpush1.bf16.msra.mxu0 %v2780_v48  ;;  %1166 = vmatpush1.bf16.msra.mxu1 %v2780_v48  ;;  %v3089_v48 = vld [vmem:[%s2655_s28 + $0x58] sm:$0xff]  }
  0xfa   : >> { %824 = vmatprep.subr.bf16.mxu0 %v2439_v28  ;;  %1167 = vmatprep.subr.bf16.mxu1 %v2439_v28 }
  0xfb   : >> { %2190 = vmatprep.mubr.msk.bf16.mxu1 %vm508_vm0, %v3013_v62  ;;  %2173 = vmatprep.mubr.msk.bf16.mxu0 %vm508_vm0, %v3042_v0  ;;  %v3067_v62 = vld [vmem:[%s2652_s27 + $0x58] sm:$0xff]  }
  0xfc   : >> { %1507 = vrot.lane.b32.xlu1 %v3067_v62, %s2440_s29 }
  0xfd   : >> { %825 = vmatpush1.bf16.msra.mxu0 %v2785_v49  ;;  %1168 = vmatpush1.bf16.msra.mxu1 %v2785_v49  ;;  %v3082_v49 = vpop.permute.xlu1 %897 }
  0xfe   : >> { %1169 = vmatprep.subr.bf16.mxu1 %v2439_v28  ;;  %826 = vmatprep.subr.bf16.mxu0 %v2439_v28 }
 0x100   : >> { %1147 = vmatmul.mubr.bf16.gmra.mrb[4].mxu1 %v3036_v12  ;;  %v3078_v12 = vld [vmem:[%s2655_s28 + $0x50] sm:$0xff]   ;;  %1513 = vrot.lane.b32.xlu1 %v3089_v48, %s2440_s29 }
 0x101   : >> { %827 = vmatpush1.bf16.msra.mxu0 %v2997_v34  ;;  %1170 = vmatpush1.bf16.msra.mxu1 %v2997_v34  ;;  %3590 = vst [vmem:[#allocation38_spill] sm:$0xff] %v3078_v12  ;;  %v800_v34 = vpop.permute.xlu0 %799  ;;  %v3099_v47 = vpop.permute.xlu1 %903 }
 0x102   : >> { %828 = vmatprep.subr.bf16.mxu0 %v2439_v28  ;;  %1171 = vmatprep.subr.bf16.mxu1 %v2439_v28 }
 0x103   : >> { %2191 = vmatprep.mubr.msk.bf16.mxu1 %vm508_vm0, %v3042_v0  ;;  %1511 = vrot.lane.b32.xlu0 %v3078_v12, %s2440_s29 }
 0x104   : >> { %1519 = vrot.lane.b32.xlu1 %v3067_v62, %s2441_s30 }
 0x105   : >> { %829 = vmatpush1.bf16.msra.mxu0 %v2983_v8  ;;  %1172 = vmatpush1.bf16.msra.mxu1 %v2983_v8  ;;  %v3093_v8 = vpop.permute.xlu0 %895 }
 0x106   : >> { %830 = vmatprep.subr.bf16.mxu0 %v2439_v28  ;;  %1173 = vmatprep.subr.bf16.mxu1 %v2439_v28 }
 0x107   : >> { %1517 = vrot.lane.b32.xlu0 %v3055_v60, %s2441_s30  ;;  %v3115_v60 = vpop.permute.xlu1 %909 }
 0x108   : >> { %1782 = vrot.lane.b32.xlu1 %v3089_v48, %s2441_s30 }
 0x109   : >> { %831 = vmatpush1.bf16.msra.mxu0 %v3003_v63  ;;  %1174 = vmatpush1.bf16.msra.mxu1 %v3003_v63  ;;  %v3105_v63 = vpop.permute.xlu0 %901 }
 0x10a   : >> { %832 = vmatprep.subr.bf16.mxu0 %v2439_v28  ;;  %1175 = vmatprep.subr.bf16.mxu1 %v2439_v28 }
 0x10b   : >> { %1780 = vrot.lane.b32.xlu0 %v3078_v12, %s2441_s30  ;;  %v3126_v12 = vsel %vm508_vm0, %v800_v34, %v3042_v0 }
 0x10c   : >> { %1858 = vperm.xlu1 %2398, %v3592_v17  }
 0x10d   : >> { %833 = vmatpush1.bf16.msra.mxu0 %v2991_v40  ;;  %1176 = vmatpush1.bf16.msra.mxu1 %v2991_v40  ;;  %v3120_v40 = vpop.permute.xlu0 %907 }
 0x10e   : >> { %834 = vmatprep.subr.bf16.mxu0 %v2439_v28  ;;  %1177 = vmatprep.subr.bf16.mxu1 %v2439_v28 }
 0x10f   : >> { %1853 = vperm.xlu0 %2397, %v3591_v16   ;;  %v3133_v16 = vpop.permute.xlu1 %805 }
 0x110   : >> { %1863 = vperm.xlu1 %2398, %v2591_v18  }
 0x111   : >> { %835 = vmatpush1.bf16.msra.mxu0 %v3011_v1  ;;  %1178 = vmatpush1.bf16.msra.mxu1 %v3011_v1  ;;  %v804_v34 = vpop.permute.xlu0 %803 }
 0x112   : >> { %836 = vmatprep.subr.bf16.mxu0 %v2439_v28  ;;  %1179 = vmatprep.subr.bf16.mxu1 %v2439_v28  ;;  %v3147_v17 = vsel %vm508_vm0, %v804_v34, %v3133_v16  ;;  %v3201_v34 = vcombine.high %v3560_v2, %v3559_v6  ;;  %v3224_v6 = vcombine.high %v2541_v10, %v2561_v14 }
 0x113   : >> { %1868 = vperm.xlu0 %2397, %v3593_v19   ;;  %v3153_v19 = vcombine.low %v3595_v3, %v3594_v7  ;;  %v3211_v7 = vcombine.low %v2546_v11, %v2566_v15  ;;  %v3216_v2 = vpop.permute.xlu1 %1220 }
 0x114   : >> { %1881 = vperm.xlu1 %2398, %v2601_v20  }
 0x115   : >> { %837 = vmatpush1.bf16.msra.mxu0 %v3005_v39  ;;  %1180 = vmatpush1.bf16.msra.mxu1 %v3005_v39  ;;  %v3206_v3 = vpop.permute.xlu0 %1218 }
 0x116   : >> { %937 = vmatprep.subr.bf16.mxu0 %v2439_v28  ;;  %1181 = vmatprep.subr.bf16.mxu1 %v2439_v28 }
 0x117   : >> { %1886 = vperm.xlu0 %2397, %v2611_v21  }
 0x118   : >> { %851 = vmatmul.mubr.bf16.vlgmr.msra.gmra.mrb[0].mxu0 %v3126_v12  ;;  %1891 = vperm.xlu1 %2398, %v2616_v22  }
 0x119   : >> { %938 = vmatpush1.bf16.msra.mxu0 %v2804_v52  ;;  %1182 = vmatpush1.bf16.msra.mxu1 %v3061_v61 }
 0x11a   : >> { %939 = vmatprep.subr.bf16.mxu0 %v2439_v28  ;;  %1183 = vmatprep.subr.bf16.mxu1 %v2439_v28 }
 0x11b   : >> { %2174 = vmatprep.mubr.msk.bf16.mxu0 %vm508_vm0, %v3133_v16  ;;  %1896 = vperm.xlu0 %2397, %v2621_v23  }
 0x11c   : >> { %1905 = vperm.xlu1 %2398, %v2626_v24  }
 0x11d   : >> { %940 = vmatpush1.bf16.msra.mxu0 %v2807_v53  ;;  %1184 = vmatpush1.bf16.msra.mxu1 %v3028_v58 }
 0x11e   : >> { %941 = vmatprep.subr.bf16.mxu0 %v2439_v28  ;;  %1224 = vmatprep.subr.bf16.mxu1 %v2439_v28 }
 0x11f   : >> { %1910 = vperm.xlu0 %2397, %v2631_v25  }
 0x120   : >> { %1198 = vmatmul.mubr.bf16.vlgmr.msra.gmra.mrb[0].mxu1 %v3126_v12  ;;  %859 = vmatmul.mubr.bf16.gmra.mrb[4].mxu0 %v3147_v17 }
 0x121   : >> { %942 = vmatpush1.bf16.msra.mxu0 %v2812_v54  ;;  %1225 = vmatpush1.bf16.msra.mxu1 %v2812_v54 }
 0x122   : >> { %943 = vmatprep.subr.bf16.mxu0 %v2439_v28  ;;  %1226 = vmatprep.subr.bf16.mxu1 %v2439_v28 }
 0x123   : >> { %2192 = vmatprep.mubr.msk.bf16.mxu1 %vm508_vm0, %v3133_v16  ;;  %2183 = vmatprep.mubr.msk.bf16.mxu0 %vm508_vm0, %v3153_v19 }
 0x124   : >> { %1915 = vperm.xlu1 %2398, %v2636_v26   ;;  %1920 = vperm.xlu0 %2397, %v2641_v27  }
 0x125   : >> { %944 = vmatpush1.bf16.msra.mxu0 %v2817_v55  ;;  %1227 = vmatpush1.bf16.msra.mxu1 %v2817_v55 }
 0x126   : >> { %1228 = vmatprep.subr.bf16.mxu1 %v2439_v28  ;;  %945 = vmatprep.subr.bf16.mxu0 %v2439_v28 }
 0x128   : >> { %1206 = vmatmul.mubr.bf16.gmra.mrb[4].mxu1 %v3147_v17 }
 0x129   : >> { %946 = vmatpush1.bf16.msra.mxu0 %v3093_v8  ;;  %1229 = vmatpush1.bf16.msra.mxu1 %v3093_v8 }
 0x12a   : >> { %947 = vmatprep.subr.bf16.mxu0 %v2439_v28  ;;  %1230 = vmatprep.subr.bf16.mxu1 %v2439_v28 }
 0x12b   : >> { %2193 = vmatprep.mubr.msk.bf16.mxu1 %vm508_vm0, %v3153_v19 }
 0x12d   : >> { %948 = vmatpush1.bf16.msra.mxu0 %v3082_v49  ;;  %1231 = vmatpush1.bf16.msra.mxu1 %v3082_v49 }
 0x12e   : >> { %949 = vmatprep.subr.bf16.mxu0 %v2439_v28  ;;  %1232 = vmatprep.subr.bf16.mxu1 %v2439_v28 }
 0x131   : >> { %950 = vmatpush1.bf16.msra.mxu0 %v3105_v63  ;;  %1233 = vmatpush1.bf16.msra.mxu1 %v3105_v63 }
 0x132   : >> { %951 = vmatprep.subr.bf16.mxu0 %v2439_v28  ;;  %1234 = vmatprep.subr.bf16.mxu1 %v2439_v28 }
 0x135   : >> { %952 = vmatpush1.bf16.msra.mxu0 %v3099_v47  ;;  %1235 = vmatpush1.bf16.msra.mxu1 %v3099_v47 }
 0x136   : >> { %953 = vmatprep.subr.bf16.mxu0 %v2439_v28  ;;  %1236 = vmatprep.subr.bf16.mxu1 %v2439_v28 }
 0x139   : >> { %954 = vmatpush1.bf16.msra.mxu0 %v3120_v40  ;;  %1237 = vmatpush1.bf16.msra.mxu1 %v3120_v40 }
 0x13a   : >> { %955 = vmatprep.subr.bf16.mxu0 %v2439_v28  ;;  %1238 = vmatprep.subr.bf16.mxu1 %v2439_v28 }
 0x13d   : >> { %956 = vmatpush1.bf16.msra.mxu0 %v3115_v60  ;;  %1239 = vmatpush1.bf16.msra.mxu1 %v3115_v60 }
 0x13e   : >> { %1240 = vmatprep.subr.bf16.mxu1 %v2439_v28  ;;  %1277 = vmatprep.subr.bf16.mxu0 %v2439_v28 }
 0x140   : >> { %970 = vmatmul.mubr.bf16.vlgmr.msra.gmra.mrb[0].mxu0 %v3201_v34 }
 0x141   : >> { %1241 = vmatpush1.bf16.msra.mxu1 %v3206_v3  ;;  %1278 = vmatpush1.bf16.msra.mxu0 %v2740_v41  ;;  %v3602_v41 = vld [vmem:[#allocation25_spill] sm:$0xff] }
 0x142   : >> { %1242 = vmatprep.subr.bf16.mxu1 %v2439_v28  ;;  %1279 = vmatprep.subr.bf16.mxu0 %v2439_v28 }
 0x143   : >> { %2184 = vmatprep.mubr.msk.bf16.mxu0 %vm508_vm0, %v3211_v7 }
 0x145   : >> { %1243 = vmatpush1.bf16.msra.mxu1 %v3216_v2  ;;  %1280 = vmatpush1.bf16.msra.mxu0 %v2745_v42  ;;  %v3603_v42 = vld [vmem:[#allocation18_spill] sm:$0xff] }
 0x146   : >> { %1281 = vmatprep.subr.bf16.mxu0 %v2439_v28  ;;  %1576 = vmatprep.subr.bf16.mxu1 %v2439_v28 }
 0x148   : >> { %978 = vmatmul.mubr.bf16.gmra.mrb[4].mxu0 %v3224_v6  ;;  %1257 = vmatmul.mubr.bf16.vlgmr.msra.gmra.mrb[0].mxu1 %v3201_v34 }
 0x149   : >> { %1282 = vmatpush1.bf16.msra.mxu0 %v2750_v43  ;;  %2195 = vmatprep.mubr.msk.bf16.mxu0 %vm508_vm0, %v2869_v45 }
 0x14a   : >> { %1577 = vmatpush1.bf16.msra.mxu1 %v2750_v43  ;;  %1283 = vmatprep.subr.bf16.mxu0 %v2439_v28  ;;  %v3604_v43 = vld [vmem:[#allocation26_spill] sm:$0xff] }
 0x14b   : >> { %1578 = vmatprep.subr.bf16.mxu1 %v2439_v28  ;;  %2194 = vmatprep.mubr.msk.bf16.mxu1 %vm508_vm0, %v3211_v7 }
 0x14d   : >> { %1284 = vmatpush1.bf16.msra.mxu0 %v2755_v44 }
 0x14e   : >> { %1579 = vmatpush1.bf16.msra.mxu1 %v2755_v44  ;;  %1285 = vmatprep.subr.bf16.mxu0 %v2439_v28  ;;  %v3605_v44 = vld [vmem:[#allocation28_spill] sm:$0xff] }
 0x14f   : >> { %1580 = vmatprep.subr.bf16.mxu1 %v2439_v28 }
 0x150   : >> { %1265 = vmatmul.mubr.bf16.gmra.mrb[4].mxu1 %v3224_v6 }
 0x151   : >> { %1286 = vmatpush1.bf16.msra.mxu0 %v2943_v9  ;;  %2209 = vmatprep.mubr.msk.bf16.mxu1 %vm508_vm0, %v2869_v45  ;;  %v3609_v45 = vld [vmem:[#allocation32_spill] sm:$0xff] }
 0x152   : >> { %1581 = vmatpush1.bf16.msra.mxu1 %v2943_v9  ;;  %1287 = vmatprep.subr.bf16.mxu0 %v2439_v28 }
 0x153   : >> { %1582 = vmatprep.subr.bf16.mxu1 %v2439_v28 }
 0x155   : >> { %1288 = vmatpush1.bf16.msra.mxu0 %v2923_v37 }
 0x156   : >> { %1583 = vmatpush1.bf16.msra.mxu1 %v2923_v37  ;;  %1289 = vmatprep.subr.bf16.mxu0 %v2439_v28  ;;  %v3613_v37 = vld [vmem:[#allocation35_spill] sm:$0xff] }
 0x157   : >> { %1584 = vmatprep.subr.bf16.mxu1 %v2439_v28 }
 0x159   : >> { %1290 = vmatpush1.bf16.msra.mxu0 %v2956_v5 }
 0x15a   : >> { %1585 = vmatpush1.bf16.msra.mxu1 %v2956_v5  ;;  %1291 = vmatprep.subr.bf16.mxu0 %v2439_v28 }
 0x15b   : >> { %1586 = vmatprep.subr.bf16.mxu1 %v2439_v28 }
 0x15d   : >> { %1292 = vmatpush1.bf16.msra.mxu0 %v2927_v38 }
 0x15e   : >> { %1587 = vmatpush1.bf16.msra.mxu1 %v2927_v38  ;;  %1293 = vmatprep.subr.bf16.mxu0 %v2439_v28  ;;  %v3614_v38 = vld [vmem:[#allocation34_spill] sm:$0xff] }
 0x15f   : >> { %1588 = vmatprep.subr.bf16.mxu1 %v2439_v28 }
 0x161   : >> { %1294 = vmatpush1.bf16.msra.mxu0 %v2966_v13 }
 0x162   : >> { %1589 = vmatpush1.bf16.msra.mxu1 %v2966_v13  ;;  %1295 = vmatprep.subr.bf16.mxu0 %v2439_v28 }
 0x163   : >> { %1590 = vmatprep.subr.bf16.mxu1 %v2439_v28 }
 0x165   : >> { %1296 = vmatpush1.bf16.msra.mxu0 %v2935_v50 }
 0x166   : >> { %1591 = vmatpush1.bf16.msra.mxu1 %v2935_v50  ;;  %1326 = vmatprep.subr.bf16.mxu0 %v2439_v28 }
 0x167   : >> { %1592 = vmatprep.subr.bf16.mxu1 %v2439_v28 }
 0x168   : >> { %1310 = vmatmul.mubr.bf16.vlgmr.msra.gmra.mrb[8].mxu0 %v2879_v51 }
 0x169   : >> { %2196 = vmatprep.mubr.msk.bf16.mxu0 %vm508_vm0, %v2897_v35  ;;  %1327 = vmatpush1.bf16.msra.mxu0 %v2660_v29  ;;  %v3597_v29 = vld [vmem:[#allocation22_spill] sm:$0xff] }
 0x16a   : >> { %1593 = vmatpush1.bf16.msra.mxu1 %v2976_v4  ;;  %1328 = vmatprep.subr.bf16.mxu0 %v2439_v28  ;;  %v3596_v4 = vld [vmem:[#allocation21_spill] sm:$0xff] }
 0x16b   : >> { %1594 = vmatprep.subr.bf16.mxu1 %v2439_v28 }
 0x16d   : >> { %1329 = vmatpush1.bf16.msra.mxu0 %v2663_v30  ;;  %v3598_v30 = vld [vmem:[#allocation23_spill] sm:$0xff] }
 0x16e   : >> { %1595 = vmatpush1.bf16.msra.mxu1 %v2945_v56  ;;  %1330 = vmatprep.subr.bf16.mxu0 %v2439_v28 }
 0x16f   : >> { %1625 = vmatprep.subr.bf16.mxu1 %v2439_v28 }
 0x170   : >> { %1318 = vmatmul.mubr.bf16.gmra.mrb[12].mxu0 %v2901_v36 }
 0x171   : >> { %1609 = vmatmul.mubr.bf16.vlgmr.msra.gmra.mrb[8].mxu1 %v2879_v51  ;;  %1331 = vmatpush1.bf16.msra.mxu0 %v2668_v31  ;;  %v3610_v51 = vld [vmem:[#allocation30_spill] sm:$0xff] }
 0x172   : >> { %2210 = vmatprep.mubr.msk.bf16.mxu1 %vm508_vm0, %v2897_v35  ;;  %1626 = vmatpush1.bf16.msra.mxu1 %v2668_v31  ;;  %v3599_v31 = vld [vmem:[#allocation24_spill] sm:$0xff]  ;;  %v3611_v35 = vld [vmem:[#allocation33_spill] sm:$0xff] }
 0x173   : >> { %1332 = vmatprep.subr.bf16.mxu0 %v2439_v28  ;;  %1627 = vmatprep.subr.bf16.mxu1 %v2439_v28 }
 0x174   : >> { %2197 = vmatprep.mubr.msk.bf16.mxu0 %vm508_vm0, %v2697_v33 }
 0x175   : >> { %1333 = vmatpush1.bf16.msra.mxu0 %v2675_v32 }
 0x176   : >> { %1628 = vmatpush1.bf16.msra.mxu1 %v2675_v32  ;;  %1334 = vmatprep.subr.bf16.mxu0 %v2439_v28  ;;  %v3600_v32 = vld [vmem:[#allocation27_spill] sm:$0xff] }
 0x177   : >> { %1629 = vmatprep.subr.bf16.mxu1 %v2439_v28 }
 0x179   : >> { %1617 = vmatmul.mubr.bf16.gmra.mrb[12].mxu1 %v2901_v36  ;;  %1335 = vmatpush1.bf16.msra.mxu0 %v2833_v57  ;;  %v3612_v36 = vld [vmem:[#allocation31_spill] sm:$0xff] }
 0x17a   : >> { %1630 = vmatpush1.bf16.msra.mxu1 %v2833_v57  ;;  %1336 = vmatprep.subr.bf16.mxu0 %v2439_v28  ;;  %v3607_v57 = vld [vmem:[#allocation29_spill] sm:$0xff] }
 0x17b   : >> { %1631 = vmatprep.subr.bf16.mxu1 %v2439_v28  ;;  %2211 = vmatprep.mubr.msk.bf16.mxu1 %vm508_vm0, %v2697_v33  ;;  %v3601_v33 = vld [vmem:[#allocation17_spill] sm:$0xff] }
 0x17d   : >> { %1337 = vmatpush1.bf16.msra.mxu0 %v2841_v59 }
 0x17e   : >> { %1632 = vmatpush1.bf16.msra.mxu1 %v2841_v59  ;;  %1338 = vmatprep.subr.bf16.mxu0 %v2439_v28  ;;  %v3608_v59 = vld [vmem:[#allocation20_spill] sm:$0xff] }
 0x17f   : >> { %1633 = vmatprep.subr.bf16.mxu1 %v2439_v28 }
 0x181   : >> { %1339 = vmatpush1.bf16.msra.mxu0 %v3596_v4 }
 0x182   : >> { %1634 = vmatpush1.bf16.msra.mxu1 %v3596_v4  ;;  %1340 = vmatprep.subr.bf16.mxu0 %v2439_v28 }
 0x183   : >> { %1635 = vmatprep.subr.bf16.mxu1 %v2439_v28 }
 0x185   : >> { %1341 = vmatpush1.bf16.msra.mxu0 %v3597_v29 }
 0x186   : >> { %1636 = vmatpush1.bf16.msra.mxu1 %v3597_v29  ;;  %1342 = vmatprep.subr.bf16.mxu0 %v2439_v28 }
 0x187   : >> { %1637 = vmatprep.subr.bf16.mxu1 %v2439_v28 }
 0x189   : >> { %1343 = vmatpush1.bf16.msra.mxu0 %v3598_v30 }
 0x18a   : >> { %1638 = vmatpush1.bf16.msra.mxu1 %v3598_v30  ;;  %1344 = vmatprep.subr.bf16.mxu0 %v2439_v28 }
 0x18b   : >> { %1639 = vmatprep.subr.bf16.mxu1 %v2439_v28 }
 0x18d   : >> { %1345 = vmatpush1.bf16.msra.mxu0 %v3599_v31 }
 0x18e   : >> { %1640 = vmatpush1.bf16.msra.mxu1 %v3599_v31  ;;  %1375 = vmatprep.subr.bf16.mxu0 %v2439_v28 }
 0x18f   : >> { %1641 = vmatprep.subr.bf16.mxu1 %v2439_v28 }
 0x190   : >> { %1359 = vmatmul.mubr.bf16.vlgmr.msra.gmra.mrb[8].mxu0 %v3600_v32 }
 0x191   : >> { %1376 = vmatpush1.bf16.msra.mxu0 %v2772_v46  ;;  %2198 = vmatprep.mubr.msk.bf16.mxu0 %vm508_vm0, %v3601_v33  ;;  %v3606_v46 = vld [vmem:[#allocation19_spill] sm:$0xff] }
 0x192   : >> { %1642 = vmatpush1.bf16.msra.mxu1 %v3602_v41  ;;  %1377 = vmatprep.subr.bf16.mxu0 %v2439_v28 }
 0x193   : >> { %1643 = vmatprep.subr.bf16.mxu1 %v2439_v28 }
 0x195   : >> { %1378 = vmatpush1.bf16.msra.mxu0 %v3603_v42 }
 0x196   : >> { %1644 = vmatpush1.bf16.msra.mxu1 %v3604_v43  ;;  %1379 = vmatprep.subr.bf16.mxu0 %v2439_v28 }
 0x197   : >> { %1674 = vmatprep.subr.bf16.mxu1 %v2439_v28 }
 0x198   : >> { %1367 = vmatmul.mubr.bf16.gmra.mrb[12].mxu0 %v3605_v44 }
 0x199   : >> { %1658 = vmatmul.mubr.bf16.vlgmr.msra.gmra.mrb[8].mxu1 %v3600_v32  ;;  %1380 = vmatpush1.bf16.msra.mxu0 %v3606_v46 }
 0x19a   : >> { %2199 = vmatprep.mubr.msk.bf16.mxu0 %vm508_vm0, %v3607_v57  ;;  %1675 = vmatpush1.bf16.msra.mxu1 %v3606_v46 }
 0x19b   : >> { %1381 = vmatprep.subr.bf16.mxu0 %v2439_v28  ;;  %1676 = vmatprep.subr.bf16.mxu1 %v2439_v28 }
 0x19c   : >> { %2212 = vmatprep.mubr.msk.bf16.mxu1 %vm508_vm0, %v3601_v33 }
 0x19d   : >> { %1382 = vmatpush1.bf16.msra.mxu0 %v3608_v59 }
 0x19e   : >> { %1677 = vmatpush1.bf16.msra.mxu1 %v3608_v59  ;;  %1383 = vmatprep.subr.bf16.mxu0 %v2439_v28 }
 0x19f   : >> { %1678 = vmatprep.subr.bf16.mxu1 %v2439_v28 }
 0x1a1   : >> { %1666 = vmatmul.mubr.bf16.gmra.mrb[12].mxu1 %v3605_v44  ;;  %1384 = vmatpush1.bf16.msra.mxu0 %v3609_v45 }
 0x1a2   : >> { %1679 = vmatpush1.bf16.msra.mxu1 %v3609_v45  ;;  %2213 = vmatprep.mubr.msk.bf16.mxu1 %vm508_vm0, %v3607_v57 }
 0x1a3   : >> { %1385 = vmatprep.subr.bf16.mxu0 %v2439_v28  ;;  %1680 = vmatprep.subr.bf16.mxu1 %v2439_v28 }
 0x1a5   : >> { %1386 = vmatpush1.bf16.msra.mxu0 %v3610_v51 }
 0x1a6   : >> { %1681 = vmatpush1.bf16.msra.mxu1 %v3610_v51  ;;  %1387 = vmatprep.subr.bf16.mxu0 %v2439_v28 }
 0x1a7   : >> { %1682 = vmatprep.subr.bf16.mxu1 %v2439_v28 }
 0x1a9   : >> { %1388 = vmatpush1.bf16.msra.mxu0 %v3611_v35 }
 0x1aa   : >> { %1683 = vmatpush1.bf16.msra.mxu1 %v3611_v35  ;;  %1389 = vmatprep.subr.bf16.mxu0 %v2439_v28 }
 0x1ab   : >> { %1684 = vmatprep.subr.bf16.mxu1 %v2439_v28 }
 0x1ad   : >> { %1390 = vmatpush1.bf16.msra.mxu0 %v3612_v36 }
 0x1ae   : >> { %1685 = vmatpush1.bf16.msra.mxu1 %v3612_v36  ;;  %1391 = vmatprep.subr.bf16.mxu0 %v2439_v28 }
 0x1af   : >> { %1686 = vmatprep.subr.bf16.mxu1 %v2439_v28 }
 0x1b1   : >> { %1392 = vmatpush1.bf16.msra.mxu0 %v3011_v1 }
 0x1b2   : >> { %1687 = vmatpush1.bf16.msra.mxu1 %v3011_v1  ;;  %1393 = vmatprep.subr.bf16.mxu0 %v2439_v28 }
 0x1b3   : >> { %1688 = vmatprep.subr.bf16.mxu1 %v2439_v28 }
 0x1b5   : >> { %1394 = vmatpush1.bf16.msra.mxu0 %v3005_v39 }
 0x1b6   : >> { %1689 = vmatpush1.bf16.msra.mxu1 %v3005_v39  ;;  %1428 = vmatprep.subr.bf16.mxu0 %v2439_v28  ;;  %v3615_v39 = vld [vmem:[#allocation36_spill] sm:$0xff] }
 0x1b7   : >> { %1690 = vmatprep.subr.bf16.mxu1 %v2439_v28 }
 0x1b8   : >> { %1408 = vmatmul.mubr.bf16.vlgmr.msra.gmra.mrb[8].mxu0 %v3613_v37 }
 0x1b9   : >> { %2200 = vmatprep.mubr.msk.bf16.mxu0 %vm508_vm0, %v3614_v38  ;;  %1429 = vmatpush1.bf16.msra.mxu0 %v2804_v52 }
 0x1ba   : >> { %1691 = vmatpush1.bf16.msra.mxu1 %v3061_v61  ;;  %1430 = vmatprep.subr.bf16.mxu0 %v2439_v28 }
 0x1bb   : >> { %1692 = vmatprep.subr.bf16.mxu1 %v2439_v28 }
 0x1bd   : >> { %1431 = vmatpush1.bf16.msra.mxu0 %v2807_v53 }
 0x1be   : >> { %1693 = vmatpush1.bf16.msra.mxu1 %v3028_v58  ;;  %1432 = vmatprep.subr.bf16.mxu0 %v2439_v28 }
 0x1bf   : >> { %1727 = vmatprep.subr.bf16.mxu1 %v2439_v28 }
 0x1c0   : >> { %1416 = vmatmul.mubr.bf16.gmra.mrb[12].mxu0 %v3615_v39 }
 0x1c1   : >> { %1707 = vmatmul.mubr.bf16.vlgmr.msra.gmra.mrb[8].mxu1 %v3613_v37  ;;  %1433 = vmatpush1.bf16.msra.mxu0 %v2812_v54 }
 0x1c2   : >> { %2201 = vmatprep.mubr.msk.bf16.mxu0 %vm508_vm0, %v3042_v0  ;;  %2214 = vmatprep.mubr.msk.bf16.mxu1 %vm508_vm0, %v3614_v38 }
 0x1c3   : >> { %1728 = vmatpush1.bf16.msra.mxu1 %v2812_v54  ;;  %1434 = vmatprep.subr.bf16.mxu0 %v2439_v28 }
 0x1c4   : >> { %1729 = vmatprep.subr.bf16.mxu1 %v2439_v28 }
 0x1c5   : >> { %1435 = vmatpush1.bf16.msra.mxu0 %v2817_v55 }
 0x1c6   : >> { %1436 = vmatprep.subr.bf16.mxu0 %v2439_v28 }
 0x1c7   : >> { %1730 = vmatpush1.bf16.msra.mxu1 %v2817_v55 }
 0x1c8   : >> { %1731 = vmatprep.subr.bf16.mxu1 %v2439_v28 }
 0x1c9   : >> { %1715 = vmatmul.mubr.bf16.gmra.mrb[12].mxu1 %v3615_v39  ;;  %1437 = vmatpush1.bf16.msra.mxu0 %v3093_v8 }
 0x1ca   : >> { %2215 = vmatprep.mubr.msk.bf16.mxu1 %vm508_vm0, %v3042_v0  ;;  %1438 = vmatprep.subr.bf16.mxu0 %v2439_v28  ;;  %v3616_v0 = vld [vmem:[#allocation37_spill] sm:$0xff] }
 0x1cb   : >> { %1732 = vmatpush1.bf16.msra.mxu1 %v3093_v8  ;;  %v3617_v8 = vld [vmem:[#allocation38_spill] sm:$0xff] }
 0x1cc   : >> { %1733 = vmatprep.subr.bf16.mxu1 %v2439_v28 }
 0x1cd   : >> { %1439 = vmatpush1.bf16.msra.mxu0 %v3082_v49 }
 0x1ce   : >> { %1440 = vmatprep.subr.bf16.mxu0 %v2439_v28 }
 0x1cf   : >> { %1734 = vmatpush1.bf16.msra.mxu1 %v3082_v49 }
 0x1d0   : >> { %1735 = vmatprep.subr.bf16.mxu1 %v2439_v28 }
 0x1d1   : >> { %1441 = vmatpush1.bf16.msra.mxu0 %v3105_v63 }
 0x1d2   : >> { %1442 = vmatprep.subr.bf16.mxu0 %v2439_v28 }
 0x1d3   : >> { %1736 = vmatpush1.bf16.msra.mxu1 %v3105_v63 }
 0x1d4   : >> { %1737 = vmatprep.subr.bf16.mxu1 %v2439_v28 }
 0x1d5   : >> { %1443 = vmatpush1.bf16.msra.mxu0 %v3099_v47 }
 0x1d6   : >> { %1444 = vmatprep.subr.bf16.mxu0 %v2439_v28 }
 0x1d7   : >> { %1738 = vmatpush1.bf16.msra.mxu1 %v3099_v47 }
 0x1d8   : >> { %1739 = vmatprep.subr.bf16.mxu1 %v2439_v28 }
 0x1d9   : >> { %1445 = vmatpush1.bf16.msra.mxu0 %v3120_v40 }
 0x1da   : >> { %1446 = vmatprep.subr.bf16.mxu0 %v2439_v28 }
 0x1db   : >> { %1740 = vmatpush1.bf16.msra.mxu1 %v3120_v40 }
 0x1dc   : >> { %1741 = vmatprep.subr.bf16.mxu1 %v2439_v28 }
 0x1dd   : >> { %1447 = vmatpush1.bf16.msra.mxu0 %v3115_v60 }
 0x1de   : >> { %1523 = vmatprep.subr.bf16.mxu0 %v2439_v28 }
 0x1df   : >> { %1742 = vmatpush1.bf16.msra.mxu1 %v3115_v60 }
 0x1e0   : >> { %1461 = vmatmul.mubr.bf16.vlgmr.msra.gmra.mrb[8].mxu0 %v3126_v12  ;;  %1743 = vmatprep.subr.bf16.mxu1 %v2439_v28 }
 0x1e1   : >> { %2202 = vmatprep.mubr.msk.bf16.mxu0 %vm508_vm0, %v3133_v16  ;;  %1524 = vmatpush1.bf16.msra.mxu0 %v3616_v0 }
 0x1e2   : >> { %1525 = vmatprep.subr.bf16.mxu0 %v2439_v28 }
 0x1e3   : >> { %1744 = vmatpush1.bf16.msra.mxu1 %v3206_v3  ;;  %v1508_v3 = vpop.permute.xlu1 %1507 }
 0x1e4   : >> { %1745 = vmatprep.subr.bf16.mxu1 %v2439_v28 }
 0x1e5   : >> { %1526 = vmatpush1.bf16.msra.mxu0 %v3067_v62 }
 0x1e6   : >> { %1527 = vmatprep.subr.bf16.mxu0 %v2439_v28 }
 0x1e7   : >> { %1746 = vmatpush1.bf16.msra.mxu1 %v3216_v2  ;;  %v1506_v2 = vpop.permute.xlu0 %1505  ;;  %v1514_v47 = vpop.permute.xlu1 %1513 }
 0x1e8   : >> { %1469 = vmatmul.mubr.bf16.gmra.mrb[12].mxu0 %v3147_v17  ;;  %1786 = vmatprep.subr.bf16.mxu1 %v2439_v28 }
 0x1e9   : >> { %1528 = vmatpush1.bf16.msra.mxu0 %v3617_v8  ;;  %2207 = vmatprep.mubr.msk.bf16.mxu0 %vm508_vm0, %v3153_v19 }
 0x1ea   : >> { %1760 = vmatmul.mubr.bf16.vlgmr.msra.gmra.mrb[8].mxu1 %v3126_v12  ;;  %1529 = vmatprep.subr.bf16.mxu0 %v2439_v28 }
 0x1eb   : >> { %2216 = vmatprep.mubr.msk.bf16.mxu1 %vm508_vm0, %v3133_v16  ;;  %1787 = vmatpush1.bf16.msra.mxu1 %v3617_v8  ;;  %v1512_v16 = vpop.permute.xlu0 %1511 }
 0x1ec   : >> { %1788 = vmatprep.subr.bf16.mxu1 %v2439_v28 }
 0x1ed   : >> { %1530 = vmatpush1.bf16.msra.mxu0 %v3089_v48 }
 0x1ee   : >> { %1531 = vmatprep.subr.bf16.mxu0 %v2439_v28 }
 0x1ef   : >> { %1789 = vmatpush1.bf16.msra.mxu1 %v3089_v48 }
 0x1f0   : >> { %1790 = vmatprep.subr.bf16.mxu1 %v2439_v28 }
 0x1f1   : >> { %1532 = vmatpush1.bf16.msra.mxu0 %v1506_v2 }
 0x1f2   : >> { %1768 = vmatmul.mubr.bf16.gmra.mrb[12].mxu1 %v3147_v17  ;;  %1533 = vmatprep.subr.bf16.mxu0 %v2439_v28  ;;  %v1518_v17 = vpop.permute.xlu0 %1517 }
 0x1f3   : >> { %1791 = vmatpush1.bf16.msra.mxu1 %v1506_v2  ;;  %2217 = vmatprep.mubr.msk.bf16.mxu1 %vm508_vm0, %v3153_v19  ;;  %v1520_v19 = vpop.permute.xlu1 %1519 }
 0x1f4   : >> { %1792 = vmatprep.subr.bf16.mxu1 %v2439_v28 }
 0x1f5   : >> { %1534 = vmatpush1.bf16.msra.mxu0 %v1508_v3 }
 0x1f6   : >> { %1535 = vmatprep.subr.bf16.mxu0 %v2439_v28  ;;  %v1781_v48 = vpop.permute.xlu0 %1780 }
 0x1f7   : >> { %1793 = vmatpush1.bf16.msra.mxu1 %v1508_v3  ;;  %v1783_v49 = vpop.permute.xlu1 %1782 }
 0x1f8   : >> { %1794 = vmatprep.subr.bf16.mxu1 %v2439_v28 }
 0x1f9   : >> { %1536 = vmatpush1.bf16.msra.mxu0 %v1512_v16 }
 0x1fa   : >> { %1537 = vmatprep.subr.bf16.mxu0 %v2439_v28  ;;  %v1854_v29 = vpop.permute.xlu0 %1853 }
 0x1fb   : >> { %1795 = vmatpush1.bf16.msra.mxu1 %v1512_v16  ;;  %v1859_v4 = vpop.permute.xlu1 %1858 }
 0x1fc   : >> { %1796 = vmatprep.subr.bf16.mxu1 %v2439_v28 }
 0x1fd   : >> { %1538 = vmatpush1.bf16.msra.mxu0 %v1514_v47 }
 0x1fe   : >> { %1539 = vmatprep.subr.bf16.mxu0 %v2439_v28  ;;  %v1869_v33 = vpop.permute.xlu0 %1868 }
 0x1ff   : >> { %1797 = vmatpush1.bf16.msra.mxu1 %v1514_v47  ;;  %v1864_v31 = vpop.permute.xlu1 %1863 }
 0x200   : >> { %1798 = vmatprep.subr.bf16.mxu1 %v2439_v28 }
 0x201   : >> { %1540 = vmatpush1.bf16.msra.mxu0 %v1518_v17 }
 0x202   : >> { %1541 = vmatprep.subr.bf16.mxu0 %v2439_v28  ;;  %v1887_v44 = vpop.permute.xlu0 %1886 }
 0x203   : >> { %1799 = vmatpush1.bf16.msra.mxu1 %v1518_v17  ;;  %v1882_v42 = vpop.permute.xlu1 %1881 }
 0x204   : >> { %1800 = vmatprep.subr.bf16.mxu1 %v2439_v28 }
 0x205   : >> { %1542 = vmatpush1.bf16.msra.mxu0 %v1520_v19 }
 0x206   : >> { %v1897_v3 = vpop.permute.xlu0 %1896 }
 0x207   : >> { %1801 = vmatpush1.bf16.msra.mxu1 %v1520_v19  ;;  %v1892_v0 = vpop.permute.xlu1 %1891 }
 0x208   : >> { %1802 = vmatprep.subr.bf16.mxu1 %v2439_v28  ;;  %1556 = vmatmul.mubr.bf16.vlgmr.msra.gmra.mrb[8].mxu0 %v3201_v34 }
 0x209   : >> { %2208 = vmatprep.mubr.msk.bf16.mxu0 %vm508_vm0, %v3211_v7 }
 0x20b   : >> { %1803 = vmatpush1.bf16.msra.mxu1 %v1781_v48 }
 0x20c   : >> { %1804 = vmatprep.subr.bf16.mxu1 %v2439_v28 }
 0x20f   : >> { %1805 = vmatpush1.bf16.msra.mxu1 %v1783_v49 }
 0x210   : >> { %1564 = vmatmul.mubr.bf16.gmra.mrb[12].mxu0 %v3224_v6 }
 0x212   : >> { %1819 = vmatmul.mubr.bf16.vlgmr.msra.gmra.mrb[8].mxu1 %v3201_v34 }
 0x213   : >> { %v971_v52 = vpop.f32.mrb[0].mxu0  ;;  %2218 = vmatprep.mubr.msk.bf16.mxu1 %vm508_vm0, %v3211_v7 }
 0x214   : >> { %v973_v53 = vpop.f32.mrb[1].mxu0 }
 0x215   : >> { %v974_v54 = vpop.f32.mrb[2].mxu0  ;;  %v1906_v53 = vpop.permute.xlu1 %1905 }
 0x216   : >> { %v976_v55 = vpop.f32.mrb[3].mxu0 }
 0x21a   : >> { %1827 = vmatmul.mubr.bf16.gmra.mrb[12].mxu1 %v3224_v6 }
 0x21b   : >> { %v979_v58 = vpop.f32.mrb[4].mxu0  ;;  %v1258_v61 = vpop.f32.mrb[0].mxu1 }
 0x21c   : >> { %v1839_v62 = vmax.f32 %v971_v52, %v1258_v61  ;;  %v981_v63 = vpop.f32.mrb[5].mxu0  ;;  %v1260_v1 = vpop.f32.mrb[1].mxu1 }
 0x21d   : >> { %v982_v28 = vpop.f32.mrb[6].mxu0  ;;  %v1261_v50 = vpop.f32.mrb[2].mxu1 }
 0x21e   : >> { %v1840_v9 = vmax.f32 %v974_v54, %v1261_v50  ;;  %v984_v56 = vpop.f32.mrb[7].mxu0  ;;  %v1263_v40 = vpop.f32.mrb[3].mxu1 }
 0x21f   : >> { %v1911_v1 = vpop.permute.xlu0 %1910 }
 0x223   : >> { %v1266_v5 = vpop.f32.mrb[4].mxu1 }
 0x224   : >> { %v1841_v13 = vmax.f32 %v979_v58, %v1266_v5  ;;  %v1268_v12 = vpop.f32.mrb[5].mxu1 }
 0x225   : >> { %v1269_v60 = vpop.f32.mrb[6].mxu1 }
 0x226   : >> { %v1842_v7 = vmax.f32 %v982_v28, %v1269_v60  ;;  %v1271_v34 = vpop.f32.mrb[7].mxu1 }
 0x2db   : >> { %v1557_v30 = vpop.f32.mrb[8].mxu0 }
 0x2dc   : >> { %v1559_v6 = vpop.f32.mrb[9].mxu0 }
 0x2dd   : >> { %v1560_v32 = vpop.f32.mrb[10].mxu0 }
 0x2de   : >> { %v1562_v41 = vpop.f32.mrb[11].mxu0 }
 0x2e3   : >> { %v1565_v43 = vpop.f32.mrb[12].mxu0 }
 0x2e4   : >> { %v1567_v46 = vpop.f32.mrb[13].mxu0 }
 0x2e5   : >> { %v1820_v57 = vpop.f32.mrb[8].mxu1  ;;  %v1568_v59 = vpop.f32.mrb[14].mxu0 }
 0x2e6   : >> { %v1843_v45 = vmax.f32 %v1557_v30, %v1820_v57  ;;  %v1822_v51 = vpop.f32.mrb[9].mxu1  ;;  %v1570_v35 = vpop.f32.mrb[15].mxu0 }
 0x2e7   : >> { %v1823_v36 = vpop.f32.mrb[10].mxu1  ;;  %v1921_v30 = vpop.permute.xlu0 %1920 }
 0x2e8   : >> { %v1847_v37 = vmax.f32 %v1839_v62, %v1843_v45  ;;  %v1844_v38 = vmax.f32 %v1560_v32, %v1823_v36  ;;  %v1825_v39 = vpop.f32.mrb[11].mxu1 }
 0x2ea   : >> { %v1871_v8 = vadd.f32 %v1854_v29, %v1847_v37  ;;  %v1848_v2 = vmax.f32 %v1840_v9, %v1844_v38 }
 0x2ec   : >> { %v1875_v16 = vmax.f32 %v1871_v8, 0.0  ;;  %v1872_v47 = vadd.f32 %v1859_v4, %v1848_v2  ;;  %v1916_v4 = vpop.permute.xlu1 %1915 }
 0x2ed   : >> { %v1828_v17 = vpop.f32.mrb[12].mxu1 }
 0x2ee   : >> { %v1899_v19 = vmul.f32 %v1882_v42, %v1875_v16  ;;  %v1876_v48 = vmax.f32 %v1872_v47, 0.0  ;;  %v1845_v49 = vmax.f32 %v1565_v43, %v1828_v17  ;;  %v1830_v52 = vpop.f32.mrb[13].mxu1 }
 0x2ef   : >> { %v1831_v54 = vpop.f32.mrb[14].mxu1 }
 0x2f0   : >> { %v1923_v55 = vadd.f32 %v1906_v53, %v1899_v19  ;;  %v1900_v58 = vmul.f32 %v1887_v44, %v1876_v48  ;;  %v1849_v61 = vmax.f32 %v1841_v13, %v1845_v49  ;;  %v1846_v62 = vmax.f32 %v1568_v59, %v1831_v54  ;;  %v1833_v63 = vpop.f32.mrb[15].mxu1 }
 0x2f2   : >> { %v2240_v28 = vpack.c.bf16 %v1923_v55, %v1923_v55  ;;  %v1924_v50 = vadd.f32 %v1911_v1, %v1900_v58  ;;  %v1873_v9 = vadd.f32 %v1864_v31, %v1849_v61  ;;  %v1850_v56 = vmax.f32 %v1842_v7, %v1846_v62 }
 0x2f4   : >> { %1947 = vst.msk [vmem:[%s1945_s12] sm:$0xf] %vm1946_vm3, %v2240_v28  ;;  %v2241_v40 = vpack.c.bf16 %v1924_v50, %v1924_v50  ;;  %v1877_v5 = vmax.f32 %v1873_v9, 0.0  ;;  %v1874_v12 = vadd.f32 %v1869_v33, %v1850_v56 }
 0x2f6   : >> { %1948 = vst.msk [vmem:[%s1945_s12 + $0x4] sm:$0xf] %vm1946_vm3, %v2241_v40  ;;  %v1901_v60 = vmul.f32 %v1892_v0, %v1877_v5  ;;  %v1878_v34 = vmax.f32 %v1874_v12, 0.0 }
 0x2f8   : >> { %v1925_v13 = vadd.f32 %v1916_v4, %v1901_v60  ;;  %v1902_v29 = vmul.f32 %v1897_v3, %v1878_v34  ;;  %305 = sbr.rel (!%p303_p4) target bundleno = 18 (0x12), region = 97 }
 0x2fa   : >> { %v2242_v6 = vpack.c.bf16 %v1925_v13, %v1925_v13  ;;  %v1926_v32 = vadd.f32 %v1921_v30, %v1902_v29 }
 0x2fc   : >> { %1949 = vst.msk [vmem:[%s1945_s12 + $0x8] sm:$0xf] %vm1946_vm3, %v2242_v6  ;;  %v2243_v41 = vpack.c.bf16 %v1926_v32, %v1926_v32 }
 0x2fe   : >> { %1950 = vst.msk [vmem:[%s1945_s12 + $0xc] sm:$0xf] %vm1946_vm3, %v2243_v41 }
 0x2ff PF: > { %s16_s21 = sadd.s32 1, %s2433_s21  }
 0x300   : > { %p13_p5 = scmp.ge.s32.totalorder %s16_s21, 4  }
 0x302   :  { %15 = sbr.rel (!%p13_p5) target bundleno = 1 (0x1), region = 108 }

// kernel: net_forward.11
= control target key start
LH: loop header
LB: loop body
LE: loop exit
PB: predicated region body
PF: predicated region fallthrough
CT: control target
= control target key end

     0   :  { %vm1271_vm0 = vcmask 261120   ;;  %vm1954_vm1 = vcmask 15360   ;;  %s3374_s1 = inlined_call_operand.vmem [shape: bf16[800,512], index: 1, kind: input, shape index: {}]   ;;  %s3375_s0 = inlined_call_operand.vmem [shape: bf16[8,800], index: 0, kind: input, shape index: {}]   ;;  %s3376_s3 = inlined_call_operand.vmem [shape: bf16[512,2], index: 3, kind: input, shape index: {}]   ;;  %s3377_s2 = inlined_call_operand.vmem [shape: f32[1,512], index: 2, kind: input, shape index: {}]   ;;  %s3378_s4 = inlined_call_operand.vmem [shape: f32[1,2], index: 4, kind: input, shape index: {}]   ;;  %s3379_s5 = inlined_call_operand.vmem [shape: f32[8,2], index: 5, kind: output, shape index: {}]  }
   0x1   :  { %v2275_v0 = vld [vmem:[%s3374_s1 + $0x4] ss:$16 sps:$4 sm:$0xff]   ;;  %v2277_v1 = vld [vmem:[%s3374_s1 + $0xc] ss:$16 sps:$4 sm:$0xff]   ;;  %v2279_v2 = vld [vmem:[%s3374_s1] ss:$16 sps:$4 sm:$0xff]  }
   0x2   :  { %1275 = vmatprep.subr.bf16.mxu0 %v2275_v0  ;;  %v2280_v3 = vld [vmem:[%s3374_s1 + $0x8] ss:$16 sps:$4 sm:$0xff]   ;;  %1439 = vmatprep.subr.bf16.mxu1 %v2277_v1  ;;  %v2281_v4 = vld [vmem:[%s3374_s1 + $0x24] ss:$16 sps:$4 sm:$0xff]   ;;  %v2283_v5 = vld [vmem:[%s3374_s1 + $0x2c] ss:$16 sps:$4 sm:$0xff]  }
   0x3   :  { %1276 = vmatpush1.bf16.msra.mxu0 %v2279_v2  ;;  %1440 = vmatpush1.bf16.msra.mxu1 %v2280_v3  ;;  %v2285_v6 = vld [vmem:[%s3374_s1 + $0x20] ss:$16 sps:$4 sm:$0xff]   ;;  %v2286_v7 = vld [vmem:[%s3374_s1 + $0x28] ss:$16 sps:$4 sm:$0xff]   ;;  %v2287_v8 = vld [vmem:[%s3374_s1 + $0x44] ss:$16 sps:$4 sm:$0xff]  }
   0x4   :  { %1277 = vmatprep.subr.bf16.mxu0 %v2281_v4  ;;  %1441 = vmatprep.subr.bf16.mxu1 %v2283_v5  ;;  %v2289_v9 = vld [vmem:[%s3374_s1 + $0x4c] ss:$16 sps:$4 sm:$0xff]   ;;  %v2291_v10 = vld [vmem:[%s3374_s1 + $0x40] ss:$16 sps:$4 sm:$0xff]   ;;  %v2292_v11 = vld [vmem:[%s3374_s1 + $0x48] ss:$16 sps:$4 sm:$0xff]  }
   0x5   :  { %v2293_v12 = vld [vmem:[%s3374_s1 + $0x64] ss:$16 sps:$4 sm:$0xff]   ;;  %v2295_v13 = vld [vmem:[%s3374_s1 + $0x6c] ss:$16 sps:$4 sm:$0xff]   ;;  %v2297_v14 = vld [vmem:[%s3374_s1 + $0x60] ss:$16 sps:$4 sm:$0xff]  }
   0x6   :  { %v2298_v15 = vld [vmem:[%s3374_s1 + $0x68] ss:$16 sps:$4 sm:$0xff]   ;;  %v2299_v16 = vld [vmem:[%s3374_s1 + $0x84] ss:$16 sps:$4 sm:$0xff]   ;;  %v2301_v17 = vld [vmem:[%s3374_s1 + $0x8c] ss:$16 sps:$4 sm:$0xff]  }
   0x7   :  { %1278 = vmatpush1.bf16.msra.mxu0 %v2285_v6  ;;  %1442 = vmatpush1.bf16.msra.mxu1 %v2286_v7  ;;  %v2303_v18 = vld [vmem:[%s3374_s1 + $0x80] ss:$16 sps:$4 sm:$0xff]   ;;  %v2304_v19 = vld [vmem:[%s3374_s1 + $0x88] ss:$16 sps:$4 sm:$0xff]   ;;  %v2305_v20 = vld [vmem:[%s3374_s1 + $0xa4] ss:$16 sps:$4 sm:$0xff]  }
   0x8   :  { %1279 = vmatprep.subr.bf16.mxu0 %v2287_v8  ;;  %1443 = vmatprep.subr.bf16.mxu1 %v2289_v9  ;;  %v2307_v21 = vld [vmem:[%s3374_s1 + $0xac] ss:$16 sps:$4 sm:$0xff]   ;;  %v2309_v22 = vld [vmem:[%s3374_s1 + $0xa0] ss:$16 sps:$4 sm:$0xff]   ;;  %v2310_v23 = vld [vmem:[%s3374_s1 + $0xa8] ss:$16 sps:$4 sm:$0xff]  }
   0x9   :  { %v2311_v24 = vld [vmem:[%s3374_s1 + $0xc4] ss:$16 sps:$4 sm:$0xff]   ;;  %v2313_v25 = vld [vmem:[%s3374_s1 + $0xcc] ss:$16 sps:$4 sm:$0xff]   ;;  %v2315_v26 = vld [vmem:[%s3374_s1 + $0xc0] ss:$16 sps:$4 sm:$0xff]  }
   0xa   :  { %v2316_v27 = vld [vmem:[%s3374_s1 + $0xc8] ss:$16 sps:$4 sm:$0xff]   ;;  %v2317_v28 = vld [vmem:[%s3374_s1 + $0xe4] ss:$16 sps:$4 sm:$0xff]   ;;  %v2319_v29 = vld [vmem:[%s3374_s1 + $0xec] ss:$16 sps:$4 sm:$0xff]  }
   0xb   :  { %1280 = vmatpush1.bf16.msra.mxu0 %v2291_v10  ;;  %1444 = vmatpush1.bf16.msra.mxu1 %v2292_v11  ;;  %v2321_v30 = vld [vmem:[%s3374_s1 + $0xe0] ss:$16 sps:$4 sm:$0xff]   ;;  %v2322_v31 = vld [vmem:[%s3374_s1 + $0xe8] ss:$16 sps:$4 sm:$0xff]   ;;  %v2323_v32 = vld [vmem:[%s3374_s1 + $0x104] ss:$16 sps:$4 sm:$0xff]  }
   0xc   :  { %1281 = vmatprep.subr.bf16.mxu0 %v2293_v12  ;;  %1445 = vmatprep.subr.bf16.mxu1 %v2295_v13  ;;  %v2325_v33 = vld [vmem:[%s3374_s1 + $0x10c] ss:$16 sps:$4 sm:$0xff]   ;;  %v2327_v34 = vld [vmem:[%s3374_s1 + $0x100] ss:$16 sps:$4 sm:$0xff]   ;;  %v2328_v35 = vld [vmem:[%s3374_s1 + $0x108] ss:$16 sps:$4 sm:$0xff]  }
   0xd   :  { %v2329_v36 = vld [vmem:[%s3374_s1 + $0x124] ss:$16 sps:$4 sm:$0xff]   ;;  %v2331_v37 = vld [vmem:[%s3374_s1 + $0x12c] ss:$16 sps:$4 sm:$0xff]   ;;  %v2333_v38 = vld [vmem:[%s3374_s1 + $0x120] ss:$16 sps:$4 sm:$0xff]  }
   0xe   :  { %v2334_v39 = vld [vmem:[%s3374_s1 + $0x128] ss:$16 sps:$4 sm:$0xff]   ;;  %v2335_v40 = vld [vmem:[%s3374_s1 + $0x144] ss:$16 sps:$4 sm:$0xff]   ;;  %v2337_v41 = vld [vmem:[%s3374_s1 + $0x14c] ss:$16 sps:$4 sm:$0xff]  }
   0xf   :  { %1282 = vmatpush1.bf16.msra.mxu0 %v2297_v14  ;;  %1446 = vmatpush1.bf16.msra.mxu1 %v2298_v15  ;;  %v2339_v42 = vld [vmem:[%s3374_s1 + $0x140] ss:$16 sps:$4 sm:$0xff]   ;;  %v2340_v43 = vld [vmem:[%s3374_s1 + $0x148] ss:$16 sps:$4 sm:$0xff]   ;;  %v2341_v44 = vld [vmem:[%s3374_s1 + $0x164] ss:$16 sps:$4 sm:$0xff]  }
  0x10   :  { %1283 = vmatprep.subr.bf16.mxu0 %v2299_v16  ;;  %1447 = vmatprep.subr.bf16.mxu1 %v2301_v17  ;;  %v2343_v45 = vld [vmem:[%s3374_s1 + $0x16c] ss:$16 sps:$4 sm:$0xff]   ;;  %v21_v46 = vld [vmem:[%s3375_s0] sm:$0xff]  ;;  %v2346_v49 = vld [vmem:[%s3374_s1 + $0x168] ss:$16 sps:$4 sm:$0xff]  }
  0x11   :  { %v2345_v47 = vld [vmem:[%s3374_s1 + $0x160] ss:$16 sps:$4 sm:$0xff]   ;;  %v1961_v48 = vcombine.high %v21_v46, %v21_v46  ;;  %v2347_v50 = vld [vmem:[%s3374_s1 + $0x184] ss:$16 sps:$4 sm:$0xff]   ;;  %v2349_v51 = vld [vmem:[%s3374_s1 + $0x18c] ss:$16 sps:$4 sm:$0xff]   ;;  %v1960_v4 = vcombine.low %v21_v46, %v21_v46 }
  0x12   :  { %v2351_v52 = vld [vmem:[%s3374_s1 + $0x180] ss:$16 sps:$4 sm:$0xff]   ;;  %v2352_v53 = vld [vmem:[%s3374_s1 + $0x188] ss:$16 sps:$4 sm:$0xff]   ;;  %v2353_v54 = vld [vmem:[%s3374_s1 + $0x1a4] ss:$16 sps:$4 sm:$0xff]  }
  0x13   :  { %1284 = vmatpush1.bf16.msra.mxu0 %v2303_v18  ;;  %1448 = vmatpush1.bf16.msra.mxu1 %v2304_v19  ;;  %v2355_v55 = vld [vmem:[%s3374_s1 + $0x1ac] ss:$16 sps:$4 sm:$0xff]   ;;  %v2357_v56 = vld [vmem:[%s3374_s1 + $0x1a0] ss:$16 sps:$4 sm:$0xff]   ;;  %v2358_v57 = vld [vmem:[%s3374_s1 + $0x1a8] ss:$16 sps:$4 sm:$0xff]  }
  0x14   :  { %1285 = vmatprep.subr.bf16.mxu0 %v2305_v20  ;;  %1449 = vmatprep.subr.bf16.mxu1 %v2307_v21  ;;  %v2359_v58 = vld [vmem:[%s3374_s1 + $0x1c4] ss:$16 sps:$4 sm:$0xff]   ;;  %v2361_v59 = vld [vmem:[%s3374_s1 + $0x1cc] ss:$16 sps:$4 sm:$0xff]   ;;  %v2363_v60 = vld [vmem:[%s3374_s1 + $0x1c0] ss:$16 sps:$4 sm:$0xff]  }
  0x15   :  { %1307 = vmatprep.mubr.bf16.mxu0 %v1961_v48  ;;  %1471 = vmatprep.mubr.bf16.mxu1 %v1961_v48  ;;  %v2364_v61 = vld [vmem:[%s3374_s1 + $0x1c8] ss:$16 sps:$4 sm:$0xff]   ;;  %v2365_v62 = vld [vmem:[%s3374_s1 + $0x1e4] ss:$16 sps:$4 sm:$0xff]   ;;  %v2367_v63 = vld [vmem:[%s3374_s1 + $0x1ec] ss:$16 sps:$4 sm:$0xff]  }
  0x16   :  { %v2369_v0 = vld [vmem:[%s3374_s1 + $0x1e0] ss:$16 sps:$4 sm:$0xff]   ;;  %v2370_v1 = vld [vmem:[%s3374_s1 + $0x1e8] ss:$16 sps:$4 sm:$0xff]   ;;  %v2376_v2 = vld [vmem:[%s3374_s1 + $0x204] ss:$16 sps:$4 sm:$0xff]  }
  0x17   :  { %1286 = vmatpush1.bf16.msra.mxu0 %v2309_v22  ;;  %1450 = vmatpush1.bf16.msra.mxu1 %v2310_v23  ;;  %v2379_v3 = vld [vmem:[%s3374_s1 + $0x20c] ss:$16 sps:$4 sm:$0xff]   ;;  %v2374_v5 = vld [vmem:[%s3374_s1 + $0x200] ss:$16 sps:$4 sm:$0xff]   ;;  %v2377_v6 = vld [vmem:[%s3374_s1 + $0x208] ss:$16 sps:$4 sm:$0xff]  }
  0x18   :  { %1287 = vmatprep.subr.bf16.mxu0 %v2311_v24  ;;  %1451 = vmatprep.subr.bf16.mxu1 %v2313_v25  ;;  %v2382_v7 = vld [vmem:[%s3374_s1 + $0x224] ss:$16 sps:$4 sm:$0xff]   ;;  %v2385_v8 = vld [vmem:[%s3374_s1 + $0x22c] ss:$16 sps:$4 sm:$0xff]   ;;  %v2380_v9 = vld [vmem:[%s3374_s1 + $0x220] ss:$16 sps:$4 sm:$0xff]  }
  0x19   :  { %v2383_v10 = vld [vmem:[%s3374_s1 + $0x228] ss:$16 sps:$4 sm:$0xff]   ;;  %v2388_v11 = vld [vmem:[%s3374_s1 + $0x244] ss:$16 sps:$4 sm:$0xff]   ;;  %v2391_v12 = vld [vmem:[%s3374_s1 + $0x24c] ss:$16 sps:$4 sm:$0xff]  }
  0x1a   :  { %v2386_v13 = vld [vmem:[%s3374_s1 + $0x240] ss:$16 sps:$4 sm:$0xff]   ;;  %v2389_v14 = vld [vmem:[%s3374_s1 + $0x248] ss:$16 sps:$4 sm:$0xff]   ;;  %v2394_v15 = vld [vmem:[%s3374_s1 + $0x264] ss:$16 sps:$4 sm:$0xff]  }
  0x1b   :  { %1288 = vmatpush1.bf16.msra.mxu0 %v2315_v26  ;;  %1452 = vmatpush1.bf16.msra.mxu1 %v2316_v27  ;;  %v2397_v16 = vld [vmem:[%s3374_s1 + $0x26c] ss:$16 sps:$4 sm:$0xff]   ;;  %v2392_v17 = vld [vmem:[%s3374_s1 + $0x260] ss:$16 sps:$4 sm:$0xff]   ;;  %v2395_v18 = vld [vmem:[%s3374_s1 + $0x268] ss:$16 sps:$4 sm:$0xff]  }
  0x1c   :  { %1289 = vmatprep.subr.bf16.mxu0 %v2317_v28  ;;  %1453 = vmatprep.subr.bf16.mxu1 %v2319_v29  ;;  %v2400_v19 = vld [vmem:[%s3374_s1 + $0x284] ss:$16 sps:$4 sm:$0xff]   ;;  %v2403_v20 = vld [vmem:[%s3374_s1 + $0x28c] ss:$16 sps:$4 sm:$0xff]   ;;  %v2398_v21 = vld [vmem:[%s3374_s1 + $0x280] ss:$16 sps:$4 sm:$0xff]  }
  0x1d   :  { %v2401_v22 = vld [vmem:[%s3374_s1 + $0x288] ss:$16 sps:$4 sm:$0xff]   ;;  %v2406_v23 = vld [vmem:[%s3374_s1 + $0x2a4] ss:$16 sps:$4 sm:$0xff]   ;;  %v2409_v24 = vld [vmem:[%s3374_s1 + $0x2ac] ss:$16 sps:$4 sm:$0xff]  }
  0x1e   :  { %v2404_v25 = vld [vmem:[%s3374_s1 + $0x2a0] ss:$16 sps:$4 sm:$0xff]   ;;  %v2407_v26 = vld [vmem:[%s3374_s1 + $0x2a8] ss:$16 sps:$4 sm:$0xff]   ;;  %v2412_v27 = vld [vmem:[%s3374_s1 + $0x2c4] ss:$16 sps:$4 sm:$0xff]  }
  0x1f   :  { %1290 = vmatpush1.bf16.msra.mxu0 %v2321_v30  ;;  %1454 = vmatpush1.bf16.msra.mxu1 %v2322_v31  ;;  %v2415_v28 = vld [vmem:[%s3374_s1 + $0x2cc] ss:$16 sps:$4 sm:$0xff]   ;;  %v2410_v30 = vld [vmem:[%s3374_s1 + $0x2c0] ss:$16 sps:$4 sm:$0xff]   ;;  %v2413_v31 = vld [vmem:[%s3374_s1 + $0x2c8] ss:$16 sps:$4 sm:$0xff]  }
  0x20   :  { %1291 = vmatprep.subr.bf16.mxu0 %v2323_v32  ;;  %1455 = vmatprep.subr.bf16.mxu1 %v2325_v33  ;;  %v2921_v29 = vld [vmem:[%s3375_s0 + $0x8] sm:$0xff]  ;;  %v2418_v33 = vld [vmem:[%s3374_s1 + $0x2e4] ss:$16 sps:$4 sm:$0xff]  }
  0x21   :  { %v1963_v32 = vcombine.high %v2921_v29, %v2921_v29  ;;  %v2439_v46 = vld [vmem:[%s3374_s1 + $0x34c] ss:$16 sps:$4 sm:$0xff]   ;;  %v2437_v48 = vld [vmem:[%s3374_s1 + $0x348] ss:$16 sps:$4 sm:$0xff]  }
  0x23   :  { %1292 = vmatpush1.bf16.msra.mxu0 %v2327_v34  ;;  %1456 = vmatpush1.bf16.msra.mxu1 %v2328_v35  ;;  %v2421_v34 = vld [vmem:[%s3374_s1 + $0x2ec] ss:$16 sps:$4 sm:$0xff]   ;;  %v2416_v35 = vld [vmem:[%s3374_s1 + $0x2e0] ss:$16 sps:$4 sm:$0xff]  }
  0x24   :  { %1293 = vmatprep.subr.bf16.mxu0 %v2329_v36  ;;  %1457 = vmatprep.subr.bf16.mxu1 %v2331_v37  ;;  %v2419_v36 = vld [vmem:[%s3374_s1 + $0x2e8] ss:$16 sps:$4 sm:$0xff]   ;;  %v2424_v37 = vld [vmem:[%s3374_s1 + $0x304] ss:$16 sps:$4 sm:$0xff]  }
  0x27   :  { %1294 = vmatpush1.bf16.msra.mxu0 %v2333_v38  ;;  %1458 = vmatpush1.bf16.msra.mxu1 %v2334_v39  ;;  %v2427_v38 = vld [vmem:[%s3374_s1 + $0x30c] ss:$16 sps:$4 sm:$0xff]   ;;  %v2422_v39 = vld [vmem:[%s3374_s1 + $0x300] ss:$16 sps:$4 sm:$0xff]  }
  0x28   :  { %1295 = vmatprep.subr.bf16.mxu0 %v2335_v40  ;;  %1459 = vmatprep.subr.bf16.mxu1 %v2337_v41  ;;  %v2425_v40 = vld [vmem:[%s3374_s1 + $0x308] ss:$16 sps:$4 sm:$0xff]   ;;  %v2430_v41 = vld [vmem:[%s3374_s1 + $0x324] ss:$16 sps:$4 sm:$0xff]  }
  0x2b   :  { %1296 = vmatpush1.bf16.msra.mxu0 %v2339_v42  ;;  %1460 = vmatpush1.bf16.msra.mxu1 %v2340_v43  ;;  %v2433_v42 = vld [vmem:[%s3374_s1 + $0x32c] ss:$16 sps:$4 sm:$0xff]   ;;  %v2428_v43 = vld [vmem:[%s3374_s1 + $0x320] ss:$16 sps:$4 sm:$0xff]  }
  0x2c   :  { %1297 = vmatprep.subr.bf16.mxu0 %v2341_v44  ;;  %1461 = vmatprep.subr.bf16.mxu1 %v2343_v45  ;;  %v2431_v44 = vld [vmem:[%s3374_s1 + $0x328] ss:$16 sps:$4 sm:$0xff]   ;;  %v2436_v45 = vld [vmem:[%s3374_s1 + $0x344] ss:$16 sps:$4 sm:$0xff]  }
  0x2f   :  { %1298 = vmatpush1.bf16.msra.mxu0 %v2345_v47  ;;  %1462 = vmatpush1.bf16.msra.mxu1 %v2346_v49  ;;  %v2434_v47 = vld [vmem:[%s3374_s1 + $0x340] ss:$16 sps:$4 sm:$0xff]   ;;  %v2442_v49 = vld [vmem:[%s3374_s1 + $0x364] ss:$16 sps:$4 sm:$0xff]  }
  0x30   :  { %1299 = vmatprep.subr.bf16.mxu0 %v2347_v50  ;;  %1463 = vmatprep.subr.bf16.mxu1 %v2349_v51  ;;  %v2445_v50 = vld [vmem:[%s3374_s1 + $0x36c] ss:$16 sps:$4 sm:$0xff]   ;;  %v2440_v51 = vld [vmem:[%s3374_s1 + $0x360] ss:$16 sps:$4 sm:$0xff]  }
  0x33   :  { %1300 = vmatpush1.bf16.msra.mxu0 %v2351_v52  ;;  %1464 = vmatpush1.bf16.msra.mxu1 %v2352_v53  ;;  %v2443_v52 = vld [vmem:[%s3374_s1 + $0x368] ss:$16 sps:$4 sm:$0xff]   ;;  %v2448_v53 = vld [vmem:[%s3374_s1 + $0x384] ss:$16 sps:$4 sm:$0xff]  }
  0x34   :  { %1301 = vmatprep.subr.bf16.mxu0 %v2353_v54  ;;  %1465 = vmatprep.subr.bf16.mxu1 %v2355_v55  ;;  %v2451_v54 = vld [vmem:[%s3374_s1 + $0x38c] ss:$16 sps:$4 sm:$0xff]   ;;  %v2446_v55 = vld [vmem:[%s3374_s1 + $0x380] ss:$16 sps:$4 sm:$0xff]  }
  0x37   :  { %1302 = vmatpush1.bf16.msra.mxu0 %v2357_v56  ;;  %1466 = vmatpush1.bf16.msra.mxu1 %v2358_v57  ;;  %v2449_v56 = vld [vmem:[%s3374_s1 + $0x388] ss:$16 sps:$4 sm:$0xff]   ;;  %v2454_v57 = vld [vmem:[%s3374_s1 + $0x3a4] ss:$16 sps:$4 sm:$0xff]  }
  0x38   :  { %1303 = vmatprep.subr.bf16.mxu0 %v2359_v58  ;;  %1467 = vmatprep.subr.bf16.mxu1 %v2361_v59  ;;  %v2457_v58 = vld [vmem:[%s3374_s1 + $0x3ac] ss:$16 sps:$4 sm:$0xff]   ;;  %v2452_v59 = vld [vmem:[%s3374_s1 + $0x3a0] ss:$16 sps:$4 sm:$0xff]  }
  0x3b   :  { %1304 = vmatpush1.bf16.msra.mxu0 %v2363_v60  ;;  %1468 = vmatpush1.bf16.msra.mxu1 %v2364_v61  ;;  %v2455_v60 = vld [vmem:[%s3374_s1 + $0x3a8] ss:$16 sps:$4 sm:$0xff]   ;;  %v2460_v61 = vld [vmem:[%s3374_s1 + $0x3c4] ss:$16 sps:$4 sm:$0xff]  }
  0x3c   :  { %1305 = vmatprep.subr.bf16.mxu0 %v2365_v62  ;;  %1469 = vmatprep.subr.bf16.mxu1 %v2367_v63  ;;  %v2463_v62 = vld [vmem:[%s3374_s1 + $0x3cc] ss:$16 sps:$4 sm:$0xff]   ;;  %v2458_v63 = vld [vmem:[%s3374_s1 + $0x3c0] ss:$16 sps:$4 sm:$0xff]  }
  0x3f   :  { %1306 = vmatpush1.bf16.msra.mxu0 %v2369_v0  ;;  %1470 = vmatpush1.bf16.msra.mxu1 %v2370_v1  ;;  %v2461_v0 = vld [vmem:[%s3374_s1 + $0x3c8] ss:$16 sps:$4 sm:$0xff]   ;;  %v2466_v1 = vld [vmem:[%s3374_s1 + $0x3e4] ss:$16 sps:$4 sm:$0xff]  }
  0x40   :  { %1316 = vmatprep.subr.bf16.mxu0 %v2376_v2  ;;  %1480 = vmatprep.subr.bf16.mxu1 %v2379_v3  ;;  %v2469_v2 = vld [vmem:[%s3374_s1 + $0x3ec] ss:$16 sps:$4 sm:$0xff]   ;;  %v2464_v3 = vld [vmem:[%s3374_s1 + $0x3e0] ss:$16 sps:$4 sm:$0xff]  }
  0x42   :  { %1308 = vmatmul.mubr.bf16.vlgmr.msra.gmra.mrb[0].mxu0 %v1960_v4  ;;  %1472 = vmatmul.mubr.bf16.vlgmr.msra.gmra.mrb[0].mxu1 %v1960_v4  ;;  %v2467_v4 = vld [vmem:[%s3374_s1 + $0x3e8] ss:$16 sps:$4 sm:$0xff]  }
  0x43   :  { %1317 = vmatpush1.bf16.msra.mxu0 %v2374_v5  ;;  %1481 = vmatpush1.bf16.msra.mxu1 %v2377_v6  ;;  %v2474_v5 = vld [vmem:[%s3374_s1 + $0x404] ss:$16 sps:$4 sm:$0xff]   ;;  %v2477_v6 = vld [vmem:[%s3374_s1 + $0x40c] ss:$16 sps:$4 sm:$0xff]  }
  0x44   :  { %1318 = vmatprep.subr.bf16.mxu0 %v2382_v7  ;;  %1482 = vmatprep.subr.bf16.mxu1 %v2385_v8  ;;  %v1962_v7 = vcombine.low %v2921_v29, %v2921_v29  ;;  %v2472_v8 = vld [vmem:[%s3374_s1 + $0x400] ss:$16 sps:$4 sm:$0xff]   ;;  %v2507_v29 = vld [vmem:[%s3374_s1 + $0x4ac] ss:$16 sps:$4 sm:$0xff]  }
  0x45   :  { %1348 = vmatprep.mubr.bf16.mxu0 %v1963_v32  ;;  %1512 = vmatprep.mubr.bf16.mxu1 %v1963_v32  ;;  %v2510_v32 = vld [vmem:[%s3374_s1 + $0x4c4] ss:$16 sps:$4 sm:$0xff]  }
  0x47   :  { %1319 = vmatpush1.bf16.msra.mxu0 %v2380_v9  ;;  %1483 = vmatpush1.bf16.msra.mxu1 %v2383_v10  ;;  %v2475_v9 = vld [vmem:[%s3374_s1 + $0x408] ss:$16 sps:$4 sm:$0xff]   ;;  %v2480_v10 = vld [vmem:[%s3374_s1 + $0x424] ss:$16 sps:$4 sm:$0xff]  }
  0x48   :  { %1320 = vmatprep.subr.bf16.mxu0 %v2388_v11  ;;  %1484 = vmatprep.subr.bf16.mxu1 %v2391_v12  ;;  %v2483_v11 = vld [vmem:[%s3374_s1 + $0x42c] ss:$16 sps:$4 sm:$0xff]   ;;  %v3062_v12 = vld [vmem:[%s3375_s0 + $0x10] sm:$0xff] }
  0x4b   :  { %1321 = vmatpush1.bf16.msra.mxu0 %v2386_v13  ;;  %1485 = vmatpush1.bf16.msra.mxu1 %v2389_v14  ;;  %v1965_v13 = vcombine.high %v3062_v12, %v3062_v12  ;;  %v2478_v14 = vld [vmem:[%s3374_s1 + $0x420] ss:$16 sps:$4 sm:$0xff]  }
  0x4c   :  { %1322 = vmatprep.subr.bf16.mxu0 %v2394_v15  ;;  %1486 = vmatprep.subr.bf16.mxu1 %v2397_v16  ;;  %v2481_v15 = vld [vmem:[%s3374_s1 + $0x428] ss:$16 sps:$4 sm:$0xff]   ;;  %v2486_v16 = vld [vmem:[%s3374_s1 + $0x444] ss:$16 sps:$4 sm:$0xff]  }
  0x4f   :  { %1323 = vmatpush1.bf16.msra.mxu0 %v2392_v17  ;;  %1487 = vmatpush1.bf16.msra.mxu1 %v2395_v18  ;;  %v2489_v17 = vld [vmem:[%s3374_s1 + $0x44c] ss:$16 sps:$4 sm:$0xff]   ;;  %v2484_v18 = vld [vmem:[%s3374_s1 + $0x440] ss:$16 sps:$4 sm:$0xff]  }
  0x50   :  { %1324 = vmatprep.subr.bf16.mxu0 %v2400_v19  ;;  %1488 = vmatprep.subr.bf16.mxu1 %v2403_v20  ;;  %v2487_v19 = vld [vmem:[%s3374_s1 + $0x448] ss:$16 sps:$4 sm:$0xff]   ;;  %v2492_v20 = vld [vmem:[%s3374_s1 + $0x464] ss:$16 sps:$4 sm:$0xff]  }
  0x53   :  { %1325 = vmatpush1.bf16.msra.mxu0 %v2398_v21  ;;  %1489 = vmatpush1.bf16.msra.mxu1 %v2401_v22  ;;  %v2495_v21 = vld [vmem:[%s3374_s1 + $0x46c] ss:$16 sps:$4 sm:$0xff]   ;;  %v2490_v22 = vld [vmem:[%s3374_s1 + $0x460] ss:$16 sps:$4 sm:$0xff]  }
  0x54   :  { %1326 = vmatprep.subr.bf16.mxu0 %v2406_v23  ;;  %1490 = vmatprep.subr.bf16.mxu1 %v2409_v24  ;;  %v2493_v23 = vld [vmem:[%s3374_s1 + $0x468] ss:$16 sps:$4 sm:$0xff]   ;;  %v2498_v24 = vld [vmem:[%s3374_s1 + $0x484] ss:$16 sps:$4 sm:$0xff]  }
  0x57   :  { %1327 = vmatpush1.bf16.msra.mxu0 %v2404_v25  ;;  %1491 = vmatpush1.bf16.msra.mxu1 %v2407_v26  ;;  %v2501_v25 = vld [vmem:[%s3374_s1 + $0x48c] ss:$16 sps:$4 sm:$0xff]   ;;  %v2496_v26 = vld [vmem:[%s3374_s1 + $0x480] ss:$16 sps:$4 sm:$0xff]  }
  0x58   :  { %1328 = vmatprep.subr.bf16.mxu0 %v2412_v27  ;;  %1492 = vmatprep.subr.bf16.mxu1 %v2415_v28  ;;  %v2499_v27 = vld [vmem:[%s3374_s1 + $0x488] ss:$16 sps:$4 sm:$0xff]   ;;  %v2504_v28 = vld [vmem:[%s3374_s1 + $0x4a4] ss:$16 sps:$4 sm:$0xff]  }
  0x5b   :  { %1329 = vmatpush1.bf16.msra.mxu0 %v2410_v30  ;;  %1493 = vmatpush1.bf16.msra.mxu1 %v2413_v31  ;;  %v2502_v30 = vld [vmem:[%s3374_s1 + $0x4a0] ss:$16 sps:$4 sm:$0xff]   ;;  %v2505_v31 = vld [vmem:[%s3374_s1 + $0x4a8] ss:$16 sps:$4 sm:$0xff]  }
  0x5c   :  { %1330 = vmatprep.subr.bf16.mxu0 %v2418_v33  ;;  %1494 = vmatprep.subr.bf16.mxu1 %v2421_v34  ;;  %v2513_v33 = vld [vmem:[%s3374_s1 + $0x4cc] ss:$16 sps:$4 sm:$0xff]   ;;  %v2508_v34 = vld [vmem:[%s3374_s1 + $0x4c0] ss:$16 sps:$4 sm:$0xff]  }
  0x5f   :  { %1331 = vmatpush1.bf16.msra.mxu0 %v2416_v35  ;;  %1495 = vmatpush1.bf16.msra.mxu1 %v2419_v36  ;;  %v2511_v35 = vld [vmem:[%s3374_s1 + $0x4c8] ss:$16 sps:$4 sm:$0xff]   ;;  %v2516_v36 = vld [vmem:[%s3374_s1 + $0x4e4] ss:$16 sps:$4 sm:$0xff]  }
  0x60   :  { %1332 = vmatprep.subr.bf16.mxu0 %v2424_v37  ;;  %1496 = vmatprep.subr.bf16.mxu1 %v2427_v38  ;;  %v2519_v37 = vld [vmem:[%s3374_s1 + $0x4ec] ss:$16 sps:$4 sm:$0xff]   ;;  %v2514_v38 = vld [vmem:[%s3374_s1 + $0x4e0] ss:$16 sps:$4 sm:$0xff]  }
  0x63   :  { %1333 = vmatpush1.bf16.msra.mxu0 %v2422_v39  ;;  %1497 = vmatpush1.bf16.msra.mxu1 %v2425_v40  ;;  %v2517_v39 = vld [vmem:[%s3374_s1 + $0x4e8] ss:$16 sps:$4 sm:$0xff]   ;;  %v2522_v40 = vld [vmem:[%s3374_s1 + $0x504] ss:$16 sps:$4 sm:$0xff]  }
  0x64   :  { %1334 = vmatprep.subr.bf16.mxu0 %v2430_v41  ;;  %1498 = vmatprep.subr.bf16.mxu1 %v2433_v42  ;;  %v2525_v41 = vld [vmem:[%s3374_s1 + $0x50c] ss:$16 sps:$4 sm:$0xff]   ;;  %v2520_v42 = vld [vmem:[%s3374_s1 + $0x500] ss:$16 sps:$4 sm:$0xff]  }
  0x67   :  { %1335 = vmatpush1.bf16.msra.mxu0 %v2428_v43  ;;  %1499 = vmatpush1.bf16.msra.mxu1 %v2431_v44  ;;  %v2523_v43 = vld [vmem:[%s3374_s1 + $0x508] ss:$16 sps:$4 sm:$0xff]   ;;  %v2528_v44 = vld [vmem:[%s3374_s1 + $0x524] ss:$16 sps:$4 sm:$0xff]  }
  0x68   :  { %1336 = vmatprep.subr.bf16.mxu0 %v2436_v45  ;;  %1500 = vmatprep.subr.bf16.mxu1 %v2439_v46  ;;  %v2531_v45 = vld [vmem:[%s3374_s1 + $0x52c] ss:$16 sps:$4 sm:$0xff]   ;;  %v2526_v46 = vld [vmem:[%s3374_s1 + $0x520] ss:$16 sps:$4 sm:$0xff]  }
  0x6b   :  { %1337 = vmatpush1.bf16.msra.mxu0 %v2434_v47  ;;  %1501 = vmatpush1.bf16.msra.mxu1 %v2437_v48  ;;  %v2529_v47 = vld [vmem:[%s3374_s1 + $0x528] ss:$16 sps:$4 sm:$0xff]   ;;  %v2534_v48 = vld [vmem:[%s3374_s1 + $0x544] ss:$16 sps:$4 sm:$0xff]  }
  0x6c   :  { %1338 = vmatprep.subr.bf16.mxu0 %v2442_v49  ;;  %1502 = vmatprep.subr.bf16.mxu1 %v2445_v50  ;;  %v2537_v49 = vld [vmem:[%s3374_s1 + $0x54c] ss:$16 sps:$4 sm:$0xff]   ;;  %v2532_v50 = vld [vmem:[%s3374_s1 + $0x540] ss:$16 sps:$4 sm:$0xff]  }
  0x6f   :  { %1339 = vmatpush1.bf16.msra.mxu0 %v2440_v51  ;;  %1503 = vmatpush1.bf16.msra.mxu1 %v2443_v52  ;;  %v2535_v51 = vld [vmem:[%s3374_s1 + $0x548] ss:$16 sps:$4 sm:$0xff]   ;;  %v2540_v52 = vld [vmem:[%s3374_s1 + $0x564] ss:$16 sps:$4 sm:$0xff]  }
  0x70   :  { %1340 = vmatprep.subr.bf16.mxu0 %v2448_v53  ;;  %1504 = vmatprep.subr.bf16.mxu1 %v2451_v54  ;;  %v2543_v53 = vld [vmem:[%s3374_s1 + $0x56c] ss:$16 sps:$4 sm:$0xff]   ;;  %v2538_v54 = vld [vmem:[%s3374_s1 + $0x560] ss:$16 sps:$4 sm:$0xff]  }
  0x73   :  { %1341 = vmatpush1.bf16.msra.mxu0 %v2446_v55  ;;  %1505 = vmatpush1.bf16.msra.mxu1 %v2449_v56  ;;  %v2541_v55 = vld [vmem:[%s3374_s1 + $0x568] ss:$16 sps:$4 sm:$0xff]   ;;  %v2546_v56 = vld [vmem:[%s3374_s1 + $0x584] ss:$16 sps:$4 sm:$0xff]  }
  0x74   :  { %1342 = vmatprep.subr.bf16.mxu0 %v2454_v57  ;;  %1506 = vmatprep.subr.bf16.mxu1 %v2457_v58  ;;  %v2549_v57 = vld [vmem:[%s3374_s1 + $0x58c] ss:$16 sps:$4 sm:$0xff]   ;;  %v2544_v58 = vld [vmem:[%s3374_s1 + $0x580] ss:$16 sps:$4 sm:$0xff]  }
  0x77   :  { %1343 = vmatpush1.bf16.msra.mxu0 %v2452_v59  ;;  %1507 = vmatpush1.bf16.msra.mxu1 %v2455_v60  ;;  %v2547_v59 = vld [vmem:[%s3374_s1 + $0x588] ss:$16 sps:$4 sm:$0xff]   ;;  %v2552_v60 = vld [vmem:[%s3374_s1 + $0x5a4] ss:$16 sps:$4 sm:$0xff]  }
  0x78   :  { %1344 = vmatprep.subr.bf16.mxu0 %v2460_v61  ;;  %1508 = vmatprep.subr.bf16.mxu1 %v2463_v62  ;;  %v2555_v61 = vld [vmem:[%s3374_s1 + $0x5ac] ss:$16 sps:$4 sm:$0xff]   ;;  %v2550_v62 = vld [vmem:[%s3374_s1 + $0x5a0] ss:$16 sps:$4 sm:$0xff]  }
  0x7b   :  { %1345 = vmatpush1.bf16.msra.mxu0 %v2458_v63  ;;  %1509 = vmatpush1.bf16.msra.mxu1 %v2461_v0  ;;  %v2553_v63 = vld [vmem:[%s3374_s1 + $0x5a8] ss:$16 sps:$4 sm:$0xff]   ;;  %v2558_v0 = vld [vmem:[%s3374_s1 + $0x5c4] ss:$16 sps:$4 sm:$0xff]  }
  0x7c   :  { %1346 = vmatprep.subr.bf16.mxu0 %v2466_v1  ;;  %1510 = vmatprep.subr.bf16.mxu1 %v2469_v2  ;;  %v2561_v1 = vld [vmem:[%s3374_s1 + $0x5cc] ss:$16 sps:$4 sm:$0xff]   ;;  %v2556_v2 = vld [vmem:[%s3374_s1 + $0x5c0] ss:$16 sps:$4 sm:$0xff]  }
  0x7f   :  { %1347 = vmatpush1.bf16.msra.mxu0 %v2464_v3  ;;  %1511 = vmatpush1.bf16.msra.mxu1 %v2467_v4  ;;  %v2559_v3 = vld [vmem:[%s3374_s1 + $0x5c8] ss:$16 sps:$4 sm:$0xff]   ;;  %v2564_v4 = vld [vmem:[%s3374_s1 + $0x5e4] ss:$16 sps:$4 sm:$0xff]  }
  0x80   :  { %1357 = vmatprep.subr.bf16.mxu0 %v2474_v5  ;;  %1521 = vmatprep.subr.bf16.mxu1 %v2477_v6  ;;  %v2567_v5 = vld [vmem:[%s3374_s1 + $0x5ec] ss:$16 sps:$4 sm:$0xff]   ;;  %v2562_v6 = vld [vmem:[%s3374_s1 + $0x5e0] ss:$16 sps:$4 sm:$0xff]  }
  0x82   :  { %1349 = vmatmul.mubr.bf16.vlgmr.msra.gmra.mrb[0].mxu0 %v1962_v7  ;;  %1513 = vmatmul.mubr.bf16.vlgmr.msra.gmra.mrb[0].mxu1 %v1962_v7  ;;  %v2565_v7 = vld [vmem:[%s3374_s1 + $0x5e8] ss:$16 sps:$4 sm:$0xff]  }
  0x83   :  { %1358 = vmatpush1.bf16.msra.mxu0 %v2472_v8  ;;  %1522 = vmatpush1.bf16.msra.mxu1 %v2475_v9  ;;  %v2572_v8 = vld [vmem:[%s3374_s1 + $0x604] ss:$16 sps:$4 sm:$0xff]   ;;  %v2575_v9 = vld [vmem:[%s3374_s1 + $0x60c] ss:$16 sps:$4 sm:$0xff]  }
  0x84   :  { %1359 = vmatprep.subr.bf16.mxu0 %v2480_v10  ;;  %1523 = vmatprep.subr.bf16.mxu1 %v2483_v11  ;;  %v1964_v10 = vcombine.low %v3062_v12, %v3062_v12  ;;  %v2570_v11 = vld [vmem:[%s3374_s1 + $0x600] ss:$16 sps:$4 sm:$0xff]   ;;  %v2581_v12 = vld [vmem:[%s3374_s1 + $0x62c] ss:$16 sps:$4 sm:$0xff]  }
  0x85   :  { %1389 = vmatprep.mubr.bf16.mxu0 %v1965_v13  ;;  %1553 = vmatprep.mubr.bf16.mxu1 %v1965_v13  ;;  %v2573_v13 = vld [vmem:[%s3374_s1 + $0x608] ss:$16 sps:$4 sm:$0xff]  }
  0x87   :  { %1360 = vmatpush1.bf16.msra.mxu0 %v2478_v14  ;;  %1524 = vmatpush1.bf16.msra.mxu1 %v2481_v15  ;;  %v2578_v14 = vld [vmem:[%s3374_s1 + $0x624] ss:$16 sps:$4 sm:$0xff]   ;;  %v2576_v15 = vld [vmem:[%s3374_s1 + $0x620] ss:$16 sps:$4 sm:$0xff]  }
  0x88   :  { %1361 = vmatprep.subr.bf16.mxu0 %v2486_v16  ;;  %1525 = vmatprep.subr.bf16.mxu1 %v2489_v17  ;;  %v2579_v16 = vld [vmem:[%s3374_s1 + $0x628] ss:$16 sps:$4 sm:$0xff]   ;;  %v2582_v17 = vld [vmem:[%s3376_s3 + $0x40] sm:$0xff]  }
  0x8b   :  { %1362 = vmatpush1.bf16.msra.mxu0 %v2484_v18  ;;  %1526 = vmatpush1.bf16.msra.mxu1 %v2487_v19  ;;  %v2583_v18 = vld [vmem:[%s3376_s3 + $0xc0] sm:$0xff]   ;;  %v2614_v19 = vmov 0  }
  0x8c   :  { %1363 = vmatprep.subr.bf16.mxu0 %v2492_v20  ;;  %1527 = vmatprep.subr.bf16.mxu1 %v2495_v21  ;;  %v2373_v20 = vld [vmem:[%s3375_s0 + $0x18] ss:$0 sps:$4 sm:$0xff]   ;;  %v2584_v21 = vld [vmem:[%s3376_s3] sm:$0xff]  }
  0x8f   :  { %1364 = vmatpush1.bf16.msra.mxu0 %v2490_v22  ;;  %1528 = vmatpush1.bf16.msra.mxu1 %v2493_v23  ;;  %v2585_v22 = vld [vmem:[%s3376_s3 + $0x80] sm:$0xff]   ;;  %v2586_v23 = vld [vmem:[%s3376_s3 + $0x48] sm:$0xff]  }
  0x90   :  { %1365 = vmatprep.subr.bf16.mxu0 %v2498_v24  ;;  %1529 = vmatprep.subr.bf16.mxu1 %v2501_v25  ;;  %v2587_v24 = vld [vmem:[%s3376_s3 + $0xc8] sm:$0xff]  }
  0x91   :  { %v2588_v25 = vld [vmem:[%s3376_s3 + $0x8] sm:$0xff]  }
  0x93   :  { %1366 = vmatpush1.bf16.msra.mxu0 %v2496_v26  ;;  %1530 = vmatpush1.bf16.msra.mxu1 %v2499_v27  ;;  %v2589_v26 = vld [vmem:[%s3376_s3 + $0x88] sm:$0xff]   ;;  %v2590_v27 = vld [vmem:[%s3376_s3 + $0x50] sm:$0xff]  }
  0x94   :  { %1367 = vmatprep.subr.bf16.mxu0 %v2504_v28  ;;  %1531 = vmatprep.subr.bf16.mxu1 %v2507_v29  ;;  %v2591_v28 = vld [vmem:[%s3376_s3 + $0xd0] sm:$0xff]  }
  0x95   :  { %v2592_v29 = vld [vmem:[%s3376_s3 + $0x10] sm:$0xff]  }
  0x97   :  { %1368 = vmatpush1.bf16.msra.mxu0 %v2502_v30  ;;  %1532 = vmatpush1.bf16.msra.mxu1 %v2505_v31  ;;  %v2593_v30 = vld [vmem:[%s3376_s3 + $0x90] sm:$0xff]   ;;  %v2594_v31 = vld [vmem:[%s3376_s3 + $0x58] sm:$0xff]  }
  0x98   :  { %1369 = vmatprep.subr.bf16.mxu0 %v2510_v32  ;;  %1533 = vmatprep.subr.bf16.mxu1 %v2513_v33  ;;  %v2595_v32 = vld [vmem:[%s3376_s3 + $0xd8] sm:$0xff]  }
  0x99   :  { %v2596_v33 = vld [vmem:[%s3376_s3 + $0x18] sm:$0xff]  }
  0x9b   :  { %1370 = vmatpush1.bf16.msra.mxu0 %v2508_v34  ;;  %1534 = vmatpush1.bf16.msra.mxu1 %v2511_v35  ;;  %v2597_v34 = vld [vmem:[%s3376_s3 + $0x98] sm:$0xff]   ;;  %v2598_v35 = vld [vmem:[%s3376_s3 + $0x60] sm:$0xff]  }
  0x9c   :  { %1371 = vmatprep.subr.bf16.mxu0 %v2516_v36  ;;  %1535 = vmatprep.subr.bf16.mxu1 %v2519_v37  ;;  %v2599_v36 = vld [vmem:[%s3376_s3 + $0xe0] sm:$0xff]  }
  0x9d   :  { %v2600_v37 = vld [vmem:[%s3376_s3 + $0x20] sm:$0xff]  }
  0x9f   :  { %1372 = vmatpush1.bf16.msra.mxu0 %v2514_v38  ;;  %1536 = vmatpush1.bf16.msra.mxu1 %v2517_v39  ;;  %v2601_v38 = vld [vmem:[%s3376_s3 + $0xa0] sm:$0xff]   ;;  %v2602_v39 = vld [vmem:[%s3376_s3 + $0x68] sm:$0xff]  }
  0xa0   :  { %1373 = vmatprep.subr.bf16.mxu0 %v2522_v40  ;;  %1537 = vmatprep.subr.bf16.mxu1 %v2525_v41  ;;  %v2603_v40 = vld [vmem:[%s3376_s3 + $0xe8] sm:$0xff]  }
  0xa1   :  { %v2604_v41 = vld [vmem:[%s3376_s3 + $0x28] sm:$0xff]  }
  0xa3   :  { %1374 = vmatpush1.bf16.msra.mxu0 %v2520_v42  ;;  %1538 = vmatpush1.bf16.msra.mxu1 %v2523_v43  ;;  %v2605_v42 = vld [vmem:[%s3376_s3 + $0xa8] sm:$0xff]   ;;  %v2606_v43 = vld [vmem:[%s3376_s3 + $0x70] sm:$0xff]  }
  0xa4   :  { %1375 = vmatprep.subr.bf16.mxu0 %v2528_v44  ;;  %1539 = vmatprep.subr.bf16.mxu1 %v2531_v45  ;;  %v2607_v44 = vld [vmem:[%s3376_s3 + $0xf0] sm:$0xff]  }
  0xa5   :  { %v2608_v45 = vld [vmem:[%s3376_s3 + $0x30] sm:$0xff]  }
  0xa7   :  { %1376 = vmatpush1.bf16.msra.mxu0 %v2526_v46  ;;  %1540 = vmatpush1.bf16.msra.mxu1 %v2529_v47  ;;  %v2609_v46 = vld [vmem:[%s3376_s3 + $0xb0] sm:$0xff]   ;;  %v2610_v47 = vld [vmem:[%s3376_s3 + $0x78] sm:$0xff]  }
  0xa8   :  { %1377 = vmatprep.subr.bf16.mxu0 %v2534_v48  ;;  %1541 = vmatprep.subr.bf16.mxu1 %v2537_v49  ;;  %v2611_v48 = vld [vmem:[%s3376_s3 + $0xf8] sm:$0xff]  }
  0xa9   :  { %v2612_v49 = vld [vmem:[%s3376_s3 + $0x38] sm:$0xff]  }
  0xab   :  { %1378 = vmatpush1.bf16.msra.mxu0 %v2532_v50  ;;  %1542 = vmatpush1.bf16.msra.mxu1 %v2535_v51  ;;  %v2613_v50 = vld [vmem:[%s3376_s3 + $0xb8] sm:$0xff]   ;;  %v227_v51 = vlaneseq }
  0xac   :  { %1379 = vmatprep.subr.bf16.mxu0 %v2540_v52  ;;  %1543 = vmatprep.subr.bf16.mxu1 %v2543_v53 }
  0xad   :  { %v228_v52 = vshrl.u32 %v227_v51, 7 }
  0xaf   :  { %1380 = vmatpush1.bf16.msra.mxu0 %v2538_v54  ;;  %1544 = vmatpush1.bf16.msra.mxu1 %v2541_v55  ;;  %v229_v53 = vsub.s32 0, %v228_v52  ;;  %v237_v54 = vsub.s32 2, %v228_v52  ;;  %v225_v55 = vld [vmem:[%s3377_s2] sm:$0xf] }
  0xb0   :  { %1381 = vmatprep.subr.bf16.mxu0 %v2546_v56  ;;  %1545 = vmatprep.subr.bf16.mxu1 %v2549_v57  ;;  %v233_v56 = vsub.s32 1, %v228_v52  ;;  %v241_v57 = vsub.s32 3, %v228_v52 }
  0xb3   :  { %1382 = vmatpush1.bf16.msra.mxu0 %v2544_v58  ;;  %1546 = vmatpush1.bf16.msra.mxu1 %v2547_v59  ;;  %v230_v58 = vrot.slane %v225_v55, %v229_v53  ;;  %v238_v59 = vrot.slane %v225_v55, %v237_v54 }
  0xb4   :  { %1383 = vmatprep.subr.bf16.mxu0 %v2552_v60  ;;  %1547 = vmatprep.subr.bf16.mxu1 %v2555_v61  ;;  %v234_v60 = vrot.slane %v225_v55, %v233_v56  ;;  %v242_v61 = vrot.slane %v225_v55, %v241_v57 }
  0xb7   :  { %1384 = vmatpush1.bf16.msra.mxu0 %v2550_v62  ;;  %1548 = vmatpush1.bf16.msra.mxu1 %v2553_v63 }
  0xb8   :  { %1385 = vmatprep.subr.bf16.mxu0 %v2558_v0  ;;  %1549 = vmatprep.subr.bf16.mxu1 %v2561_v1 }
  0xbb   :  { %1386 = vmatpush1.bf16.msra.mxu0 %v2556_v2  ;;  %1550 = vmatpush1.bf16.msra.mxu1 %v2559_v3 }
  0xbc   :  { %1387 = vmatprep.subr.bf16.mxu0 %v2564_v4  ;;  %1551 = vmatprep.subr.bf16.mxu1 %v2567_v5 }
  0xbf   :  { %1388 = vmatpush1.bf16.msra.mxu0 %v2562_v6  ;;  %1552 = vmatpush1.bf16.msra.mxu1 %v2565_v7 }
  0xc0   :  { %1398 = vmatprep.subr.bf16.mxu0 %v2572_v8  ;;  %1562 = vmatprep.subr.bf16.mxu1 %v2575_v9 }
  0xc2   :  { %1390 = vmatmul.mubr.bf16.vlgmr.msra.gmra.mrb[0].mxu0 %v1964_v10  ;;  %1554 = vmatmul.mubr.bf16.vlgmr.msra.gmra.mrb[0].mxu1 %v1964_v10 }
  0xc3   :  { %1399 = vmatpush1.bf16.msra.mxu0 %v2570_v11  ;;  %1563 = vmatpush1.bf16.msra.mxu1 %v2573_v13 }
  0xc4   :  { %1400 = vmatprep.subr.bf16.mxu0 %v2578_v14  ;;  %1564 = vmatprep.subr.bf16.mxu1 %v2581_v12 }
  0xc5   :  { %1430 = vmatprep.mubr.bf16.mxu0 %v2614_v19  ;;  %1594 = vmatprep.mubr.bf16.mxu1 %v2614_v19 }
  0xc7   :  { %1401 = vmatpush1.bf16.msra.mxu0 %v2576_v15  ;;  %1565 = vmatpush1.bf16.msra.mxu1 %v2579_v16 }
  0xc8   :  { %2202 = vmatprep.subr.bf16.mxu0 %v2582_v17  ;;  %2224 = vmatprep.subr.bf16.mxu1 %v2583_v18 }
  0xce   :  { %2167 = vmatmul.mubr.msk.bf16.vlgmr.msra.gmra.mrb[0].mxu0 %vm1271_vm0, %v2373_v20  ;;  %2168 = vmatmul.mubr.msk.bf16.vlgmr.msra.gmra.mrb[0].mxu1 %vm1271_vm0, %v2373_v20  ;;  %v2169_v20 = vld [vmem:[%s3378_s4] ss:$0 sm:$0xff] }
  0xcf   :  { %2203 = vmatpush3.bf16.msra.mxu0 %v2584_v21  ;;  %2225 = vmatpush3.bf16.msra.mxu1 %v2585_v22 }
  0xd0   :  { %2204 = vmatprep.subr.bf16.mxu0 %v2586_v23  ;;  %2226 = vmatprep.subr.bf16.mxu1 %v2587_v24 }
  0xd3   :  { %2205 = vmatpush3.bf16.msra.mxu0 %v2588_v25  ;;  %2227 = vmatpush3.bf16.msra.mxu1 %v2589_v26 }
  0xd4   :  { %2206 = vmatprep.subr.bf16.mxu0 %v2590_v27  ;;  %2228 = vmatprep.subr.bf16.mxu1 %v2591_v28 }
  0xd7   :  { %2207 = vmatpush3.bf16.msra.mxu0 %v2592_v29  ;;  %2229 = vmatpush3.bf16.msra.mxu1 %v2593_v30 }
  0xd8   :  { %2208 = vmatprep.subr.bf16.mxu0 %v2594_v31  ;;  %2230 = vmatprep.subr.bf16.mxu1 %v2595_v32 }
  0xdb   :  { %2209 = vmatpush3.bf16.msra.mxu0 %v2596_v33  ;;  %2231 = vmatpush3.bf16.msra.mxu1 %v2597_v34 }
  0xdc   :  { %2210 = vmatprep.subr.bf16.mxu0 %v2598_v35  ;;  %2232 = vmatprep.subr.bf16.mxu1 %v2599_v36 }
  0xdf   :  { %2211 = vmatpush3.bf16.msra.mxu0 %v2600_v37  ;;  %2233 = vmatpush3.bf16.msra.mxu1 %v2601_v38 }
  0xe0   :  { %2212 = vmatprep.subr.bf16.mxu0 %v2602_v39  ;;  %2234 = vmatprep.subr.bf16.mxu1 %v2603_v40 }
  0xe3   :  { %2213 = vmatpush3.bf16.msra.mxu0 %v2604_v41  ;;  %2235 = vmatpush3.bf16.msra.mxu1 %v2605_v42 }
  0xe4   :  { %2214 = vmatprep.subr.bf16.mxu0 %v2606_v43  ;;  %2236 = vmatprep.subr.bf16.mxu1 %v2607_v44 }
  0xe7   :  { %2215 = vmatpush3.bf16.msra.mxu0 %v2608_v45  ;;  %2237 = vmatpush3.bf16.msra.mxu1 %v2609_v46 }
  0xe8   :  { %2216 = vmatprep.subr.bf16.mxu0 %v2610_v47  ;;  %2238 = vmatprep.subr.bf16.mxu1 %v2611_v48 }
  0xeb   :  { %2217 = vmatpush3.bf16.msra.mxu0 %v2612_v49  ;;  %2239 = vmatpush3.bf16.msra.mxu1 %v2613_v50 }
 0x1a1   :  { %v1432_v62 = vpop.f32.mrb[0].mxu0  ;;  %v1596_v63 = vpop.f32.mrb[0].mxu1 }
 0x1a2   :  { %v2246_v0 = vadd.f32 %v1432_v62, %v230_v58  ;;  %v2248_v1 = vadd.f32 %v1596_v63, %v238_v59  ;;  %v1434_v2 = vpop.f32.mrb[1].mxu0  ;;  %v1598_v3 = vpop.f32.mrb[1].mxu1 }
 0x1a3   :  { %v2247_v4 = vadd.f32 %v1434_v2, %v234_v60  ;;  %v2249_v5 = vadd.f32 %v1598_v3, %v242_v61  ;;  %v1436_v6 = vpop.f32.mrb[2].mxu0  ;;  %v1600_v7 = vpop.f32.mrb[2].mxu1 }
 0x1a4   :  { %v1603_v8 = vmax.f32 %v2246_v0, 0.0  ;;  %v1605_v9 = vmax.f32 %v2248_v1, 0.0  ;;  %v1437_v10 = vpop.f32.mrb[3].mxu0  ;;  %v1601_v11 = vpop.f32.mrb[3].mxu1 }
 0x1a5   :  { %v1604_v13 = vmax.f32 %v2247_v4, 0.0  ;;  %v1606_v14 = vmax.f32 %v2249_v5, 0.0 }
 0x1a6   :  { %v1607_v16 = vpack.c.bf16 %v1603_v8, %v1603_v8  ;;  %v1609_v17 = vpack.c.bf16 %v1605_v9, %v1605_v9 }
 0x1a7   :  { %v1608_v12 = vpack.c.bf16 %v1604_v13, %v1604_v13  ;;  %v1610_v15 = vpack.c.bf16 %v1606_v14, %v1606_v14 }
 0x1a9   :  { %1906 = vmatprep.mubr.bf16.mxu0 %v1608_v12  ;;  %1946 = vmatprep.mubr.bf16.mxu1 %v1610_v15 }
 0x1aa   :  { %1907 = vmatmul.mubr.bf16.vlgmr.msra.gmra.mrb[4].mxu0 %v1607_v16  ;;  %1947 = vmatmul.mubr.bf16.vlgmr.msra.gmra.mrb[4].mxu1 %v1609_v17 }
 0x27d   :  { %v2218_v18 = vpop.f32.mrb[4].mxu0  ;;  %v2240_v19 = vpop.f32.mrb[4].mxu1 }
 0x27e   :  { %v2219_v21 = vpop.f32.mrb[5].mxu0  ;;  %v2241_v22 = vpop.f32.mrb[5].mxu1 }
 0x27f   :  { %v2220_v23 = vadd.f32 %v2219_v21, %v2218_v18  ;;  %v2242_v24 = vadd.f32 %v2241_v22, %v2240_v19  ;;  %v2221_v25 = vpop.f32.mrb[6].mxu0  ;;  %v2243_v26 = vpop.f32.mrb[6].mxu1 }
 0x280   :  { %v2222_v27 = vpop.f32.mrb[7].mxu0  ;;  %v2244_v28 = vpop.f32.mrb[7].mxu1 }
 0x281   :  { %v1909_v29 = vadd.f32 %v2220_v23, %v2169_v20 }
 0x283   :  { %v1949_v30 = vadd.f32 %v2242_v24, %v1909_v29 }
 0x285   :  { %1955 = vst.msk [vmem:[%s3379_s5] sm:$0xff] %vm1954_vm1, %v1949_v30 }

</bundles_post_ra>
